<compile_context>
chip_gen: v7x
topology: tpu7x:2x2x1
jax: 0.10.0
libtpu: 0.0.40
codegen_flags: <defaults>
</compile_context>

<pallas_src>
import functools

import jax
import jax.numpy as jnp
from jax import lax
from jax.experimental import pallas as pl
from jax.experimental.pallas import tpu as pltpu


def _round_up(n, m):
    return ((n + m - 1) // m) * m


# ----------------------------------------------------------------------------
# Single fused kernel: conv stack + GRU input projection + GRU recurrence
# ----------------------------------------------------------------------------
def _fused_kernel(x_cols_ref, w1_ref, b1_ref, wblk_ref, bblk_ref,
                  wih_ref, bih_ref, whh_ref, bhn_ref,
                  h_ref,
                  act_ref, act2_ref, gi_ref,
                  *, nb, B, T, K2, pad2, off, seg, CP, HP, mxu_bf16):
    f32 = jnp.float32
    cvt = (lambda a: a.astype(jnp.bfloat16)) if mxu_bf16 else (lambda a: a)
    GW = B * HP                        # folded (batch-on-lanes) gate width

    # ---- zero ONLY the halo rows of the padded activation scratches --------
    tail = seg - off - T
    zh = jnp.zeros((off, CP), f32)
    zt = jnp.zeros((tail, CP), f32) if tail else None
    for b in range(B):
        act_ref[pl.ds(b * seg, off), :] = zh
        act2_ref[pl.ds(b * seg, off), :] = zh
        if tail:
            act_ref[pl.ds(b * seg + off + T, tail), :] = zt
            act2_ref[pl.ds(b * seg + off + T, tail), :] = zt

    # ---- conv1: im2col slab built in the wrapper -> one MXU matmul + ReLU --
    y = jnp.dot(cvt(x_cols_ref[...]), cvt(w1_ref[...]),
                preferred_element_type=f32)
    y = jnp.maximum(y + b1_ref[...], 0.0)                       # (B*T, CP)
    for b in range(B):                                          # aligned stores
        act_ref[pl.ds(b * seg + off, T), :] = y[b * T:(b + 1) * T, :]

    # ---- TemporalBlock convs: tap-accumulate matmuls, VMEM-resident --------
    def conv_layer(src_ref, dst_ref, layer_idx, residual):
        accs = [jnp.zeros((T, CP), f32) for _ in range(B)]
        for k in range(K2):                                     # taps
            r0 = (layer_idx * K2 + k) * CP
            w_k = cvt(wblk_ref[pl.ds(r0, CP), :])               # (CP, CP)
            for b in range(B):
                s0 = b * seg + off - pad2 + k
                accs[b] = accs[b] + jnp.dot(cvt(src_ref[pl.ds(s0, T), :]), w_k,
                                            preferred_element_type=f32)
        bias = bblk_ref[pl.ds(layer_idx, 1), :]                 # (1, CP)
        for b in range(B):
            d0 = b * seg + off
            out = jnp.maximum(accs[b] + bias, 0.0)
            if residual:
                out = dst_ref[pl.ds(d0, T), :] + out
            dst_ref[pl.ds(d0, T), :] = out                      # aligned store

    for i in range(nb):
        conv_layer(act_ref, act2_ref, 2 * i, residual=False)
        conv_layer(act2_ref, act_ref, 2 * i + 1, residual=True)

    # ---- GRU input projection for ALL timesteps (hoisted off the serial
    #      recurrence).  Stored time-major, batch folded onto lanes:
    #      gi[t, g*GW + b*HP + j]  (every chunk 128-lane aligned).
    wih = cvt(wih_ref[...])                                     # (CP, 3*HP)
    bih = bih_ref[...]                                          # (1, 3*HP)
    for b in range(B):
        xg_b = act_ref[pl.ds(b * seg + off, T), :]              # (T, CP)
        gi_b = jnp.dot(cvt(xg_b), wih, preferred_element_type=f32) + bih
        for g in range(3):
            gi_ref[:, pl.ds(g * GW + b * HP, HP)] = gi_b[:, g * HP:(g + 1) * HP]

    # ---- GRU recurrence (serial).  h is (1, B*HP) with batch on lanes;
    #      whh is block-diagonal (B*HP, 3*B*HP).  Kept f32: latency-bound.
    whh = whh_ref[...]                                          # (GW, 3*GW)
    bhn = bhn_ref[...]                                          # (1, GW)

    def step(t, h):
        g_row = gi_ref[pl.ds(t, 1), :]                          # (1, 3*GW)
        gh = jnp.dot(h, whh, preferred_element_type=f32)        # (1, 3*GW)
        r = jax.nn.sigmoid(g_row[:, :GW] + gh[:, :GW])
        z = jax.nn.sigmoid(g_row[:, GW:2 * GW] + gh[:, GW:2 * GW])
        n = jnp.tanh(g_row[:, 2 * GW:] + r * (gh[:, 2 * GW:] + bhn))
        return (1.0 - z) * n + z * h

    h0 = jnp.zeros((1, GW), f32)
    h_ref[...] = lax.fori_loop(0, T, step, h0,
                               unroll=(T if T <= 32 else 8))


def _fused_forward(x_cols, w1p, b1p, wblk, bblk, wih_p, bih_p, whh_f, bhn_f,
                   *, B, T, K2, pad2, off, seg, CP, HP, nb, mxu_bf16):
    GW = B * HP
    inputs = [x_cols, w1p, b1p, wblk, bblk, wih_p, bih_p, whh_f, bhn_f]
    in_specs = [pl.BlockSpec(a.shape, lambda i: (0, 0)) for a in inputs]
    kernel = functools.partial(_fused_kernel, nb=nb, B=B, T=T, K2=K2,
                               pad2=pad2, off=off, seg=seg, CP=CP, HP=HP,
                               mxu_bf16=mxu_bf16)
    return pl.pallas_call(
        kernel,
        out_shape=jax.ShapeDtypeStruct((1, GW), jnp.float32),
        grid_spec=pltpu.PrefetchScalarGridSpec(
            num_scalar_prefetch=0,
            grid=(1,),
            in_specs=in_specs,
            out_specs=pl.BlockSpec((1, GW), lambda i: (0, 0)),
            scratch_shapes=[pltpu.VMEM((B * seg, CP), jnp.float32),
                            pltpu.VMEM((B * seg, CP), jnp.float32),
                            pltpu.VMEM((T, 3 * GW), jnp.float32)],
        ),
        compiler_params=pltpu.CompilerParams(
            dimension_semantics=("arbitrary",)),
    )(*inputs)


# ----------------------------------------------------------------------------
# Wrapper: pack weights into lane-dense padded slabs and call the fused kernel
# ----------------------------------------------------------------------------
def recurrent_dance_classifier_forward(x_ncw, params, mxu_bf16=False):
    # x_ncw: (B, C_in, T) as in PyTorch -> channel-last (B, T, C_in)
    x = jnp.transpose(x_ncw, (0, 2, 1)).astype(jnp.float32)
    B, T, Cin = x.shape

    w1 = params["conv1_w"]                      # (K1, Cin, C_H)
    K1, _, C_H = w1.shape
    assert K1 % 2 == 1, "conv1 kernel must be odd for 'same' padding"
    pad1 = (K1 - 1) // 2
    CP = _round_up(C_H, 128)                    # lane-padded channel width

    blocks = params["blocks"]
    nb = len(blocks)
    K2 = blocks[0]["conv1_w"].shape[0] if nb else 1
    assert K2 % 2 == 1, "block kernel must be odd for 'same' padding"
    pad2 = (K2 - 1) // 2
    off = max(8, _round_up(pad2, 8))            # 8-aligned front halo
    seg = _round_up(off + T + pad2, 8)          # per-batch padded segment

    H = params["gru_w_hh"].shape[1]
    HP = _round_up(H, 128)                      # per-gate lane-padded width
    GW = B * HP

    # ---- conv1 im2col slab (built in the wrapper), lane-padded to 128 ------
    xpad = jnp.pad(x, ((0, 0), (pad1, pad1), (0, 0)))
    x_cols = jnp.concatenate([xpad[:, k:k + T, :] for k in range(K1)],
                             axis=-1).reshape(B * T, K1 * Cin)
    KC = _round_up(K1 * Cin, 128)
    x_cols = jnp.pad(x_cols, ((0, 0), (0, KC - K1 * Cin)))

    w1p = jnp.zeros((KC, CP), jnp.float32).at[:K1 * Cin, :C_H].set(
        w1.reshape(K1 * Cin, C_H))
    b1p = jnp.zeros((1, CP), jnp.float32).at[0, :C_H].set(params["conv1_b"])

    # ---- pack all block conv weights / biases into two slabs ----------------
    nlayers = max(2 * nb, 1)
    wblk = jnp.zeros((nlayers * K2 * CP, CP), jnp.float32)
    bblk = jnp.zeros((nlayers, CP), jnp.float32)
    for i, blk in enumerate(blocks):
        for l, (wn, bn) in enumerate((("conv1_w", "conv1_b"),
                                      ("conv2_w", "conv2_b"))):
            li = 2 * i + l
            w = blk[wn]                         # (K2, C_H, C_H)
            for k in range(K2):
                r0 = (li * K2 + k) * CP
                wblk = wblk.at[r0:r0 + C_H, :C_H].set(w[k])
            bblk = bblk.at[li, :C_H].set(blk[bn])

    # ---- GRU packing: gate order [r, z, n], each gate padded to HP lanes ---
    w_ih = params["gru_w_ih"]                   # (3H, C_H)
    w_hh = params["gru_w_hh"]                   # (3H, H)
    b_ih = params["gru_b_ih"]
    b_hh = params["gru_b_hh"]

    wih_p = jnp.zeros((CP, 3 * HP), jnp.float32)
    bih_p = jnp.zeros((1, 3 * HP), jnp.float32)
    for g in range(3):
        wih_p = wih_p.at[:C_H, g * HP:g * HP + H].set(w_ih[g * H:(g + 1) * H, :].T)
        bias_g = b_ih[g * H:(g + 1) * H]
        if g < 2:                               # fold b_hr, b_hz into b_ih
            bias_g = bias_g + b_hh[g * H:(g + 1) * H]
        bih_p = bih_p.at[0, g * HP:g * HP + H].set(bias_g)

    # block-diagonal (batch-folded) recurrence weight and n-gate hidden bias
    whh_t = w_hh.T                              # (H, 3H)
    whh_f = jnp.zeros((GW, 3 * GW), jnp.float32)
    bhn_f = jnp.zeros((1, GW), jnp.float32)
    for b in range(B):
        bhn_f = bhn_f.at[0, b * HP:b * HP + H].set(b_hh[2 * H:3 * H])
        for g in range(3):
            whh_f = whh_f.at[b * HP:b * HP + H,
                             g * GW + b * HP:g * GW + b * HP + H].set(
                whh_t[:, g * H:(g + 1) * H])

    h = _fused_forward(x_cols, w1p, b1p, wblk, bblk, wih_p, bih_p, whh_f,
                       bhn_f, B=B, T=T, K2=K2, pad2=pad2, off=off, seg=seg,
                       CP=CP, HP=HP, nb=nb, mxu_bf16=mxu_bf16)   # (1, B*HP)
    return h.reshape(B, HP)[:, :H]


# ----------------------------------------------------------------------------
# Pure-JAX reference (mirrors PyTorch semantics) for validation
# ----------------------------------------------------------------------------
def _ref_conv1d(x, w, b, residual=None):
    B, T, Cin = x.shape
    K, _, Cout = w.shape
    pad = (K - 1) // 2
    xpad = jnp.pad(x, ((0, 0), (pad, pad), (0, 0)))
    out = jnp.zeros((B, T, Cout), jnp.float32)
    for k in range(K):
        out = out + jnp.einsum("bti,io->bto", xpad[:, k:k + T, :], w[k])
    out = jnp.maximum(out + b.reshape(1, 1, Cout), 0.0)
    if residual is not None:
        out = residual + out
    return out


def _ref_gru(x_seq, w_ih, w_hh, b_ih, b_hh):
    B, T, C = x_seq.shape
    H = w_hh.shape[1]

    def step(h, x_t):
        gi = x_t @ w_ih.T + b_ih
        gh = h @ w_hh.T + b_hh
        i_r, i_z, i_n = gi[:, :H], gi[:, H:2 * H], gi[:, 2 * H:]
        h_r, h_z, h_n = gh[:, :H], gh[:, H:2 * H], gh[:, 2 * H:]
        r = jax.nn.sigmoid(i_r + h_r)
        z = jax.nn.sigmoid(i_z + h_z)
        n = jnp.tanh(i_n + r * h_n)
        return (1.0 - z) * n + z * h, None

    h0 = jnp.zeros((B, H), jnp.float32)
    h_fin, _ = lax.scan(step, h0, jnp.transpose(x_seq, (1, 0, 2)))
    return h_fin


def _ref_forward(x_ncw, params):
    x = jnp.transpose(x_ncw, (0, 2, 1))
    x = _ref_conv1d(x, params["conv1_w"], params["conv1_b"])
    for blk in params["blocks"]:
        x1 = _ref_conv1d(x, blk["conv1_w"], blk["conv1_b"])
        x = _ref_conv1d(x1, blk["conv2_w"], blk["conv2_b"], residual=x)
    return _ref_gru(x, params["gru_w_ih"], params["gru_w_hh"],
                    params["gru_b_ih"], params["gru_b_hh"])


# ----------------------------------------------------------------------------
# Deterministic synthetic parameters (shapes follow the module __init__)
# ----------------------------------------------------------------------------
def init_params(key, channels_in, channels_h, output_code,
                init_ker=9, n_blocks=1, block_ker=7):
    def nrm(k, shape, scale=0.1):
        return scale * jax.random.normal(k, shape, jnp.float32)

    keys = jax.random.split(key, 6 + 4 * n_blocks)
    ki = iter(keys)
    params = {
        # conv weights stored as (K, Cin, Cout) = transpose of torch (Cout,Cin,K)
        "conv1_w": nrm(next(ki), (init_ker, channels_in, channels_h)),
        "conv1_b": nrm(next(ki), (channels_h,)),
        "blocks": [],
        # GRU: PyTorch layout (3H, in) / (3H, H), gate order [r, z, n]
        "gru_w_ih": nrm(next(ki), (3 * output_code, channels_h)),
        "gru_w_hh": nrm(next(ki), (3 * output_code, output_code)),
        "gru_b_ih": nrm(next(ki), (3 * output_code,)),
        "gru_b_hh": nrm(next(ki), (3 * output_code,)),
    }
    for _ in range(n_blocks):
        params["blocks"].append({
            "conv1_w": nrm(next(ki), (block_ker, channels_h, channels_h)),
            "conv1_b": nrm(next(ki), (channels_h,)),
            "conv2_w": nrm(next(ki), (block_ker, channels_h, channels_h)),
            "conv2_b": nrm(next(ki), (channels_h,)),
        })
    return params


if __name__ == "__main__":
    B, C_IN, T = 2, 4, 16
    C_H, OUT_CODE = 32, 8

    key = jax.random.PRNGKey(0)
    pkey, xkey = jax.random.split(key)
    params = init_params(pkey, C_IN, C_H, OUT_CODE, init_ker=9, n_blocks=1)
    x = jax.random.normal(xkey, (B, C_IN, T), jnp.float32)   # NCW like PyTorch

    ref = jax.block_until_ready(_ref_forward(x, params))

    # f32 MXU operands: tight check against the PyTorch-equivalent reference
    fwd = jax.jit(recurrent_dance_classifier_forward)
    out = jax.block_until_ready(fwd(x, params))
    assert out.shape == (B, OUT_CODE), out.shape
    err = float(jnp.max(jnp.abs(out - ref)))
    assert err < 1e-4, f"f32 max err {err}"

    # bf16 MXU operands (v6e/v7x throughput path), looser tolerance
    fwd_bf16 = jax.jit(functools.partial(recurrent_dance_classifier_forward,
                                         mxu_bf16=True))
    out_bf16 = jax.block_until_ready(fwd_bf16(x, params))
    err_bf16 = float(jnp.max(jnp.abs(out_bf16 - ref)))
    assert err_bf16 < 5e-2, f"bf16 max err {err_bf16}"

    print("KERNEL_OK")
</pallas_src>

<mosaic_0001>
module attributes {stable_mosaic.version = 11 : i64} {
  func.func @_fused_kernel(%arg0: i32, %arg1: memref<32x128xf32, #tpu.memory_space<vmem>>, %arg2: memref<128x128xf32, #tpu.memory_space<vmem>>, %arg3: memref<1x128xf32, #tpu.memory_space<vmem>>, %arg4: memref<1792x128xf32, #tpu.memory_space<vmem>>, %arg5: memref<2x128xf32, #tpu.memory_space<vmem>>, %arg6: memref<128x384xf32, #tpu.memory_space<vmem>>, %arg7: memref<1x384xf32, #tpu.memory_space<vmem>>, %arg8: memref<256x768xf32, #tpu.memory_space<vmem>>, %arg9: memref<1x256xf32, #tpu.memory_space<vmem>>, %arg10: memref<1x256xf32, #tpu.memory_space<vmem>>, %arg11: memref<64x128xf32, #tpu.memory_space<vmem>>, %arg12: memref<64x128xf32, #tpu.memory_space<vmem>>, %arg13: memref<16x768xf32, #tpu.memory_space<vmem>>) attributes {dimension_semantics = [#tpu.dimension_semantics<arbitrary>], iteration_bounds = array<i64: 1>, scalar_prefetch = 0 : i64, scratch_operands = 3 : i64, tpu.core_type = #tpu.core_type<tc>, window_params = [{pipeline_mode = #tpu.pipeline_mode<synchronous>, transform_indices = @transform_0, window_bounds = array<i64: 32, 128>}, {pipeline_mode = #tpu.pipeline_mode<synchronous>, transform_indices = @transform_1, window_bounds = array<i64: 128, 128>}, {pipeline_mode = #tpu.pipeline_mode<synchronous>, transform_indices = @transform_2, window_bounds = array<i64: 1, 128>}, {pipeline_mode = #tpu.pipeline_mode<synchronous>, transform_indices = @transform_3, window_bounds = array<i64: 1792, 128>}, {pipeline_mode = #tpu.pipeline_mode<synchronous>, transform_indices = @transform_4, window_bounds = array<i64: 2, 128>}, {pipeline_mode = #tpu.pipeline_mode<synchronous>, transform_indices = @transform_5, window_bounds = array<i64: 128, 384>}, {pipeline_mode = #tpu.pipeline_mode<synchronous>, transform_indices = @transform_6, window_bounds = array<i64: 1, 384>}, {pipeline_mode = #tpu.pipeline_mode<synchronous>, transform_indices = @transform_7, window_bounds = array<i64: 256, 768>}, {pipeline_mode = #tpu.pipeline_mode<synchronous>, transform_indices = @transform_8, window_bounds = array<i64: 1, 256>}, {pipeline_mode = #tpu.pipeline_mode<synchronous>, transform_indices = @transform_9, window_bounds = array<i64: 1, 256>}]} {
    %cst = arith.constant 0.000000e+00 : f32
    %0 = vector.broadcast %cst : f32 to vector<8x128xf32>
    %cst_0 = arith.constant 0.000000e+00 : f32
    %1 = vector.broadcast %cst_0 : f32 to vector<8x128xf32>
    %c0 = arith.constant 0 : index
    %c0_1 = arith.constant 0 : index
    %2 = vector.load %arg11[%c0, %c0_1] : memref<64x128xf32, #tpu.memory_space<vmem>>, vector<8x128xf32>
    tpu.vector_store %arg11[%c0, %c0_1], %0 {strides = array<i32>} : memref<64x128xf32, #tpu.memory_space<vmem>>, vector<8x128xf32>,
    %c0_2 = arith.constant 0 : index
    %c0_3 = arith.constant 0 : index
    %3 = vector.load %arg12[%c0_2, %c0_3] : memref<64x128xf32, #tpu.memory_space<vmem>>, vector<8x128xf32>
    tpu.vector_store %arg12[%c0_2, %c0_3], %0 {strides = array<i32>} : memref<64x128xf32, #tpu.memory_space<vmem>>, vector<8x128xf32>,
    %c24 = arith.constant 24 : index
    %c0_4 = arith.constant 0 : index
    %4 = vector.load %arg11[%c24, %c0_4] : memref<64x128xf32, #tpu.memory_space<vmem>>, vector<8x128xf32>
    tpu.vector_store %arg11[%c24, %c0_4], %1 {strides = array<i32>} : memref<64x128xf32, #tpu.memory_space<vmem>>, vector<8x128xf32>,
    %c24_5 = arith.constant 24 : index
    %c0_6 = arith.constant 0 : index
    %5 = vector.load %arg12[%c24_5, %c0_6] : memref<64x128xf32, #tpu.memory_space<vmem>>, vector<8x128xf32>
    tpu.vector_store %arg12[%c24_5, %c0_6], %1 {strides = array<i32>} : memref<64x128xf32, #tpu.memory_space<vmem>>, vector<8x128xf32>,
    %c32 = arith.constant 32 : index
    %c0_7 = arith.constant 0 : index
    %6 = vector.load %arg11[%c32, %c0_7] : memref<64x128xf32, #tpu.memory_space<vmem>>, vector<8x128xf32>
    tpu.vector_store %arg11[%c32, %c0_7], %0 {strides = array<i32>} : memref<64x128xf32, #tpu.memory_space<vmem>>, vector<8x128xf32>,
    %c32_8 = arith.constant 32 : index
    %c0_9 = arith.constant 0 : index
    %7 = vector.load %arg12[%c32_8, %c0_9] : memref<64x128xf32, #tpu.memory_space<vmem>>, vector<8x128xf32>
    tpu.vector_store %arg12[%c32_8, %c0_9], %0 {strides = array<i32>} : memref<64x128xf32, #tpu.memory_space<vmem>>, vector<8x128xf32>,
    %c56 = arith.constant 56 : index
    %c0_10 = arith.constant 0 : index
    %8 = vector.load %arg11[%c56, %c0_10] : memref<64x128xf32, #tpu.memory_space<vmem>>, vector<8x128xf32>
    tpu.vector_store %arg11[%c56, %c0_10], %1 {strides = array<i32>} : memref<64x128xf32, #tpu.memory_space<vmem>>, vector<8x128xf32>,
    %c56_11 = arith.constant 56 : index
    %c0_12 = arith.constant 0 : index
    %9 = vector.load %arg12[%c56_11, %c0_12] : memref<64x128xf32, #tpu.memory_space<vmem>>, vector<8x128xf32>
    tpu.vector_store %arg12[%c56_11, %c0_12], %1 {strides = array<i32>} : memref<64x128xf32, #tpu.memory_space<vmem>>, vector<8x128xf32>,
    %c0_13 = arith.constant 0 : index
    %c0_14 = arith.constant 0 : index
    %10 = vector.load %arg1[%c0_13, %c0_14] : memref<32x128xf32, #tpu.memory_space<vmem>>, vector<32x128xf32>
    %c0_15 = arith.constant 0 : index
    %c0_16 = arith.constant 0 : index
    %11 = vector.load %arg2[%c0_15, %c0_16] : memref<128x128xf32, #tpu.memory_space<vmem>>, vector<128x128xf32>
    %cst_17 = arith.constant dense<0.000000e+00> : vector<32x128xf32>
    %12 = tpu.matmul %10, %11, %cst_17 {dimension_numbers = #tpu.dot_dimension_numbers<[1], [0], [0], [1], [0, 0, 1, 1], [], []>} : vector<32x128xf32>, vector<128x128xf32>, vector<32x128xf32> -> vector<32x128xf32>
    %c0_18 = arith.constant 0 : index
    %c0_19 = arith.constant 0 : index
    %13 = vector.load %arg3[%c0_18, %c0_19] : memref<1x128xf32, #tpu.memory_space<vmem>>, vector<1x128xf32>
    %14 = vector.broadcast %13 : vector<1x128xf32> to vector<32x128xf32>
    %15 = arith.addf %12, %14 : vector<32x128xf32>
    %cst_20 = arith.constant 0.000000e+00 : f32
    %16 = vector.broadcast %cst_20 : f32 to vector<32x128xf32>
    %17 = arith.maximumf %15, %16 : vector<32x128xf32>
    %18 = vector.extract_strided_slice %17 {offsets = [0, 0], sizes = [16, 128], strides = [1, 1]} : vector<32x128xf32> to vector<16x128xf32>
    %c8 = arith.constant 8 : index
    %c0_21 = arith.constant 0 : index
    %19 = vector.load %arg11[%c8, %c0_21] : memref<64x128xf32, #tpu.memory_space<vmem>>, vector<16x128xf32>
    tpu.vector_store %arg11[%c8, %c0_21], %18 {strides = array<i32>} : memref<64x128xf32, #tpu.memory_space<vmem>>, vector<16x128xf32>,
    %20 = vector.extract_strided_slice %17 {offsets = [16, 0], sizes = [16, 128], strides = [1, 1]} : vector<32x128xf32> to vector<16x128xf32>
    %c40 = arith.constant 40 : index
    %c0_22 = arith.constant 0 : index
    %21 = vector.load %arg11[%c40, %c0_22] : memref<64x128xf32, #tpu.memory_space<vmem>>, vector<16x128xf32>
    tpu.vector_store %arg11[%c40, %c0_22], %20 {strides = array<i32>} : memref<64x128xf32, #tpu.memory_space<vmem>>, vector<16x128xf32>,
    %cst_23 = arith.constant 0.000000e+00 : f32
    %22 = vector.broadcast %cst_23 : f32 to vector<16x128xf32>
    %cst_24 = arith.constant 0.000000e+00 : f32
    %23 = vector.broadcast %cst_24 : f32 to vector<16x128xf32>
    %c0_25 = arith.constant 0 : index
    %c0_26 = arith.constant 0 : index
    %24 = vector.load %arg4[%c0_25, %c0_26] : memref<1792x128xf32, #tpu.memory_space<vmem>>, vector<128x128xf32>
    %c5 = arith.constant 5 : index
    %c0_27 = arith.constant 0 : index
    %25 = vector.load %arg11[%c5, %c0_27] : memref<64x128xf32, #tpu.memory_space<vmem>>, vector<16x128xf32>
    %cst_28 = arith.constant dense<0.000000e+00> : vector<16x128xf32>
    %26 = tpu.matmul %25, %24, %cst_28 {dimension_numbers = #tpu.dot_dimension_numbers<[1], [0], [0], [1], [0, 0, 1, 1], [], []>} : vector<16x128xf32>, vector<128x128xf32>, vector<16x128xf32> -> vector<16x128xf32>
    %27 = arith.addf %22, %26 : vector<16x128xf32>
    %c37 = arith.constant 37 : index
    %c0_29 = arith.constant 0 : index
    %28 = vector.load %arg11[%c37, %c0_29] : memref<64x128xf32, #tpu.memory_space<vmem>>, vector<16x128xf32>
    %cst_30 = arith.constant dense<0.000000e+00> : vector<16x128xf32>
    %29 = tpu.matmul %28, %24, %cst_30 {dimension_numbers = #tpu.dot_dimension_numbers<[1], [0], [0], [1], [0, 0, 1, 1], [], []>} : vector<16x128xf32>, vector<128x128xf32>, vector<16x128xf32> -> vector<16x128xf32>
    %30 = arith.addf %23, %29 : vector<16x128xf32>
    %c128 = arith.constant 128 : index
    %c0_31 = arith.constant 0 : index
    %31 = vector.load %arg4[%c128, %c0_31] : memref<1792x128xf32, #tpu.memory_space<vmem>>, vector<128x128xf32>
    %c6 = arith.constant 6 : index
    %c0_32 = arith.constant 0 : index
    %32 = vector.load %arg11[%c6, %c0_32] : memref<64x128xf32, #tpu.memory_space<vmem>>, vector<16x128xf32>
    %cst_33 = arith.constant dense<0.000000e+00> : vector<16x128xf32>
    %33 = tpu.matmul %32, %31, %cst_33 {dimension_numbers = #tpu.dot_dimension_numbers<[1], [0], [0], [1], [0, 0, 1, 1], [], []>} : vector<16x128xf32>, vector<128x128xf32>, vector<16x128xf32> -> vector<16x128xf32>
    %34 = arith.addf %27, %33 : vector<16x128xf32>
    %c38 = arith.constant 38 : index
    %c0_34 = arith.constant 0 : index
    %35 = vector.load %arg11[%c38, %c0_34] : memref<64x128xf32, #tpu.memory_space<vmem>>, vector<16x128xf32>
    %cst_35 = arith.constant dense<0.000000e+00> : vector<16x128xf32>
    %36 = tpu.matmul %35, %31, %cst_35 {dimension_numbers = #tpu.dot_dimension_numbers<[1], [0], [0], [1], [0, 0, 1, 1], [], []>} : vector<16x128xf32>, vector<128x128xf32>, vector<16x128xf32> -> vector<16x128xf32>
    %37 = arith.addf %30, %36 : vector<16x128xf32>
    %c256 = arith.constant 256 : index
    %c0_36 = arith.constant 0 : index
    %38 = vector.load %arg4[%c256, %c0_36] : memref<1792x128xf32, #tpu.memory_space<vmem>>, vector<128x128xf32>
    %c7 = arith.constant 7 : index
    %c0_37 = arith.constant 0 : index
    %39 = vector.load %arg11[%c7, %c0_37] : memref<64x128xf32, #tpu.memory_space<vmem>>, vector<16x128xf32>
    %cst_38 = arith.constant dense<0.000000e+00> : vector<16x128xf32>
    %40 = tpu.matmul %39, %38, %cst_38 {dimension_numbers = #tpu.dot_dimension_numbers<[1], [0], [0], [1], [0, 0, 1, 1], [], []>} : vector<16x128xf32>, vector<128x128xf32>, vector<16x128xf32> -> vector<16x128xf32>
    %41 = arith.addf %34, %40 : vector<16x128xf32>
    %c39 = arith.constant 39 : index
    %c0_39 = arith.constant 0 : index
    %42 = vector.load %arg11[%c39, %c0_39] : memref<64x128xf32, #tpu.memory_space<vmem>>, vector<16x128xf32>
    %cst_40 = arith.constant dense<0.000000e+00> : vector<16x128xf32>
    %43 = tpu.matmul %42, %38, %cst_40 {dimension_numbers = #tpu.dot_dimension_numbers<[1], [0], [0], [1], [0, 0, 1, 1], [], []>} : vector<16x128xf32>, vector<128x128xf32>, vector<16x128xf32> -> vector<16x128xf32>
    %44 = arith.addf %37, %43 : vector<16x128xf32>
    %c384 = arith.constant 384 : index
    %c0_41 = arith.constant 0 : index
    %45 = vector.load %arg4[%c384, %c0_41] : memref<1792x128xf32, #tpu.memory_space<vmem>>, vector<128x128xf32>
    %c8_42 = arith.constant 8 : index
    %c0_43 = arith.constant 0 : index
    %46 = vector.load %arg11[%c8_42, %c0_43] : memref<64x128xf32, #tpu.memory_space<vmem>>, vector<16x128xf32>
    %cst_44 = arith.constant dense<0.000000e+00> : vector<16x128xf32>
    %47 = tpu.matmul %46, %45, %cst_44 {dimension_numbers = #tpu.dot_dimension_numbers<[1], [0], [0], [1], [0, 0, 1, 1], [], []>} : vector<16x128xf32>, vector<128x128xf32>, vector<16x128xf32> -> vector<16x128xf32>
    %48 = arith.addf %41, %47 : vector<16x128xf32>
    %c40_45 = arith.constant 40 : index
    %c0_46 = arith.constant 0 : index
    %49 = vector.load %arg11[%c40_45, %c0_46] : memref<64x128xf32, #tpu.memory_space<vmem>>, vector<16x128xf32>
    %cst_47 = arith.constant dense<0.000000e+00> : vector<16x128xf32>
    %50 = tpu.matmul %49, %45, %cst_47 {dimension_numbers = #tpu.dot_dimension_numbers<[1], [0], [0], [1], [0, 0, 1, 1], [], []>} : vector<16x128xf32>, vector<128x128xf32>, vector<16x128xf32> -> vector<16x128xf32>
    %51 = arith.addf %44, %50 : vector<16x128xf32>
    %c512 = arith.constant 512 : index
    %c0_48 = arith.constant 0 : index
    %52 = vector.load %arg4[%c512, %c0_48] : memref<1792x128xf32, #tpu.memory_space<vmem>>, vector<128x128xf32>
    %c9 = arith.constant 9 : index
    %c0_49 = arith.constant 0 : index
    %53 = vector.load %arg11[%c9, %c0_49] : memref<64x128xf32, #tpu.memory_space<vmem>>, vector<16x128xf32>
    %cst_50 = arith.constant dense<0.000000e+00> : vector<16x128xf32>
    %54 = tpu.matmul %53, %52, %cst_50 {dimension_numbers = #tpu.dot_dimension_numbers<[1], [0], [0], [1], [0, 0, 1, 1], [], []>} : vector<16x128xf32>, vector<128x128xf32>, vector<16x128xf32> -> vector<16x128xf32>
    %55 = arith.addf %48, %54 : vector<16x128xf32>
    %c41 = arith.constant 41 : index
    %c0_51 = arith.constant 0 : index
    %56 = vector.load %arg11[%c41, %c0_51] : memref<64x128xf32, #tpu.memory_space<vmem>>, vector<16x128xf32>
    %cst_52 = arith.constant dense<0.000000e+00> : vector<16x128xf32>
    %57 = tpu.matmul %56, %52, %cst_52 {dimension_numbers = #tpu.dot_dimension_numbers<[1], [0], [0], [1], [0, 0, 1, 1], [], []>} : vector<16x128xf32>, vector<128x128xf32>, vector<16x128xf32> -> vector<16x128xf32>
    %58 = arith.addf %51, %57 : vector<16x128xf32>
    %c640 = arith.constant 640 : index
    %c0_53 = arith.constant 0 : index
    %59 = vector.load %arg4[%c640, %c0_53] : memref<1792x128xf32, #tpu.memory_space<vmem>>, vector<128x128xf32>
    %c10 = arith.constant 10 : index
    %c0_54 = arith.constant 0 : index
    %60 = vector.load %arg11[%c10, %c0_54] : memref<64x128xf32, #tpu.memory_space<vmem>>, vector<16x128xf32>
    %cst_55 = arith.constant dense<0.000000e+00> : vector<16x128xf32>
    %61 = tpu.matmul %60, %59, %cst_55 {dimension_numbers = #tpu.dot_dimension_numbers<[1], [0], [0], [1], [0, 0, 1, 1], [], []>} : vector<16x128xf32>, vector<128x128xf32>, vector<16x128xf32> -> vector<16x128xf32>
    %62 = arith.addf %55, %61 : vector<16x128xf32>
    %c42 = arith.constant 42 : index
    %c0_56 = arith.constant 0 : index
    %63 = vector.load %arg11[%c42, %c0_56] : memref<64x128xf32, #tpu.memory_space<vmem>>, vector<16x128xf32>
    %cst_57 = arith.constant dense<0.000000e+00> : vector<16x128xf32>
    %64 = tpu.matmul %63, %59, %cst_57 {dimension_numbers = #tpu.dot_dimension_numbers<[1], [0], [0], [1], [0, 0, 1, 1], [], []>} : vector<16x128xf32>, vector<128x128xf32>, vector<16x128xf32> -> vector<16x128xf32>
    %65 = arith.addf %58, %64 : vector<16x128xf32>
    %c768 = arith.constant 768 : index
    %c0_58 = arith.constant 0 : index
    %66 = vector.load %arg4[%c768, %c0_58] : memref<1792x128xf32, #tpu.memory_space<vmem>>, vector<128x128xf32>
    %c11 = arith.constant 11 : index
    %c0_59 = arith.constant 0 : index
    %67 = vector.load %arg11[%c11, %c0_59] : memref<64x128xf32, #tpu.memory_space<vmem>>, vector<16x128xf32>
    %cst_60 = arith.constant dense<0.000000e+00> : vector<16x128xf32>
    %68 = tpu.matmul %67, %66, %cst_60 {dimension_numbers = #tpu.dot_dimension_numbers<[1], [0], [0], [1], [0, 0, 1, 1], [], []>} : vector<16x128xf32>, vector<128x128xf32>, vector<16x128xf32> -> vector<16x128xf32>
    %69 = arith.addf %62, %68 : vector<16x128xf32>
    %c43 = arith.constant 43 : index
    %c0_61 = arith.constant 0 : index
    %70 = vector.load %arg11[%c43, %c0_61] : memref<64x128xf32, #tpu.memory_space<vmem>>, vector<16x128xf32>
    %cst_62 = arith.constant dense<0.000000e+00> : vector<16x128xf32>
    %71 = tpu.matmul %70, %66, %cst_62 {dimension_numbers = #tpu.dot_dimension_numbers<[1], [0], [0], [1], [0, 0, 1, 1], [], []>} : vector<16x128xf32>, vector<128x128xf32>, vector<16x128xf32> -> vector<16x128xf32>
    %72 = arith.addf %65, %71 : vector<16x128xf32>
    %c0_63 = arith.constant 0 : index
    %c0_64 = arith.constant 0 : index
    %73 = vector.load %arg5[%c0_63, %c0_64] : memref<2x128xf32, #tpu.memory_space<vmem>>, vector<1x128xf32>
    %74 = vector.broadcast %73 : vector<1x128xf32> to vector<16x128xf32>
    %75 = arith.addf %69, %74 : vector<16x128xf32>
    %cst_65 = arith.constant 0.000000e+00 : f32
    %76 = vector.broadcast %cst_65 : f32 to vector<16x128xf32>
    %77 = arith.maximumf %75, %76 : vector<16x128xf32>
    %c8_66 = arith.constant 8 : index
    %c0_67 = arith.constant 0 : index
    %78 = vector.load %arg12[%c8_66, %c0_67] : memref<64x128xf32, #tpu.memory_space<vmem>>, vector<16x128xf32>
    tpu.vector_store %arg12[%c8_66, %c0_67], %77 {strides = array<i32>} : memref<64x128xf32, #tpu.memory_space<vmem>>, vector<16x128xf32>,
    %79 = vector.broadcast %73 : vector<1x128xf32> to vector<16x128xf32>
    %80 = arith.addf %72, %79 : vector<16x128xf32>
    %cst_68 = arith.constant 0.000000e+00 : f32
    %81 = vector.broadcast %cst_68 : f32 to vector<16x128xf32>
    %82 = arith.maximumf %80, %81 : vector<16x128xf32>
    %c40_69 = arith.constant 40 : index
    %c0_70 = arith.constant 0 : index
    %83 = vector.load %arg12[%c40_69, %c0_70] : memref<64x128xf32, #tpu.memory_space<vmem>>, vector<16x128xf32>
    tpu.vector_store %arg12[%c40_69, %c0_70], %82 {strides = array<i32>} : memref<64x128xf32, #tpu.memory_space<vmem>>, vector<16x128xf32>,
    %cst_71 = arith.constant 0.000000e+00 : f32
    %84 = vector.broadcast %cst_71 : f32 to vector<16x128xf32>
    %cst_72 = arith.constant 0.000000e+00 : f32
    %85 = vector.broadcast %cst_72 : f32 to vector<16x128xf32>
    %c896 = arith.constant 896 : index
    %c0_73 = arith.constant 0 : index
    %86 = vector.load %arg4[%c896, %c0_73] : memref<1792x128xf32, #tpu.memory_space<vmem>>, vector<128x128xf32>
    %c5_74 = arith.constant 5 : index
    %c0_75 = arith.constant 0 : index
    %87 = vector.load %arg12[%c5_74, %c0_75] : memref<64x128xf32, #tpu.memory_space<vmem>>, vector<16x128xf32>
    %cst_76 = arith.constant dense<0.000000e+00> : vector<16x128xf32>
    %88 = tpu.matmul %87, %86, %cst_76 {dimension_numbers = #tpu.dot_dimension_numbers<[1], [0], [0], [1], [0, 0, 1, 1], [], []>} : vector<16x128xf32>, vector<128x128xf32>, vector<16x128xf32> -> vector<16x128xf32>
    %89 = arith.addf %84, %88 : vector<16x128xf32>
    %c37_77 = arith.constant 37 : index
    %c0_78 = arith.constant 0 : index
    %90 = vector.load %arg12[%c37_77, %c0_78] : memref<64x128xf32, #tpu.memory_space<vmem>>, vector<16x128xf32>
    %cst_79 = arith.constant dense<0.000000e+00> : vector<16x128xf32>
    %91 = tpu.matmul %90, %86, %cst_79 {dimension_numbers = #tpu.dot_dimension_numbers<[1], [0], [0], [1], [0, 0, 1, 1], [], []>} : vector<16x128xf32>, vector<128x128xf32>, vector<16x128xf32> -> vector<16x128xf32>
    %92 = arith.addf %85, %91 : vector<16x128xf32>
    %c1024 = arith.constant 1024 : index
    %c0_80 = arith.constant 0 : index
    %93 = vector.load %arg4[%c1024, %c0_80] : memref<1792x128xf32, #tpu.memory_space<vmem>>, vector<128x128xf32>
    %c6_81 = arith.constant 6 : index
    %c0_82 = arith.constant 0 : index
    %94 = vector.load %arg12[%c6_81, %c0_82] : memref<64x128xf32, #tpu.memory_space<vmem>>, vector<16x128xf32>
    %cst_83 = arith.constant dense<0.000000e+00> : vector<16x128xf32>
    %95 = tpu.matmul %94, %93, %cst_83 {dimension_numbers = #tpu.dot_dimension_numbers<[1], [0], [0], [1], [0, 0, 1, 1], [], []>} : vector<16x128xf32>, vector<128x128xf32>, vector<16x128xf32> -> vector<16x128xf32>
    %96 = arith.addf %89, %95 : vector<16x128xf32>
    %c38_84 = arith.constant 38 : index
    %c0_85 = arith.constant 0 : index
    %97 = vector.load %arg12[%c38_84, %c0_85] : memref<64x128xf32, #tpu.memory_space<vmem>>, vector<16x128xf32>
    %cst_86 = arith.constant dense<0.000000e+00> : vector<16x128xf32>
    %98 = tpu.matmul %97, %93, %cst_86 {dimension_numbers = #tpu.dot_dimension_numbers<[1], [0], [0], [1], [0, 0, 1, 1], [], []>} : vector<16x128xf32>, vector<128x128xf32>, vector<16x128xf32> -> vector<16x128xf32>
    %99 = arith.addf %92, %98 : vector<16x128xf32>
    %c1152 = arith.constant 1152 : index
    %c0_87 = arith.constant 0 : index
    %100 = vector.load %arg4[%c1152, %c0_87] : memref<1792x128xf32, #tpu.memory_space<vmem>>, vector<128x128xf32>
    %c7_88 = arith.constant 7 : index
    %c0_89 = arith.constant 0 : index
    %101 = vector.load %arg12[%c7_88, %c0_89] : memref<64x128xf32, #tpu.memory_space<vmem>>, vector<16x128xf32>
    %cst_90 = arith.constant dense<0.000000e+00> : vector<16x128xf32>
    %102 = tpu.matmul %101, %100, %cst_90 {dimension_numbers = #tpu.dot_dimension_numbers<[1], [0], [0], [1], [0, 0, 1, 1], [], []>} : vector<16x128xf32>, vector<128x128xf32>, vector<16x128xf32> -> vector<16x128xf32>
    %103 = arith.addf %96, %102 : vector<16x128xf32>
    %c39_91 = arith.constant 39 : index
    %c0_92 = arith.constant 0 : index
    %104 = vector.load %arg12[%c39_91, %c0_92] : memref<64x128xf32, #tpu.memory_space<vmem>>, vector<16x128xf32>
    %cst_93 = arith.constant dense<0.000000e+00> : vector<16x128xf32>
    %105 = tpu.matmul %104, %100, %cst_93 {dimension_numbers = #tpu.dot_dimension_numbers<[1], [0], [0], [1], [0, 0, 1, 1], [], []>} : vector<16x128xf32>, vector<128x128xf32>, vector<16x128xf32> -> vector<16x128xf32>
    %106 = arith.addf %99, %105 : vector<16x128xf32>
    %c1280 = arith.constant 1280 : index
    %c0_94 = arith.constant 0 : index
    %107 = vector.load %arg4[%c1280, %c0_94] : memref<1792x128xf32, #tpu.memory_space<vmem>>, vector<128x128xf32>
    %c8_95 = arith.constant 8 : index
    %c0_96 = arith.constant 0 : index
    %108 = vector.load %arg12[%c8_95, %c0_96] : memref<64x128xf32, #tpu.memory_space<vmem>>, vector<16x128xf32>
    %cst_97 = arith.constant dense<0.000000e+00> : vector<16x128xf32>
    %109 = tpu.matmul %108, %107, %cst_97 {dimension_numbers = #tpu.dot_dimension_numbers<[1], [0], [0], [1], [0, 0, 1, 1], [], []>} : vector<16x128xf32>, vector<128x128xf32>, vector<16x128xf32> -> vector<16x128xf32>
    %110 = arith.addf %103, %109 : vector<16x128xf32>
    %c40_98 = arith.constant 40 : index
    %c0_99 = arith.constant 0 : index
    %111 = vector.load %arg12[%c40_98, %c0_99] : memref<64x128xf32, #tpu.memory_space<vmem>>, vector<16x128xf32>
    %cst_100 = arith.constant dense<0.000000e+00> : vector<16x128xf32>
    %112 = tpu.matmul %111, %107, %cst_100 {dimension_numbers = #tpu.dot_dimension_numbers<[1], [0], [0], [1], [0, 0, 1, 1], [], []>} : vector<16x128xf32>, vector<128x128xf32>, vector<16x128xf32> -> vector<16x128xf32>
    %113 = arith.addf %106, %112 : vector<16x128xf32>
    %c1408 = arith.constant 1408 : index
    %c0_101 = arith.constant 0 : index
    %114 = vector.load %arg4[%c1408, %c0_101] : memref<1792x128xf32, #tpu.memory_space<vmem>>, vector<128x128xf32>
    %c9_102 = arith.constant 9 : index
    %c0_103 = arith.constant 0 : index
    %115 = vector.load %arg12[%c9_102, %c0_103] : memref<64x128xf32, #tpu.memory_space<vmem>>, vector<16x128xf32>
    %cst_104 = arith.constant dense<0.000000e+00> : vector<16x128xf32>
    %116 = tpu.matmul %115, %114, %cst_104 {dimension_numbers = #tpu.dot_dimension_numbers<[1], [0], [0], [1], [0, 0, 1, 1], [], []>} : vector<16x128xf32>, vector<128x128xf32>, vector<16x128xf32> -> vector<16x128xf32>
    %117 = arith.addf %110, %116 : vector<16x128xf32>
    %c41_105 = arith.constant 41 : index
    %c0_106 = arith.constant 0 : index
    %118 = vector.load %arg12[%c41_105, %c0_106] : memref<64x128xf32, #tpu.memory_space<vmem>>, vector<16x128xf32>
    %cst_107 = arith.constant dense<0.000000e+00> : vector<16x128xf32>
    %119 = tpu.matmul %118, %114, %cst_107 {dimension_numbers = #tpu.dot_dimension_numbers<[1], [0], [0], [1], [0, 0, 1, 1], [], []>} : vector<16x128xf32>, vector<128x128xf32>, vector<16x128xf32> -> vector<16x128xf32>
    %120 = arith.addf %113, %119 : vector<16x128xf32>
    %c1536 = arith.constant 1536 : index
    %c0_108 = arith.constant 0 : index
    %121 = vector.load %arg4[%c1536, %c0_108] : memref<1792x128xf32, #tpu.memory_space<vmem>>, vector<128x128xf32>
    %c10_109 = arith.constant 10 : index
    %c0_110 = arith.constant 0 : index
    %122 = vector.load %arg12[%c10_109, %c0_110] : memref<64x128xf32, #tpu.memory_space<vmem>>, vector<16x128xf32>
    %cst_111 = arith.constant dense<0.000000e+00> : vector<16x128xf32>
    %123 = tpu.matmul %122, %121, %cst_111 {dimension_numbers = #tpu.dot_dimension_numbers<[1], [0], [0], [1], [0, 0, 1, 1], [], []>} : vector<16x128xf32>, vector<128x128xf32>, vector<16x128xf32> -> vector<16x128xf32>
    %124 = arith.addf %117, %123 : vector<16x128xf32>
    %c42_112 = arith.constant 42 : index
    %c0_113 = arith.constant 0 : index
    %125 = vector.load %arg12[%c42_112, %c0_113] : memref<64x128xf32, #tpu.memory_space<vmem>>, vector<16x128xf32>
    %cst_114 = arith.constant dense<0.000000e+00> : vector<16x128xf32>
    %126 = tpu.matmul %125, %121, %cst_114 {dimension_numbers = #tpu.dot_dimension_numbers<[1], [0], [0], [1], [0, 0, 1, 1], [], []>} : vector<16x128xf32>, vector<128x128xf32>, vector<16x128xf32> -> vector<16x128xf32>
    %127 = arith.addf %120, %126 : vector<16x128xf32>
    %c1664 = arith.constant 1664 : index
    %c0_115 = arith.constant 0 : index
    %128 = vector.load %arg4[%c1664, %c0_115] : memref<1792x128xf32, #tpu.memory_space<vmem>>, vector<128x128xf32>
    %c11_116 = arith.constant 11 : index
    %c0_117 = arith.constant 0 : index
    %129 = vector.load %arg12[%c11_116, %c0_117] : memref<64x128xf32, #tpu.memory_space<vmem>>, vector<16x128xf32>
    %cst_118 = arith.constant dense<0.000000e+00> : vector<16x128xf32>
    %130 = tpu.matmul %129, %128, %cst_118 {dimension_numbers = #tpu.dot_dimension_numbers<[1], [0], [0], [1], [0, 0, 1, 1], [], []>} : vector<16x128xf32>, vector<128x128xf32>, vector<16x128xf32> -> vector<16x128xf32>
    %131 = arith.addf %124, %130 : vector<16x128xf32>
    %c43_119 = arith.constant 43 : index
    %c0_120 = arith.constant 0 : index
    %132 = vector.load %arg12[%c43_119, %c0_120] : memref<64x128xf32, #tpu.memory_space<vmem>>, vector<16x128xf32>
    %cst_121 = arith.constant dense<0.000000e+00> : vector<16x128xf32>
    %133 = tpu.matmul %132, %128, %cst_121 {dimension_numbers = #tpu.dot_dimension_numbers<[1], [0], [0], [1], [0, 0, 1, 1], [], []>} : vector<16x128xf32>, vector<128x128xf32>, vector<16x128xf32> -> vector<16x128xf32>
    %134 = arith.addf %127, %133 : vector<16x128xf32>
    %c1 = arith.constant 1 : index
    %c0_122 = arith.constant 0 : index
    %135 = vector.load %arg5[%c1, %c0_122] : memref<2x128xf32, #tpu.memory_space<vmem>>, vector<1x128xf32>
    %136 = vector.broadcast %135 : vector<1x128xf32> to vector<16x128xf32>
    %137 = arith.addf %131, %136 : vector<16x128xf32>
    %cst_123 = arith.constant 0.000000e+00 : f32
    %138 = vector.broadcast %cst_123 : f32 to vector<16x128xf32>
    %139 = arith.maximumf %137, %138 : vector<16x128xf32>
    %c8_124 = arith.constant 8 : index
    %c0_125 = arith.constant 0 : index
    %140 = vector.load %arg11[%c8_124, %c0_125] : memref<64x128xf32, #tpu.memory_space<vmem>>, vector<16x128xf32>
    %141 = arith.addf %140, %139 : vector<16x128xf32>
    %c8_126 = arith.constant 8 : index
    %c0_127 = arith.constant 0 : index
    %142 = vector.load %arg11[%c8_126, %c0_127] : memref<64x128xf32, #tpu.memory_space<vmem>>, vector<16x128xf32>
    tpu.vector_store %arg11[%c8_126, %c0_127], %141 {strides = array<i32>} : memref<64x128xf32, #tpu.memory_space<vmem>>, vector<16x128xf32>,
    %143 = vector.broadcast %135 : vector<1x128xf32> to vector<16x128xf32>
    %144 = arith.addf %134, %143 : vector<16x128xf32>
    %cst_128 = arith.constant 0.000000e+00 : f32
    %145 = vector.broadcast %cst_128 : f32 to vector<16x128xf32>
    %146 = arith.maximumf %144, %145 : vector<16x128xf32>
    %c40_129 = arith.constant 40 : index
    %c0_130 = arith.constant 0 : index
    %147 = vector.load %arg11[%c40_129, %c0_130] : memref<64x128xf32, #tpu.memory_space<vmem>>, vector<16x128xf32>
    %148 = arith.addf %147, %146 : vector<16x128xf32>
    %c40_131 = arith.constant 40 : index
    %c0_132 = arith.constant 0 : index
    %149 = vector.load %arg11[%c40_131, %c0_132] : memref<64x128xf32, #tpu.memory_space<vmem>>, vector<16x128xf32>
    tpu.vector_store %arg11[%c40_131, %c0_132], %148 {strides = array<i32>} : memref<64x128xf32, #tpu.memory_space<vmem>>, vector<16x128xf32>,
    %c0_133 = arith.constant 0 : index
    %c0_134 = arith.constant 0 : index
    %150 = vector.load %arg6[%c0_133, %c0_134] : memref<128x384xf32, #tpu.memory_space<vmem>>, vector<128x384xf32>
    %c0_135 = arith.constant 0 : index
    %c0_136 = arith.constant 0 : index
    %151 = vector.load %arg7[%c0_135, %c0_136] : memref<1x384xf32, #tpu.memory_space<vmem>>, vector<1x384xf32>
    %c8_137 = arith.constant 8 : index
    %c0_138 = arith.constant 0 : index
    %152 = vector.load %arg11[%c8_137, %c0_138] : memref<64x128xf32, #tpu.memory_space<vmem>>, vector<16x128xf32>
    %cst_139 = arith.constant dense<0.000000e+00> : vector<16x384xf32>
    %153 = tpu.matmul %152, %150, %cst_139 {dimension_numbers = #tpu.dot_dimension_numbers<[1], [0], [0], [1], [0, 0, 1, 1], [], []>} : vector<16x128xf32>, vector<128x384xf32>, vector<16x384xf32> -> vector<16x384xf32>
    %154 = vector.broadcast %151 : vector<1x384xf32> to vector<16x384xf32>
    %155 = arith.addf %153, %154 : vector<16x384xf32>
    %156 = vector.extract_strided_slice %155 {offsets = [0, 0], sizes = [16, 128], strides = [1, 1]} : vector<16x384xf32> to vector<16x128xf32>
    %c0_140 = arith.constant 0 : index
    %c0_141 = arith.constant 0 : index
    %157 = vector.load %arg13[%c0_140, %c0_141] : memref<16x768xf32, #tpu.memory_space<vmem>>, vector<16x128xf32>
    tpu.vector_store %arg13[%c0_140, %c0_141], %156 {strides = array<i32>} : memref<16x768xf32, #tpu.memory_space<vmem>>, vector<16x128xf32>,
    %158 = vector.extract_strided_slice %155 {offsets = [0, 128], sizes = [16, 128], strides = [1, 1]} : vector<16x384xf32> to vector<16x128xf32>
    %c0_142 = arith.constant 0 : index
    %c256_143 = arith.constant 256 : index
    %159 = vector.load %arg13[%c0_142, %c256_143] : memref<16x768xf32, #tpu.memory_space<vmem>>, vector<16x128xf32>
    tpu.vector_store %arg13[%c0_142, %c256_143], %158 {strides = array<i32>} : memref<16x768xf32, #tpu.memory_space<vmem>>, vector<16x128xf32>,
    %160 = vector.extract_strided_slice %155 {offsets = [0, 256], sizes = [16, 128], strides = [1, 1]} : vector<16x384xf32> to vector<16x128xf32>
    %c0_144 = arith.constant 0 : index
    %c512_145 = arith.constant 512 : index
    %161 = vector.load %arg13[%c0_144, %c512_145] : memref<16x768xf32, #tpu.memory_space<vmem>>, vector<16x128xf32>
    tpu.vector_store %arg13[%c0_144, %c512_145], %160 {strides = array<i32>} : memref<16x768xf32, #tpu.memory_space<vmem>>, vector<16x128xf32>,
    %c40_146 = arith.constant 40 : index
    %c0_147 = arith.constant 0 : index
    %162 = vector.load %arg11[%c40_146, %c0_147] : memref<64x128xf32, #tpu.memory_space<vmem>>, vector<16x128xf32>
    %cst_148 = arith.constant dense<0.000000e+00> : vector<16x384xf32>
    %163 = tpu.matmul %162, %150, %cst_148 {dimension_numbers = #tpu.dot_dimension_numbers<[1], [0], [0], [1], [0, 0, 1, 1], [], []>} : vector<16x128xf32>, vector<128x384xf32>, vector<16x384xf32> -> vector<16x384xf32>
    %164 = vector.broadcast %151 : vector<1x384xf32> to vector<16x384xf32>
    %165 = arith.addf %163, %164 : vector<16x384xf32>
    %166 = vector.extract_strided_slice %165 {offsets = [0, 0], sizes = [16, 128], strides = [1, 1]} : vector<16x384xf32> to vector<16x128xf32>
    %c0_149 = arith.constant 0 : index
    %c128_150 = arith.constant 128 : index
    %167 = vector.load %arg13[%c0_149, %c128_150] : memref<16x768xf32, #tpu.memory_space<vmem>>, vector<16x128xf32>
    tpu.vector_store %arg13[%c0_149, %c128_150], %166 {strides = array<i32>} : memref<16x768xf32, #tpu.memory_space<vmem>>, vector<16x128xf32>,
    %168 = vector.extract_strided_slice %165 {offsets = [0, 128], sizes = [16, 128], strides = [1, 1]} : vector<16x384xf32> to vector<16x128xf32>
    %c0_151 = arith.constant 0 : index
    %c384_152 = arith.constant 384 : index
    %169 = vector.load %arg13[%c0_151, %c384_152] : memref<16x768xf32, #tpu.memory_space<vmem>>, vector<16x128xf32>
    tpu.vector_store %arg13[%c0_151, %c384_152], %168 {strides = array<i32>} : memref<16x768xf32, #tpu.memory_space<vmem>>, vector<16x128xf32>,
    %170 = vector.extract_strided_slice %165 {offsets = [0, 256], sizes = [16, 128], strides = [1, 1]} : vector<16x384xf32> to vector<16x128xf32>
    %c0_153 = arith.constant 0 : index
    %c640_154 = arith.constant 640 : index
    %171 = vector.load %arg13[%c0_153, %c640_154] : memref<16x768xf32, #tpu.memory_space<vmem>>, vector<16x128xf32>
    tpu.vector_store %arg13[%c0_153, %c640_154], %170 {strides = array<i32>} : memref<16x768xf32, #tpu.memory_space<vmem>>, vector<16x128xf32>,
    %c0_155 = arith.constant 0 : index
    %c0_156 = arith.constant 0 : index
    %172 = vector.load %arg8[%c0_155, %c0_156] : memref<256x768xf32, #tpu.memory_space<vmem>>, vector<256x768xf32>
    %c0_157 = arith.constant 0 : index
    %c0_158 = arith.constant 0 : index
    %173 = vector.load %arg9[%c0_157, %c0_158] : memref<1x256xf32, #tpu.memory_space<vmem>>, vector<1x256xf32>
    %cst_159 = arith.constant 0.000000e+00 : f32
    %174 = vector.broadcast %cst_159 : f32 to vector<1x256xf32>
    %c0_i32 = arith.constant 0 : i32
    %175 = arith.index_cast %c0_i32 : i32 to index
    %c0_160 = arith.constant 0 : index
    %176 = vector.load %arg13[%175, %c0_160] : memref<16x768xf32, #tpu.memory_space<vmem>>, vector<1x768xf32>
    %cst_161 = arith.constant dense<0.000000e+00> : vector<1x768xf32>
    %177 = tpu.matmul %174, %172, %cst_161 {dimension_numbers = #tpu.dot_dimension_numbers<[1], [0], [0], [1], [0, 0, 1, 1], [], []>} : vector<1x256xf32>, vector<256x768xf32>, vector<1x768xf32> -> vector<1x768xf32>
    %178 = vector.extract_strided_slice %176 {offsets = [0, 0], sizes = [1, 256], strides = [1, 1]} : vector<1x768xf32> to vector<1x256xf32>
    %179 = vector.extract_strided_slice %177 {offsets = [0, 0], sizes = [1, 256], strides = [1, 1]} : vector<1x768xf32> to vector<1x256xf32>
    %180 = arith.addf %178, %179 : vector<1x256xf32>
    %181 = arith.negf %180 : vector<1x256xf32>
    %182 = math.exp %181 : vector<1x256xf32>
    %cst_162 = arith.constant 1.000000e+00 : f32
    %183 = vector.broadcast %cst_162 : f32 to vector<1x256xf32>
    %184 = arith.addf %183, %182 : vector<1x256xf32>
    %185 = arith.divf %183, %184 : vector<1x256xf32>
    %186 = vector.extract_strided_slice %176 {offsets = [0, 256], sizes = [1, 256], strides = [1, 1]} : vector<1x768xf32> to vector<1x256xf32>
    %187 = vector.extract_strided_slice %177 {offsets = [0, 256], sizes = [1, 256], strides = [1, 1]} : vector<1x768xf32> to vector<1x256xf32>
    %188 = arith.addf %186, %187 : vector<1x256xf32>
    %189 = arith.negf %188 : vector<1x256xf32>
    %190 = math.exp %189 : vector<1x256xf32>
    %cst_163 = arith.constant 1.000000e+00 : f32
    %191 = vector.broadcast %cst_163 : f32 to vector<1x256xf32>
    %192 = arith.addf %191, %190 : vector<1x256xf32>
    %193 = arith.divf %191, %192 : vector<1x256xf32>
    %194 = vector.extract_strided_slice %176 {offsets = [0, 512], sizes = [1, 256], strides = [1, 1]} : vector<1x768xf32> to vector<1x256xf32>
    %195 = vector.extract_strided_slice %177 {offsets = [0, 512], sizes = [1, 256], strides = [1, 1]} : vector<1x768xf32> to vector<1x256xf32>
    %196 = arith.addf %195, %173 : vector<1x256xf32>
    %197 = arith.mulf %185, %196 : vector<1x256xf32>
    %198 = arith.addf %194, %197 : vector<1x256xf32>
    %199 = math.tanh %198 : vector<1x256xf32>
    %cst_164 = arith.constant 1.000000e+00 : f32
    %200 = vector.broadcast %cst_164 : f32 to vector<1x256xf32>
    %201 = arith.subf %200, %193 : vector<1x256xf32>
    %202 = arith.mulf %201, %199 : vector<1x256xf32>
    %203 = arith.mulf %193, %174 : vector<1x256xf32>
    %204 = arith.addf %202, %203 : vector<1x256xf32>
    %c1_i32 = arith.constant 1 : i32
    %205 = arith.index_cast %c1_i32 : i32 to index
    %c0_165 = arith.constant 0 : index
    %206 = vector.load %arg13[%205, %c0_165] : memref<16x768xf32, #tpu.memory_space<vmem>>, vector<1x768xf32>
    %cst_166 = arith.constant dense<0.000000e+00> : vector<1x768xf32>
    %207 = tpu.matmul %204, %172, %cst_166 {dimension_numbers = #tpu.dot_dimension_numbers<[1], [0], [0], [1], [0, 0, 1, 1], [], []>} : vector<1x256xf32>, vector<256x768xf32>, vector<1x768xf32> -> vector<1x768xf32>
    %208 = vector.extract_strided_slice %206 {offsets = [0, 0], sizes = [1, 256], strides = [1, 1]} : vector<1x768xf32> to vector<1x256xf32>
    %209 = vector.extract_strided_slice %207 {offsets = [0, 0], sizes = [1, 256], strides = [1, 1]} : vector<1x768xf32> to vector<1x256xf32>
    %210 = arith.addf %208, %209 : vector<1x256xf32>
    %211 = arith.negf %210 : vector<1x256xf32>
    %212 = math.exp %211 : vector<1x256xf32>
    %cst_167 = arith.constant 1.000000e+00 : f32
    %213 = vector.broadcast %cst_167 : f32 to vector<1x256xf32>
    %214 = arith.addf %213, %212 : vector<1x256xf32>
    %215 = arith.divf %213, %214 : vector<1x256xf32>
    %216 = vector.extract_strided_slice %206 {offsets = [0, 256], sizes = [1, 256], strides = [1, 1]} : vector<1x768xf32> to vector<1x256xf32>
    %217 = vector.extract_strided_slice %207 {offsets = [0, 256], sizes = [1, 256], strides = [1, 1]} : vector<1x768xf32> to vector<1x256xf32>
    %218 = arith.addf %216, %217 : vector<1x256xf32>
    %219 = arith.negf %218 : vector<1x256xf32>
    %220 = math.exp %219 : vector<1x256xf32>
    %cst_168 = arith.constant 1.000000e+00 : f32
    %221 = vector.broadcast %cst_168 : f32 to vector<1x256xf32>
    %222 = arith.addf %221, %220 : vector<1x256xf32>
    %223 = arith.divf %221, %222 : vector<1x256xf32>
    %224 = vector.extract_strided_slice %206 {offsets = [0, 512], sizes = [1, 256], strides = [1, 1]} : vector<1x768xf32> to vector<1x256xf32>
    %225 = vector.extract_strided_slice %207 {offsets = [0, 512], sizes = [1, 256], strides = [1, 1]} : vector<1x768xf32> to vector<1x256xf32>
    %226 = arith.addf %225, %173 : vector<1x256xf32>
    %227 = arith.mulf %215, %226 : vector<1x256xf32>
    %228 = arith.addf %224, %227 : vector<1x256xf32>
    %229 = math.tanh %228 : vector<1x256xf32>
    %cst_169 = arith.constant 1.000000e+00 : f32
    %230 = vector.broadcast %cst_169 : f32 to vector<1x256xf32>
    %231 = arith.subf %230, %223 : vector<1x256xf32>
    %232 = arith.mulf %231, %229 : vector<1x256xf32>
    %233 = arith.mulf %223, %204 : vector<1x256xf32>
    %234 = arith.addf %232, %233 : vector<1x256xf32>
    %c2_i32 = arith.constant 2 : i32
    %235 = arith.index_cast %c2_i32 : i32 to index
    %c0_170 = arith.constant 0 : index
    %236 = vector.load %arg13[%235, %c0_170] : memref<16x768xf32, #tpu.memory_space<vmem>>, vector<1x768xf32>
    %cst_171 = arith.constant dense<0.000000e+00> : vector<1x768xf32>
    %237 = tpu.matmul %234, %172, %cst_171 {dimension_numbers = #tpu.dot_dimension_numbers<[1], [0], [0], [1], [0, 0, 1, 1], [], []>} : vector<1x256xf32>, vector<256x768xf32>, vector<1x768xf32> -> vector<1x768xf32>
    %238 = vector.extract_strided_slice %236 {offsets = [0, 0], sizes = [1, 256], strides = [1, 1]} : vector<1x768xf32> to vector<1x256xf32>
    %239 = vector.extract_strided_slice %237 {offsets = [0, 0], sizes = [1, 256], strides = [1, 1]} : vector<1x768xf32> to vector<1x256xf32>
    %240 = arith.addf %238, %239 : vector<1x256xf32>
    %241 = arith.negf %240 : vector<1x256xf32>
    %242 = math.exp %241 : vector<1x256xf32>
    %cst_172 = arith.constant 1.000000e+00 : f32
    %243 = vector.broadcast %cst_172 : f32 to vector<1x256xf32>
    %244 = arith.addf %243, %242 : vector<1x256xf32>
    %245 = arith.divf %243, %244 : vector<1x256xf32>
    %246 = vector.extract_strided_slice %236 {offsets = [0, 256], sizes = [1, 256], strides = [1, 1]} : vector<1x768xf32> to vector<1x256xf32>
    %247 = vector.extract_strided_slice %237 {offsets = [0, 256], sizes = [1, 256], strides = [1, 1]} : vector<1x768xf32> to vector<1x256xf32>
    %248 = arith.addf %246, %247 : vector<1x256xf32>
    %249 = arith.negf %248 : vector<1x256xf32>
    %250 = math.exp %249 : vector<1x256xf32>
    %cst_173 = arith.constant 1.000000e+00 : f32
    %251 = vector.broadcast %cst_173 : f32 to vector<1x256xf32>
    %252 = arith.addf %251, %250 : vector<1x256xf32>
    %253 = arith.divf %251, %252 : vector<1x256xf32>
    %254 = vector.extract_strided_slice %236 {offsets = [0, 512], sizes = [1, 256], strides = [1, 1]} : vector<1x768xf32> to vector<1x256xf32>
    %255 = vector.extract_strided_slice %237 {offsets = [0, 512], sizes = [1, 256], strides = [1, 1]} : vector<1x768xf32> to vector<1x256xf32>
    %256 = arith.addf %255, %173 : vector<1x256xf32>
    %257 = arith.mulf %245, %256 : vector<1x256xf32>
    %258 = arith.addf %254, %257 : vector<1x256xf32>
    %259 = math.tanh %258 : vector<1x256xf32>
    %cst_174 = arith.constant 1.000000e+00 : f32
    %260 = vector.broadcast %cst_174 : f32 to vector<1x256xf32>
    %261 = arith.subf %260, %253 : vector<1x256xf32>
    %262 = arith.mulf %261, %259 : vector<1x256xf32>
    %263 = arith.mulf %253, %234 : vector<1x256xf32>
    %264 = arith.addf %262, %263 : vector<1x256xf32>
    %c3_i32 = arith.constant 3 : i32
    %265 = arith.index_cast %c3_i32 : i32 to index
    %c0_175 = arith.constant 0 : index
    %266 = vector.load %arg13[%265, %c0_175] : memref<16x768xf32, #tpu.memory_space<vmem>>, vector<1x768xf32>
    %cst_176 = arith.constant dense<0.000000e+00> : vector<1x768xf32>
    %267 = tpu.matmul %264, %172, %cst_176 {dimension_numbers = #tpu.dot_dimension_numbers<[1], [0], [0], [1], [0, 0, 1, 1], [], []>} : vector<1x256xf32>, vector<256x768xf32>, vector<1x768xf32> -> vector<1x768xf32>
    %268 = vector.extract_strided_slice %266 {offsets = [0, 0], sizes = [1, 256], strides = [1, 1]} : vector<1x768xf32> to vector<1x256xf32>
    %269 = vector.extract_strided_slice %267 {offsets = [0, 0], sizes = [1, 256], strides = [1, 1]} : vector<1x768xf32> to vector<1x256xf32>
    %270 = arith.addf %268, %269 : vector<1x256xf32>
    %271 = arith.negf %270 : vector<1x256xf32>
    %272 = math.exp %271 : vector<1x256xf32>
    %cst_177 = arith.constant 1.000000e+00 : f32
    %273 = vector.broadcast %cst_177 : f32 to vector<1x256xf32>
    %274 = arith.addf %273, %272 : vector<1x256xf32>
    %275 = arith.divf %273, %274 : vector<1x256xf32>
    %276 = vector.extract_strided_slice %266 {offsets = [0, 256], sizes = [1, 256], strides = [1, 1]} : vector<1x768xf32> to vector<1x256xf32>
    %277 = vector.extract_strided_slice %267 {offsets = [0, 256], sizes = [1, 256], strides = [1, 1]} : vector<1x768xf32> to vector<1x256xf32>
    %278 = arith.addf %276, %277 : vector<1x256xf32>
    %279 = arith.negf %278 : vector<1x256xf32>
    %280 = math.exp %279 : vector<1x256xf32>
    %cst_178 = arith.constant 1.000000e+00 : f32
    %281 = vector.broadcast %cst_178 : f32 to vector<1x256xf32>
    %282 = arith.addf %281, %280 : vector<1x256xf32>
    %283 = arith.divf %281, %282 : vector<1x256xf32>
    %284 = vector.extract_strided_slice %266 {offsets = [0, 512], sizes = [1, 256], strides = [1, 1]} : vector<1x768xf32> to vector<1x256xf32>
    %285 = vector.extract_strided_slice %267 {offsets = [0, 512], sizes = [1, 256], strides = [1, 1]} : vector<1x768xf32> to vector<1x256xf32>
    %286 = arith.addf %285, %173 : vector<1x256xf32>
    %287 = arith.mulf %275, %286 : vector<1x256xf32>
    %288 = arith.addf %284, %287 : vector<1x256xf32>
    %289 = math.tanh %288 : vector<1x256xf32>
    %cst_179 = arith.constant 1.000000e+00 : f32
    %290 = vector.broadcast %cst_179 : f32 to vector<1x256xf32>
    %291 = arith.subf %290, %283 : vector<1x256xf32>
    %292 = arith.mulf %291, %289 : vector<1x256xf32>
    %293 = arith.mulf %283, %264 : vector<1x256xf32>
    %294 = arith.addf %292, %293 : vector<1x256xf32>
    %c4_i32 = arith.constant 4 : i32
    %295 = arith.index_cast %c4_i32 : i32 to index
    %c0_180 = arith.constant 0 : index
    %296 = vector.load %arg13[%295, %c0_180] : memref<16x768xf32, #tpu.memory_space<vmem>>, vector<1x768xf32>
    %cst_181 = arith.constant dense<0.000000e+00> : vector<1x768xf32>
    %297 = tpu.matmul %294, %172, %cst_181 {dimension_numbers = #tpu.dot_dimension_numbers<[1], [0], [0], [1], [0, 0, 1, 1], [], []>} : vector<1x256xf32>, vector<256x768xf32>, vector<1x768xf32> -> vector<1x768xf32>
    %298 = vector.extract_strided_slice %296 {offsets = [0, 0], sizes = [1, 256], strides = [1, 1]} : vector<1x768xf32> to vector<1x256xf32>
    %299 = vector.extract_strided_slice %297 {offsets = [0, 0], sizes = [1, 256], strides = [1, 1]} : vector<1x768xf32> to vector<1x256xf32>
    %300 = arith.addf %298, %299 : vector<1x256xf32>
    %301 = arith.negf %300 : vector<1x256xf32>
    %302 = math.exp %301 : vector<1x256xf32>
    %cst_182 = arith.constant 1.000000e+00 : f32
    %303 = vector.broadcast %cst_182 : f32 to vector<1x256xf32>
    %304 = arith.addf %303, %302 : vector<1x256xf32>
    %305 = arith.divf %303, %304 : vector<1x256xf32>
    %306 = vector.extract_strided_slice %296 {offsets = [0, 256], sizes = [1, 256], strides = [1, 1]} : vector<1x768xf32> to vector<1x256xf32>
    %307 = vector.extract_strided_slice %297 {offsets = [0, 256], sizes = [1, 256], strides = [1, 1]} : vector<1x768xf32> to vector<1x256xf32>
    %308 = arith.addf %306, %307 : vector<1x256xf32>
    %309 = arith.negf %308 : vector<1x256xf32>
    %310 = math.exp %309 : vector<1x256xf32>
    %cst_183 = arith.constant 1.000000e+00 : f32
    %311 = vector.broadcast %cst_183 : f32 to vector<1x256xf32>
    %312 = arith.addf %311, %310 : vector<1x256xf32>
    %313 = arith.divf %311, %312 : vector<1x256xf32>
    %314 = vector.extract_strided_slice %296 {offsets = [0, 512], sizes = [1, 256], strides = [1, 1]} : vector<1x768xf32> to vector<1x256xf32>
    %315 = vector.extract_strided_slice %297 {offsets = [0, 512], sizes = [1, 256], strides = [1, 1]} : vector<1x768xf32> to vector<1x256xf32>
    %316 = arith.addf %315, %173 : vector<1x256xf32>
    %317 = arith.mulf %305, %316 : vector<1x256xf32>
    %318 = arith.addf %314, %317 : vector<1x256xf32>
    %319 = math.tanh %318 : vector<1x256xf32>
    %cst_184 = arith.constant 1.000000e+00 : f32
    %320 = vector.broadcast %cst_184 : f32 to vector<1x256xf32>
    %321 = arith.subf %320, %313 : vector<1x256xf32>
    %322 = arith.mulf %321, %319 : vector<1x256xf32>
    %323 = arith.mulf %313, %294 : vector<1x256xf32>
    %324 = arith.addf %322, %323 : vector<1x256xf32>
    %c5_i32 = arith.constant 5 : i32
    %325 = arith.index_cast %c5_i32 : i32 to index
    %c0_185 = arith.constant 0 : index
    %326 = vector.load %arg13[%325, %c0_185] : memref<16x768xf32, #tpu.memory_space<vmem>>, vector<1x768xf32>
    %cst_186 = arith.constant dense<0.000000e+00> : vector<1x768xf32>
    %327 = tpu.matmul %324, %172, %cst_186 {dimension_numbers = #tpu.dot_dimension_numbers<[1], [0], [0], [1], [0, 0, 1, 1], [], []>} : vector<1x256xf32>, vector<256x768xf32>, vector<1x768xf32> -> vector<1x768xf32>
    %328 = vector.extract_strided_slice %326 {offsets = [0, 0], sizes = [1, 256], strides = [1, 1]} : vector<1x768xf32> to vector<1x256xf32>
    %329 = vector.extract_strided_slice %327 {offsets = [0, 0], sizes = [1, 256], strides = [1, 1]} : vector<1x768xf32> to vector<1x256xf32>
    %330 = arith.addf %328, %329 : vector<1x256xf32>
    %331 = arith.negf %330 : vector<1x256xf32>
    %332 = math.exp %331 : vector<1x256xf32>
    %cst_187 = arith.constant 1.000000e+00 : f32
    %333 = vector.broadcast %cst_187 : f32 to vector<1x256xf32>
    %334 = arith.addf %333, %332 : vector<1x256xf32>
    %335 = arith.divf %333, %334 : vector<1x256xf32>
    %336 = vector.extract_strided_slice %326 {offsets = [0, 256], sizes = [1, 256], strides = [1, 1]} : vector<1x768xf32> to vector<1x256xf32>
    %337 = vector.extract_strided_slice %327 {offsets = [0, 256], sizes = [1, 256], strides = [1, 1]} : vector<1x768xf32> to vector<1x256xf32>
    %338 = arith.addf %336, %337 : vector<1x256xf32>
    %339 = arith.negf %338 : vector<1x256xf32>
    %340 = math.exp %339 : vector<1x256xf32>
    %cst_188 = arith.constant 1.000000e+00 : f32
    %341 = vector.broadcast %cst_188 : f32 to vector<1x256xf32>
    %342 = arith.addf %341, %340 : vector<1x256xf32>
    %343 = arith.divf %341, %342 : vector<1x256xf32>
    %344 = vector.extract_strided_slice %326 {offsets = [0, 512], sizes = [1, 256], strides = [1, 1]} : vector<1x768xf32> to vector<1x256xf32>
    %345 = vector.extract_strided_slice %327 {offsets = [0, 512], sizes = [1, 256], strides = [1, 1]} : vector<1x768xf32> to vector<1x256xf32>
    %346 = arith.addf %345, %173 : vector<1x256xf32>
    %347 = arith.mulf %335, %346 : vector<1x256xf32>
    %348 = arith.addf %344, %347 : vector<1x256xf32>
    %349 = math.tanh %348 : vector<1x256xf32>
    %cst_189 = arith.constant 1.000000e+00 : f32
    %350 = vector.broadcast %cst_189 : f32 to vector<1x256xf32>
    %351 = arith.subf %350, %343 : vector<1x256xf32>
    %352 = arith.mulf %351, %349 : vector<1x256xf32>
    %353 = arith.mulf %343, %324 : vector<1x256xf32>
    %354 = arith.addf %352, %353 : vector<1x256xf32>
    %c6_i32 = arith.constant 6 : i32
    %355 = arith.index_cast %c6_i32 : i32 to index
    %c0_190 = arith.constant 0 : index
    %356 = vector.load %arg13[%355, %c0_190] : memref<16x768xf32, #tpu.memory_space<vmem>>, vector<1x768xf32>
    %cst_191 = arith.constant dense<0.000000e+00> : vector<1x768xf32>
    %357 = tpu.matmul %354, %172, %cst_191 {dimension_numbers = #tpu.dot_dimension_numbers<[1], [0], [0], [1], [0, 0, 1, 1], [], []>} : vector<1x256xf32>, vector<256x768xf32>, vector<1x768xf32> -> vector<1x768xf32>
    %358 = vector.extract_strided_slice %356 {offsets = [0, 0], sizes = [1, 256], strides = [1, 1]} : vector<1x768xf32> to vector<1x256xf32>
    %359 = vector.extract_strided_slice %357 {offsets = [0, 0], sizes = [1, 256], strides = [1, 1]} : vector<1x768xf32> to vector<1x256xf32>
    %360 = arith.addf %358, %359 : vector<1x256xf32>
    %361 = arith.negf %360 : vector<1x256xf32>
    %362 = math.exp %361 : vector<1x256xf32>
    %cst_192 = arith.constant 1.000000e+00 : f32
    %363 = vector.broadcast %cst_192 : f32 to vector<1x256xf32>
    %364 = arith.addf %363, %362 : vector<1x256xf32>
    %365 = arith.divf %363, %364 : vector<1x256xf32>
    %366 = vector.extract_strided_slice %356 {offsets = [0, 256], sizes = [1, 256], strides = [1, 1]} : vector<1x768xf32> to vector<1x256xf32>
    %367 = vector.extract_strided_slice %357 {offsets = [0, 256], sizes = [1, 256], strides = [1, 1]} : vector<1x768xf32> to vector<1x256xf32>
    %368 = arith.addf %366, %367 : vector<1x256xf32>
    %369 = arith.negf %368 : vector<1x256xf32>
    %370 = math.exp %369 : vector<1x256xf32>
    %cst_193 = arith.constant 1.000000e+00 : f32
    %371 = vector.broadcast %cst_193 : f32 to vector<1x256xf32>
    %372 = arith.addf %371, %370 : vector<1x256xf32>
    %373 = arith.divf %371, %372 : vector<1x256xf32>
    %374 = vector.extract_strided_slice %356 {offsets = [0, 512], sizes = [1, 256], strides = [1, 1]} : vector<1x768xf32> to vector<1x256xf32>
    %375 = vector.extract_strided_slice %357 {offsets = [0, 512], sizes = [1, 256], strides = [1, 1]} : vector<1x768xf32> to vector<1x256xf32>
    %376 = arith.addf %375, %173 : vector<1x256xf32>
    %377 = arith.mulf %365, %376 : vector<1x256xf32>
    %378 = arith.addf %374, %377 : vector<1x256xf32>
    %379 = math.tanh %378 : vector<1x256xf32>
    %cst_194 = arith.constant 1.000000e+00 : f32
    %380 = vector.broadcast %cst_194 : f32 to vector<1x256xf32>
    %381 = arith.subf %380, %373 : vector<1x256xf32>
    %382 = arith.mulf %381, %379 : vector<1x256xf32>
    %383 = arith.mulf %373, %354 : vector<1x256xf32>
    %384 = arith.addf %382, %383 : vector<1x256xf32>
    %c7_i32 = arith.constant 7 : i32
    %385 = arith.index_cast %c7_i32 : i32 to index
    %c0_195 = arith.constant 0 : index
    %386 = vector.load %arg13[%385, %c0_195] : memref<16x768xf32, #tpu.memory_space<vmem>>, vector<1x768xf32>
    %cst_196 = arith.constant dense<0.000000e+00> : vector<1x768xf32>
    %387 = tpu.matmul %384, %172, %cst_196 {dimension_numbers = #tpu.dot_dimension_numbers<[1], [0], [0], [1], [0, 0, 1, 1], [], []>} : vector<1x256xf32>, vector<256x768xf32>, vector<1x768xf32> -> vector<1x768xf32>
    %388 = vector.extract_strided_slice %386 {offsets = [0, 0], sizes = [1, 256], strides = [1, 1]} : vector<1x768xf32> to vector<1x256xf32>
    %389 = vector.extract_strided_slice %387 {offsets = [0, 0], sizes = [1, 256], strides = [1, 1]} : vector<1x768xf32> to vector<1x256xf32>
    %390 = arith.addf %388, %389 : vector<1x256xf32>
    %391 = arith.negf %390 : vector<1x256xf32>
    %392 = math.exp %391 : vector<1x256xf32>
    %cst_197 = arith.constant 1.000000e+00 : f32
    %393 = vector.broadcast %cst_197 : f32 to vector<1x256xf32>
    %394 = arith.addf %393, %392 : vector<1x256xf32>
    %395 = arith.divf %393, %394 : vector<1x256xf32>
    %396 = vector.extract_strided_slice %386 {offsets = [0, 256], sizes = [1, 256], strides = [1, 1]} : vector<1x768xf32> to vector<1x256xf32>
    %397 = vector.extract_strided_slice %387 {offsets = [0, 256], sizes = [1, 256], strides = [1, 1]} : vector<1x768xf32> to vector<1x256xf32>
    %398 = arith.addf %396, %397 : vector<1x256xf32>
    %399 = arith.negf %398 : vector<1x256xf32>
    %400 = math.exp %399 : vector<1x256xf32>
    %cst_198 = arith.constant 1.000000e+00 : f32
    %401 = vector.broadcast %cst_198 : f32 to vector<1x256xf32>
    %402 = arith.addf %401, %400 : vector<1x256xf32>
    %403 = arith.divf %401, %402 : vector<1x256xf32>
    %404 = vector.extract_strided_slice %386 {offsets = [0, 512], sizes = [1, 256], strides = [1, 1]} : vector<1x768xf32> to vector<1x256xf32>
    %405 = vector.extract_strided_slice %387 {offsets = [0, 512], sizes = [1, 256], strides = [1, 1]} : vector<1x768xf32> to vector<1x256xf32>
    %406 = arith.addf %405, %173 : vector<1x256xf32>
    %407 = arith.mulf %395, %406 : vector<1x256xf32>
    %408 = arith.addf %404, %407 : vector<1x256xf32>
    %409 = math.tanh %408 : vector<1x256xf32>
    %cst_199 = arith.constant 1.000000e+00 : f32
    %410 = vector.broadcast %cst_199 : f32 to vector<1x256xf32>
    %411 = arith.subf %410, %403 : vector<1x256xf32>
    %412 = arith.mulf %411, %409 : vector<1x256xf32>
    %413 = arith.mulf %403, %384 : vector<1x256xf32>
    %414 = arith.addf %412, %413 : vector<1x256xf32>
    %c8_i32 = arith.constant 8 : i32
    %415 = arith.index_cast %c8_i32 : i32 to index
    %c0_200 = arith.constant 0 : index
    %416 = vector.load %arg13[%415, %c0_200] : memref<16x768xf32, #tpu.memory_space<vmem>>, vector<1x768xf32>
    %cst_201 = arith.constant dense<0.000000e+00> : vector<1x768xf32>
    %417 = tpu.matmul %414, %172, %cst_201 {dimension_numbers = #tpu.dot_dimension_numbers<[1], [0], [0], [1], [0, 0, 1, 1], [], []>} : vector<1x256xf32>, vector<256x768xf32>, vector<1x768xf32> -> vector<1x768xf32>
    %418 = vector.extract_strided_slice %416 {offsets = [0, 0], sizes = [1, 256], strides = [1, 1]} : vector<1x768xf32> to vector<1x256xf32>
    %419 = vector.extract_strided_slice %417 {offsets = [0, 0], sizes = [1, 256], strides = [1, 1]} : vector<1x768xf32> to vector<1x256xf32>
    %420 = arith.addf %418, %419 : vector<1x256xf32>
    %421 = arith.negf %420 : vector<1x256xf32>
    %422 = math.exp %421 : vector<1x256xf32>
    %cst_202 = arith.constant 1.000000e+00 : f32
    %423 = vector.broadcast %cst_202 : f32 to vector<1x256xf32>
    %424 = arith.addf %423, %422 : vector<1x256xf32>
    %425 = arith.divf %423, %424 : vector<1x256xf32>
    %426 = vector.extract_strided_slice %416 {offsets = [0, 256], sizes = [1, 256], strides = [1, 1]} : vector<1x768xf32> to vector<1x256xf32>
    %427 = vector.extract_strided_slice %417 {offsets = [0, 256], sizes = [1, 256], strides = [1, 1]} : vector<1x768xf32> to vector<1x256xf32>
    %428 = arith.addf %426, %427 : vector<1x256xf32>
    %429 = arith.negf %428 : vector<1x256xf32>
    %430 = math.exp %429 : vector<1x256xf32>
    %cst_203 = arith.constant 1.000000e+00 : f32
    %431 = vector.broadcast %cst_203 : f32 to vector<1x256xf32>
    %432 = arith.addf %431, %430 : vector<1x256xf32>
    %433 = arith.divf %431, %432 : vector<1x256xf32>
    %434 = vector.extract_strided_slice %416 {offsets = [0, 512], sizes = [1, 256], strides = [1, 1]} : vector<1x768xf32> to vector<1x256xf32>
    %435 = vector.extract_strided_slice %417 {offsets = [0, 512], sizes = [1, 256], strides = [1, 1]} : vector<1x768xf32> to vector<1x256xf32>
    %436 = arith.addf %435, %173 : vector<1x256xf32>
    %437 = arith.mulf %425, %436 : vector<1x256xf32>
    %438 = arith.addf %434, %437 : vector<1x256xf32>
    %439 = math.tanh %438 : vector<1x256xf32>
    %cst_204 = arith.constant 1.000000e+00 : f32
    %440 = vector.broadcast %cst_204 : f32 to vector<1x256xf32>
    %441 = arith.subf %440, %433 : vector<1x256xf32>
    %442 = arith.mulf %441, %439 : vector<1x256xf32>
    %443 = arith.mulf %433, %414 : vector<1x256xf32>
    %444 = arith.addf %442, %443 : vector<1x256xf32>
    %c9_i32 = arith.constant 9 : i32
    %445 = arith.index_cast %c9_i32 : i32 to index
    %c0_205 = arith.constant 0 : index
    %446 = vector.load %arg13[%445, %c0_205] : memref<16x768xf32, #tpu.memory_space<vmem>>, vector<1x768xf32>
    %cst_206 = arith.constant dense<0.000000e+00> : vector<1x768xf32>
    %447 = tpu.matmul %444, %172, %cst_206 {dimension_numbers = #tpu.dot_dimension_numbers<[1], [0], [0], [1], [0, 0, 1, 1], [], []>} : vector<1x256xf32>, vector<256x768xf32>, vector<1x768xf32> -> vector<1x768xf32>
    %448 = vector.extract_strided_slice %446 {offsets = [0, 0], sizes = [1, 256], strides = [1, 1]} : vector<1x768xf32> to vector<1x256xf32>
    %449 = vector.extract_strided_slice %447 {offsets = [0, 0], sizes = [1, 256], strides = [1, 1]} : vector<1x768xf32> to vector<1x256xf32>
    %450 = arith.addf %448, %449 : vector<1x256xf32>
    %451 = arith.negf %450 : vector<1x256xf32>
    %452 = math.exp %451 : vector<1x256xf32>
    %cst_207 = arith.constant 1.000000e+00 : f32
    %453 = vector.broadcast %cst_207 : f32 to vector<1x256xf32>
    %454 = arith.addf %453, %452 : vector<1x256xf32>
    %455 = arith.divf %453, %454 : vector<1x256xf32>
    %456 = vector.extract_strided_slice %446 {offsets = [0, 256], sizes = [1, 256], strides = [1, 1]} : vector<1x768xf32> to vector<1x256xf32>
    %457 = vector.extract_strided_slice %447 {offsets = [0, 256], sizes = [1, 256], strides = [1, 1]} : vector<1x768xf32> to vector<1x256xf32>
    %458 = arith.addf %456, %457 : vector<1x256xf32>
    %459 = arith.negf %458 : vector<1x256xf32>
    %460 = math.exp %459 : vector<1x256xf32>
    %cst_208 = arith.constant 1.000000e+00 : f32
    %461 = vector.broadcast %cst_208 : f32 to vector<1x256xf32>
    %462 = arith.addf %461, %460 : vector<1x256xf32>
    %463 = arith.divf %461, %462 : vector<1x256xf32>
    %464 = vector.extract_strided_slice %446 {offsets = [0, 512], sizes = [1, 256], strides = [1, 1]} : vector<1x768xf32> to vector<1x256xf32>
    %465 = vector.extract_strided_slice %447 {offsets = [0, 512], sizes = [1, 256], strides = [1, 1]} : vector<1x768xf32> to vector<1x256xf32>
    %466 = arith.addf %465, %173 : vector<1x256xf32>
    %467 = arith.mulf %455, %466 : vector<1x256xf32>
    %468 = arith.addf %464, %467 : vector<1x256xf32>
    %469 = math.tanh %468 : vector<1x256xf32>
    %cst_209 = arith.constant 1.000000e+00 : f32
    %470 = vector.broadcast %cst_209 : f32 to vector<1x256xf32>
    %471 = arith.subf %470, %463 : vector<1x256xf32>
    %472 = arith.mulf %471, %469 : vector<1x256xf32>
    %473 = arith.mulf %463, %444 : vector<1x256xf32>
    %474 = arith.addf %472, %473 : vector<1x256xf32>
    %c10_i32 = arith.constant 10 : i32
    %475 = arith.index_cast %c10_i32 : i32 to index
    %c0_210 = arith.constant 0 : index
    %476 = vector.load %arg13[%475, %c0_210] : memref<16x768xf32, #tpu.memory_space<vmem>>, vector<1x768xf32>
    %cst_211 = arith.constant dense<0.000000e+00> : vector<1x768xf32>
    %477 = tpu.matmul %474, %172, %cst_211 {dimension_numbers = #tpu.dot_dimension_numbers<[1], [0], [0], [1], [0, 0, 1, 1], [], []>} : vector<1x256xf32>, vector<256x768xf32>, vector<1x768xf32> -> vector<1x768xf32>
    %478 = vector.extract_strided_slice %476 {offsets = [0, 0], sizes = [1, 256], strides = [1, 1]} : vector<1x768xf32> to vector<1x256xf32>
    %479 = vector.extract_strided_slice %477 {offsets = [0, 0], sizes = [1, 256], strides = [1, 1]} : vector<1x768xf32> to vector<1x256xf32>
    %480 = arith.addf %478, %479 : vector<1x256xf32>
    %481 = arith.negf %480 : vector<1x256xf32>
    %482 = math.exp %481 : vector<1x256xf32>
    %cst_212 = arith.constant 1.000000e+00 : f32
    %483 = vector.broadcast %cst_212 : f32 to vector<1x256xf32>
    %484 = arith.addf %483, %482 : vector<1x256xf32>
    %485 = arith.divf %483, %484 : vector<1x256xf32>
    %486 = vector.extract_strided_slice %476 {offsets = [0, 256], sizes = [1, 256], strides = [1, 1]} : vector<1x768xf32> to vector<1x256xf32>
    %487 = vector.extract_strided_slice %477 {offsets = [0, 256], sizes = [1, 256], strides = [1, 1]} : vector<1x768xf32> to vector<1x256xf32>
    %488 = arith.addf %486, %487 : vector<1x256xf32>
    %489 = arith.negf %488 : vector<1x256xf32>
    %490 = math.exp %489 : vector<1x256xf32>
    %cst_213 = arith.constant 1.000000e+00 : f32
    %491 = vector.broadcast %cst_213 : f32 to vector<1x256xf32>
    %492 = arith.addf %491, %490 : vector<1x256xf32>
    %493 = arith.divf %491, %492 : vector<1x256xf32>
    %494 = vector.extract_strided_slice %476 {offsets = [0, 512], sizes = [1, 256], strides = [1, 1]} : vector<1x768xf32> to vector<1x256xf32>
    %495 = vector.extract_strided_slice %477 {offsets = [0, 512], sizes = [1, 256], strides = [1, 1]} : vector<1x768xf32> to vector<1x256xf32>
    %496 = arith.addf %495, %173 : vector<1x256xf32>
    %497 = arith.mulf %485, %496 : vector<1x256xf32>
    %498 = arith.addf %494, %497 : vector<1x256xf32>
    %499 = math.tanh %498 : vector<1x256xf32>
    %cst_214 = arith.constant 1.000000e+00 : f32
    %500 = vector.broadcast %cst_214 : f32 to vector<1x256xf32>
    %501 = arith.subf %500, %493 : vector<1x256xf32>
    %502 = arith.mulf %501, %499 : vector<1x256xf32>
    %503 = arith.mulf %493, %474 : vector<1x256xf32>
    %504 = arith.addf %502, %503 : vector<1x256xf32>
    %c11_i32 = arith.constant 11 : i32
    %505 = arith.index_cast %c11_i32 : i32 to index
    %c0_215 = arith.constant 0 : index
    %506 = vector.load %arg13[%505, %c0_215] : memref<16x768xf32, #tpu.memory_space<vmem>>, vector<1x768xf32>
    %cst_216 = arith.constant dense<0.000000e+00> : vector<1x768xf32>
    %507 = tpu.matmul %504, %172, %cst_216 {dimension_numbers = #tpu.dot_dimension_numbers<[1], [0], [0], [1], [0, 0, 1, 1], [], []>} : vector<1x256xf32>, vector<256x768xf32>, vector<1x768xf32> -> vector<1x768xf32>
    %508 = vector.extract_strided_slice %506 {offsets = [0, 0], sizes = [1, 256], strides = [1, 1]} : vector<1x768xf32> to vector<1x256xf32>
    %509 = vector.extract_strided_slice %507 {offsets = [0, 0], sizes = [1, 256], strides = [1, 1]} : vector<1x768xf32> to vector<1x256xf32>
    %510 = arith.addf %508, %509 : vector<1x256xf32>
    %511 = arith.negf %510 : vector<1x256xf32>
    %512 = math.exp %511 : vector<1x256xf32>
    %cst_217 = arith.constant 1.000000e+00 : f32
    %513 = vector.broadcast %cst_217 : f32 to vector<1x256xf32>
    %514 = arith.addf %513, %512 : vector<1x256xf32>
    %515 = arith.divf %513, %514 : vector<1x256xf32>
    %516 = vector.extract_strided_slice %506 {offsets = [0, 256], sizes = [1, 256], strides = [1, 1]} : vector<1x768xf32> to vector<1x256xf32>
    %517 = vector.extract_strided_slice %507 {offsets = [0, 256], sizes = [1, 256], strides = [1, 1]} : vector<1x768xf32> to vector<1x256xf32>
    %518 = arith.addf %516, %517 : vector<1x256xf32>
    %519 = arith.negf %518 : vector<1x256xf32>
    %520 = math.exp %519 : vector<1x256xf32>
    %cst_218 = arith.constant 1.000000e+00 : f32
    %521 = vector.broadcast %cst_218 : f32 to vector<1x256xf32>
    %522 = arith.addf %521, %520 : vector<1x256xf32>
    %523 = arith.divf %521, %522 : vector<1x256xf32>
    %524 = vector.extract_strided_slice %506 {offsets = [0, 512], sizes = [1, 256], strides = [1, 1]} : vector<1x768xf32> to vector<1x256xf32>
    %525 = vector.extract_strided_slice %507 {offsets = [0, 512], sizes = [1, 256], strides = [1, 1]} : vector<1x768xf32> to vector<1x256xf32>
    %526 = arith.addf %525, %173 : vector<1x256xf32>
    %527 = arith.mulf %515, %526 : vector<1x256xf32>
    %528 = arith.addf %524, %527 : vector<1x256xf32>
    %529 = math.tanh %528 : vector<1x256xf32>
    %cst_219 = arith.constant 1.000000e+00 : f32
    %530 = vector.broadcast %cst_219 : f32 to vector<1x256xf32>
    %531 = arith.subf %530, %523 : vector<1x256xf32>
    %532 = arith.mulf %531, %529 : vector<1x256xf32>
    %533 = arith.mulf %523, %504 : vector<1x256xf32>
    %534 = arith.addf %532, %533 : vector<1x256xf32>
    %c12_i32 = arith.constant 12 : i32
    %535 = arith.index_cast %c12_i32 : i32 to index
    %c0_220 = arith.constant 0 : index
    %536 = vector.load %arg13[%535, %c0_220] : memref<16x768xf32, #tpu.memory_space<vmem>>, vector<1x768xf32>
    %cst_221 = arith.constant dense<0.000000e+00> : vector<1x768xf32>
    %537 = tpu.matmul %534, %172, %cst_221 {dimension_numbers = #tpu.dot_dimension_numbers<[1], [0], [0], [1], [0, 0, 1, 1], [], []>} : vector<1x256xf32>, vector<256x768xf32>, vector<1x768xf32> -> vector<1x768xf32>
    %538 = vector.extract_strided_slice %536 {offsets = [0, 0], sizes = [1, 256], strides = [1, 1]} : vector<1x768xf32> to vector<1x256xf32>
    %539 = vector.extract_strided_slice %537 {offsets = [0, 0], sizes = [1, 256], strides = [1, 1]} : vector<1x768xf32> to vector<1x256xf32>
    %540 = arith.addf %538, %539 : vector<1x256xf32>
    %541 = arith.negf %540 : vector<1x256xf32>
    %542 = math.exp %541 : vector<1x256xf32>
    %cst_222 = arith.constant 1.000000e+00 : f32
    %543 = vector.broadcast %cst_222 : f32 to vector<1x256xf32>
    %544 = arith.addf %543, %542 : vector<1x256xf32>
    %545 = arith.divf %543, %544 : vector<1x256xf32>
    %546 = vector.extract_strided_slice %536 {offsets = [0, 256], sizes = [1, 256], strides = [1, 1]} : vector<1x768xf32> to vector<1x256xf32>
    %547 = vector.extract_strided_slice %537 {offsets = [0, 256], sizes = [1, 256], strides = [1, 1]} : vector<1x768xf32> to vector<1x256xf32>
    %548 = arith.addf %546, %547 : vector<1x256xf32>
    %549 = arith.negf %548 : vector<1x256xf32>
    %550 = math.exp %549 : vector<1x256xf32>
    %cst_223 = arith.constant 1.000000e+00 : f32
    %551 = vector.broadcast %cst_223 : f32 to vector<1x256xf32>
    %552 = arith.addf %551, %550 : vector<1x256xf32>
    %553 = arith.divf %551, %552 : vector<1x256xf32>
    %554 = vector.extract_strided_slice %536 {offsets = [0, 512], sizes = [1, 256], strides = [1, 1]} : vector<1x768xf32> to vector<1x256xf32>
    %555 = vector.extract_strided_slice %537 {offsets = [0, 512], sizes = [1, 256], strides = [1, 1]} : vector<1x768xf32> to vector<1x256xf32>
    %556 = arith.addf %555, %173 : vector<1x256xf32>
    %557 = arith.mulf %545, %556 : vector<1x256xf32>
    %558 = arith.addf %554, %557 : vector<1x256xf32>
    %559 = math.tanh %558 : vector<1x256xf32>
    %cst_224 = arith.constant 1.000000e+00 : f32
    %560 = vector.broadcast %cst_224 : f32 to vector<1x256xf32>
    %561 = arith.subf %560, %553 : vector<1x256xf32>
    %562 = arith.mulf %561, %559 : vector<1x256xf32>
    %563 = arith.mulf %553, %534 : vector<1x256xf32>
    %564 = arith.addf %562, %563 : vector<1x256xf32>
    %c13_i32 = arith.constant 13 : i32
    %565 = arith.index_cast %c13_i32 : i32 to index
    %c0_225 = arith.constant 0 : index
    %566 = vector.load %arg13[%565, %c0_225] : memref<16x768xf32, #tpu.memory_space<vmem>>, vector<1x768xf32>
    %cst_226 = arith.constant dense<0.000000e+00> : vector<1x768xf32>
    %567 = tpu.matmul %564, %172, %cst_226 {dimension_numbers = #tpu.dot_dimension_numbers<[1], [0], [0], [1], [0, 0, 1, 1], [], []>} : vector<1x256xf32>, vector<256x768xf32>, vector<1x768xf32> -> vector<1x768xf32>
    %568 = vector.extract_strided_slice %566 {offsets = [0, 0], sizes = [1, 256], strides = [1, 1]} : vector<1x768xf32> to vector<1x256xf32>
    %569 = vector.extract_strided_slice %567 {offsets = [0, 0], sizes = [1, 256], strides = [1, 1]} : vector<1x768xf32> to vector<1x256xf32>
    %570 = arith.addf %568, %569 : vector<1x256xf32>
    %571 = arith.negf %570 : vector<1x256xf32>
    %572 = math.exp %571 : vector<1x256xf32>
    %cst_227 = arith.constant 1.000000e+00 : f32
    %573 = vector.broadcast %cst_227 : f32 to vector<1x256xf32>
    %574 = arith.addf %573, %572 : vector<1x256xf32>
    %575 = arith.divf %573, %574 : vector<1x256xf32>
    %576 = vector.extract_strided_slice %566 {offsets = [0, 256], sizes = [1, 256], strides = [1, 1]} : vector<1x768xf32> to vector<1x256xf32>
    %577 = vector.extract_strided_slice %567 {offsets = [0, 256], sizes = [1, 256], strides = [1, 1]} : vector<1x768xf32> to vector<1x256xf32>
    %578 = arith.addf %576, %577 : vector<1x256xf32>
    %579 = arith.negf %578 : vector<1x256xf32>
    %580 = math.exp %579 : vector<1x256xf32>
    %cst_228 = arith.constant 1.000000e+00 : f32
    %581 = vector.broadcast %cst_228 : f32 to vector<1x256xf32>
    %582 = arith.addf %581, %580 : vector<1x256xf32>
    %583 = arith.divf %581, %582 : vector<1x256xf32>
    %584 = vector.extract_strided_slice %566 {offsets = [0, 512], sizes = [1, 256], strides = [1, 1]} : vector<1x768xf32> to vector<1x256xf32>
    %585 = vector.extract_strided_slice %567 {offsets = [0, 512], sizes = [1, 256], strides = [1, 1]} : vector<1x768xf32> to vector<1x256xf32>
    %586 = arith.addf %585, %173 : vector<1x256xf32>
    %587 = arith.mulf %575, %586 : vector<1x256xf32>
    %588 = arith.addf %584, %587 : vector<1x256xf32>
    %589 = math.tanh %588 : vector<1x256xf32>
    %cst_229 = arith.constant 1.000000e+00 : f32
    %590 = vector.broadcast %cst_229 : f32 to vector<1x256xf32>
    %591 = arith.subf %590, %583 : vector<1x256xf32>
    %592 = arith.mulf %591, %589 : vector<1x256xf32>
    %593 = arith.mulf %583, %564 : vector<1x256xf32>
    %594 = arith.addf %592, %593 : vector<1x256xf32>
    %c14_i32 = arith.constant 14 : i32
    %595 = arith.index_cast %c14_i32 : i32 to index
    %c0_230 = arith.constant 0 : index
    %596 = vector.load %arg13[%595, %c0_230] : memref<16x768xf32, #tpu.memory_space<vmem>>, vector<1x768xf32>
    %cst_231 = arith.constant dense<0.000000e+00> : vector<1x768xf32>
    %597 = tpu.matmul %594, %172, %cst_231 {dimension_numbers = #tpu.dot_dimension_numbers<[1], [0], [0], [1], [0, 0, 1, 1], [], []>} : vector<1x256xf32>, vector<256x768xf32>, vector<1x768xf32> -> vector<1x768xf32>
    %598 = vector.extract_strided_slice %596 {offsets = [0, 0], sizes = [1, 256], strides = [1, 1]} : vector<1x768xf32> to vector<1x256xf32>
    %599 = vector.extract_strided_slice %597 {offsets = [0, 0], sizes = [1, 256], strides = [1, 1]} : vector<1x768xf32> to vector<1x256xf32>
    %600 = arith.addf %598, %599 : vector<1x256xf32>
    %601 = arith.negf %600 : vector<1x256xf32>
    %602 = math.exp %601 : vector<1x256xf32>
    %cst_232 = arith.constant 1.000000e+00 : f32
    %603 = vector.broadcast %cst_232 : f32 to vector<1x256xf32>
    %604 = arith.addf %603, %602 : vector<1x256xf32>
    %605 = arith.divf %603, %604 : vector<1x256xf32>
    %606 = vector.extract_strided_slice %596 {offsets = [0, 256], sizes = [1, 256], strides = [1, 1]} : vector<1x768xf32> to vector<1x256xf32>
    %607 = vector.extract_strided_slice %597 {offsets = [0, 256], sizes = [1, 256], strides = [1, 1]} : vector<1x768xf32> to vector<1x256xf32>
    %608 = arith.addf %606, %607 : vector<1x256xf32>
    %609 = arith.negf %608 : vector<1x256xf32>
    %610 = math.exp %609 : vector<1x256xf32>
    %cst_233 = arith.constant 1.000000e+00 : f32
    %611 = vector.broadcast %cst_233 : f32 to vector<1x256xf32>
    %612 = arith.addf %611, %610 : vector<1x256xf32>
    %613 = arith.divf %611, %612 : vector<1x256xf32>
    %614 = vector.extract_strided_slice %596 {offsets = [0, 512], sizes = [1, 256], strides = [1, 1]} : vector<1x768xf32> to vector<1x256xf32>
    %615 = vector.extract_strided_slice %597 {offsets = [0, 512], sizes = [1, 256], strides = [1, 1]} : vector<1x768xf32> to vector<1x256xf32>
    %616 = arith.addf %615, %173 : vector<1x256xf32>
    %617 = arith.mulf %605, %616 : vector<1x256xf32>
    %618 = arith.addf %614, %617 : vector<1x256xf32>
    %619 = math.tanh %618 : vector<1x256xf32>
    %cst_234 = arith.constant 1.000000e+00 : f32
    %620 = vector.broadcast %cst_234 : f32 to vector<1x256xf32>
    %621 = arith.subf %620, %613 : vector<1x256xf32>
    %622 = arith.mulf %621, %619 : vector<1x256xf32>
    %623 = arith.mulf %613, %594 : vector<1x256xf32>
    %624 = arith.addf %622, %623 : vector<1x256xf32>
    %c15_i32 = arith.constant 15 : i32
    %625 = arith.index_cast %c15_i32 : i32 to index
    %c0_235 = arith.constant 0 : index
    %626 = vector.load %arg13[%625, %c0_235] : memref<16x768xf32, #tpu.memory_space<vmem>>, vector<1x768xf32>
    %cst_236 = arith.constant dense<0.000000e+00> : vector<1x768xf32>
    %627 = tpu.matmul %624, %172, %cst_236 {dimension_numbers = #tpu.dot_dimension_numbers<[1], [0], [0], [1], [0, 0, 1, 1], [], []>} : vector<1x256xf32>, vector<256x768xf32>, vector<1x768xf32> -> vector<1x768xf32>
    %628 = vector.extract_strided_slice %626 {offsets = [0, 0], sizes = [1, 256], strides = [1, 1]} : vector<1x768xf32> to vector<1x256xf32>
    %629 = vector.extract_strided_slice %627 {offsets = [0, 0], sizes = [1, 256], strides = [1, 1]} : vector<1x768xf32> to vector<1x256xf32>
    %630 = arith.addf %628, %629 : vector<1x256xf32>
    %631 = arith.negf %630 : vector<1x256xf32>
    %632 = math.exp %631 : vector<1x256xf32>
    %cst_237 = arith.constant 1.000000e+00 : f32
    %633 = vector.broadcast %cst_237 : f32 to vector<1x256xf32>
    %634 = arith.addf %633, %632 : vector<1x256xf32>
    %635 = arith.divf %633, %634 : vector<1x256xf32>
    %636 = vector.extract_strided_slice %626 {offsets = [0, 256], sizes = [1, 256], strides = [1, 1]} : vector<1x768xf32> to vector<1x256xf32>
    %637 = vector.extract_strided_slice %627 {offsets = [0, 256], sizes = [1, 256], strides = [1, 1]} : vector<1x768xf32> to vector<1x256xf32>
    %638 = arith.addf %636, %637 : vector<1x256xf32>
    %639 = arith.negf %638 : vector<1x256xf32>
    %640 = math.exp %639 : vector<1x256xf32>
    %cst_238 = arith.constant 1.000000e+00 : f32
    %641 = vector.broadcast %cst_238 : f32 to vector<1x256xf32>
    %642 = arith.addf %641, %640 : vector<1x256xf32>
    %643 = arith.divf %641, %642 : vector<1x256xf32>
    %644 = vector.extract_strided_slice %626 {offsets = [0, 512], sizes = [1, 256], strides = [1, 1]} : vector<1x768xf32> to vector<1x256xf32>
    %645 = vector.extract_strided_slice %627 {offsets = [0, 512], sizes = [1, 256], strides = [1, 1]} : vector<1x768xf32> to vector<1x256xf32>
    %646 = arith.addf %645, %173 : vector<1x256xf32>
    %647 = arith.mulf %635, %646 : vector<1x256xf32>
    %648 = arith.addf %644, %647 : vector<1x256xf32>
    %649 = math.tanh %648 : vector<1x256xf32>
    %cst_239 = arith.constant 1.000000e+00 : f32
    %650 = vector.broadcast %cst_239 : f32 to vector<1x256xf32>
    %651 = arith.subf %650, %643 : vector<1x256xf32>
    %652 = arith.mulf %651, %649 : vector<1x256xf32>
    %653 = arith.mulf %643, %624 : vector<1x256xf32>
    %654 = arith.addf %652, %653 : vector<1x256xf32>
    %c16_i32 = arith.constant 16 : i32
    %c0_240 = arith.constant 0 : index
    %c0_241 = arith.constant 0 : index
    %655 = vector.load %arg10[%c0_240, %c0_241] : memref<1x256xf32, #tpu.memory_space<vmem>>, vector<1x256xf32>
    tpu.vector_store %arg10[%c0_240, %c0_241], %654 {strides = array<i32>} : memref<1x256xf32, #tpu.memory_space<vmem>>, vector<1x256xf32>,
    return
  }
  func.func @transform_0(%arg0: i32) -> (i32, i32) {
    %c0_i32 = arith.constant 0 : i32
    %c0_i32_0 = arith.constant 0 : i32
    %c0_i32_1 = arith.constant 0 : i32
    return %c0_i32, %c0_i32_0 : i32, i32
  }
  func.func @transform_1(%arg0: i32) -> (i32, i32) {
    %c0_i32 = arith.constant 0 : i32
    %c0_i32_0 = arith.constant 0 : i32
    %c0_i32_1 = arith.constant 0 : i32
    return %c0_i32, %c0_i32_0 : i32, i32
  }
  func.func @transform_2(%arg0: i32) -> (i32, i32) {
    %c0_i32 = arith.constant 0 : i32
    %c0_i32_0 = arith.constant 0 : i32
    %c0_i32_1 = arith.constant 0 : i32
    return %c0_i32, %c0_i32_0 : i32, i32
  }
  func.func @transform_3(%arg0: i32) -> (i32, i32) {
    %c0_i32 = arith.constant 0 : i32
    %c0_i32_0 = arith.constant 0 : i32
    %c0_i32_1 = arith.constant 0 : i32
    return %c0_i32, %c0_i32_0 : i32, i32
  }
  func.func @transform_4(%arg0: i32) -> (i32, i32) {
    %c0_i32 = arith.constant 0 : i32
    %c0_i32_0 = arith.constant 0 : i32
    %c0_i32_1 = arith.constant 0 : i32
    return %c0_i32, %c0_i32_0 : i32, i32
  }
  func.func @transform_5(%arg0: i32) -> (i32, i32) {
    %c0_i32 = arith.constant 0 : i32
    %c0_i32_0 = arith.constant 0 : i32
    %c0_i32_1 = arith.constant 0 : i32
    return %c0_i32, %c0_i32_0 : i32, i32
  }
  func.func @transform_6(%arg0: i32) -> (i32, i32) {
    %c0_i32 = arith.constant 0 : i32
    %c0_i32_0 = arith.constant 0 : i32
    %c0_i32_1 = arith.constant 0 : i32
    return %c0_i32, %c0_i32_0 : i32, i32
  }
  func.func @transform_7(%arg0: i32) -> (i32, i32) {
    %c0_i32 = arith.constant 0 : i32
    %c0_i32_0 = arith.constant 0 : i32
    %c0_i32_1 = arith.constant 0 : i32
    return %c0_i32, %c0_i32_0 : i32, i32
  }
  func.func @transform_8(%arg0: i32) -> (i32, i32) {
    %c0_i32 = arith.constant 0 : i32
    %c0_i32_0 = arith.constant 0 : i32
    %c0_i32_1 = arith.constant 0 : i32
    return %c0_i32, %c0_i32_0 : i32, i32
  }
  func.func @transform_9(%arg0: i32) -> (i32, i32) {
    %c0_i32 = arith.constant 0 : i32
    %c0_i32_0 = arith.constant 0 : i32
    %c0_i32_1 = arith.constant 0 : i32
    return %c0_i32, %c0_i32_0 : i32, i32
  }
}

</mosaic_0001>

<bundles_post_ra>
// kernel: recurrent_dance_classifier_forward.1
= control target key start
LH: loop header
LB: loop body
LE: loop exit
PB: predicated region body
PF: predicated region fallthrough
CT: control target
= control target key end

     0   :  { %s17996_s0 = inlined_call_operand.vmem [shape: f32[32,128], index: 0, kind: input, shape index: {}]   ;;  %s17997_s1 = inlined_call_operand.vmem [shape: f32[128,128], index: 1, kind: input, shape index: {}]   ;;  %s17998_s2 = inlined_call_operand.vmem [shape: f32[1,128], index: 2, kind: input, shape index: {}]   ;;  %s17999_s3 = inlined_call_operand.vmem [shape: f32[1792,128], index: 3, kind: input, shape index: {}]   ;;  %s18000_s4 = inlined_call_operand.vmem [shape: f32[2,128], index: 4, kind: input, shape index: {}]   ;;  %s18001_s5 = inlined_call_operand.vmem [shape: f32[128,384], index: 5, kind: input, shape index: {}]   ;;  %s18002_s6 = inlined_call_operand.vmem [shape: f32[1,384], index: 6, kind: input, shape index: {}]   ;;  %s18003_s7 = inlined_call_operand.vmem [shape: f32[256,768], index: 7, kind: input, shape index: {}]   ;;  %s18004_s8 = inlined_call_operand.vmem [shape: f32[1,256], index: 8, kind: input, shape index: {}]   ;;  %s18005_s9 = inlined_call_operand.hbm [shape: f32[1,256], index: 9, kind: output, shape index: {}]  }
   0x1   :  { %v45_v0 = vld [vmem:[%s17997_s1] sm:$0xff]  ;;  %v46_v1 = vld [vmem:[%s17997_s1 + $0x8] sm:$0xff]  ;;  %v47_v2 = vld [vmem:[%s17997_s1 + $0x10] sm:$0xff] }
   0x2   :  { %v9862_v3 = vpack.c.bf16 %v46_v1, %v45_v0  ;;  %v48_v4 = vld [vmem:[%s17997_s1 + $0x18] sm:$0xff]  ;;  %v49_v6 = vld [vmem:[%s17997_s1 + $0x20] sm:$0xff]  ;;  %v50_v7 = vld [vmem:[%s17997_s1 + $0x28] sm:$0xff] }
   0x3   :  { %v9866_v5 = vpack.c.bf16 %v48_v4, %v47_v2  ;;  %v9870_v8 = vpack.c.bf16 %v50_v7, %v49_v6  ;;  %v41_v9 = vld [vmem:[%s17996_s0] sm:$0xff]  ;;  %v51_v10 = vld [vmem:[%s17997_s1 + $0x30] sm:$0xff]  ;;  %v52_v11 = vld [vmem:[%s17997_s1 + $0x38] sm:$0xff] }
   0x4   :  { %9863 = vmatprep.subr.bf16.mxu0 %v9862_v3  ;;  %8806 = vmatprep.mubr.f32.mxu0 %v41_v9  ;;  %v181_v12 = vld [vmem:[%s17999_s3 + $0x80] sm:$0xff]  ;;  %v182_v13 = vld [vmem:[%s17999_s3 + $0x88] sm:$0xff]  ;;  %v183_v14 = vld [vmem:[%s17999_s3 + $0x90] sm:$0xff]  ;;  %v9874_v18 = vpack.c.bf16 %v52_v11, %v51_v10 }
   0x5   :  { %9865 = vmatpush3.bf16.msra.mxu0 %v9862_v3  ;;  %v184_v15 = vld [vmem:[%s17999_s3 + $0x98] sm:$0xff]  ;;  %v9894_v16 = vpack.c.bf16 %v182_v13, %v181_v12  ;;  %v185_v19 = vld [vmem:[%s17999_s3 + $0xa0] sm:$0xff]  ;;  %v186_v20 = vld [vmem:[%s17999_s3 + $0xa8] sm:$0xff] }
   0x6   :  { %9867 = vmatprep.subr.bf16.mxu0 %v9866_v5  ;;  %v9898_v17 = vpack.c.bf16 %v184_v15, %v183_v14  ;;  %v53_v21 = vld [vmem:[%s17997_s1 + $0x40] sm:$0xff]  ;;  %v54_v22 = vld [vmem:[%s17997_s1 + $0x48] sm:$0xff] }
   0x7   :  { %9895 = vmatprep.subr.bf16.mxu1 %v9894_v16 }
   0x9   :  { %9869 = vmatpush3.bf16.msra.mxu0 %v9866_v5 }
   0xa   :  { %9871 = vmatprep.subr.bf16.mxu0 %v9870_v8 }
   0xb   :  { %14 = vsyncpa [#allocation6], 0  ;;  %9897 = vmatpush3.bf16.msra.mxu1 %v9894_v16  ;;  %v9902_v23 = vpack.c.bf16 %v186_v20, %v185_v19  ;;  %v9878_v24 = vpack.c.bf16 %v54_v22, %v53_v21  ;;  %v187_v25 = vld [vmem:[%s17999_s3 + $0xb0] sm:$0xff]  ;;  %v188_v26 = vld [vmem:[%s17999_s3 + $0xb8] sm:$0xff]  ;;  %v14227_v49 = vmov 0.0  }
   0xc   :  { %9899 = vmatprep.subr.bf16.mxu1 %v9898_v17  ;;  %v55_v27 = vld [vmem:[%s17997_s1 + $0x50] sm:$0xff]  ;;  %v56_v28 = vld [vmem:[%s17997_s1 + $0x58] sm:$0xff]  ;;  %v9906_v29 = vpack.c.bf16 %v188_v26, %v187_v25  ;;  %v189_v31 = vld [vmem:[%s17999_s3 + $0xc0] sm:$0xff]  ;;  %33 = vst [vmem:[#allocation2] sm:$0xff] %v14227_v49 }
   0xd   :  { %9873 = vmatpush3.bf16.msra.mxu0 %v9870_v8  ;;  %v9882_v30 = vpack.c.bf16 %v56_v28, %v55_v27  ;;  %v190_v32 = vld [vmem:[%s17999_s3 + $0xc8] sm:$0xff]  ;;  %v57_v33 = vld [vmem:[%s17997_s1 + $0x60] sm:$0xff]  ;;  %v59_v37 = vld [vmem:[%s17997_s1 + $0x70] sm:$0xff]  ;;  %34 = vst [vmem:[#allocation3] sm:$0xff] %v14227_v49 }
   0xe   :  { %9875 = vmatprep.subr.bf16.mxu0 %v9874_v18  ;;  %v58_v34 = vld [vmem:[%s17997_s1 + $0x68] sm:$0xff]  ;;  %v9910_v35 = vpack.c.bf16 %v190_v32, %v189_v31  ;;  %v60_v38 = vld [vmem:[%s17997_s1 + $0x78] sm:$0xff]  ;;  %v43_v41 = vld [vmem:[%s17996_s0 + $0x10] sm:$0xff]  ;;  %35 = vst [vmem:[#allocation2 + $0x18] sm:$0xff] %v14227_v49 }
   0xf   :  { %9901 = vmatpush3.bf16.msra.mxu1 %v9898_v17  ;;  %v9886_v36 = vpack.c.bf16 %v58_v34, %v57_v33  ;;  %v9890_v39 = vpack.c.bf16 %v60_v38, %v59_v37  ;;  %v42_v40 = vld [vmem:[%s17996_s0 + $0x8] sm:$0xff]  ;;  %v44_v42 = vld [vmem:[%s17996_s0 + $0x18] sm:$0xff]  ;;  %v191_v43 = vld [vmem:[%s17999_s3 + $0xd0] sm:$0xff]  ;;  %36 = vst [vmem:[#allocation3 + $0x18] sm:$0xff] %v14227_v49 }
  0x10   :  { %9903 = vmatprep.subr.bf16.mxu1 %v9902_v23  ;;  %v192_v44 = vld [vmem:[%s17999_s3 + $0xd8] sm:$0xff]  ;;  %v193_v46 = vld [vmem:[%s17999_s3 + $0xe0] sm:$0xff]  ;;  %v194_v47 = vld [vmem:[%s17999_s3 + $0xe8] sm:$0xff]  ;;  %37 = vst [vmem:[#allocation2 + $0x20] sm:$0xff] %v14227_v49 }
  0x11   :  { %9877 = vmatpush3.bf16.msra.mxu0 %v9874_v18  ;;  %v9914_v45 = vpack.c.bf16 %v192_v44, %v191_v43  ;;  %v9918_v48 = vpack.c.bf16 %v194_v47, %v193_v46  ;;  %38 = vst [vmem:[#allocation3 + $0x20] sm:$0xff] %v14227_v49  ;;  %39 = vst [vmem:[#allocation2 + $0x38] sm:$0xff] %v14227_v49  ;;  %v195_v50 = vld [vmem:[%s17999_s3 + $0xf0] sm:$0xff]  ;;  %v196_v51 = vld [vmem:[%s17999_s3 + $0xf8] sm:$0xff] }
  0x12   :  { %9879 = vmatprep.subr.bf16.mxu0 %v9878_v24  ;;  %40 = vst [vmem:[#allocation3 + $0x38] sm:$0xff] %v14227_v49  ;;  %v9922_v52 = vpack.c.bf16 %v196_v51, %v195_v50  ;;  %v161_v53 = vld [vmem:[%s17999_s3] sm:$0xff]  ;;  %v162_v54 = vld [vmem:[%s17999_s3 + $0x8] sm:$0xff]  ;;  %v163_v5 = vld [vmem:[%s17999_s3 + $0x10] sm:$0xff] }
  0x13   :  { %9905 = vmatpush3.bf16.msra.mxu1 %v9902_v23  ;;  %v9926_v55 = vpack.c.bf16 %v162_v54, %v161_v53  ;;  %v8179_v56 = vld [vmem:[%s17998_s2] ss:$0 sm:$0xff]  ;;  %v164_v6 = vld [vmem:[%s17999_s3 + $0x18] sm:$0xff]  ;;  %v166_v11 = vld [vmem:[%s17999_s3 + $0x28] sm:$0xff] }
  0x14   :  { %9907 = vmatprep.subr.bf16.mxu1 %v9906_v29  ;;  %v9930_v9 = vpack.c.bf16 %v164_v6, %v163_v5  ;;  %v165_v10 = vld [vmem:[%s17999_s3 + $0x20] sm:$0xff]  ;;  %v170_v21 = vld [vmem:[%s17999_s3 + $0x48] sm:$0xff]  ;;  %v507_v44 = vld [vmem:[%s17999_s3 + $0x130] sm:$0xff] }
  0x15   :  { %9881 = vmatpush3.bf16.msra.mxu0 %v9878_v24  ;;  %v9934_v15 = vpack.c.bf16 %v166_v11, %v165_v10  ;;  %v169_v20 = vld [vmem:[%s17999_s3 + $0x40] sm:$0xff]  ;;  %v172_v24 = vld [vmem:[%s17999_s3 + $0x58] sm:$0xff]  ;;  %v174_v27 = vld [vmem:[%s17999_s3 + $0x68] sm:$0xff] }
  0x16   :  { %9883 = vmatprep.subr.bf16.mxu0 %v9882_v30  ;;  %v9942_v22 = vpack.c.bf16 %v170_v21, %v169_v20  ;;  %v173_v26 = vld [vmem:[%s17999_s3 + $0x60] sm:$0xff]  ;;  %v502_v33 = vld [vmem:[%s17999_s3 + $0x108] sm:$0xff]  ;;  %v511_v51 = vld [vmem:[%s17999_s3 + $0x150] sm:$0xff] }
  0x17   :  { %9909 = vmatpush3.bf16.msra.mxu1 %v9906_v29  ;;  %v9950_v28 = vpack.c.bf16 %v174_v27, %v173_v26  ;;  %v501_v32 = vld [vmem:[%s17999_s3 + $0x100] sm:$0xff]  ;;  %v510_v49 = vld [vmem:[%s17999_s3 + $0x148] sm:$0xff] }
  0x18   :  { %9911 = vmatprep.subr.bf16.mxu1 %v9910_v35  ;;  %v10022_v34 = vpack.c.bf16 %v502_v33, %v501_v32  ;;  %v513_v54 = vld [vmem:[%s17999_s3 + $0x160] sm:$0xff]  ;;  %v676_v5 = vld [vmem:[%s17999_s3 + $0x188] sm:$0xff] }
  0x19   :  { %9885 = vmatpush3.bf16.msra.mxu0 %v9882_v30  ;;  %v176_v30 = vld [vmem:[%s17999_s3 + $0x78] sm:$0xff]  ;;  %v679_v11 = vld [vmem:[%s17999_s3 + $0x1a0] sm:$0xff]  ;;  %v688_v21 = vld [vmem:[%s17999_s3 + $0x1e8] sm:$0xff] }
  0x1a   :  { %9887 = vmatprep.subr.bf16.mxu0 %v9886_v36  ;;  %v687_v20 = vld [vmem:[%s17999_s3 + $0x1e0] sm:$0xff]  ;;  %v850_v27 = vld [vmem:[%s17999_s3 + $0x208] sm:$0xff] }
  0x1b   :  { %9913 = vmatpush3.bf16.msra.mxu1 %v9910_v35  ;;  %v849_v26 = vld [vmem:[%s17999_s3 + $0x200] sm:$0xff]  ;;  %v854_v33 = vld [vmem:[%s17999_s3 + $0x228] sm:$0xff] }
  0x1c   :  { %9915 = vmatprep.subr.bf16.mxu1 %v9914_v45  ;;  %v853_v32 = vld [vmem:[%s17999_s3 + $0x220] sm:$0xff] }
  0x1d   :  { %9889 = vmatpush3.bf16.msra.mxu0 %v9886_v36  ;;  %v504_v36 = vld [vmem:[%s17999_s3 + $0x118] sm:$0xff] }
  0x1e   :  { %9891 = vmatprep.subr.bf16.mxu0 %v9890_v39 }
  0x1f   :  { %9917 = vmatpush3.bf16.msra.mxu1 %v9914_v45 }
  0x20   :  { %9919 = vmatprep.subr.bf16.mxu1 %v9918_v48 }
  0x21   :  { %9893 = vmatpush3.bf16.msra.mxu0 %v9890_v39  ;;  %v505_v39 = vld [vmem:[%s17999_s3 + $0x120] sm:$0xff] }
  0x22   :  { %9959 = vmatprep.subr.bf16.mxu0 %v9894_v16 }
  0x23   :  { %9921 = vmatpush3.bf16.msra.mxu1 %v9918_v48 }
  0x24   :  { %8807 = vmatmul.mubr.f32.vlgmr.msra.gmra.mrb[0].mxu0 %v42_v40  ;;  %9923 = vmatprep.subr.bf16.mxu1 %v9922_v52  ;;  %v506_v40 = vld [vmem:[%s17999_s3 + $0x128] sm:$0xff] }
  0x25   :  { %8809 = vmatprep.mubr.f32.mxu0 %v43_v41  ;;  %9961 = vmatpush3.bf16.msra.mxu0 %v9894_v16  ;;  %v167_v16 = vld [vmem:[%s17999_s3 + $0x30] sm:$0xff] }
  0x26   :  { %9963 = vmatprep.subr.bf16.mxu0 %v9898_v17 }
  0x27   :  { %9925 = vmatpush3.bf16.msra.mxu1 %v9922_v52 }
  0x28   :  { %8810 = vmatmul.mubr.f32.gmra.mrb[2].mxu0 %v44_v42  ;;  %9927 = vmatprep.subr.bf16.mxu1 %v9926_v55  ;;  %v10030_v42 = vpack.c.bf16 %v506_v40, %v505_v39  ;;  %v858_v39 = vld [vmem:[%s17999_s3 + $0x248] sm:$0xff]  ;;  %v860_v40 = vld [vmem:[%s17999_s3 + $0x258] sm:$0xff] }
  0x29   :  { %9965 = vmatpush3.bf16.msra.mxu0 %v9898_v17  ;;  %v168_v17 = vld [vmem:[%s17999_s3 + $0x38] sm:$0xff] }
  0x2a   :  { %9967 = vmatprep.subr.bf16.mxu0 %v9902_v23  ;;  %v9938_v19 = vpack.c.bf16 %v168_v17, %v167_v16  ;;  %v682_v16 = vld [vmem:[%s17999_s3 + $0x1b8] sm:$0xff]  ;;  %v684_v17 = vld [vmem:[%s17999_s3 + $0x1c8] sm:$0xff] }
  0x2d   :  { %9969 = vmatpush3.bf16.msra.mxu0 %v9902_v23  ;;  %v171_v23 = vld [vmem:[%s17999_s3 + $0x50] sm:$0xff] }
  0x2e   :  { %9971 = vmatprep.subr.bf16.mxu0 %v9906_v29  ;;  %v9946_v25 = vpack.c.bf16 %v172_v24, %v171_v23  ;;  %v689_v23 = vld [vmem:[%s17999_s3 + $0x1f0] sm:$0xff]  ;;  %v690_v24 = vld [vmem:[%s17999_s3 + $0x1f8] sm:$0xff] }
  0x31   :  { %9973 = vmatpush3.bf16.msra.mxu0 %v9906_v29  ;;  %v175_v29 = vld [vmem:[%s17999_s3 + $0x70] sm:$0xff] }
  0x32   :  { %9975 = vmatprep.subr.bf16.mxu0 %v9910_v35  ;;  %v9954_v31 = vpack.c.bf16 %v176_v30, %v175_v29  ;;  %v851_v29 = vld [vmem:[%s17999_s3 + $0x210] sm:$0xff]  ;;  %v852_v30 = vld [vmem:[%s17999_s3 + $0x218] sm:$0xff] }
  0x35   :  { %9977 = vmatpush3.bf16.msra.mxu0 %v9910_v35  ;;  %v503_v35 = vld [vmem:[%s17999_s3 + $0x110] sm:$0xff] }
  0x36   :  { %9979 = vmatprep.subr.bf16.mxu0 %v9914_v45  ;;  %v10026_v37 = vpack.c.bf16 %v504_v36, %v503_v35  ;;  %v10158_v35 = vpack.c.bf16 %v854_v33, %v853_v32  ;;  %v855_v36 = vld [vmem:[%s17999_s3 + $0x230] sm:$0xff]  ;;  %v1205_v32 = vld [vmem:[%s17999_s3 + $0x340] sm:$0xff]  ;;  %v1206_v33 = vld [vmem:[%s17999_s3 + $0x348] sm:$0xff] }
  0x39   :  { %9981 = vmatpush3.bf16.msra.mxu0 %v9914_v45  ;;  %v508_v45 = vld [vmem:[%s17999_s3 + $0x138] sm:$0xff] }
  0x3a   :  { %9983 = vmatprep.subr.bf16.mxu0 %v9918_v48  ;;  %v10034_v47 = vpack.c.bf16 %v508_v45, %v507_v44  ;;  %v863_v45 = vld [vmem:[%s17999_s3 + $0x270] sm:$0xff] }
  0x3d   :  { %9985 = vmatpush3.bf16.msra.mxu0 %v9918_v48  ;;  %v509_v48 = vld [vmem:[%s17999_s3 + $0x140] sm:$0xff] }
  0x3e   :  { %9987 = vmatprep.subr.bf16.mxu0 %v9922_v52  ;;  %v10038_v50 = vpack.c.bf16 %v510_v49, %v509_v48  ;;  %v1023_v48 = vld [vmem:[%s17999_s3 + $0x280] sm:$0xff]  ;;  %v1024_v49 = vld [vmem:[%s17999_s3 + $0x288] sm:$0xff] }
  0x41   :  { %9989 = vmatpush3.bf16.msra.mxu0 %v9922_v52  ;;  %v512_v52 = vld [vmem:[%s17999_s3 + $0x158] sm:$0xff] }
  0x42   :  { %9991 = vmatprep.subr.bf16.mxu0 %v9926_v55  ;;  %v10042_v53 = vpack.c.bf16 %v512_v52, %v511_v51  ;;  %v1025_v51 = vld [vmem:[%s17999_s3 + $0x290] sm:$0xff]  ;;  %v1026_v52 = vld [vmem:[%s17999_s3 + $0x298] sm:$0xff] }
  0xf7   :  { %v8808_v57 = vpop.f32.mrb[0].mxu0 }
  0xf8   :  { %v14397_v58 = vadd.f32 %v8808_v57, %v8179_v56  ;;  %v134_v59 = vpop.f32.mrb[1].mxu0  ;;  %v515_v57 = vld [vmem:[%s17999_s3 + $0x170] sm:$0xff] }
  0xf9   :  { %v14399_v60 = vadd.f32 %v8179_v56, %v134_v59  ;;  %v516_v59 = vld [vmem:[%s17999_s3 + $0x178] sm:$0xff] }
  0xfa   :  { %v154_v61 = vmax.f32 %v14397_v58, 0.0 }
  0xfb   :  { %v153_v62 = vmax.f32 %v14399_v60, 0.0  ;;  %v8811_v63 = vpop.f32.mrb[2].mxu0 }
  0xfc   :  { %158 = vst [vmem:[#allocation2 + $0x10] sm:$0xff] %v154_v61  ;;  %v14405_v0 = vadd.f32 %v8811_v63, %v8179_v56  ;;  %v144_v1 = vpop.f32.mrb[3].mxu0  ;;  %v10050_v63 = vpack.c.bf16 %v516_v59, %v515_v57 }
  0xfd   :  { %157 = vst [vmem:[#allocation2 + $0x8] sm:$0xff] %v153_v62  ;;  %v14409_v2 = vadd.f32 %v8179_v56, %v144_v1  ;;  %v675_v1 = vld [vmem:[%s17999_s3 + $0x180] sm:$0xff] }
  0xfe   :  { %v156_v3 = vmax.f32 %v14405_v0, 0.0  ;;  %v10086_v6 = vpack.c.bf16 %v676_v5, %v675_v1  ;;  %v1029_v1 = vld [vmem:[%s17999_s3 + $0x2b0] sm:$0xff]  ;;  %v1030_v5 = vld [vmem:[%s17999_s3 + $0x2b8] sm:$0xff] }
  0xff   :  { %v155_v4 = vmax.f32 %v14409_v2, 0.0  ;;  %v685_v2 = vld [vmem:[%s17999_s3 + $0x1d0] sm:$0xff] }
 0x100   :  { %160 = vst [vmem:[#allocation2 + $0x30] sm:$0xff] %v156_v3 }
 0x101   :  { %159 = vst [vmem:[#allocation2 + $0x28] sm:$0xff] %v155_v4 }
 0x104   :  { %v197_v7 = vld [vmem:[#allocation2 + $0x6] sm:$0xff]  ;;  %v198_v8 = vld [vmem:[#allocation2 + $0xe] sm:$0xff] }
 0x105   :  { %8844 = vmatprep.mubr.f32.mxu1 %v197_v7  ;;  %v177_v12 = vld [vmem:[#allocation2 + $0x5] sm:$0xff]  ;;  %v178_v38 = vld [vmem:[#allocation2 + $0xd] sm:$0xff] }
 0x106   :  { %8845 = vmatmul.mubr.f32.vlgmr.msra.gmra.mrb[0].mxu1 %v198_v8  ;;  %v517_v41 = vld [vmem:[#allocation2 + $0x7] sm:$0xff]  ;;  %v677_v7 = vld [vmem:[%s17999_s3 + $0x190] sm:$0xff]  ;;  %v678_v8 = vld [vmem:[%s17999_s3 + $0x198] sm:$0xff] }
 0x107   :  { %9929 = vmatpush3.bf16.msra.mxu1 %v9926_v55  ;;  %8879 = vmatprep.mubr.f32.mxu1 %v177_v12  ;;  %v518_v10 = vld [vmem:[#allocation2 + $0xf] sm:$0xff] }
 0x108   :  { %9931 = vmatprep.subr.bf16.mxu1 %v9930_v9  ;;  %v349_v13 = vld [vmem:[#allocation2 + $0x26] sm:$0xff]  ;;  %v350_v14 = vld [vmem:[#allocation2 + $0x2e] sm:$0xff] }
 0x109   :  { %8914 = vmatprep.mubr.f32.mxu0 %v349_v13  ;;  %v179_v18 = vld [vmem:[#allocation2 + $0x25] sm:$0xff]  ;;  %v180_v43 = vld [vmem:[#allocation2 + $0x2d] sm:$0xff] }
 0x10a   :  { %8915 = vmatmul.mubr.f32.vlgmr.msra.gmra.mrb[4].mxu0 %v350_v14  ;;  %v596_v46 = vld [vmem:[#allocation2 + $0x27] sm:$0xff]  ;;  %v597_v14 = vld [vmem:[#allocation2 + $0x2f] sm:$0xff] }
 0x10b   :  { %9933 = vmatpush3.bf16.msra.mxu1 %v9930_v9  ;;  %9993 = vmatpush3.bf16.msra.mxu0 %v9926_v55  ;;  %v514_v55 = vld [vmem:[%s17999_s3 + $0x168] sm:$0xff] }
 0x10c   :  { %9935 = vmatprep.subr.bf16.mxu1 %v9934_v15  ;;  %9995 = vmatprep.subr.bf16.mxu0 %v9930_v9  ;;  %v10046_v56 = vpack.c.bf16 %v514_v55, %v513_v54  ;;  %v680_v12 = vld [vmem:[%s17999_s3 + $0x1a8] sm:$0xff]  ;;  %v866_v54 = vld [vmem:[#allocation2 + $0x11] sm:$0xff]  ;;  %v1027_v55 = vld [vmem:[%s17999_s3 + $0x2a0] sm:$0xff] }
 0x10d   :  { %8949 = vmatprep.mubr.f32.mxu0 %v179_v18  ;;  %v10094_v13 = vpack.c.bf16 %v680_v12, %v679_v11  ;;  %v944_v58 = vld [vmem:[#allocation2 + $0x29] sm:$0xff]  ;;  %v1034_v12 = vld [vmem:[%s17999_s3 + $0x2d8] sm:$0xff] }
 0x10e   :  { %v1039_v57 = vld [vmem:[#allocation2 + $0xa] sm:$0xff] }
 0x10f   :  { %9937 = vmatpush3.bf16.msra.mxu1 %v9934_v15  ;;  %9997 = vmatpush3.bf16.msra.mxu0 %v9930_v9  ;;  %v10090_v9 = vpack.c.bf16 %v678_v8, %v677_v7  ;;  %v10226_v7 = vpack.c.bf16 %v1030_v5, %v1029_v1  ;;  %v1031_v8 = vld [vmem:[%s17999_s3 + $0x2c0] sm:$0xff]  ;;  %v1033_v11 = vld [vmem:[%s17999_s3 + $0x2d0] sm:$0xff]  ;;  %v1421_v5 = vld [vmem:[%s17999_s3 + $0x468] sm:$0xff] }
 0x110   :  { %9939 = vmatprep.subr.bf16.mxu1 %v9938_v19  ;;  %9999 = vmatprep.subr.bf16.mxu0 %v9934_v15  ;;  %v1420_v1 = vld [vmem:[%s17999_s3 + $0x460] sm:$0xff] }
 0x113   :  { %9941 = vmatpush3.bf16.msra.mxu1 %v9938_v19  ;;  %10001 = vmatpush3.bf16.msra.mxu0 %v9934_v15  ;;  %v681_v15 = vld [vmem:[%s17999_s3 + $0x1b0] sm:$0xff] }
 0x114   :  { %9943 = vmatprep.subr.bf16.mxu1 %v9942_v22  ;;  %10003 = vmatprep.subr.bf16.mxu0 %v9938_v19  ;;  %v10098_v60 = vpack.c.bf16 %v682_v16, %v681_v15  ;;  %v1036_v15 = vld [vmem:[%s17999_s3 + $0x2e8] sm:$0xff] }
 0x117   :  { %9945 = vmatpush3.bf16.msra.mxu1 %v9942_v22  ;;  %10005 = vmatpush3.bf16.msra.mxu0 %v9938_v19 }
 0x118   :  { %9947 = vmatprep.subr.bf16.mxu1 %v9946_v25  ;;  %10007 = vmatprep.subr.bf16.mxu0 %v9942_v22 }
 0x11b   :  { %9949 = vmatpush3.bf16.msra.mxu1 %v9946_v25  ;;  %10009 = vmatpush3.bf16.msra.mxu0 %v9942_v22  ;;  %v10110_v22 = vpack.c.bf16 %v688_v21, %v687_v20  ;;  %v1200_v20 = vld [vmem:[%s17999_s3 + $0x318] sm:$0xff] }
 0x11c   :  { %9951 = vmatprep.subr.bf16.mxu1 %v9950_v28  ;;  %10011 = vmatprep.subr.bf16.mxu0 %v9946_v25 }
 0x11f   :  { %9953 = vmatpush3.bf16.msra.mxu1 %v9950_v28  ;;  %10013 = vmatpush3.bf16.msra.mxu0 %v9946_v25  ;;  %v10114_v25 = vpack.c.bf16 %v690_v24, %v689_v23  ;;  %v1201_v23 = vld [vmem:[%s17999_s3 + $0x320] sm:$0xff]  ;;  %v1202_v24 = vld [vmem:[%s17999_s3 + $0x328] sm:$0xff] }
 0x120   :  { %9955 = vmatprep.subr.bf16.mxu1 %v9954_v31  ;;  %10015 = vmatprep.subr.bf16.mxu0 %v9950_v28 }
 0x123   :  { %9957 = vmatpush3.bf16.msra.mxu1 %v9954_v31  ;;  %10017 = vmatpush3.bf16.msra.mxu0 %v9950_v28  ;;  %v10150_v28 = vpack.c.bf16 %v850_v27, %v849_v26  ;;  %v10286_v26 = vpack.c.bf16 %v1202_v24, %v1201_v23  ;;  %v1119_v27 = vld [vmem:[#allocation2 + $0x32] sm:$0xff] }
 0x124   :  { %10019 = vmatprep.subr.bf16.mxu0 %v9954_v31  ;;  %10023 = vmatprep.subr.bf16.mxu1 %v10022_v34  ;;  %v1391_v23 = vld [vmem:[%s17999_s3 + $0x398] sm:$0xff] }
 0x126   :  { %8880 = vmatmul.mubr.f32.vlgmr.msra.gmra.mrb[0].mxu1 %v178_v38  ;;  %v857_v38 = vld [vmem:[%s17999_s3 + $0x240] sm:$0xff] }
 0x127   :  { %10021 = vmatpush3.bf16.msra.mxu0 %v9954_v31  ;;  %10025 = vmatpush3.bf16.msra.mxu1 %v10022_v34  ;;  %v10154_v31 = vpack.c.bf16 %v852_v30, %v851_v29  ;;  %v10166_v0 = vpack.c.bf16 %v858_v39, %v857_v38  ;;  %v1204_v29 = vld [vmem:[%s17999_s3 + $0x338] sm:$0xff]  ;;  %v1292_v30 = vld [vmem:[#allocation2 + $0x2b] sm:$0xff] }
 0x128   :  { %8984 = vmatprep.mubr.f32.mxu1 %v517_v41  ;;  %10027 = vmatprep.subr.bf16.mxu1 %v10026_v37  ;;  %v1211_v39 = vld [vmem:[%s17999_s3 + $0x370] sm:$0xff] }
 0x129   :  { %10055 = vmatprep.subr.bf16.mxu0 %v10022_v34 }
 0x12a   :  { %8950 = vmatmul.mubr.f32.vlgmr.msra.gmra.mrb[4].mxu0 %v180_v43  ;;  %v862_v43 = vld [vmem:[%s17999_s3 + $0x268] sm:$0xff] }
 0x12b   :  { %10029 = vmatpush3.bf16.msra.mxu1 %v10026_v37  ;;  %10057 = vmatpush3.bf16.msra.mxu0 %v10022_v34  ;;  %v865_v34 = vld [vmem:[#allocation2 + $0x9] sm:$0xff] }
 0x12c   :  { %9019 = vmatprep.mubr.f32.mxu0 %v596_v46  ;;  %10031 = vmatprep.subr.bf16.mxu1 %v10030_v42  ;;  %v864_v46 = vld [vmem:[%s17999_s3 + $0x278] sm:$0xff] }
 0x12d   :  { %10059 = vmatprep.subr.bf16.mxu0 %v10026_v37 }
 0x12f   :  { %10033 = vmatpush3.bf16.msra.mxu1 %v10030_v42  ;;  %10061 = vmatpush3.bf16.msra.mxu0 %v10026_v37  ;;  %v856_v37 = vld [vmem:[%s17999_s3 + $0x238] sm:$0xff] }
 0x130   :  { %10035 = vmatprep.subr.bf16.mxu1 %v10034_v47  ;;  %10063 = vmatprep.subr.bf16.mxu0 %v10030_v42 }
 0x133   :  { %10037 = vmatpush3.bf16.msra.mxu1 %v10034_v47  ;;  %10065 = vmatpush3.bf16.msra.mxu0 %v10030_v42  ;;  %v861_v42 = vld [vmem:[%s17999_s3 + $0x260] sm:$0xff] }
 0x134   :  { %10039 = vmatprep.subr.bf16.mxu1 %v10038_v50  ;;  %10067 = vmatprep.subr.bf16.mxu0 %v10034_v47  ;;  %v10174_v44 = vpack.c.bf16 %v862_v43, %v861_v42  ;;  %v1410_v43 = vld [vmem:[%s17999_s3 + $0x410] sm:$0xff] }
 0x137   :  { %10041 = vmatpush3.bf16.msra.mxu1 %v10038_v50  ;;  %10069 = vmatpush3.bf16.msra.mxu0 %v10034_v47  ;;  %v10178_v47 = vpack.c.bf16 %v864_v46, %v863_v45  ;;  %v1214_v46 = vld [vmem:[#allocation2 + $0x13] sm:$0xff] }
 0x138   :  { %10043 = vmatprep.subr.bf16.mxu1 %v10042_v53  ;;  %10071 = vmatprep.subr.bf16.mxu0 %v10038_v50 }
 0x13b   :  { %10045 = vmatpush3.bf16.msra.mxu1 %v10042_v53  ;;  %10073 = vmatpush3.bf16.msra.mxu0 %v10038_v50  ;;  %v10214_v50 = vpack.c.bf16 %v1024_v49, %v1023_v48  ;;  %v1413_v48 = vld [vmem:[%s17999_s3 + $0x428] sm:$0xff] }
 0x13c   :  { %10047 = vmatprep.subr.bf16.mxu1 %v10046_v56  ;;  %10075 = vmatprep.subr.bf16.mxu0 %v10042_v53 }
 0x13f   :  { %10049 = vmatpush3.bf16.msra.mxu1 %v10046_v56  ;;  %10077 = vmatpush3.bf16.msra.mxu0 %v10042_v53  ;;  %v10218_v53 = vpack.c.bf16 %v1026_v52, %v1025_v51  ;;  %v1414_v51 = vld [vmem:[%s17999_s3 + $0x430] sm:$0xff]  ;;  %v1415_v52 = vld [vmem:[%s17999_s3 + $0x438] sm:$0xff] }
 0x140   :  { %10051 = vmatprep.subr.bf16.mxu1 %v10050_v63  ;;  %10079 = vmatprep.subr.bf16.mxu0 %v10046_v56 }
 0x143   :  { %10053 = vmatpush3.bf16.msra.mxu1 %v10050_v63  ;;  %10081 = vmatpush3.bf16.msra.mxu0 %v10046_v56  ;;  %v1028_v56 = vld [vmem:[%s17999_s3 + $0x2a8] sm:$0xff] }
 0x144   :  { %10083 = vmatprep.subr.bf16.mxu0 %v10050_v63  ;;  %10087 = vmatprep.subr.bf16.mxu1 %v10086_v6  ;;  %v10222_v59 = vpack.c.bf16 %v1028_v56, %v1027_v55  ;;  %v1417_v55 = vld [vmem:[%s17999_s3 + $0x448] sm:$0xff] }
 0x146   :  { %8985 = vmatmul.mubr.f32.vlgmr.msra.gmra.mrb[0].mxu1 %v518_v10 }
 0x147   :  { %10085 = vmatpush3.bf16.msra.mxu0 %v10050_v63  ;;  %10089 = vmatpush3.bf16.msra.mxu1 %v10086_v6  ;;  %v945_v63 = vld [vmem:[#allocation2 + $0x31] sm:$0xff] }
 0x148   :  { %9054 = vmatprep.mubr.f32.mxu1 %v153_v62  ;;  %10091 = vmatprep.subr.bf16.mxu1 %v10090_v9  ;;  %v683_v62 = vld [vmem:[%s17999_s3 + $0x1c0] sm:$0xff] }
 0x149   :  { %10119 = vmatprep.subr.bf16.mxu0 %v10086_v6  ;;  %v10102_v18 = vpack.c.bf16 %v684_v17, %v683_v62  ;;  %v1038_v62 = vld [vmem:[%s17999_s3 + $0x2f8] sm:$0xff] }
 0x14a   :  { %9020 = vmatmul.mubr.f32.vlgmr.msra.gmra.mrb[4].mxu0 %v597_v14  ;;  %v1035_v14 = vld [vmem:[%s17999_s3 + $0x2e0] sm:$0xff] }
 0x14b   :  { %10093 = vmatpush3.bf16.msra.mxu1 %v10090_v9  ;;  %10121 = vmatpush3.bf16.msra.mxu0 %v10086_v6  ;;  %v1118_v6 = vld [vmem:[#allocation2 + $0x2a] sm:$0xff]  ;;  %v10238_v16 = vpack.c.bf16 %v1036_v15, %v1035_v14 }
 0x14c   :  { %9089 = vmatprep.mubr.f32.mxu0 %v155_v4  ;;  %10095 = vmatprep.subr.bf16.mxu1 %v10094_v13  ;;  %v686_v4 = vld [vmem:[%s17999_s3 + $0x1d8] sm:$0xff] }
 0x14d   :  { %10123 = vmatprep.subr.bf16.mxu0 %v10090_v9  ;;  %v10106_v19 = vpack.c.bf16 %v686_v4, %v685_v2  ;;  %v1198_v2 = vld [vmem:[%s17999_s3 + $0x308] sm:$0xff] }
 0x14f   :  { %10097 = vmatpush3.bf16.msra.mxu1 %v10094_v13  ;;  %10125 = vmatpush3.bf16.msra.mxu0 %v10090_v9  ;;  %v1032_v9 = vld [vmem:[%s17999_s3 + $0x2c8] sm:$0xff] }
 0x150   :  { %10099 = vmatprep.subr.bf16.mxu1 %v10098_v60  ;;  %10127 = vmatprep.subr.bf16.mxu0 %v10094_v13  ;;  %v10230_v10 = vpack.c.bf16 %v1032_v9, %v1031_v8  ;;  %v1423_v8 = vld [vmem:[%s17999_s3 + $0x478] sm:$0xff] }
 0x153   :  { %10101 = vmatpush3.bf16.msra.mxu1 %v10098_v60  ;;  %10129 = vmatpush3.bf16.msra.mxu0 %v10094_v13  ;;  %v10234_v13 = vpack.c.bf16 %v1034_v12, %v1033_v11  ;;  %v1389_v11 = vld [vmem:[%s17999_s3 + $0x388] sm:$0xff] }
 0x154   :  { %10103 = vmatprep.subr.bf16.mxu1 %v10102_v18  ;;  %10131 = vmatprep.subr.bf16.mxu0 %v10098_v60 }
 0x157   :  { %10105 = vmatpush3.bf16.msra.mxu1 %v10102_v18  ;;  %10133 = vmatpush3.bf16.msra.mxu0 %v10098_v60  ;;  %v1037_v60 = vld [vmem:[%s17999_s3 + $0x2f0] sm:$0xff] }
 0x158   :  { %10107 = vmatprep.subr.bf16.mxu1 %v10106_v19  ;;  %10135 = vmatprep.subr.bf16.mxu0 %v10102_v18  ;;  %v10242_v17 = vpack.c.bf16 %v1038_v62, %v1037_v60 }
 0x15b   :  { %10109 = vmatpush3.bf16.msra.mxu1 %v10106_v19  ;;  %10137 = vmatpush3.bf16.msra.mxu0 %v10102_v18  ;;  %v1197_v18 = vld [vmem:[%s17999_s3 + $0x300] sm:$0xff] }
 0x15c   :  { %10111 = vmatprep.subr.bf16.mxu1 %v10110_v22  ;;  %10139 = vmatprep.subr.bf16.mxu0 %v10106_v19  ;;  %v10278_v4 = vpack.c.bf16 %v1198_v2, %v1197_v18 }
 0x15f   :  { %10113 = vmatpush3.bf16.msra.mxu1 %v10110_v22  ;;  %10141 = vmatpush3.bf16.msra.mxu0 %v10106_v19  ;;  %v1199_v19 = vld [vmem:[%s17999_s3 + $0x310] sm:$0xff] }
 0x160   :  { %10115 = vmatprep.subr.bf16.mxu1 %v10114_v25  ;;  %10143 = vmatprep.subr.bf16.mxu0 %v10110_v22  ;;  %v10282_v21 = vpack.c.bf16 %v1200_v20, %v1199_v19 }
 0x163   :  { %10117 = vmatpush3.bf16.msra.mxu1 %v10114_v25  ;;  %10145 = vmatpush3.bf16.msra.mxu0 %v10110_v22  ;;  %v1040_v22 = vld [vmem:[#allocation2 + $0x12] sm:$0xff] }
 0x164   :  { %10147 = vmatprep.subr.bf16.mxu0 %v10114_v25  ;;  %10151 = vmatprep.subr.bf16.mxu1 %v10150_v28 }
 0x166   :  { %9055 = vmatmul.mubr.f32.vlgmr.msra.gmra.mrb[0].mxu1 %v154_v61  ;;  %v10162_v61 = vpack.c.bf16 %v856_v37, %v855_v36  ;;  %v1208_v36 = vld [vmem:[%s17999_s3 + $0x358] sm:$0xff] }
 0x167   :  { %10149 = vmatpush3.bf16.msra.mxu0 %v10114_v25  ;;  %10153 = vmatpush3.bf16.msra.mxu1 %v10150_v28  ;;  %v1213_v25 = vld [vmem:[#allocation2 + $0xb] sm:$0xff] }
 0x168   :  { %9124 = vmatprep.mubr.f32.mxu1 %v865_v34  ;;  %10155 = vmatprep.subr.bf16.mxu1 %v10154_v31  ;;  %v10294_v34 = vpack.c.bf16 %v1206_v33, %v1205_v32  ;;  %v1394_v33 = vld [vmem:[%s17999_s3 + $0x3b0] sm:$0xff] }
 0x169   :  { %10183 = vmatprep.subr.bf16.mxu0 %v10150_v28 }
 0x16a   :  { %9090 = vmatmul.mubr.f32.vlgmr.msra.gmra.mrb[4].mxu0 %v156_v3  ;;  %v859_v3 = vld [vmem:[%s17999_s3 + $0x250] sm:$0xff] }
 0x16b   :  { %10157 = vmatpush3.bf16.msra.mxu1 %v10154_v31  ;;  %10185 = vmatpush3.bf16.msra.mxu0 %v10150_v28  ;;  %v10170_v41 = vpack.c.bf16 %v860_v40, %v859_v3  ;;  %v1203_v28 = vld [vmem:[%s17999_s3 + $0x330] sm:$0xff]  ;;  %v1408_v40 = vld [vmem:[%s17999_s3 + $0x400] sm:$0xff] }
 0x16c   :  { %9159 = vmatprep.mubr.f32.mxu0 %v944_v58  ;;  %10159 = vmatprep.subr.bf16.mxu1 %v10158_v35  ;;  %v1209_v58 = vld [vmem:[%s17999_s3 + $0x360] sm:$0xff] }
 0x16d   :  { %10187 = vmatprep.subr.bf16.mxu0 %v10154_v31 }
 0x16f   :  { %10161 = vmatpush3.bf16.msra.mxu1 %v10158_v35  ;;  %10189 = vmatpush3.bf16.msra.mxu0 %v10154_v31  ;;  %v10290_v31 = vpack.c.bf16 %v1204_v29, %v1203_v28  ;;  %v1393_v28 = vld [vmem:[%s17999_s3 + $0x3a8] sm:$0xff] }
 0x170   :  { %10163 = vmatprep.subr.bf16.mxu1 %v10162_v61  ;;  %10191 = vmatprep.subr.bf16.mxu0 %v10158_v35 }
 0x173   :  { %10165 = vmatpush3.bf16.msra.mxu1 %v10162_v61  ;;  %10193 = vmatpush3.bf16.msra.mxu0 %v10158_v35  ;;  %v1207_v35 = vld [vmem:[%s17999_s3 + $0x350] sm:$0xff] }
 0x174   :  { %10167 = vmatprep.subr.bf16.mxu1 %v10166_v0  ;;  %10195 = vmatprep.subr.bf16.mxu0 %v10162_v61  ;;  %v10298_v37 = vpack.c.bf16 %v1208_v36, %v1207_v35 }
 0x177   :  { %10169 = vmatpush3.bf16.msra.mxu1 %v10166_v0  ;;  %10197 = vmatpush3.bf16.msra.mxu0 %v10162_v61  ;;  %v1210_v61 = vld [vmem:[%s17999_s3 + $0x368] sm:$0xff] }
 0x178   :  { %10171 = vmatprep.subr.bf16.mxu1 %v10170_v41  ;;  %10199 = vmatprep.subr.bf16.mxu0 %v10166_v0  ;;  %v10302_v38 = vpack.c.bf16 %v1210_v61, %v1209_v58  ;;  %v1397_v58 = vld [vmem:[%s17999_s3 + $0x3c8] sm:$0xff] }
 0x17b   :  { %10173 = vmatpush3.bf16.msra.mxu1 %v10170_v41  ;;  %10201 = vmatpush3.bf16.msra.mxu0 %v10166_v0  ;;  %v1212_v0 = vld [vmem:[%s17999_s3 + $0x378] sm:$0xff] }
 0x17c   :  { %10175 = vmatprep.subr.bf16.mxu1 %v10174_v44  ;;  %10203 = vmatprep.subr.bf16.mxu0 %v10170_v41  ;;  %v10306_v3 = vpack.c.bf16 %v1212_v0, %v1211_v39  ;;  %v1399_v39 = vld [vmem:[%s17999_s3 + $0x3d8] sm:$0xff] }
 0x17f   :  { %10177 = vmatpush3.bf16.msra.mxu1 %v10174_v44  ;;  %10205 = vmatpush3.bf16.msra.mxu0 %v10170_v41  ;;  %v1409_v41 = vld [vmem:[%s17999_s3 + $0x408] sm:$0xff] }
 0x180   :  { %10179 = vmatprep.subr.bf16.mxu1 %v10178_v47  ;;  %10207 = vmatprep.subr.bf16.mxu0 %v10174_v44  ;;  %v10342_v42 = vpack.c.bf16 %v1409_v41, %v1408_v40  ;;  %v1401_v40 = vld [vmem:[%s17999_s3 + $0x3e8] sm:$0xff] }
 0x183   :  { %10181 = vmatpush3.bf16.msra.mxu1 %v10178_v47  ;;  %10209 = vmatpush3.bf16.msra.mxu0 %v10174_v44  ;;  %v1411_v44 = vld [vmem:[%s17999_s3 + $0x418] sm:$0xff] }
 0x184   :  { %10211 = vmatprep.subr.bf16.mxu0 %v10178_v47  ;;  %10215 = vmatprep.subr.bf16.mxu1 %v10214_v50  ;;  %v10346_v45 = vpack.c.bf16 %v1411_v44, %v1410_v43  ;;  %v1403_v43 = vld [vmem:[%s17999_s3 + $0x3f8] sm:$0xff] }
 0x186   :  { %9125 = vmatmul.mubr.f32.vlgmr.msra.gmra.mrb[0].mxu1 %v866_v54  ;;  %v1416_v54 = vld [vmem:[%s17999_s3 + $0x440] sm:$0xff] }
 0x187   :  { %10213 = vmatpush3.bf16.msra.mxu0 %v10178_v47  ;;  %10217 = vmatpush3.bf16.msra.mxu1 %v10214_v50  ;;  %v1412_v47 = vld [vmem:[%s17999_s3 + $0x420] sm:$0xff]  ;;  %v10358_v56 = vpack.c.bf16 %v1417_v55, %v1416_v54 }
 0x188   :  { %9194 = vmatprep.mubr.f32.mxu1 %v1039_v57  ;;  %10219 = vmatprep.subr.bf16.mxu1 %v10218_v53  ;;  %v10350_v49 = vpack.c.bf16 %v1413_v48, %v1412_v47  ;;  %v1418_v57 = vld [vmem:[%s17999_s3 + $0x450] sm:$0xff] }
 0x189   :  { %10247 = vmatprep.subr.bf16.mxu0 %v10214_v50  ;;  %v1730_v48 = vld [vmem:[%s17999_s3 + $0x490] sm:$0xff] }
 0x18a   :  { %9160 = vmatmul.mubr.f32.vlgmr.msra.gmra.mrb[4].mxu0 %v945_v63 }
 0x18b   :  { %10221 = vmatpush3.bf16.msra.mxu1 %v10218_v53  ;;  %10249 = vmatpush3.bf16.msra.mxu0 %v10214_v50  ;;  %v1293_v50 = vld [vmem:[#allocation2 + $0x33] sm:$0xff] }
 0x18c   :  { %9229 = vmatprep.mubr.f32.mxu0 %v1118_v6  ;;  %10223 = vmatprep.subr.bf16.mxu1 %v10222_v59  ;;  %v10366_v6 = vpack.c.bf16 %v1421_v5, %v1420_v1  ;;  %v1736_v5 = vld [vmem:[%s17999_s3 + $0x4c0] sm:$0xff] }
 0x18d   :  { %10251 = vmatprep.subr.bf16.mxu0 %v10218_v53 }
 0x18f   :  { %10225 = vmatpush3.bf16.msra.mxu1 %v10222_v59  ;;  %10253 = vmatpush3.bf16.msra.mxu0 %v10218_v53  ;;  %v10354_v53 = vpack.c.bf16 %v1415_v52, %v1414_v51  ;;  %v1732_v52 = vld [vmem:[%s17999_s3 + $0x4a0] sm:$0xff] }
 0x190   :  { %10227 = vmatprep.subr.bf16.mxu1 %v10226_v7  ;;  %10255 = vmatprep.subr.bf16.mxu0 %v10222_v59 }
 0x193   :  { %10229 = vmatpush3.bf16.msra.mxu1 %v10226_v7  ;;  %10257 = vmatpush3.bf16.msra.mxu0 %v10222_v59  ;;  %v1419_v59 = vld [vmem:[%s17999_s3 + $0x458] sm:$0xff] }
 0x194   :  { %10231 = vmatprep.subr.bf16.mxu1 %v10230_v10  ;;  %10259 = vmatprep.subr.bf16.mxu0 %v10226_v7  ;;  %v10362_v63 = vpack.c.bf16 %v1419_v59, %v1418_v57  ;;  %v1734_v57 = vld [vmem:[%s17999_s3 + $0x4b0] sm:$0xff]  ;;  %v1735_v59 = vld [vmem:[%s17999_s3 + $0x4b8] sm:$0xff] }
 0x195   :  { %v10482_v1 = vpack.c.bf16 %v1735_v59, %v1734_v57  ;;  %v2090_v59 = vld [vmem:[%s17999_s3 + $0x5f0] sm:$0xff] }
 0x197   :  { %10233 = vmatpush3.bf16.msra.mxu1 %v10230_v10  ;;  %10261 = vmatpush3.bf16.msra.mxu0 %v10226_v7  ;;  %v1422_v7 = vld [vmem:[%s17999_s3 + $0x470] sm:$0xff] }
 0x198   :  { %10235 = vmatprep.subr.bf16.mxu1 %v10234_v13  ;;  %10263 = vmatprep.subr.bf16.mxu0 %v10230_v10  ;;  %v10370_v9 = vpack.c.bf16 %v1423_v8, %v1422_v7  ;;  %v1738_v8 = vld [vmem:[%s17999_s3 + $0x4d0] sm:$0xff] }
 0x19b   :  { %10237 = vmatpush3.bf16.msra.mxu1 %v10234_v13  ;;  %10265 = vmatpush3.bf16.msra.mxu0 %v10230_v10  ;;  %v1388_v10 = vld [vmem:[%s17999_s3 + $0x380] sm:$0xff] }
 0x19c   :  { %10239 = vmatprep.subr.bf16.mxu1 %v10238_v16  ;;  %10267 = vmatprep.subr.bf16.mxu0 %v10234_v13  ;;  %v10374_v12 = vpack.c.bf16 %v1389_v11, %v1388_v10  ;;  %v1740_v11 = vld [vmem:[%s17999_s3 + $0x4e0] sm:$0xff] }
 0x19f   :  { %10241 = vmatpush3.bf16.msra.mxu1 %v10238_v16  ;;  %10269 = vmatpush3.bf16.msra.mxu0 %v10234_v13  ;;  %v8180_v13 = vld [vmem:[%s18000_s4] ss:$0 sm:$0xff] }
 0x1a0   :  { %10243 = vmatprep.subr.bf16.mxu1 %v10242_v17  ;;  %10271 = vmatprep.subr.bf16.mxu0 %v10238_v16 }
 0x1a3   :  { %10245 = vmatpush3.bf16.msra.mxu1 %v10242_v17  ;;  %10273 = vmatpush3.bf16.msra.mxu0 %v10238_v16 }
 0x1a4   :  { %10275 = vmatprep.subr.bf16.mxu0 %v10242_v17  ;;  %10279 = vmatprep.subr.bf16.mxu1 %v10278_v4 }
 0x1a6   :  { %9195 = vmatmul.mubr.f32.vlgmr.msra.gmra.mrb[0].mxu1 %v1040_v22  ;;  %v1390_v22 = vld [vmem:[%s17999_s3 + $0x390] sm:$0xff] }
 0x1a7   :  { %10277 = vmatpush3.bf16.msra.mxu0 %v10242_v17  ;;  %10281 = vmatpush3.bf16.msra.mxu1 %v10278_v4 }
 0x1a8   :  { %9264 = vmatprep.mubr.f32.mxu1 %v1213_v25  ;;  %10283 = vmatprep.subr.bf16.mxu1 %v10282_v21 }
 0x1a9   :  { %10311 = vmatprep.subr.bf16.mxu0 %v10278_v4 }
 0x1aa   :  { %9230 = vmatmul.mubr.f32.vlgmr.msra.gmra.mrb[4].mxu0 %v1119_v27  ;;  %v1392_v27 = vld [vmem:[%s17999_s3 + $0x3a0] sm:$0xff] }
 0x1ab   :  { %10285 = vmatpush3.bf16.msra.mxu1 %v10282_v21  ;;  %10313 = vmatpush3.bf16.msra.mxu0 %v10278_v4  ;;  %v10382_v32 = vpack.c.bf16 %v1393_v28, %v1392_v27  ;;  %v1906_v28 = vld [vmem:[%s17999_s3 + $0x520] sm:$0xff] }
 0x1ac   :  { %9299 = vmatprep.mubr.f32.mxu0 %v1292_v30  ;;  %10287 = vmatprep.subr.bf16.mxu1 %v10286_v26 }
 0x1ad   :  { %10315 = vmatprep.subr.bf16.mxu0 %v10282_v21 }
 0x1af   :  { %10289 = vmatpush3.bf16.msra.mxu1 %v10286_v26  ;;  %10317 = vmatpush3.bf16.msra.mxu0 %v10282_v21 }
 0x1b0   :  { %10291 = vmatprep.subr.bf16.mxu1 %v10290_v31  ;;  %10319 = vmatprep.subr.bf16.mxu0 %v10286_v26 }
 0x1b3   :  { %10293 = vmatpush3.bf16.msra.mxu1 %v10290_v31  ;;  %10321 = vmatpush3.bf16.msra.mxu0 %v10286_v26  ;;  %v10378_v26 = vpack.c.bf16 %v1391_v23, %v1390_v22  ;;  %v1903_v22 = vld [vmem:[%s17999_s3 + $0x508] sm:$0xff] }
 0x1b4   :  { %10295 = vmatprep.subr.bf16.mxu1 %v10294_v34  ;;  %10323 = vmatprep.subr.bf16.mxu0 %v10290_v31 }
 0x1b7   :  { %10297 = vmatpush3.bf16.msra.mxu1 %v10294_v34  ;;  %10325 = vmatpush3.bf16.msra.mxu0 %v10290_v31 }
 0x1b8   :  { %10299 = vmatprep.subr.bf16.mxu1 %v10298_v37  ;;  %10327 = vmatprep.subr.bf16.mxu0 %v10294_v34 }
 0x1bb   :  { %10301 = vmatpush3.bf16.msra.mxu1 %v10298_v37  ;;  %10329 = vmatpush3.bf16.msra.mxu0 %v10294_v34  ;;  %v1395_v34 = vld [vmem:[%s17999_s3 + $0x3b8] sm:$0xff] }
 0x1bc   :  { %10303 = vmatprep.subr.bf16.mxu1 %v10302_v38  ;;  %10331 = vmatprep.subr.bf16.mxu0 %v10298_v37  ;;  %v10386_v36 = vpack.c.bf16 %v1395_v34, %v1394_v33  ;;  %v1909_v33 = vld [vmem:[%s17999_s3 + $0x538] sm:$0xff]  ;;  %v1911_v34 = vld [vmem:[%s17999_s3 + $0x548] sm:$0xff] }
 0x1bf   :  { %10305 = vmatpush3.bf16.msra.mxu1 %v10302_v38  ;;  %10333 = vmatpush3.bf16.msra.mxu0 %v10298_v37  ;;  %v1396_v37 = vld [vmem:[%s17999_s3 + $0x3c0] sm:$0xff] }
 0x1c0   :  { %10307 = vmatprep.subr.bf16.mxu1 %v10306_v3  ;;  %10335 = vmatprep.subr.bf16.mxu0 %v10302_v38  ;;  %v10390_v61 = vpack.c.bf16 %v1397_v58, %v1396_v37  ;;  %v1914_v37 = vld [vmem:[%s17999_s3 + $0x560] sm:$0xff]  ;;  %v1915_v58 = vld [vmem:[%s17999_s3 + $0x568] sm:$0xff] }
 0x1c3   :  { %10309 = vmatpush3.bf16.msra.mxu1 %v10306_v3  ;;  %10337 = vmatpush3.bf16.msra.mxu0 %v10302_v38  ;;  %v1398_v38 = vld [vmem:[%s17999_s3 + $0x3d0] sm:$0xff] }
 0x1c4   :  { %10339 = vmatprep.subr.bf16.mxu0 %v10306_v3  ;;  %10343 = vmatprep.subr.bf16.mxu1 %v10342_v42  ;;  %v10394_v0 = vpack.c.bf16 %v1399_v39, %v1398_v38  ;;  %v1916_v38 = vld [vmem:[%s17999_s3 + $0x570] sm:$0xff]  ;;  %v1917_v39 = vld [vmem:[%s17999_s3 + $0x578] sm:$0xff] }
 0x1c6   :  { %9265 = vmatmul.mubr.f32.vlgmr.msra.gmra.mrb[0].mxu1 %v1214_v46  ;;  %v1729_v46 = vld [vmem:[%s17999_s3 + $0x488] sm:$0xff] }
 0x1c7   :  { %10341 = vmatpush3.bf16.msra.mxu0 %v10306_v3  ;;  %10345 = vmatpush3.bf16.msra.mxu1 %v10342_v42  ;;  %v1400_v3 = vld [vmem:[%s17999_s3 + $0x3e0] sm:$0xff] }
 0x1c8   :  { %10347 = vmatprep.subr.bf16.mxu1 %v10346_v45  ;;  %10407 = vmatprep.subr.bf16.mxu0 %v10342_v42  ;;  %v10398_v41 = vpack.c.bf16 %v1401_v40, %v1400_v3  ;;  %v2076_v3 = vld [vmem:[%s17999_s3 + $0x580] sm:$0xff]  ;;  %v2077_v40 = vld [vmem:[%s17999_s3 + $0x588] sm:$0xff] }
 0x1ca   :  { %9300 = vmatmul.mubr.f32.vlgmr.msra.gmra.mrb[4].mxu0 %v1293_v50 }
 0x1cb   :  { %10349 = vmatpush3.bf16.msra.mxu1 %v10346_v45  ;;  %10409 = vmatpush3.bf16.msra.mxu0 %v10342_v42  ;;  %v1402_v42 = vld [vmem:[%s17999_s3 + $0x3f0] sm:$0xff] }
 0x1cc   :  { %10351 = vmatprep.subr.bf16.mxu1 %v10350_v49  ;;  %10411 = vmatprep.subr.bf16.mxu0 %v10346_v45  ;;  %v10402_v44 = vpack.c.bf16 %v1403_v43, %v1402_v42  ;;  %v2078_v42 = vld [vmem:[%s17999_s3 + $0x590] sm:$0xff]  ;;  %v2079_v43 = vld [vmem:[%s17999_s3 + $0x598] sm:$0xff] }
 0x1cf   :  { %10353 = vmatpush3.bf16.msra.mxu1 %v10350_v49  ;;  %10413 = vmatpush3.bf16.msra.mxu0 %v10346_v45  ;;  %v1728_v45 = vld [vmem:[%s17999_s3 + $0x480] sm:$0xff] }
 0x1d0   :  { %10355 = vmatprep.subr.bf16.mxu1 %v10354_v53  ;;  %10415 = vmatprep.subr.bf16.mxu0 %v10350_v49  ;;  %v10470_v47 = vpack.c.bf16 %v1729_v46, %v1728_v45  ;;  %v2080_v45 = vld [vmem:[%s17999_s3 + $0x5a0] sm:$0xff]  ;;  %v2081_v46 = vld [vmem:[%s17999_s3 + $0x5a8] sm:$0xff] }
 0x1d3   :  { %10357 = vmatpush3.bf16.msra.mxu1 %v10354_v53  ;;  %10417 = vmatpush3.bf16.msra.mxu0 %v10350_v49  ;;  %v1731_v49 = vld [vmem:[%s17999_s3 + $0x498] sm:$0xff] }
 0x1d4   :  { %10359 = vmatprep.subr.bf16.mxu1 %v10358_v56  ;;  %10419 = vmatprep.subr.bf16.mxu0 %v10354_v53  ;;  %v10474_v50 = vpack.c.bf16 %v1731_v49, %v1730_v48  ;;  %v10606_v48 = vpack.c.bf16 %v2081_v46, %v2080_v45  ;;  %v2082_v49 = vld [vmem:[%s17999_s3 + $0x5b0] sm:$0xff]  ;;  %v2432_v45 = vld [vmem:[%s17999_s3 + $0x6c0] sm:$0xff]  ;;  %v2433_v46 = vld [vmem:[%s17999_s3 + $0x6c8] sm:$0xff] }
 0x1d7   :  { %10361 = vmatpush3.bf16.msra.mxu1 %v10358_v56  ;;  %10421 = vmatpush3.bf16.msra.mxu0 %v10354_v53  ;;  %v1733_v53 = vld [vmem:[%s17999_s3 + $0x4a8] sm:$0xff] }
 0x1d8   :  { %10423 = vmatprep.subr.bf16.mxu0 %v10358_v56  ;;  %10363 = vmatprep.subr.bf16.mxu1 %v10362_v63  ;;  %v10478_v55 = vpack.c.bf16 %v1733_v53, %v1732_v52  ;;  %v2085_v52 = vld [vmem:[%s17999_s3 + $0x5c8] sm:$0xff]  ;;  %v2087_v53 = vld [vmem:[%s17999_s3 + $0x5d8] sm:$0xff] }
 0x1db   :  { %10425 = vmatpush3.bf16.msra.mxu0 %v10358_v56  ;;  %10365 = vmatpush3.bf16.msra.mxu1 %v10362_v63 }
 0x1dc   :  { %10427 = vmatprep.subr.bf16.mxu0 %v10362_v63  ;;  %10367 = vmatprep.subr.bf16.mxu1 %v10366_v6 }
 0x1df   :  { %10429 = vmatpush3.bf16.msra.mxu0 %v10362_v63  ;;  %10369 = vmatpush3.bf16.msra.mxu1 %v10366_v6 }
 0x1e0   :  { %10431 = vmatprep.subr.bf16.mxu0 %v10366_v6  ;;  %10371 = vmatprep.subr.bf16.mxu1 %v10370_v9 }
 0x1e3   :  { %10433 = vmatpush3.bf16.msra.mxu0 %v10366_v6  ;;  %10373 = vmatpush3.bf16.msra.mxu1 %v10370_v9  ;;  %v1737_v6 = vld [vmem:[%s17999_s3 + $0x4c8] sm:$0xff] }
 0x1e4   :  { %10435 = vmatprep.subr.bf16.mxu0 %v10370_v9  ;;  %10375 = vmatprep.subr.bf16.mxu1 %v10374_v12  ;;  %v10486_v7 = vpack.c.bf16 %v1737_v6, %v1736_v5  ;;  %v2250_v5 = vld [vmem:[%s17999_s3 + $0x600] sm:$0xff]  ;;  %v2251_v6 = vld [vmem:[%s17999_s3 + $0x608] sm:$0xff] }
 0x1e7   :  { %10437 = vmatpush3.bf16.msra.mxu0 %v10370_v9  ;;  %v1739_v9 = vld [vmem:[%s17999_s3 + $0x4d8] sm:$0xff] }
 0x1e8   :  { %10439 = vmatprep.subr.bf16.mxu0 %v10374_v12  ;;  %v10490_v10 = vpack.c.bf16 %v1739_v9, %v1738_v8  ;;  %v2252_v8 = vld [vmem:[%s17999_s3 + $0x610] sm:$0xff]  ;;  %v2253_v9 = vld [vmem:[%s17999_s3 + $0x618] sm:$0xff] }
 0x299   :  { %v9266_v14 = vpop.f32.mrb[0].mxu1 }
 0x29a   :  { %v14764_v15 = vadd.f32 %v9266_v14, %v8180_v13  ;;  %v1281_v16 = vpop.f32.mrb[1].mxu1  ;;  %v1742_v14 = vld [vmem:[%s17999_s3 + $0x4f0] sm:$0xff] }
 0x29b   :  { %v14766_v60 = vadd.f32 %v8180_v13, %v1281_v16  ;;  %v1743_v16 = vld [vmem:[%s17999_s3 + $0x4f8] sm:$0xff] }
 0x29c   :  { %v1379_v62 = vmax.f32 %v14764_v15, 0.0 }
 0x29d   :  { %v1378_v17 = vmax.f32 %v14766_v60, 0.0  ;;  %v9301_v18 = vpop.f32.mrb[4].mxu0 }
 0x29e   :  { %1381 = vst [vmem:[#allocation3 + $0x10] sm:$0xff] %v1379_v62  ;;  %v14772_v2 = vadd.f32 %v9301_v18, %v8180_v13  ;;  %v1360_v4 = vpop.f32.mrb[5].mxu0  ;;  %v10498_v18 = vpack.c.bf16 %v1743_v16, %v1742_v14 }
 0x29f   :  { %1380 = vst [vmem:[#allocation3 + $0x8] sm:$0xff] %v1378_v17  ;;  %v14776_v19 = vadd.f32 %v8180_v13, %v1360_v4  ;;  %v1902_v4 = vld [vmem:[%s17999_s3 + $0x500] sm:$0xff] }
 0x2a0   :  { %v1385_v20 = vmax.f32 %v14772_v2, 0.0  ;;  %v10534_v23 = vpack.c.bf16 %v1903_v22, %v1902_v4  ;;  %v2256_v4 = vld [vmem:[%s17999_s3 + $0x630] sm:$0xff]  ;;  %v2257_v22 = vld [vmem:[%s17999_s3 + $0x638] sm:$0xff] }
 0x2a1   :  { %v1384_v21 = vmax.f32 %v14776_v19, 0.0  ;;  %v1912_v19 = vld [vmem:[%s17999_s3 + $0x550] sm:$0xff] }
 0x2a2   :  { %1387 = vst [vmem:[#allocation3 + $0x30] sm:$0xff] %v1385_v20 }
 0x2a3   :  { %1386 = vst [vmem:[#allocation3 + $0x28] sm:$0xff] %v1384_v21 }
 0x2a6   :  { %v1424_v24 = vld [vmem:[#allocation3 + $0x6] sm:$0xff]  ;;  %v1425_v25 = vld [vmem:[#allocation3 + $0xe] sm:$0xff] }
 0x2a7   :  { %9334 = vmatprep.mubr.f32.mxu1 %v1424_v24  ;;  %v1404_v29 = vld [vmem:[#allocation3 + $0x5] sm:$0xff]  ;;  %v1405_v51 = vld [vmem:[#allocation3 + $0xd] sm:$0xff] }
 0x2a8   :  { %9335 = vmatmul.mubr.f32.vlgmr.msra.gmra.mrb[2].mxu1 %v1425_v25  ;;  %v1744_v54 = vld [vmem:[#allocation3 + $0x7] sm:$0xff]  ;;  %v1904_v24 = vld [vmem:[%s17999_s3 + $0x510] sm:$0xff]  ;;  %v1905_v25 = vld [vmem:[%s17999_s3 + $0x518] sm:$0xff] }
 0x2a9   :  { %10377 = vmatpush3.bf16.msra.mxu1 %v10374_v12  ;;  %9369 = vmatprep.mubr.f32.mxu1 %v1404_v29  ;;  %v1745_v27 = vld [vmem:[#allocation3 + $0xf] sm:$0xff] }
 0x2aa   :  { %10379 = vmatprep.subr.bf16.mxu1 %v10378_v26  ;;  %v1576_v30 = vld [vmem:[#allocation3 + $0x26] sm:$0xff]  ;;  %v1577_v31 = vld [vmem:[#allocation3 + $0x2e] sm:$0xff] }
 0x2ab   :  { %9404 = vmatprep.mubr.f32.mxu0 %v1576_v30  ;;  %v1406_v35 = vld [vmem:[#allocation3 + $0x25] sm:$0xff]  ;;  %v1407_v56 = vld [vmem:[#allocation3 + $0x2d] sm:$0xff] }
 0x2ac   :  { %9405 = vmatmul.mubr.f32.vlgmr.msra.gmra.mrb[6].mxu0 %v1577_v31  ;;  %v1823_v63 = vld [vmem:[#allocation3 + $0x27] sm:$0xff]  ;;  %v1824_v31 = vld [vmem:[#allocation3 + $0x2f] sm:$0xff] }
 0x2ad   :  { %10381 = vmatpush3.bf16.msra.mxu1 %v10378_v26  ;;  %10441 = vmatpush3.bf16.msra.mxu0 %v10374_v12  ;;  %v1741_v12 = vld [vmem:[%s17999_s3 + $0x4e8] sm:$0xff] }
 0x2ae   :  { %9439 = vmatprep.mubr.f32.mxu0 %v1406_v35  ;;  %10383 = vmatprep.subr.bf16.mxu1 %v10382_v32  ;;  %v10494_v13 = vpack.c.bf16 %v1741_v12, %v1740_v11  ;;  %v1907_v29 = vld [vmem:[%s17999_s3 + $0x528] sm:$0xff]  ;;  %v2093_v11 = vld [vmem:[#allocation3 + $0x11] sm:$0xff]  ;;  %v2254_v12 = vld [vmem:[%s17999_s3 + $0x620] sm:$0xff] }
 0x2af   :  { %10443 = vmatprep.subr.bf16.mxu0 %v10378_v26  ;;  %v10542_v30 = vpack.c.bf16 %v1907_v29, %v1906_v28  ;;  %v2171_v15 = vld [vmem:[#allocation3 + $0x29] sm:$0xff]  ;;  %v2261_v29 = vld [vmem:[%s17999_s3 + $0x658] sm:$0xff] }
 0x2b0   :  { %v2266_v14 = vld [vmem:[#allocation3 + $0xa] sm:$0xff] }
 0x2b1   :  { %10385 = vmatpush3.bf16.msra.mxu1 %v10382_v32  ;;  %10445 = vmatpush3.bf16.msra.mxu0 %v10378_v26  ;;  %v10538_v26 = vpack.c.bf16 %v1905_v25, %v1904_v24  ;;  %v10674_v24 = vpack.c.bf16 %v2257_v22, %v2256_v4  ;;  %v2258_v25 = vld [vmem:[%s17999_s3 + $0x640] sm:$0xff]  ;;  %v2260_v28 = vld [vmem:[%s17999_s3 + $0x650] sm:$0xff] }
 0x2b2   :  { %10387 = vmatprep.subr.bf16.mxu1 %v10386_v36  ;;  %10447 = vmatprep.subr.bf16.mxu0 %v10382_v32 }
 0x2b5   :  { %10389 = vmatpush3.bf16.msra.mxu1 %v10386_v36  ;;  %10449 = vmatpush3.bf16.msra.mxu0 %v10382_v32  ;;  %v1908_v32 = vld [vmem:[%s17999_s3 + $0x530] sm:$0xff] }
 0x2b6   :  { %10391 = vmatprep.subr.bf16.mxu1 %v10390_v61  ;;  %10451 = vmatprep.subr.bf16.mxu0 %v10386_v36  ;;  %v10546_v60 = vpack.c.bf16 %v1909_v33, %v1908_v32  ;;  %v2263_v32 = vld [vmem:[%s17999_s3 + $0x668] sm:$0xff] }
 0x2b9   :  { %10393 = vmatpush3.bf16.msra.mxu1 %v10390_v61  ;;  %10453 = vmatpush3.bf16.msra.mxu0 %v10386_v36 }
 0x2ba   :  { %10395 = vmatprep.subr.bf16.mxu1 %v10394_v0  ;;  %10455 = vmatprep.subr.bf16.mxu0 %v10390_v61 }
 0x2bd   :  { %10397 = vmatpush3.bf16.msra.mxu1 %v10394_v0  ;;  %10457 = vmatpush3.bf16.msra.mxu0 %v10390_v61  ;;  %v10558_v61 = vpack.c.bf16 %v1915_v58, %v1914_v37  ;;  %v2427_v37 = vld [vmem:[%s17999_s3 + $0x698] sm:$0xff] }
 0x2be   :  { %10399 = vmatprep.subr.bf16.mxu1 %v10398_v41  ;;  %10459 = vmatprep.subr.bf16.mxu0 %v10394_v0 }
 0x2c1   :  { %10401 = vmatpush3.bf16.msra.mxu1 %v10398_v41  ;;  %10461 = vmatpush3.bf16.msra.mxu0 %v10394_v0  ;;  %v10562_v0 = vpack.c.bf16 %v1917_v39, %v1916_v38  ;;  %v2428_v38 = vld [vmem:[%s17999_s3 + $0x6a0] sm:$0xff]  ;;  %v2429_v39 = vld [vmem:[%s17999_s3 + $0x6a8] sm:$0xff] }
 0x2c2   :  { %10403 = vmatprep.subr.bf16.mxu1 %v10402_v44  ;;  %10463 = vmatprep.subr.bf16.mxu0 %v10398_v41 }
 0x2c5   :  { %10405 = vmatpush3.bf16.msra.mxu1 %v10402_v44  ;;  %10465 = vmatpush3.bf16.msra.mxu0 %v10398_v41  ;;  %v10598_v41 = vpack.c.bf16 %v2077_v40, %v2076_v3  ;;  %v10734_v3 = vpack.c.bf16 %v2429_v39, %v2428_v38  ;;  %v2346_v40 = vld [vmem:[#allocation3 + $0x32] sm:$0xff] }
 0x2c6   :  { %10467 = vmatprep.subr.bf16.mxu0 %v10402_v44  ;;  %10471 = vmatprep.subr.bf16.mxu1 %v10470_v47  ;;  %v2650_v38 = vld [vmem:[%s18001_s5 + $0xd8] sm:$0xff]  ;;  %v2649_v39 = vld [vmem:[%s18001_s5 + $0xd0] sm:$0xff] }
 0x2c8   :  { %9370 = vmatmul.mubr.f32.vlgmr.msra.gmra.mrb[2].mxu1 %v1405_v51  ;;  %v2084_v51 = vld [vmem:[%s17999_s3 + $0x5c0] sm:$0xff] }
 0x2c9   :  { %10469 = vmatpush3.bf16.msra.mxu0 %v10402_v44  ;;  %10473 = vmatpush3.bf16.msra.mxu1 %v10470_v47  ;;  %v10602_v44 = vpack.c.bf16 %v2079_v43, %v2078_v42  ;;  %v10614_v2 = vpack.c.bf16 %v2085_v52, %v2084_v51  ;;  %v2431_v42 = vld [vmem:[%s17999_s3 + $0x6b8] sm:$0xff]  ;;  %v2519_v43 = vld [vmem:[#allocation3 + $0x2b] sm:$0xff] }
 0x2ca   :  { %9474 = vmatprep.mubr.f32.mxu1 %v1744_v54  ;;  %10475 = vmatprep.subr.bf16.mxu1 %v10474_v50  ;;  %v2438_v52 = vld [vmem:[%s17999_s3 + $0x6f0] sm:$0xff] }
 0x2cb   :  { %10503 = vmatprep.subr.bf16.mxu0 %v10470_v47 }
 0x2cc   :  { %9440 = vmatmul.mubr.f32.vlgmr.msra.gmra.mrb[6].mxu0 %v1407_v56  ;;  %v2089_v56 = vld [vmem:[%s17999_s3 + $0x5e8] sm:$0xff] }
 0x2cd   :  { %10477 = vmatpush3.bf16.msra.mxu1 %v10474_v50  ;;  %10505 = vmatpush3.bf16.msra.mxu0 %v10470_v47  ;;  %v2092_v47 = vld [vmem:[#allocation3 + $0x9] sm:$0xff] }
 0x2ce   :  { %9509 = vmatprep.mubr.f32.mxu0 %v1823_v63  ;;  %10479 = vmatprep.subr.bf16.mxu1 %v10478_v55  ;;  %v2091_v63 = vld [vmem:[%s17999_s3 + $0x5f8] sm:$0xff] }
 0x2cf   :  { %10507 = vmatprep.subr.bf16.mxu0 %v10474_v50 }
 0x2d1   :  { %10481 = vmatpush3.bf16.msra.mxu1 %v10478_v55  ;;  %10509 = vmatpush3.bf16.msra.mxu0 %v10474_v50  ;;  %v2083_v50 = vld [vmem:[%s17999_s3 + $0x5b8] sm:$0xff] }
 0x2d2   :  { %10483 = vmatprep.subr.bf16.mxu1 %v10482_v1  ;;  %10511 = vmatprep.subr.bf16.mxu0 %v10478_v55 }
 0x2d5   :  { %10485 = vmatpush3.bf16.msra.mxu1 %v10482_v1  ;;  %10513 = vmatpush3.bf16.msra.mxu0 %v10478_v55  ;;  %v2088_v55 = vld [vmem:[%s17999_s3 + $0x5e0] sm:$0xff] }
 0x2d6   :  { %10487 = vmatprep.subr.bf16.mxu1 %v10486_v7  ;;  %10515 = vmatprep.subr.bf16.mxu0 %v10482_v1  ;;  %v10622_v57 = vpack.c.bf16 %v2089_v56, %v2088_v55  ;;  %v2623_v56 = vld [vmem:[%s18001_s5] sm:$0xff] }
 0x2d9   :  { %10489 = vmatpush3.bf16.msra.mxu1 %v10486_v7  ;;  %10517 = vmatpush3.bf16.msra.mxu0 %v10482_v1  ;;  %v10626_v1 = vpack.c.bf16 %v2091_v63, %v2090_v59  ;;  %v2625_v59 = vld [vmem:[%s18001_s5 + $0x10] sm:$0xff]  ;;  %v2628_v63 = vld [vmem:[%s18001_s5 + $0x28] sm:$0xff] }
 0x2da   :  { %10491 = vmatprep.subr.bf16.mxu1 %v10490_v10  ;;  %10519 = vmatprep.subr.bf16.mxu0 %v10486_v7 }
 0x2dd   :  { %10493 = vmatpush3.bf16.msra.mxu1 %v10490_v10  ;;  %10521 = vmatpush3.bf16.msra.mxu0 %v10486_v7  ;;  %v10662_v7 = vpack.c.bf16 %v2251_v6, %v2250_v5  ;;  %v2633_v5 = vld [vmem:[%s18001_s5 + $0x50] sm:$0xff] }
 0x2de   :  { %10495 = vmatprep.subr.bf16.mxu1 %v10494_v13  ;;  %10523 = vmatprep.subr.bf16.mxu0 %v10490_v10  ;;  %v2441_v6 = vld [vmem:[#allocation3 + $0x13] sm:$0xff] }
 0x2e1   :  { %10497 = vmatpush3.bf16.msra.mxu1 %v10494_v13  ;;  %10525 = vmatpush3.bf16.msra.mxu0 %v10490_v10  ;;  %v10666_v10 = vpack.c.bf16 %v2253_v9, %v2252_v8  ;;  %v15103_v8 = vpack.c.bf16 %v2628_v63, %v2625_v59  ;;  %v2665_v63 = vld [vmem:[%s18001_s5 + $0x150] sm:$0xff] }
 0x2e2   :  { %10499 = vmatprep.subr.bf16.mxu1 %v10498_v18  ;;  %10527 = vmatprep.subr.bf16.mxu0 %v10494_v13 }
 0x2e5   :  { %10501 = vmatpush3.bf16.msra.mxu1 %v10498_v18  ;;  %10529 = vmatpush3.bf16.msra.mxu0 %v10494_v13  ;;  %v2255_v13 = vld [vmem:[%s17999_s3 + $0x628] sm:$0xff] }
 0x2e6   :  { %10531 = vmatprep.subr.bf16.mxu0 %v10498_v18  ;;  %10535 = vmatprep.subr.bf16.mxu1 %v10534_v23  ;;  %v10670_v16 = vpack.c.bf16 %v2255_v13, %v2254_v12  ;;  %v2631_v12 = vld [vmem:[%s18001_s5 + $0x40] sm:$0xff]  ;;  %v2634_v13 = vld [vmem:[%s18001_s5 + $0x58] sm:$0xff] }
 0x2e7   :  { %v15130_v22 = vpack.c.bf16 %v2634_v13, %v2631_v12  ;;  %v8181_v12 = vld [vmem:[%s18000_s4 + $0x1] ss:$0 sm:$0xff] }
 0x2e8   :  { %9475 = vmatmul.mubr.f32.vlgmr.msra.gmra.mrb[2].mxu1 %v1745_v27 }
 0x2e9   :  { %10533 = vmatpush3.bf16.msra.mxu0 %v10498_v18  ;;  %10537 = vmatpush3.bf16.msra.mxu1 %v10534_v23  ;;  %v2172_v18 = vld [vmem:[#allocation3 + $0x31] sm:$0xff] }
 0x2ea   :  { %9544 = vmatprep.mubr.f32.mxu1 %v1378_v17  ;;  %10539 = vmatprep.subr.bf16.mxu1 %v10538_v26  ;;  %v1910_v17 = vld [vmem:[%s17999_s3 + $0x540] sm:$0xff] }
 0x2eb   :  { %10567 = vmatprep.subr.bf16.mxu0 %v10534_v23  ;;  %v10550_v35 = vpack.c.bf16 %v1911_v34, %v1910_v17  ;;  %v2265_v17 = vld [vmem:[%s17999_s3 + $0x678] sm:$0xff] }
 0x2ec   :  { %9510 = vmatmul.mubr.f32.vlgmr.msra.gmra.mrb[6].mxu0 %v1824_v31  ;;  %v2262_v31 = vld [vmem:[%s17999_s3 + $0x660] sm:$0xff] }
 0x2ed   :  { %10541 = vmatpush3.bf16.msra.mxu1 %v10538_v26  ;;  %10569 = vmatpush3.bf16.msra.mxu0 %v10534_v23  ;;  %v2345_v23 = vld [vmem:[#allocation3 + $0x2a] sm:$0xff]  ;;  %v10686_v33 = vpack.c.bf16 %v2263_v32, %v2262_v31 }
 0x2ee   :  { %9579 = vmatprep.mubr.f32.mxu0 %v1384_v21  ;;  %10543 = vmatprep.subr.bf16.mxu1 %v10542_v30  ;;  %v1913_v21 = vld [vmem:[%s17999_s3 + $0x558] sm:$0xff] }
 0x2ef   :  { %10571 = vmatprep.subr.bf16.mxu0 %v10538_v26  ;;  %v10554_v36 = vpack.c.bf16 %v1913_v21, %v1912_v19  ;;  %v2425_v19 = vld [vmem:[%s17999_s3 + $0x688] sm:$0xff] }
 0x2f1   :  { %10545 = vmatpush3.bf16.msra.mxu1 %v10542_v30  ;;  %10573 = vmatpush3.bf16.msra.mxu0 %v10538_v26  ;;  %v2259_v26 = vld [vmem:[%s17999_s3 + $0x648] sm:$0xff] }
 0x2f2   :  { %10547 = vmatprep.subr.bf16.mxu1 %v10546_v60  ;;  %10575 = vmatprep.subr.bf16.mxu0 %v10542_v30  ;;  %v10678_v27 = vpack.c.bf16 %v2259_v26, %v2258_v25  ;;  %v2638_v25 = vld [vmem:[%s18001_s5 + $0x78] sm:$0xff]  ;;  %v2637_v26 = vld [vmem:[%s18001_s5 + $0x70] sm:$0xff] }
 0x2f5   :  { %10549 = vmatpush3.bf16.msra.mxu1 %v10546_v60  ;;  %10577 = vmatpush3.bf16.msra.mxu0 %v10542_v30  ;;  %v10682_v30 = vpack.c.bf16 %v2261_v29, %v2260_v28  ;;  %v2642_v28 = vld [vmem:[%s18001_s5 + $0x98] sm:$0xff]  ;;  %v2645_v29 = vld [vmem:[%s18001_s5 + $0xb0] sm:$0xff] }
 0x2f6   :  { %10551 = vmatprep.subr.bf16.mxu1 %v10550_v35  ;;  %10579 = vmatprep.subr.bf16.mxu0 %v10546_v60 }
 0x2f9   :  { %10553 = vmatpush3.bf16.msra.mxu1 %v10550_v35  ;;  %10581 = vmatpush3.bf16.msra.mxu0 %v10546_v60  ;;  %v2264_v60 = vld [vmem:[%s17999_s3 + $0x670] sm:$0xff] }
 0x2fa   :  { %10555 = vmatprep.subr.bf16.mxu1 %v10554_v36  ;;  %10583 = vmatprep.subr.bf16.mxu0 %v10550_v35  ;;  %v10690_v34 = vpack.c.bf16 %v2265_v17, %v2264_v60  ;;  %v2641_v60 = vld [vmem:[%s18001_s5 + $0x90] sm:$0xff]  ;;  %v2644_v17 = vld [vmem:[%s18001_s5 + $0xa8] sm:$0xff] }
 0x2fd   :  { %10557 = vmatpush3.bf16.msra.mxu1 %v10554_v36  ;;  %10585 = vmatpush3.bf16.msra.mxu0 %v10550_v35  ;;  %v2424_v35 = vld [vmem:[%s17999_s3 + $0x680] sm:$0xff] }
 0x2fe   :  { %10559 = vmatprep.subr.bf16.mxu1 %v10558_v61  ;;  %10587 = vmatprep.subr.bf16.mxu0 %v10554_v36  ;;  %v10726_v21 = vpack.c.bf16 %v2425_v19, %v2424_v35  ;;  %v2646_v35 = vld [vmem:[%s18001_s5 + $0xb8] sm:$0xff]  ;;  %v2648_v19 = vld [vmem:[%s18001_s5 + $0xc8] sm:$0xff] }
 0x301   :  { %10561 = vmatpush3.bf16.msra.mxu1 %v10558_v61  ;;  %10589 = vmatpush3.bf16.msra.mxu0 %v10554_v36  ;;  %v2426_v36 = vld [vmem:[%s17999_s3 + $0x690] sm:$0xff] }
 0x302   :  { %10563 = vmatprep.subr.bf16.mxu1 %v10562_v0  ;;  %10591 = vmatprep.subr.bf16.mxu0 %v10558_v61  ;;  %v10730_v58 = vpack.c.bf16 %v2427_v37, %v2426_v36  ;;  %v15185_v36 = vpack.c.bf16 %v2644_v17, %v2641_v60 }
 0x305   :  { %10565 = vmatpush3.bf16.msra.mxu1 %v10562_v0  ;;  %10593 = vmatpush3.bf16.msra.mxu0 %v10558_v61  ;;  %v2267_v61 = vld [vmem:[#allocation3 + $0x12] sm:$0xff] }
 0x306   :  { %10595 = vmatprep.subr.bf16.mxu0 %v10562_v0  ;;  %10599 = vmatprep.subr.bf16.mxu1 %v10598_v41 }
 0x308   :  { %9545 = vmatmul.mubr.f32.vlgmr.msra.gmra.mrb[2].mxu1 %v1379_v62  ;;  %v10610_v62 = vpack.c.bf16 %v2083_v50, %v2082_v49  ;;  %v2435_v49 = vld [vmem:[%s17999_s3 + $0x6d8] sm:$0xff] }
 0x309   :  { %10597 = vmatpush3.bf16.msra.mxu0 %v10562_v0  ;;  %10601 = vmatpush3.bf16.msra.mxu1 %v10598_v41  ;;  %v2440_v0 = vld [vmem:[#allocation3 + $0xb] sm:$0xff] }
 0x30a   :  { %9614 = vmatprep.mubr.f32.mxu1 %v2092_v47  ;;  %10603 = vmatprep.subr.bf16.mxu1 %v10602_v44  ;;  %v10742_v47 = vpack.c.bf16 %v2433_v46, %v2432_v45  ;;  %v2656_v45 = vld [vmem:[%s18001_s5 + $0x108] sm:$0xff]  ;;  %v2655_v46 = vld [vmem:[%s18001_s5 + $0x100] sm:$0xff] }
 0x30b   :  { %10631 = vmatprep.subr.bf16.mxu0 %v10598_v41 }
 0x30c   :  { %9580 = vmatmul.mubr.f32.vlgmr.msra.gmra.mrb[6].mxu0 %v1385_v20  ;;  %v2086_v20 = vld [vmem:[%s17999_s3 + $0x5d0] sm:$0xff] }
 0x30d   :  { %10605 = vmatpush3.bf16.msra.mxu1 %v10602_v44  ;;  %10633 = vmatpush3.bf16.msra.mxu0 %v10598_v41  ;;  %v10618_v54 = vpack.c.bf16 %v2087_v53, %v2086_v20  ;;  %v2430_v41 = vld [vmem:[%s17999_s3 + $0x6b0] sm:$0xff]  ;;  %v2624_v53 = vld [vmem:[%s18001_s5 + $0x8] sm:$0xff] }
 0x30e   :  { %9649 = vmatprep.mubr.f32.mxu0 %v2171_v15  ;;  %10607 = vmatprep.subr.bf16.mxu1 %v10606_v48  ;;  %v2436_v15 = vld [vmem:[%s17999_s3 + $0x6e0] sm:$0xff] }
 0x30f   :  { %10635 = vmatprep.subr.bf16.mxu0 %v10602_v44 }
 0x311   :  { %10609 = vmatpush3.bf16.msra.mxu1 %v10606_v48  ;;  %10637 = vmatpush3.bf16.msra.mxu0 %v10602_v44  ;;  %v10738_v44 = vpack.c.bf16 %v2431_v42, %v2430_v41  ;;  %v2654_v41 = vld [vmem:[%s18001_s5 + $0xf8] sm:$0xff]  ;;  %v2657_v42 = vld [vmem:[%s18001_s5 + $0x110] sm:$0xff] }
 0x312   :  { %10611 = vmatprep.subr.bf16.mxu1 %v10610_v62  ;;  %10639 = vmatprep.subr.bf16.mxu0 %v10606_v48 }
 0x315   :  { %10613 = vmatpush3.bf16.msra.mxu1 %v10610_v62  ;;  %10641 = vmatpush3.bf16.msra.mxu0 %v10606_v48  ;;  %v2434_v48 = vld [vmem:[%s17999_s3 + $0x6d0] sm:$0xff] }
 0x316   :  { %10615 = vmatprep.subr.bf16.mxu1 %v10614_v2  ;;  %10643 = vmatprep.subr.bf16.mxu0 %v10610_v62  ;;  %v10746_v50 = vpack.c.bf16 %v2435_v49, %v2434_v48  ;;  %v2658_v48 = vld [vmem:[%s18001_s5 + $0x118] sm:$0xff] }
 0x317   :  { %v15240_v49 = vpack.c.bf16 %v2658_v48, %v2655_v46  ;;  %v3033_v48 = vld [vmem:[%s18003_s7 + $0xc8] sm:$0xff] }
 0x319   :  { %10617 = vmatpush3.bf16.msra.mxu1 %v10614_v2  ;;  %10645 = vmatpush3.bf16.msra.mxu0 %v10610_v62  ;;  %v2437_v62 = vld [vmem:[%s17999_s3 + $0x6e8] sm:$0xff] }
 0x31a   :  { %10619 = vmatprep.subr.bf16.mxu1 %v10618_v54  ;;  %10647 = vmatprep.subr.bf16.mxu0 %v10614_v2  ;;  %v10750_v51 = vpack.c.bf16 %v2437_v62, %v2436_v15  ;;  %v2663_v15 = vld [vmem:[%s18001_s5 + $0x140] sm:$0xff] }
 0x31d   :  { %10621 = vmatpush3.bf16.msra.mxu1 %v10618_v54  ;;  %10649 = vmatpush3.bf16.msra.mxu0 %v10614_v2  ;;  %v2439_v2 = vld [vmem:[%s17999_s3 + $0x6f8] sm:$0xff] }
 0x31e   :  { %10623 = vmatprep.subr.bf16.mxu1 %v10622_v57  ;;  %10651 = vmatprep.subr.bf16.mxu0 %v10618_v54  ;;  %v10754_v20 = vpack.c.bf16 %v2439_v2, %v2438_v52  ;;  %v2662_v52 = vld [vmem:[%s18001_s5 + $0x138] sm:$0xff]  ;;  %v2661_v2 = vld [vmem:[%s18001_s5 + $0x130] sm:$0xff] }
 0x321   :  { %10625 = vmatpush3.bf16.msra.mxu1 %v10622_v57  ;;  %10653 = vmatpush3.bf16.msra.mxu0 %v10618_v54  ;;  %v2627_v54 = vld [vmem:[%s18001_s5 + $0x20] sm:$0xff] }
 0x322   :  { %10627 = vmatprep.subr.bf16.mxu1 %v10626_v1  ;;  %10655 = vmatprep.subr.bf16.mxu0 %v10622_v57  ;;  %v15080_v55 = vpack.c.bf16 %v2627_v54, %v2624_v53  ;;  %v2664_v53 = vld [vmem:[%s18001_s5 + $0x148] sm:$0xff] }
 0x323   :  { %v15268_v54 = vpack.c.bf16 %v2664_v53, %v2661_v2  ;;  %v3032_v2 = vld [vmem:[%s18003_s7 + $0xc0] sm:$0xff]  ;;  %v3034_v53 = vld [vmem:[%s18003_s7 + $0xd0] sm:$0xff] }
 0x325   :  { %10629 = vmatpush3.bf16.msra.mxu1 %v10626_v1  ;;  %10657 = vmatpush3.bf16.msra.mxu0 %v10622_v57  ;;  %v2626_v57 = vld [vmem:[%s18001_s5 + $0x18] sm:$0xff] }
 0x326   :  { %10659 = vmatprep.subr.bf16.mxu0 %v10626_v1  ;;  %10663 = vmatprep.subr.bf16.mxu1 %v10662_v7 }
 0x328   :  { %9615 = vmatmul.mubr.f32.vlgmr.msra.gmra.mrb[2].mxu1 %v2093_v11  ;;  %v2632_v11 = vld [vmem:[%s18001_s5 + $0x48] sm:$0xff] }
 0x329   :  { %10661 = vmatpush3.bf16.msra.mxu0 %v10626_v1  ;;  %10665 = vmatpush3.bf16.msra.mxu1 %v10662_v7  ;;  %v2630_v1 = vld [vmem:[%s18001_s5 + $0x38] sm:$0xff] }
 0x32a   :  { %9684 = vmatprep.mubr.f32.mxu1 %v2266_v14  ;;  %10667 = vmatprep.subr.bf16.mxu1 %v10666_v10  ;;  %v15105_v9 = vpack.c.bf16 %v2633_v5, %v2630_v1  ;;  %v2636_v14 = vld [vmem:[%s18001_s5 + $0x68] sm:$0xff]  ;;  %v2667_v5 = vld [vmem:[%s18001_s5 + $0x160] sm:$0xff] }
 0x32b   :  { %10695 = vmatprep.subr.bf16.mxu0 %v10662_v7  ;;  %v2668_v1 = vld [vmem:[%s18001_s5 + $0x168] sm:$0xff] }
 0x32c   :  { %9650 = vmatmul.mubr.f32.vlgmr.msra.gmra.mrb[6].mxu0 %v2172_v18  ;;  %v2520_v18 = vld [vmem:[#allocation3 + $0x33] sm:$0xff] }
 0x32d   :  { %10669 = vmatpush3.bf16.msra.mxu1 %v10666_v10  ;;  %10697 = vmatpush3.bf16.msra.mxu0 %v10662_v7  ;;  %v15100_v7 = vpack.c.bf16 %v2626_v57, %v2623_v56  ;;  %v2666_v56 = vld [vmem:[%s18001_s5 + $0x158] sm:$0xff]  ;;  %v2669_v57 = vld [vmem:[%s18001_s5 + $0x170] sm:$0xff] }
 0x32e   :  { %9719 = vmatprep.mubr.f32.mxu0 %v2345_v23  ;;  %10671 = vmatprep.subr.bf16.mxu1 %v10670_v16  ;;  %v15278_v59 = vpack.c.bf16 %v2669_v57, %v2666_v56  ;;  %v3040_v56 = vld [vmem:[%s18003_s7 + $0x100] sm:$0xff]  ;;  %v3045_v57 = vld [vmem:[%s18003_s7 + $0x128] sm:$0xff] }
 0x32f   :  { %10699 = vmatprep.subr.bf16.mxu0 %v10666_v10 }
 0x331   :  { %10673 = vmatpush3.bf16.msra.mxu1 %v10670_v16  ;;  %10701 = vmatpush3.bf16.msra.mxu0 %v10666_v10  ;;  %v2629_v10 = vld [vmem:[%s18001_s5 + $0x30] sm:$0xff] }
 0x332   :  { %10675 = vmatprep.subr.bf16.mxu1 %v10674_v24  ;;  %10703 = vmatprep.subr.bf16.mxu0 %v10670_v16  ;;  %v15126_v4 = vpack.c.bf16 %v2632_v11, %v2629_v10  ;;  %v2670_v10 = vld [vmem:[%s18001_s5 + $0x178] sm:$0xff] }
 0x333   :  { %v15296_v11 = vpack.c.bf16 %v2670_v10, %v2667_v5 }
 0x335   :  { %10677 = vmatpush3.bf16.msra.mxu1 %v10674_v24  ;;  %10705 = vmatpush3.bf16.msra.mxu0 %v10670_v16  ;;  %v2639_v16 = vld [vmem:[%s18001_s5 + $0x80] sm:$0xff] }
 0x336   :  { %10679 = vmatprep.subr.bf16.mxu1 %v10678_v27  ;;  %10707 = vmatprep.subr.bf16.mxu0 %v10674_v24  ;;  %v15132_v23 = vpack.c.bf16 %v2639_v16, %v2636_v14 }
 0x339   :  { %10681 = vmatpush3.bf16.msra.mxu1 %v10678_v27  ;;  %10709 = vmatpush3.bf16.msra.mxu0 %v10674_v24  ;;  %v2635_v24 = vld [vmem:[%s18001_s5 + $0x60] sm:$0xff] }
 0x33a   :  { %10683 = vmatprep.subr.bf16.mxu1 %v10682_v30  ;;  %10711 = vmatprep.subr.bf16.mxu0 %v10678_v27  ;;  %v15157_v31 = vpack.c.bf16 %v2638_v25, %v2635_v24  ;;  %v2608_v25 = vld [vmem:[#allocation2 + $0x10] sm:$0xff] }
 0x33d   :  { %10685 = vmatpush3.bf16.msra.mxu1 %v10682_v30  ;;  %10713 = vmatpush3.bf16.msra.mxu0 %v10678_v27  ;;  %v2640_v27 = vld [vmem:[%s18001_s5 + $0x88] sm:$0xff] }
 0x33e   :  { %10687 = vmatprep.subr.bf16.mxu1 %v10686_v33  ;;  %10715 = vmatprep.subr.bf16.mxu0 %v10682_v30  ;;  %v15161_v32 = vpack.c.bf16 %v2640_v27, %v2637_v26 }
 0x341   :  { %10689 = vmatpush3.bf16.msra.mxu1 %v10686_v33  ;;  %10717 = vmatpush3.bf16.msra.mxu0 %v10682_v30  ;;  %v15152_v30 = vld [vmem:[#allocation2] sm:$0xff] }
 0x342   :  { %10691 = vmatprep.subr.bf16.mxu1 %v10690_v34  ;;  %10719 = vmatprep.subr.bf16.mxu0 %v10686_v33 }
 0x345   :  { %10693 = vmatpush3.bf16.msra.mxu1 %v10690_v34  ;;  %10721 = vmatpush3.bf16.msra.mxu0 %v10686_v33  ;;  %v15163_v33 = vpack.c.bf16 %v2645_v29, %v2642_v28  ;;  %v2607_v29 = vld [vmem:[#allocation2 + $0x8] sm:$0xff] }
 0x346   :  { %10723 = vmatprep.subr.bf16.mxu0 %v10690_v34  ;;  %10727 = vmatprep.subr.bf16.mxu1 %v10726_v21 }
 0x348   :  { %9685 = vmatmul.mubr.f32.vlgmr.msra.gmra.mrb[2].mxu1 %v2267_v61  ;;  %v2647_v61 = vld [vmem:[%s18001_s5 + $0xc0] sm:$0xff] }
 0x349   :  { %10725 = vmatpush3.bf16.msra.mxu0 %v10690_v34  ;;  %10729 = vmatpush3.bf16.msra.mxu1 %v10726_v21  ;;  %v2643_v34 = vld [vmem:[%s18001_s5 + $0xa0] sm:$0xff] }
 0x34a   :  { %9754 = vmatprep.mubr.f32.mxu1 %v2440_v0  ;;  %10731 = vmatprep.subr.bf16.mxu1 %v10730_v58  ;;  %v15189_v37 = vpack.c.bf16 %v2646_v35, %v2643_v34  ;;  %v15207_v0 = vpack.c.bf16 %v2650_v38, %v2647_v61  ;;  %v2617_v38 = vld [vmem:[#allocation2 + $0x28] sm:$0xff] }
 0x34b   :  { %10759 = vmatprep.subr.bf16.mxu0 %v10726_v21 }
 0x34c   :  { %9720 = vmatmul.mubr.f32.vlgmr.msra.gmra.mrb[6].mxu0 %v2346_v40 }
 0x34d   :  { %10733 = vmatpush3.bf16.msra.mxu1 %v10730_v58  ;;  %10761 = vmatpush3.bf16.msra.mxu0 %v10726_v21  ;;  %v2651_v21 = vld [vmem:[%s18001_s5 + $0xe0] sm:$0xff] }
 0x34e   :  { %9789 = vmatprep.mubr.f32.mxu0 %v2519_v43  ;;  %10735 = vmatprep.subr.bf16.mxu1 %v10734_v3  ;;  %v15222_v43 = vpack.c.bf16 %v2657_v42, %v2654_v41  ;;  %v3020_v42 = vld [vmem:[%s18003_s7 + $0x60] sm:$0xff] }
 0x34f   :  { %10763 = vmatprep.subr.bf16.mxu0 %v10730_v58 }
 0x351   :  { %10737 = vmatpush3.bf16.msra.mxu1 %v10734_v3  ;;  %10765 = vmatpush3.bf16.msra.mxu0 %v10730_v58  ;;  %v15191_v58 = vpack.c.bf16 %v2651_v21, %v2648_v19  ;;  %v2618_v19 = vld [vmem:[#allocation2 + $0x30] sm:$0xff] }
 0x352   :  { %10739 = vmatprep.subr.bf16.mxu1 %v10738_v44  ;;  %10767 = vmatprep.subr.bf16.mxu0 %v10734_v3 }
 0x355   :  { %10741 = vmatpush3.bf16.msra.mxu1 %v10738_v44  ;;  %10769 = vmatpush3.bf16.msra.mxu0 %v10734_v3  ;;  %v2652_v3 = vld [vmem:[%s18001_s5 + $0xe8] sm:$0xff] }
 0x356   :  { %10743 = vmatprep.subr.bf16.mxu1 %v10742_v47  ;;  %10771 = vmatprep.subr.bf16.mxu0 %v10738_v44  ;;  %v15212_v40 = vpack.c.bf16 %v2652_v3, %v2649_v39  ;;  %v3029_v3 = vld [vmem:[%s18003_s7 + $0xa8] sm:$0xff] }
 0x359   :  { %10745 = vmatpush3.bf16.msra.mxu1 %v10742_v47  ;;  %10773 = vmatpush3.bf16.msra.mxu0 %v10738_v44  ;;  %v2653_v44 = vld [vmem:[%s18001_s5 + $0xf0] sm:$0xff] }
 0x35a   :  { %10747 = vmatprep.subr.bf16.mxu1 %v10746_v50  ;;  %10775 = vmatprep.subr.bf16.mxu0 %v10742_v47 }
 0x35d   :  { %10749 = vmatpush3.bf16.msra.mxu1 %v10746_v50  ;;  %10777 = vmatpush3.bf16.msra.mxu0 %v10742_v47  ;;  %v15234_v47 = vpack.c.bf16 %v2656_v45, %v2653_v44  ;;  %v3022_v44 = vld [vmem:[%s18003_s7 + $0x70] sm:$0xff] }
 0x35e   :  { %10751 = vmatprep.subr.bf16.mxu1 %v10750_v51  ;;  %10779 = vmatprep.subr.bf16.mxu0 %v10746_v50 }
 0x361   :  { %10753 = vmatpush3.bf16.msra.mxu1 %v10750_v51  ;;  %10781 = vmatpush3.bf16.msra.mxu0 %v10746_v50  ;;  %v2660_v50 = vld [vmem:[%s18001_s5 + $0x128] sm:$0xff] }
 0x362   :  { %10755 = vmatprep.subr.bf16.mxu1 %v10754_v20  ;;  %10783 = vmatprep.subr.bf16.mxu0 %v10750_v51  ;;  %v15250_v62 = vpack.c.bf16 %v2663_v15, %v2660_v50  ;;  %v3035_v50 = vld [vmem:[%s18003_s7 + $0xd8] sm:$0xff]  ;;  %v3041_v15 = vld [vmem:[%s18003_s7 + $0x108] sm:$0xff] }
 0x365   :  { %10757 = vmatpush3.bf16.msra.mxu1 %v10754_v20  ;;  %10785 = vmatpush3.bf16.msra.mxu0 %v10750_v51  ;;  %v2659_v51 = vld [vmem:[%s18001_s5 + $0x120] sm:$0xff] }
 0x366   :  { %10787 = vmatprep.subr.bf16.mxu0 %v10754_v20  ;;  %10791 = vmatprep.subr.bf16.mxu1 %v15080_v55 }
 0x368   :  { %9755 = vmatmul.mubr.f32.vlgmr.msra.gmra.mrb[2].mxu1 %v2441_v6  ;;  %v15290_v6 = vpack.c.bf16 %v2668_v1, %v2665_v63  ;;  %v3047_v63 = vld [vmem:[%s18003_s7 + $0x138] sm:$0xff]  ;;  %v3053_v1 = vld [vmem:[%s18003_s7 + $0x168] sm:$0xff] }
 0x369   :  { %10789 = vmatpush3.bf16.msra.mxu0 %v10754_v20  ;;  %10793 = vmatpush1.bf16.msra.mxu1 %v15100_v7  ;;  %v15262_v20 = vpack.c.bf16 %v2662_v52, %v2659_v51 }
 0x36a   :  { %10823 = vmatprep.subr.bf16.mxu0 %v15103_v8  ;;  %10795 = vmatprep.subr.bf16.mxu1 %v15105_v9 }
 0x36b   :  { %2754 = vmatprep.mubr.f32.mxu1 %v15152_v30 }
 0x36c   :  { %9790 = vmatmul.mubr.f32.vlgmr.msra.gmra.mrb[6].mxu0 %v2520_v18 }
 0x36d   :  { %10825 = vmatpush3.bf16.msra.mxu0 %v15103_v8  ;;  %10797 = vmatpush1.bf16.msra.mxu1 %v15126_v4 }
 0x36e   :  { %10827 = vmatprep.subr.bf16.mxu0 %v15130_v22  ;;  %10799 = vmatprep.subr.bf16.mxu1 %v15132_v23 }
 0x371   :  { %10829 = vmatpush3.bf16.msra.mxu0 %v15130_v22  ;;  %10801 = vmatpush1.bf16.msra.mxu1 %v15157_v31 }
 0x372   :  { %10831 = vmatprep.subr.bf16.mxu0 %v15161_v32  ;;  %10803 = vmatprep.subr.bf16.mxu1 %v15163_v33 }
 0x375   :  { %10833 = vmatpush3.bf16.msra.mxu0 %v15161_v32  ;;  %10805 = vmatpush1.bf16.msra.mxu1 %v15185_v36 }
 0x376   :  { %10835 = vmatprep.subr.bf16.mxu0 %v15189_v37  ;;  %10807 = vmatprep.subr.bf16.mxu1 %v15191_v58 }
 0x379   :  { %10837 = vmatpush3.bf16.msra.mxu0 %v15189_v37  ;;  %10809 = vmatpush1.bf16.msra.mxu1 %v15207_v0 }
 0x37a   :  { %10839 = vmatprep.subr.bf16.mxu0 %v15212_v40  ;;  %10811 = vmatprep.subr.bf16.mxu1 %v15222_v43 }
 0x37d   :  { %10841 = vmatpush3.bf16.msra.mxu0 %v15212_v40  ;;  %10813 = vmatpush1.bf16.msra.mxu1 %v15234_v47 }
 0x37e   :  { %10843 = vmatprep.subr.bf16.mxu0 %v15240_v49  ;;  %10815 = vmatprep.subr.bf16.mxu1 %v15250_v62 }
 0x381   :  { %10845 = vmatpush3.bf16.msra.mxu0 %v15240_v49  ;;  %10817 = vmatpush1.bf16.msra.mxu1 %v15262_v20 }
 0x382   :  { %10847 = vmatprep.subr.bf16.mxu0 %v15268_v54  ;;  %10819 = vmatprep.subr.bf16.mxu1 %v15278_v59 }
 0x385   :  { %10849 = vmatpush3.bf16.msra.mxu0 %v15268_v54  ;;  %10821 = vmatpush1.bf16.msra.mxu1 %v15290_v6 }
 0x386   :  { %10851 = vmatprep.subr.bf16.mxu0 %v15296_v11  ;;  %10855 = vmatprep.subr.bf16.mxu1 %v15080_v55 }
 0x389   :  { %10853 = vmatpush3.bf16.msra.mxu0 %v15296_v11 }
 0x38a   :  { %10887 = vmatprep.subr.bf16.mxu0 %v15103_v8 }
 0x43b   :  { %v9756_v13 = vpop.f32.mrb[2].mxu1 }
 0x43c   :  { %v2604_v14 = vadd.f32 %v9756_v13, %v8181_v12  ;;  %v2508_v16 = vpop.f32.mrb[3].mxu1  ;;  %v3046_v13 = vld [vmem:[%s18003_s7 + $0x130] sm:$0xff] }
 0x43d   :  { %v2603_v18 = vadd.f32 %v8181_v12, %v2508_v16  ;;  %v3052_v16 = vld [vmem:[%s18003_s7 + $0x160] sm:$0xff] }
 0x43e   :  { %v2606_v24 = vmax.f32 %v2604_v14, 0.0  ;;  %v15475_v14 = vpack.c.bf16 %v3053_v1, %v3047_v63  ;;  %v3092_v63 = vld [vmem:[%s18003_s7 + $0x2a0] sm:$0xff]  ;;  %v3098_v1 = vld [vmem:[%s18003_s7 + $0x2d0] sm:$0xff] }
 0x43f   :  { %v2605_v26 = vmax.f32 %v2603_v18, 0.0  ;;  %v9791_v27 = vpop.f32.mrb[6].mxu0  ;;  %v3057_v18 = vld [vmem:[%s18003_s7 + $0x188] sm:$0xff] }
 0x440   :  { %v2610_v28 = vadd.f32 %v2608_v25, %v2606_v24  ;;  %v2614_v60 = vadd.f32 %v9791_v27, %v8181_v12  ;;  %v2587_v55 = vpop.f32.mrb[7].mxu0  ;;  %18189 = vst [vmem:[#allocation18_spill] sm:$0xff] %v15475_v14  ;;  %v3063_v24 = vld [vmem:[%s18003_s7 + $0x1b8] sm:$0xff] }
 0x441   :  { %v2609_v17 = vadd.f32 %v2607_v29, %v2605_v26  ;;  %v2613_v34 = vadd.f32 %v8181_v12, %v2587_v55  ;;  %v3050_v12 = vld [vmem:[%s18003_s7 + $0x150] sm:$0xff]  ;;  %v3059_v25 = vld [vmem:[%s18003_s7 + $0x198] sm:$0xff]  ;;  %v3065_v26 = vld [vmem:[%s18003_s7 + $0x1c8] sm:$0xff]  ;;  %v15499_v29 = vpack.c.bf16 %v3063_v24, %v3057_v18 }
 0x442   :  { %2612 = vst [vmem:[#allocation2 + $0x10] sm:$0xff] %v2610_v28  ;;  %v2616_v35 = vmax.f32 %v2614_v60, 0.0  ;;  %v3056_v60 = vld [vmem:[%s18003_s7 + $0x180] sm:$0xff]  ;;  %v3062_v55 = vld [vmem:[%s18003_s7 + $0x1b0] sm:$0xff]  ;;  %v3111_v18 = vld [vmem:[%s18003_s7 + $0x338] sm:$0xff] }
 0x443   :  { %2611 = vst [vmem:[#allocation2 + $0x8] sm:$0xff] %v2609_v17  ;;  %v2615_v21 = vmax.f32 %v2613_v34, 0.0  ;;  %2755 = vmatmul.mubr.f32.vlgmr.msra.gmra.mrb[4].mxu1 %v2609_v17  ;;  %9824 = vmatprep.mubr.f32.mxu0 %v2609_v17  ;;  %18191 = vst [vmem:[#allocation20_spill] sm:$0xff] %v15499_v29  ;;  %v3058_v17 = vld [vmem:[%s18003_s7 + $0x190] sm:$0xff]  ;;  %v15511_v34 = vpack.c.bf16 %v3065_v26, %v3059_v25  ;;  %v3107_v24 = vld [vmem:[%s18003_s7 + $0x318] sm:$0xff]  ;;  %v15637_v26 = vpack.c.bf16 %v3098_v1, %v3092_v63 }
 0x444   :  { %v15306_v61 = vadd.f32 %v2618_v19, %v2616_v35  ;;  %10857 = vmatpush1.bf16.msra.mxu1 %v15100_v7  ;;  %9825 = vmatmul.mubr.f32.vlgmr.msra.gmra.mrb[8].mxu0 %v2610_v28  ;;  %v3009_v7 = vld [vmem:[%s18003_s7 + $0x8] sm:$0xff]  ;;  %v3064_v35 = vld [vmem:[%s18003_s7 + $0x1c0] sm:$0xff] }
 0x445   :  { %v2619_v39 = vadd.f32 %v2617_v38, %v2615_v21  ;;  %10889 = vmatpush3.bf16.msra.mxu0 %v15103_v8  ;;  %2760 = vmatprep.mubr.f32.mxu1 %v15152_v30  ;;  %v3015_v8 = vld [vmem:[%s18003_s7 + $0x38] sm:$0xff]  ;;  %18192 = vst [vmem:[#allocation21_spill] sm:$0xff] %v15511_v34  ;;  %v3069_v19 = vld [vmem:[%s18003_s7 + $0x1e8] sm:$0xff]  ;;  %18203 = vst [vmem:[#allocation32_spill] sm:$0xff] %v15637_v26 }
 0x446   :  { %2622 = vst [vmem:[#allocation2 + $0x30] sm:$0xff] %v15306_v61  ;;  %10859 = vmatprep.subr.bf16.mxu1 %v15105_v9  ;;  %10891 = vmatprep.subr.bf16.mxu0 %v15130_v22  ;;  %v3011_v9 = vld [vmem:[%s18003_s7 + $0x18] sm:$0xff]  ;;  %v3077_v38 = vld [vmem:[%s18003_s7 + $0x228] sm:$0xff] }
 0x447   :  { %2621 = vst [vmem:[#allocation2 + $0x28] sm:$0xff] %v2619_v39  ;;  %2761 = vmatmul.mubr.f32.gmra.mrb[6].mxu1 %v2610_v28  ;;  %9859 = vmatprep.mubr.f32.mxu0 %v2619_v39  ;;  %v15497_v28 = vpack.c.bf16 %v3052_v16, %v3046_v13  ;;  %v3075_v21 = vld [vmem:[%s18003_s7 + $0x218] sm:$0xff]  ;;  %v3100_v13 = vld [vmem:[%s18003_s7 + $0x2e0] sm:$0xff]  ;;  %v3105_v16 = vld [vmem:[%s18003_s7 + $0x308] sm:$0xff] }
 0x448   :  { %10861 = vmatpush1.bf16.msra.mxu1 %v15126_v4  ;;  %2914 = vmatprep.mubr.f32.mxu1 %v15152_v30  ;;  %v3017_v4 = vld [vmem:[%s18003_s7 + $0x48] sm:$0xff] }
 0x449   :  { %10893 = vmatpush3.bf16.msra.mxu0 %v15130_v22  ;;  %10863 = vmatprep.subr.bf16.mxu1 %v15132_v23  ;;  %v15350_v22 = vpack.c.bf16 %v3015_v8, %v3009_v7  ;;  %v3008_v23 = vld [vmem:[%s18003_s7] sm:$0xff]  ;;  %18190 = vst [vmem:[#allocation19_spill] sm:$0xff] %v15497_v28  ;;  %v15533_v7 = vpack.c.bf16 %v3064_v35, %v3058_v17  ;;  %v3113_v25 = vld [vmem:[%s18003_s7 + $0x348] sm:$0xff]  ;;  %v3110_v35 = vld [vmem:[%s18003_s7 + $0x330] sm:$0xff] }
 0x44a   :  { %10895 = vmatprep.subr.bf16.mxu0 %v15161_v32  ;;  %v15535_v8 = vpack.c.bf16 %v3075_v21, %v3069_v19  ;;  %v3104_v17 = vld [vmem:[%s18003_s7 + $0x300] sm:$0xff]  ;;  %v3106_v19 = vld [vmem:[%s18003_s7 + $0x310] sm:$0xff]  ;;  %v15655_v21 = vpack.c.bf16 %v3113_v25, %v3107_v24  ;;  %v3141_v25 = vld [vmem:[%s18003_s7 + $0x428] sm:$0xff] }
 0x44b   :  { %18179 = vst [vmem:[#allocation8_spill] sm:$0xff] %v15350_v22  ;;  %18193 = vst [vmem:[#allocation22_spill] sm:$0xff] %v15533_v7  ;;  %v3136_v24 = vld [vmem:[%s18003_s7 + $0x400] sm:$0xff] }
 0x44c   :  { %10865 = vmatpush1.bf16.msra.mxu1 %v15157_v31  ;;  %v3014_v31 = vld [vmem:[%s18003_s7 + $0x30] sm:$0xff]  ;;  %18194 = vst [vmem:[#allocation23_spill] sm:$0xff] %v15535_v8  ;;  %18206 = vst [vmem:[#allocation35_spill] sm:$0xff] %v15655_v21 }
 0x44d   :  { %10897 = vmatpush3.bf16.msra.mxu0 %v15161_v32  ;;  %10867 = vmatprep.subr.bf16.mxu1 %v15163_v33  ;;  %v15359_v32 = vpack.c.bf16 %v3017_v4, %v3011_v9  ;;  %v3010_v33 = vld [vmem:[%s18003_s7 + $0x10] sm:$0xff]  ;;  %v3068_v9 = vld [vmem:[%s18003_s7 + $0x1e0] sm:$0xff] }
 0x44e   :  { %10899 = vmatprep.subr.bf16.mxu0 %v15189_v37  ;;  %v3074_v4 = vld [vmem:[%s18003_s7 + $0x210] sm:$0xff] }
 0x44f   :  { %18180 = vst [vmem:[#allocation9_spill] sm:$0xff] %v15359_v32 }
 0x450   :  { %10869 = vmatpush1.bf16.msra.mxu1 %v15185_v36  ;;  %v3016_v36 = vld [vmem:[%s18003_s7 + $0x40] sm:$0xff] }
 0x451   :  { %10901 = vmatpush3.bf16.msra.mxu0 %v15189_v37  ;;  %10871 = vmatprep.subr.bf16.mxu1 %v15191_v58  ;;  %v3021_v37 = vld [vmem:[%s18003_s7 + $0x68] sm:$0xff]  ;;  %v3027_v58 = vld [vmem:[%s18003_s7 + $0x98] sm:$0xff]  ;;  %v15384_v41 = vpack.c.bf16 %v3016_v36, %v3010_v33  ;;  %v3076_v33 = vld [vmem:[%s18003_s7 + $0x220] sm:$0xff] }
 0x452   :  { %10903 = vmatprep.subr.bf16.mxu0 %v15212_v40  ;;  %v15396_v45 = vpack.c.bf16 %v3027_v58, %v3021_v37  ;;  %v3081_v36 = vld [vmem:[%s18003_s7 + $0x248] sm:$0xff]  ;;  %v3087_v37 = vld [vmem:[%s18003_s7 + $0x278] sm:$0xff] }
 0x453   :  { %18181 = vst [vmem:[#allocation10_spill] sm:$0xff] %v15384_v41  ;;  %v3083_v58 = vld [vmem:[%s18003_s7 + $0x258] sm:$0xff] }
 0x454   :  { %10873 = vmatpush1.bf16.msra.mxu1 %v15207_v0  ;;  %v3023_v0 = vld [vmem:[%s18003_s7 + $0x78] sm:$0xff]  ;;  %18182 = vst [vmem:[#allocation11_spill] sm:$0xff] %v15396_v45 }
 0x455   :  { %10905 = vmatpush3.bf16.msra.mxu0 %v15212_v40  ;;  %10875 = vmatprep.subr.bf16.mxu1 %v15222_v43  ;;  %v15380_v40 = vpack.c.bf16 %v3014_v31, %v3008_v23  ;;  %v3026_v43 = vld [vmem:[%s18003_s7 + $0x90] sm:$0xff]  ;;  %v15398_v46 = vpack.c.bf16 %v3029_v3, %v3023_v0  ;;  %v3089_v0 = vld [vmem:[%s18003_s7 + $0x288] sm:$0xff]  ;;  %v15565_v3 = vpack.c.bf16 %v3074_v4, %v3068_v9  ;;  %v3123_v9 = vld [vmem:[%s18003_s7 + $0x398] sm:$0xff] }
 0x456   :  { %10907 = vmatprep.subr.bf16.mxu0 %v15240_v49  ;;  %v3070_v23 = vld [vmem:[%s18003_s7 + $0x1f0] sm:$0xff]  ;;  %v3119_v4 = vld [vmem:[%s18003_s7 + $0x378] sm:$0xff] }
 0x457   :  { %18183 = vst [vmem:[#allocation12_spill] sm:$0xff] %v15398_v46 }
 0x458   :  { %10877 = vmatpush1.bf16.msra.mxu1 %v15234_v47  ;;  %v3028_v47 = vld [vmem:[%s18003_s7 + $0xa0] sm:$0xff] }
 0x459   :  { %10909 = vmatpush3.bf16.msra.mxu0 %v15240_v49  ;;  %10879 = vmatprep.subr.bf16.mxu1 %v15250_v62  ;;  %v3039_v49 = vld [vmem:[%s18003_s7 + $0xf8] sm:$0xff]  ;;  %v15417_v62 = vpack.c.bf16 %v3026_v43, %v3020_v42  ;;  %v15421_v51 = vpack.c.bf16 %v3028_v47, %v3022_v44  ;;  %v15569_v42 = vpack.c.bf16 %v3076_v33, %v3070_v23  ;;  %v3080_v44 = vld [vmem:[%s18003_s7 + $0x240] sm:$0xff]  ;;  %v3086_v47 = vld [vmem:[%s18003_s7 + $0x270] sm:$0xff] }
 0x45a   :  { %10911 = vmatprep.subr.bf16.mxu0 %v15268_v54  ;;  %v15423_v52 = vpack.c.bf16 %v3039_v49, %v3033_v48  ;;  %v15571_v43 = vpack.c.bf16 %v3087_v37, %v3081_v36  ;;  %v3082_v48 = vld [vmem:[%s18003_s7 + $0x250] sm:$0xff]  ;;  %v15583_v49 = vpack.c.bf16 %v3089_v0, %v3083_v58  ;;  %v3125_v23 = vld [vmem:[%s18003_s7 + $0x3a8] sm:$0xff]  ;;  %v15673_v33 = vpack.c.bf16 %v3110_v35, %v3104_v17  ;;  %v3116_v58 = vld [vmem:[%s18003_s7 + $0x360] sm:$0xff] }
 0x45b   :  { %18184 = vst [vmem:[#allocation13_spill] sm:$0xff] %v15421_v51  ;;  %18196 = vst [vmem:[#allocation25_spill] sm:$0xff] %v15569_v42  ;;  %v3122_v0 = vld [vmem:[%s18003_s7 + $0x390] sm:$0xff]  ;;  %v3147_v17 = vld [vmem:[%s18003_s7 + $0x458] sm:$0xff] }
 0x45c   :  { %10881 = vmatpush1.bf16.msra.mxu1 %v15262_v20  ;;  %18185 = vst [vmem:[#allocation14_spill] sm:$0xff] %v15423_v52  ;;  %v3038_v20 = vld [vmem:[%s18003_s7 + $0xf0] sm:$0xff]  ;;  %18197 = vst [vmem:[#allocation26_spill] sm:$0xff] %v15571_v43  ;;  %v3143_v35 = vld [vmem:[%s18003_s7 + $0x438] sm:$0xff] }
 0x45d   :  { %10913 = vmatpush3.bf16.msra.mxu0 %v15268_v54  ;;  %10883 = vmatprep.subr.bf16.mxu1 %v15278_v59  ;;  %v15436_v54 = vpack.c.bf16 %v3041_v15, %v3035_v50  ;;  %v3051_v59 = vld [vmem:[%s18003_s7 + $0x158] sm:$0xff]  ;;  %v15456_v5 = vpack.c.bf16 %v3038_v20, %v3032_v2  ;;  %18198 = vst [vmem:[#allocation27_spill] sm:$0xff] %v15583_v49  ;;  %v3088_v50 = vld [vmem:[%s18003_s7 + $0x280] sm:$0xff]  ;;  %v3093_v15 = vld [vmem:[%s18003_s7 + $0x2a8] sm:$0xff] }
 0x45e   :  { %10915 = vmatprep.subr.bf16.mxu0 %v15296_v11  ;;  %v15463_v10 = vpack.c.bf16 %v3051_v59, %v3045_v57  ;;  %v3099_v2 = vld [vmem:[%s18003_s7 + $0x2d8] sm:$0xff]  ;;  %v15605_v57 = vpack.c.bf16 %v3088_v50, %v3082_v48  ;;  %18207 = vst [vmem:[#allocation36_spill] sm:$0xff] %v15673_v33  ;;  %v3124_v48 = vld [vmem:[%s18003_s7 + $0x3a0] sm:$0xff]  ;;  %v3129_v50 = vld [vmem:[%s18003_s7 + $0x3c8] sm:$0xff] }
 0x45f   :  { %18186 = vst [vmem:[#allocation15_spill] sm:$0xff] %v15436_v54  ;;  %v3095_v20 = vld [vmem:[%s18003_s7 + $0x2b8] sm:$0xff]  ;;  %v15607_v59 = vpack.c.bf16 %v3099_v2, %v3093_v15 }
 0x460   :  { %10885 = vmatpush1.bf16.msra.mxu1 %v15290_v6  ;;  %v15461_v6 = vpack.c.bf16 %v3040_v56, %v3034_v53  ;;  %18188 = vst [vmem:[#allocation17_spill] sm:$0xff] %v15463_v10  ;;  %v3101_v53 = vld [vmem:[%s18003_s7 + $0x2e8] sm:$0xff]  ;;  %v15601_v56 = vpack.c.bf16 %v3086_v47, %v3080_v44  ;;  %18200 = vst [vmem:[#allocation29_spill] sm:$0xff] %v15605_v57  ;;  %v3118_v44 = vld [vmem:[%s18003_s7 + $0x370] sm:$0xff]  ;;  %v15691_v47 = vpack.c.bf16 %v3125_v23, %v3119_v4 }
 0x461   :  { %10917 = vmatpush3.bf16.msra.mxu0 %v15296_v11  ;;  %10919 = vmatprep.subr.bf16.mxu1 %v15350_v22  ;;  %v3044_v11 = vld [vmem:[%s18003_s7 + $0x120] sm:$0xff]  ;;  %18201 = vst [vmem:[#allocation30_spill] sm:$0xff] %v15607_v59  ;;  %v3135_v15 = vld [vmem:[%s18003_s7 + $0x3f8] sm:$0xff]  ;;  %v15713_v63 = vpack.c.bf16 %v3124_v48, %v3118_v44  ;;  %v3146_v23 = vld [vmem:[%s18003_s7 + $0x450] sm:$0xff] }
 0x462   :  { %10983 = vmatprep.subr.bf16.mxu0 %v15359_v32  ;;  %18187 = vst [vmem:[#allocation16_spill] sm:$0xff] %v15461_v6  ;;  %v15493_v27 = vpack.c.bf16 %v3050_v12, %v3044_v11  ;;  %18199 = vst [vmem:[#allocation28_spill] sm:$0xff] %v15601_v56  ;;  %v3094_v11 = vld [vmem:[%s18003_s7 + $0x2b0] sm:$0xff]  ;;  %v15619_v12 = vpack.c.bf16 %v3101_v53, %v3095_v20  ;;  %v3131_v2 = vld [vmem:[%s18003_s7 + $0x3d8] sm:$0xff]  ;;  %v15709_v53 = vpack.c.bf16 %v3122_v0, %v3116_v58 }
 0x463   :  { %2915 = vmatmul.mubr.f32.vlgmr.msra.gmra.mrb[8].mxu1 %v2619_v39  ;;  %v15529_v39 = vpack.c.bf16 %v3062_v55, %v3056_v60  ;;  %v15641_v60 = vpack.c.bf16 %v3100_v13, %v3094_v11  ;;  %v15643_v55 = vpack.c.bf16 %v3111_v18, %v3105_v16  ;;  %18210 = vst [vmem:[#allocation39_spill] sm:$0xff] %v15691_v47  ;;  %v3137_v20 = vld [vmem:[%s18003_s7 + $0x408] sm:$0xff]  ;;  %18212 = vst [vmem:[#allocation41_spill] sm:$0xff] %v15713_v63  ;;  %v3128_v11 = vld [vmem:[%s18003_s7 + $0x3c0] sm:$0xff] }
 0x464   :  { %9860 = vmatmul.mubr.f32.vlgmr.msra.gmra.mrb[10].mxu0 %v15306_v61  ;;  %10921 = vmatpush1.bf16.msra.mxu1 %v15380_v40  ;;  %18202 = vst [vmem:[#allocation31_spill] sm:$0xff] %v15619_v12  ;;  %18211 = vst [vmem:[#allocation40_spill] sm:$0xff] %v15709_v53  ;;  %v15715_v1 = vpack.c.bf16 %v3135_v15, %v3129_v50  ;;  %v3134_v13 = vld [vmem:[%s18003_s7 + $0x3f0] sm:$0xff]  ;;  %v15727_v18 = vpack.c.bf16 %v3137_v20, %v3131_v2  ;;  %v3140_v4 = vld [vmem:[%s18003_s7 + $0x420] sm:$0xff] }
 0x465   :  { %10985 = vmatpush1.bf16.msra.mxu0 %v15384_v41  ;;  %2920 = vmatprep.mubr.f32.mxu1 %v15152_v30  ;;  %18204 = vst [vmem:[#allocation33_spill] sm:$0xff] %v15641_v60  ;;  %18205 = vst [vmem:[#allocation34_spill] sm:$0xff] %v15643_v55  ;;  %v3130_v16 = vld [vmem:[%s18003_s7 + $0x3d0] sm:$0xff]  ;;  %v3148_v44 = vld [vmem:[%s18003_s7 + $0x460] sm:$0xff]  ;;  %v15781_v20 = vpack.c.bf16 %v3146_v23, %v3140_v4 }
 0x466   :  { %10923 = vmatprep.subr.bf16.mxu1 %v15396_v45  ;;  %10987 = vmatprep.subr.bf16.mxu0 %v15398_v46  ;;  %18213 = vst [vmem:[#allocation42_spill] sm:$0xff] %v15715_v1  ;;  %18214 = vst [vmem:[#allocation43_spill] sm:$0xff] %v15727_v18  ;;  %v3142_v58 = vld [vmem:[%s18003_s7 + $0x430] sm:$0xff]  ;;  %v3153_v48 = vld [vmem:[%s18003_s7 + $0x488] sm:$0xff] }
 0x467   :  { %2921 = vmatmul.mubr.f32.gmra.mrb[10].mxu1 %v15306_v61  ;;  %3339 = vmatprep.mubr.f32.mxu0 %v15152_v30  ;;  %v3071_v61 = vld [vmem:[%s18003_s7 + $0x1f8] sm:$0xff]  ;;  %v3161_v2 = vld [vmem:[%s18003_s7 + $0x4c8] sm:$0xff]  ;;  %18219 = vst [vmem:[#allocation48_spill] sm:$0xff] %v15781_v20 }
 0x468   :  { %10925 = vmatpush1.bf16.msra.mxu1 %v15417_v62  ;;  %3268 = vmatprep.mubr.f32.mxu1 %v15152_v30  ;;  %v15547_v31 = vpack.c.bf16 %v3077_v38, %v3071_v61  ;;  %v3112_v61 = vld [vmem:[%s18003_s7 + $0x340] sm:$0xff]  ;;  %v3117_v38 = vld [vmem:[%s18003_s7 + $0x368] sm:$0xff]  ;;  %v3159_v50 = vld [vmem:[%s18003_s7 + $0x4b8] sm:$0xff] }
 0x469   :  { %10989 = vmatpush1.bf16.msra.mxu0 %v15421_v51  ;;  %10927 = vmatprep.subr.bf16.mxu1 %v15423_v52  ;;  %v15677_v36 = vpack.c.bf16 %v3112_v61, %v3106_v19  ;;  %v15679_v37 = vpack.c.bf16 %v3123_v9, %v3117_v38  ;;  %v3149_v19 = vld [vmem:[%s18003_s7 + $0x468] sm:$0xff]  ;;  %v15745_v61 = vpack.c.bf16 %v3134_v13, %v3128_v11  ;;  %v3155_v15 = vld [vmem:[%s18003_s7 + $0x498] sm:$0xff] }
 0x46a   :  { %10991 = vmatprep.subr.bf16.mxu0 %v15436_v54  ;;  %18195 = vst [vmem:[#allocation24_spill] sm:$0xff] %v15547_v31  ;;  %v15749_v38 = vpack.c.bf16 %v3136_v24, %v3130_v16  ;;  %v15751_v9 = vpack.c.bf16 %v3147_v17, %v3141_v25  ;;  %v15763_v0 = vpack.c.bf16 %v3149_v19, %v3143_v35  ;;  %v3152_v16 = vld [vmem:[%s18003_s7 + $0x480] sm:$0xff]  ;;  %v3158_v24 = vld [vmem:[%s18003_s7 + $0x4b0] sm:$0xff]  ;;  %v3165_v19 = vld [vmem:[%s18003_s7 + $0x4e8] sm:$0xff] }
 0x46b   :  { %18208 = vst [vmem:[#allocation37_spill] sm:$0xff] %v15677_v36  ;;  %18209 = vst [vmem:[#allocation38_spill] sm:$0xff] %v15679_v37  ;;  %v15785_v11 = vpack.c.bf16 %v3148_v44, %v3142_v58  ;;  %v15787_v13 = vpack.c.bf16 %v3159_v50, %v3153_v48  ;;  %v3154_v25 = vld [vmem:[%s18003_s7 + $0x490] sm:$0xff]  ;;  %v15799_v17 = vpack.c.bf16 %v3161_v2, %v3155_v15  ;;  %v3160_v35 = vld [vmem:[%s18003_s7 + $0x4c0] sm:$0xff] }
 0x46c   :  { %10929 = vmatpush1.bf16.msra.mxu1 %v15456_v5  ;;  %18215 = vst [vmem:[#allocation44_spill] sm:$0xff] %v15745_v61  ;;  %18216 = vst [vmem:[#allocation45_spill] sm:$0xff] %v15749_v38  ;;  %v3171_v4 = vld [vmem:[%s18003_s7 + $0x518] sm:$0xff]  ;;  %v3173_v58 = vld [vmem:[%s18003_s7 + $0x528] sm:$0xff]  ;;  %v15817_v44 = vpack.c.bf16 %v3158_v24, %v3152_v16  ;;  %v15821_v48 = vpack.c.bf16 %v3160_v35, %v3154_v25 }
 0x46d   :  { %10993 = vmatpush1.bf16.msra.mxu0 %v15461_v6  ;;  %10931 = vmatprep.subr.bf16.mxu1 %v15463_v10  ;;  %18217 = vst [vmem:[#allocation46_spill] sm:$0xff] %v15751_v9  ;;  %18218 = vst [vmem:[#allocation47_spill] sm:$0xff] %v15763_v0  ;;  %v3167_v23 = vld [vmem:[%s18003_s7 + $0x4f8] sm:$0xff]  ;;  %v15823_v50 = vpack.c.bf16 %v3171_v4, %v3165_v19  ;;  %v3164_v15 = vld [vmem:[%s18003_s7 + $0x4e0] sm:$0xff] }
 0x46e   :  { %10995 = vmatprep.subr.bf16.mxu0 %v15475_v14  ;;  %18220 = vst [vmem:[#allocation49_spill] sm:$0xff] %v15785_v11  ;;  %18221 = vst [vmem:[#allocation50_spill] sm:$0xff] %v15787_v13  ;;  %v3170_v2 = vld [vmem:[%s18003_s7 + $0x510] sm:$0xff]  ;;  %v15835_v24 = vpack.c.bf16 %v3173_v58, %v3167_v23  ;;  %v3172_v25 = vld [vmem:[%s18003_s7 + $0x520] sm:$0xff] }
 0x46f   :  { %18222 = vst [vmem:[#allocation51_spill] sm:$0xff] %v15799_v17  ;;  %18223 = vst [vmem:[#allocation52_spill] sm:$0xff] %v15817_v44  ;;  %v3166_v16 = vld [vmem:[%s18003_s7 + $0x4f0] sm:$0xff]  ;;  %v3177_v35 = vld [vmem:[%s18003_s7 + $0x548] sm:$0xff]  ;;  %v15853_v58 = vpack.c.bf16 %v3170_v2, %v3164_v15 }
 0x470   :  { %10933 = vmatpush1.bf16.msra.mxu1 %v15493_v27  ;;  %18224 = vst [vmem:[#allocation53_spill] sm:$0xff] %v15821_v48  ;;  %18225 = vst [vmem:[#allocation54_spill] sm:$0xff] %v15823_v50  ;;  %v3183_v19 = vld [vmem:[%s18003_s7 + $0x578] sm:$0xff]  ;;  %v3185_v23 = vld [vmem:[%s18003_s7 + $0x588] sm:$0xff] }
 0x471   :  { %10997 = vmatpush1.bf16.msra.mxu0 %v15497_v28  ;;  %10935 = vmatprep.subr.bf16.mxu1 %v15499_v29  ;;  %18226 = vst [vmem:[#allocation55_spill] sm:$0xff] %v15835_v24  ;;  %v3179_v4 = vld [vmem:[%s18003_s7 + $0x558] sm:$0xff]  ;;  %18227 = vst [vmem:[#allocation56_spill] sm:$0xff] %v15853_v58  ;;  %v3178_v15 = vld [vmem:[%s18003_s7 + $0x550] sm:$0xff] }
 0x472   :  { %10999 = vmatprep.subr.bf16.mxu0 %v15511_v34  ;;  %v15871_v2 = vpack.c.bf16 %v3185_v23, %v3179_v4  ;;  %v3197_v4 = vld [vmem:[%s18003_s7 + $0x5e8] sm:$0xff] }
 0x474   :  { %10937 = vmatpush1.bf16.msra.mxu1 %v15529_v39  ;;  %18230 = vst [vmem:[#allocation59_spill] sm:$0xff] %v15871_v2 }
 0x475   :  { %11001 = vmatpush1.bf16.msra.mxu0 %v15533_v7  ;;  %10939 = vmatprep.subr.bf16.mxu1 %v15535_v8 }
 0x476   :  { %11003 = vmatprep.subr.bf16.mxu0 %v15547_v31 }
 0x478   :  { %10941 = vmatpush1.bf16.msra.mxu1 %v15565_v3 }
 0x479   :  { %11005 = vmatpush1.bf16.msra.mxu0 %v15569_v42  ;;  %10943 = vmatprep.subr.bf16.mxu1 %v15571_v43 }
 0x47a   :  { %11007 = vmatprep.subr.bf16.mxu0 %v15583_v49 }
 0x47c   :  { %10945 = vmatpush1.bf16.msra.mxu1 %v15601_v56 }
 0x47d   :  { %11009 = vmatpush1.bf16.msra.mxu0 %v15605_v57  ;;  %10947 = vmatprep.subr.bf16.mxu1 %v15607_v59 }
 0x47e   :  { %11011 = vmatprep.subr.bf16.mxu0 %v15619_v12 }
 0x480   :  { %10949 = vmatpush1.bf16.msra.mxu1 %v15637_v26 }
 0x481   :  { %11013 = vmatpush1.bf16.msra.mxu0 %v15641_v60  ;;  %10951 = vmatprep.subr.bf16.mxu1 %v15643_v55 }
 0x482   :  { %11015 = vmatprep.subr.bf16.mxu0 %v15655_v21 }
 0x484   :  { %10953 = vmatpush1.bf16.msra.mxu1 %v15673_v33 }
 0x485   :  { %11017 = vmatpush1.bf16.msra.mxu0 %v15677_v36  ;;  %10955 = vmatprep.subr.bf16.mxu1 %v15679_v37 }
 0x486   :  { %11019 = vmatprep.subr.bf16.mxu0 %v15691_v47 }
 0x488   :  { %10957 = vmatpush1.bf16.msra.mxu1 %v15709_v53 }
 0x489   :  { %11021 = vmatpush1.bf16.msra.mxu0 %v15713_v63  ;;  %10959 = vmatprep.subr.bf16.mxu1 %v15715_v1  ;;  %v3194_v63 = vld [vmem:[%s18003_s7 + $0x5d0] sm:$0xff] }
 0x48a   :  { %11023 = vmatprep.subr.bf16.mxu0 %v15727_v18  ;;  %v3188_v18 = vld [vmem:[%s18003_s7 + $0x5a0] sm:$0xff] }
 0x48c   :  { %10961 = vmatpush1.bf16.msra.mxu1 %v15745_v61 }
 0x48d   :  { %11025 = vmatpush1.bf16.msra.mxu0 %v15749_v38  ;;  %10963 = vmatprep.subr.bf16.mxu1 %v15751_v9  ;;  %v3182_v38 = vld [vmem:[%s18003_s7 + $0x570] sm:$0xff] }
 0x48e   :  { %11027 = vmatprep.subr.bf16.mxu0 %v15763_v0  ;;  %v3176_v0 = vld [vmem:[%s18003_s7 + $0x540] sm:$0xff] }
 0x48f   :  { %v15889_v23 = vpack.c.bf16 %v3182_v38, %v3176_v0  ;;  %v3190_v38 = vld [vmem:[%s18003_s7 + $0x5b0] sm:$0xff] }
 0x490   :  { %10965 = vmatpush1.bf16.msra.mxu1 %v15781_v20 }
 0x491   :  { %11029 = vmatpush1.bf16.msra.mxu0 %v15785_v11  ;;  %10967 = vmatprep.subr.bf16.mxu1 %v15787_v13  ;;  %v15859_v11 = vpack.c.bf16 %v3183_v19, %v3177_v35  ;;  %v3195_v35 = vld [vmem:[%s18003_s7 + $0x5d8] sm:$0xff]  ;;  %18231 = vst [vmem:[#allocation60_spill] sm:$0xff] %v15889_v23 }
 0x492   :  { %11031 = vmatprep.subr.bf16.mxu0 %v15799_v17  ;;  %v15857_v17 = vpack.c.bf16 %v3172_v25, %v3166_v16  ;;  %v3184_v16 = vld [vmem:[%s18003_s7 + $0x580] sm:$0xff]  ;;  %v3189_v25 = vld [vmem:[%s18003_s7 + $0x5a8] sm:$0xff]  ;;  %v3191_v19 = vld [vmem:[%s18003_s7 + $0x5b8] sm:$0xff] }
 0x493   :  { %18229 = vst [vmem:[#allocation58_spill] sm:$0xff] %v15859_v11  ;;  %v15907_v0 = vpack.c.bf16 %v3197_v4, %v3191_v19 }
 0x494   :  { %10969 = vmatpush1.bf16.msra.mxu1 %v15817_v44  ;;  %18228 = vst [vmem:[#allocation57_spill] sm:$0xff] %v15857_v17 }
 0x495   :  { %11033 = vmatpush1.bf16.msra.mxu0 %v15821_v48  ;;  %10971 = vmatprep.subr.bf16.mxu1 %v15823_v50  ;;  %v15895_v48 = vpack.c.bf16 %v3195_v35, %v3189_v25  ;;  %18234 = vst [vmem:[#allocation63_spill] sm:$0xff] %v15907_v0  ;;  %v3019_v25 = vld [vmem:[%s18003_s7 + $0x58] sm:$0xff]  ;;  %v15919_v35 = vpack.c.bf16 %v3194_v63, %v3188_v18  ;;  %v3025_v63 = vld [vmem:[%s18003_s7 + $0x88] sm:$0xff] }
 0x496   :  { %11035 = vmatprep.subr.bf16.mxu0 %v15835_v24  ;;  %v15893_v24 = vpack.c.bf16 %v3184_v16, %v3178_v15  ;;  %v3196_v15 = vld [vmem:[%s18003_s7 + $0x5e0] sm:$0xff]  ;;  %v3013_v16 = vld [vmem:[%s18003_s7 + $0x28] sm:$0xff]  ;;  %v3031_v18 = vld [vmem:[%s18003_s7 + $0xb8] sm:$0xff] }
 0x497   :  { %18233 = vst [vmem:[#allocation62_spill] sm:$0xff] %v15895_v48  ;;  %18235 = vst [vmem:[#allocation64_spill] sm:$0xff] %v15919_v35  ;;  %v15923_v19 = vpack.c.bf16 %v3196_v15, %v3190_v38  ;;  %v15925_v4 = vpack.c.bf16 %v3019_v25, %v3013_v16  ;;  %v15945_v15 = vpack.c.bf16 %v3031_v18, %v3025_v63  ;;  %v3024_v16 = vld [vmem:[%s18003_s7 + $0x80] sm:$0xff]  ;;  %v3030_v25 = vld [vmem:[%s18003_s7 + $0xb0] sm:$0xff] }
 0x498   :  { %10973 = vmatpush1.bf16.msra.mxu1 %v15853_v58  ;;  %18232 = vst [vmem:[#allocation61_spill] sm:$0xff] %v15893_v24  ;;  %v3036_v18 = vld [vmem:[%s18003_s7 + $0xe0] sm:$0xff] }
 0x499   :  { %11037 = vmatpush1.bf16.msra.mxu0 %v15857_v17  ;;  %10975 = vmatprep.subr.bf16.mxu1 %v15859_v11  ;;  %18236 = vst [vmem:[#allocation65_spill] sm:$0xff] %v15923_v19  ;;  %18237 = vst [vmem:[#allocation66_spill] sm:$0xff] %v15925_v4  ;;  %v3018_v17 = vld [vmem:[%s18003_s7 + $0x50] sm:$0xff] }
 0x49a   :  { %11039 = vmatprep.subr.bf16.mxu0 %v15871_v2  ;;  %v3012_v2 = vld [vmem:[%s18003_s7 + $0x20] sm:$0xff] }
 0x49b   :  { %v15941_v38 = vpack.c.bf16 %v3018_v17, %v3012_v2  ;;  %v3043_v17 = vld [vmem:[%s18003_s7 + $0x118] sm:$0xff]  ;;  %v15963_v2 = vpack.c.bf16 %v3030_v25, %v3024_v16 }
 0x49c   :  { %10977 = vmatpush1.bf16.msra.mxu1 %v15889_v23  ;;  %v3055_v16 = vld [vmem:[%s18003_s7 + $0x178] sm:$0xff] }
 0x49d   :  { %11041 = vmatpush1.bf16.msra.mxu0 %v15893_v24  ;;  %10979 = vmatprep.subr.bf16.mxu1 %v15895_v48  ;;  %18238 = vst [vmem:[#allocation67_spill] sm:$0xff] %v15941_v38 }
 0x49e   :  { %11043 = vmatprep.subr.bf16.mxu0 %v15907_v0  ;;  %v3037_v0 = vld [vmem:[%s18003_s7 + $0xe8] sm:$0xff] }
 0x49f   :  { %v15966_v63 = vpack.c.bf16 %v3043_v17, %v3037_v0  ;;  %v3054_v17 = vld [vmem:[%s18003_s7 + $0x170] sm:$0xff] }
 0x4a0   :  { %10981 = vmatpush1.bf16.msra.mxu1 %v15919_v35 }
 0x4a1   :  { %11045 = vmatpush1.bf16.msra.mxu0 %v15923_v19  ;;  %11047 = vmatprep.subr.bf16.mxu1 %v15925_v4  ;;  %18239 = vst [vmem:[#allocation68_spill] sm:$0xff] %v15966_v63 }
 0x4a2   :  { %11111 = vmatprep.subr.bf16.mxu0 %v15350_v22  ;;  %v3042_v22 = vld [vmem:[%s18003_s7 + $0x110] sm:$0xff] }
 0x4a3   :  { %3269 = vmatmul.mubr.f32.vlgmr.msra.gmra.mrb[12].mxu1 %v15152_v30  ;;  %v15984_v0 = vpack.c.bf16 %v3042_v22, %v3036_v18  ;;  %v3067_v22 = vld [vmem:[%s18003_s7 + $0x1d8] sm:$0xff] }
 0x4a4   :  { %3340 = vmatmul.mubr.f32.vlgmr.msra.gmra.mrb[12].mxu0 %v15152_v30  ;;  %11049 = vmatpush1.bf16.msra.mxu1 %v15941_v38  ;;  %v3049_v38 = vld [vmem:[%s18003_s7 + $0x148] sm:$0xff] }
 0x4a5   :  { %11051 = vmatprep.subr.bf16.mxu1 %v15945_v15  ;;  %3410 = vmatprep.mubr.f32.mxu1 %v15152_v30  ;;  %v15987_v25 = vpack.c.bf16 %v3055_v16, %v3049_v38  ;;  %v3048_v30 = vld [vmem:[%s18003_s7 + $0x140] sm:$0xff] }
 0x4a6   :  { %11113 = vmatpush1.bf16.msra.mxu0 %v15380_v40  ;;  %v16004_v38 = vpack.c.bf16 %v3054_v17, %v3048_v30  ;;  %v3060_v16 = vld [vmem:[%s18003_s7 + $0x1a0] sm:$0xff]  ;;  %v3079_v30 = vld [vmem:[%s18003_s7 + $0x238] sm:$0xff] }
 0x4a7   :  { %11115 = vmatprep.subr.bf16.mxu0 %v15396_v45  ;;  %18240 = vst [vmem:[#allocation69_spill] sm:$0xff] %v15987_v25  ;;  %v3061_v45 = vld [vmem:[%s18003_s7 + $0x1a8] sm:$0xff] }
 0x4a8   :  { %11053 = vmatpush1.bf16.msra.mxu1 %v15963_v2  ;;  %v16007_v18 = vpack.c.bf16 %v3067_v22, %v3061_v45  ;;  %v3072_v22 = vld [vmem:[%s18003_s7 + $0x200] sm:$0xff] }
 0x4a9   :  { %11055 = vmatprep.subr.bf16.mxu1 %v15966_v63  ;;  %v3066_v63 = vld [vmem:[%s18003_s7 + $0x1d0] sm:$0xff] }
 0x4aa   :  { %11117 = vmatpush1.bf16.msra.mxu0 %v15417_v62  ;;  %18241 = vst [vmem:[#allocation70_spill] sm:$0xff] %v16007_v18  ;;  %v16024_v45 = vpack.c.bf16 %v3066_v63, %v3060_v16  ;;  %v3091_v63 = vld [vmem:[%s18003_s7 + $0x298] sm:$0xff] }
 0x4ab   :  { %11119 = vmatprep.subr.bf16.mxu0 %v15423_v52  ;;  %v3073_v52 = vld [vmem:[%s18003_s7 + $0x208] sm:$0xff] }
 0x4ac   :  { %11057 = vmatpush1.bf16.msra.mxu1 %v15984_v0  ;;  %v16027_v17 = vpack.c.bf16 %v3079_v30, %v3073_v52  ;;  %v3084_v30 = vld [vmem:[%s18003_s7 + $0x260] sm:$0xff] }
 0x4ad   :  { %11059 = vmatprep.subr.bf16.mxu1 %v15987_v25  ;;  %v3078_v25 = vld [vmem:[%s18003_s7 + $0x230] sm:$0xff] }
 0x4ae   :  { %11121 = vmatpush1.bf16.msra.mxu0 %v15456_v5  ;;  %18242 = vst [vmem:[#allocation71_spill] sm:$0xff] %v16027_v17  ;;  %v16044_v52 = vpack.c.bf16 %v3078_v25, %v3072_v22  ;;  %v3103_v25 = vld [vmem:[%s18003_s7 + $0x2f8] sm:$0xff] }
 0x4af   :  { %11123 = vmatprep.subr.bf16.mxu0 %v15463_v10  ;;  %v3085_v10 = vld [vmem:[%s18003_s7 + $0x268] sm:$0xff] }
 0x4b0   :  { %11061 = vmatpush1.bf16.msra.mxu1 %v16004_v38  ;;  %v16047_v16 = vpack.c.bf16 %v3091_v63, %v3085_v10  ;;  %v3096_v63 = vld [vmem:[%s18003_s7 + $0x2c0] sm:$0xff] }
 0x4b1   :  { %11063 = vmatprep.subr.bf16.mxu1 %v16007_v18  ;;  %v3090_v18 = vld [vmem:[%s18003_s7 + $0x290] sm:$0xff] }
 0x4b2   :  { %11125 = vmatpush1.bf16.msra.mxu0 %v15493_v27  ;;  %18243 = vst [vmem:[#allocation72_spill] sm:$0xff] %v16047_v16  ;;  %v16064_v10 = vpack.c.bf16 %v3090_v18, %v3084_v30  ;;  %v3115_v18 = vld [vmem:[%s18003_s7 + $0x358] sm:$0xff] }
 0x4b3   :  { %11127 = vmatprep.subr.bf16.mxu0 %v15499_v29  ;;  %v3097_v29 = vld [vmem:[%s18003_s7 + $0x2c8] sm:$0xff] }
 0x4b4   :  { %11065 = vmatpush1.bf16.msra.mxu1 %v16024_v45  ;;  %18244 = vst [vmem:[#allocation73_spill] sm:$0xff] %v16064_v10  ;;  %v16067_v22 = vpack.c.bf16 %v3103_v25, %v3097_v29  ;;  %v3108_v25 = vld [vmem:[%s18003_s7 + $0x320] sm:$0xff] }
 0x4b5   :  { %11067 = vmatprep.subr.bf16.mxu1 %v16027_v17  ;;  %v3102_v17 = vld [vmem:[%s18003_s7 + $0x2f0] sm:$0xff] }
 0x4b6   :  { %11129 = vmatpush1.bf16.msra.mxu0 %v15529_v39  ;;  %18245 = vst [vmem:[#allocation74_spill] sm:$0xff] %v16067_v22  ;;  %v16084_v29 = vpack.c.bf16 %v3102_v17, %v3096_v63  ;;  %v3127_v17 = vld [vmem:[%s18003_s7 + $0x3b8] sm:$0xff] }
 0x4b7   :  { %11131 = vmatprep.subr.bf16.mxu0 %v15535_v8  ;;  %v3109_v8 = vld [vmem:[%s18003_s7 + $0x328] sm:$0xff] }
 0x4b8   :  { %11069 = vmatpush1.bf16.msra.mxu1 %v16044_v52  ;;  %18246 = vst [vmem:[#allocation75_spill] sm:$0xff] %v16084_v29  ;;  %v16087_v30 = vpack.c.bf16 %v3115_v18, %v3109_v8  ;;  %v3120_v18 = vld [vmem:[%s18003_s7 + $0x380] sm:$0xff] }
 0x4b9   :  { %11071 = vmatprep.subr.bf16.mxu1 %v16047_v16  ;;  %v3114_v16 = vld [vmem:[%s18003_s7 + $0x350] sm:$0xff] }
 0x4ba   :  { %11133 = vmatpush1.bf16.msra.mxu0 %v15565_v3  ;;  %18247 = vst [vmem:[#allocation76_spill] sm:$0xff] %v16087_v30  ;;  %v16104_v8 = vpack.c.bf16 %v3114_v16, %v3108_v25  ;;  %v3139_v16 = vld [vmem:[%s18003_s7 + $0x418] sm:$0xff] }
 0x4bb   :  { %11135 = vmatprep.subr.bf16.mxu0 %v15571_v43  ;;  %v3121_v43 = vld [vmem:[%s18003_s7 + $0x388] sm:$0xff] }
 0x4bc   :  { %11073 = vmatpush1.bf16.msra.mxu1 %v16064_v10  ;;  %18248 = vst [vmem:[#allocation77_spill] sm:$0xff] %v16104_v8  ;;  %v16107_v63 = vpack.c.bf16 %v3127_v17, %v3121_v43  ;;  %v3132_v17 = vld [vmem:[%s18003_s7 + $0x3e0] sm:$0xff] }
 0x4bd   :  { %11075 = vmatprep.subr.bf16.mxu1 %v16067_v22  ;;  %v3126_v22 = vld [vmem:[%s18003_s7 + $0x3b0] sm:$0xff] }
 0x4be   :  { %11137 = vmatpush1.bf16.msra.mxu0 %v15601_v56  ;;  %18249 = vst [vmem:[#allocation78_spill] sm:$0xff] %v16107_v63  ;;  %v16124_v43 = vpack.c.bf16 %v3126_v22, %v3120_v18  ;;  %v3151_v22 = vld [vmem:[%s18003_s7 + $0x478] sm:$0xff] }
 0x4bf   :  { %11139 = vmatprep.subr.bf16.mxu0 %v15607_v59  ;;  %v3133_v59 = vld [vmem:[%s18003_s7 + $0x3e8] sm:$0xff] }
 0x4c0   :  { %11077 = vmatpush1.bf16.msra.mxu1 %v16084_v29  ;;  %18250 = vst [vmem:[#allocation79_spill] sm:$0xff] %v16124_v43  ;;  %v16127_v25 = vpack.c.bf16 %v3139_v16, %v3133_v59  ;;  %v3144_v16 = vld [vmem:[%s18003_s7 + $0x440] sm:$0xff] }
 0x4c1   :  { %11079 = vmatprep.subr.bf16.mxu1 %v16087_v30  ;;  %v3138_v30 = vld [vmem:[%s18003_s7 + $0x410] sm:$0xff] }
 0x4c2   :  { %11141 = vmatpush1.bf16.msra.mxu0 %v15637_v26  ;;  %18251 = vst [vmem:[#allocation80_spill] sm:$0xff] %v16127_v25  ;;  %v16144_v59 = vpack.c.bf16 %v3138_v30, %v3132_v17  ;;  %v3163_v30 = vld [vmem:[%s18003_s7 + $0x4d8] sm:$0xff] }
 0x4c3   :  { %11143 = vmatprep.subr.bf16.mxu0 %v15643_v55  ;;  %v3145_v55 = vld [vmem:[%s18003_s7 + $0x448] sm:$0xff] }
 0x4c4   :  { %11081 = vmatpush1.bf16.msra.mxu1 %v16104_v8  ;;  %18252 = vst [vmem:[#allocation81_spill] sm:$0xff] %v16144_v59  ;;  %v16147_v18 = vpack.c.bf16 %v3151_v22, %v3145_v55  ;;  %v3156_v22 = vld [vmem:[%s18003_s7 + $0x4a0] sm:$0xff] }
 0x4c5   :  { %11083 = vmatprep.subr.bf16.mxu1 %v16107_v63  ;;  %v3150_v63 = vld [vmem:[%s18003_s7 + $0x470] sm:$0xff] }
 0x4c6   :  { %11145 = vmatpush1.bf16.msra.mxu0 %v15673_v33  ;;  %18253 = vst [vmem:[#allocation82_spill] sm:$0xff] %v16147_v18  ;;  %v16164_v55 = vpack.c.bf16 %v3150_v63, %v3144_v16  ;;  %v3175_v63 = vld [vmem:[%s18003_s7 + $0x538] sm:$0xff] }
 0x4c7   :  { %11147 = vmatprep.subr.bf16.mxu0 %v15679_v37  ;;  %v3157_v37 = vld [vmem:[%s18003_s7 + $0x4a8] sm:$0xff] }
 0x4c8   :  { %11085 = vmatpush1.bf16.msra.mxu1 %v16124_v43  ;;  %18254 = vst [vmem:[#allocation83_spill] sm:$0xff] %v16164_v55  ;;  %v16167_v17 = vpack.c.bf16 %v3163_v30, %v3157_v37  ;;  %v3168_v30 = vld [vmem:[%s18003_s7 + $0x500] sm:$0xff] }
 0x4c9   :  { %11087 = vmatprep.subr.bf16.mxu1 %v16127_v25  ;;  %v3162_v25 = vld [vmem:[%s18003_s7 + $0x4d0] sm:$0xff] }
 0x4ca   :  { %11149 = vmatpush1.bf16.msra.mxu0 %v15709_v53  ;;  %18255 = vst [vmem:[#allocation84_spill] sm:$0xff] %v16167_v17  ;;  %v16184_v37 = vpack.c.bf16 %v3162_v25, %v3156_v22  ;;  %v3187_v25 = vld [vmem:[%s18003_s7 + $0x598] sm:$0xff] }
 0x4cb   :  { %11151 = vmatprep.subr.bf16.mxu0 %v15715_v1  ;;  %v3169_v1 = vld [vmem:[%s18003_s7 + $0x508] sm:$0xff] }
 0x4cc   :  { %11089 = vmatpush1.bf16.msra.mxu1 %v16144_v59  ;;  %18256 = vst [vmem:[#allocation85_spill] sm:$0xff] %v16184_v37  ;;  %v16187_v16 = vpack.c.bf16 %v3175_v63, %v3169_v1  ;;  %v3180_v63 = vld [vmem:[%s18003_s7 + $0x560] sm:$0xff] }
 0x4cd   :  { %11091 = vmatprep.subr.bf16.mxu1 %v16147_v18  ;;  %v3174_v18 = vld [vmem:[%s18003_s7 + $0x530] sm:$0xff] }
 0x4ce   :  { %11153 = vmatpush1.bf16.msra.mxu0 %v15745_v61  ;;  %18257 = vst [vmem:[#allocation86_spill] sm:$0xff] %v16187_v16  ;;  %v16204_v1 = vpack.c.bf16 %v3174_v18, %v3168_v30  ;;  %v3199_v18 = vld [vmem:[%s18003_s7 + $0x5f8] sm:$0xff] }
 0x4cf   :  { %11155 = vmatprep.subr.bf16.mxu0 %v15751_v9  ;;  %v3181_v9 = vld [vmem:[%s18003_s7 + $0x568] sm:$0xff] }
 0x4d0   :  { %11093 = vmatpush1.bf16.msra.mxu1 %v16164_v55  ;;  %18258 = vst [vmem:[#allocation87_spill] sm:$0xff] %v16204_v1  ;;  %v16207_v22 = vpack.c.bf16 %v3187_v25, %v3181_v9  ;;  %v3192_v25 = vld [vmem:[%s18003_s7 + $0x5c0] sm:$0xff] }
 0x4d1   :  { %11095 = vmatprep.subr.bf16.mxu1 %v16167_v17  ;;  %v3186_v17 = vld [vmem:[%s18003_s7 + $0x590] sm:$0xff] }
 0x4d2   :  { %11157 = vmatpush1.bf16.msra.mxu0 %v15781_v20  ;;  %18259 = vst [vmem:[#allocation88_spill] sm:$0xff] %v16207_v22  ;;  %v16224_v9 = vpack.c.bf16 %v3186_v17, %v3180_v63  ;;  %v18263_v63 = vld [vmem:[#allocation41_spill] sm:$0xff] }
 0x4d3   :  { %11159 = vmatprep.subr.bf16.mxu0 %v15787_v13  ;;  %v3193_v13 = vld [vmem:[%s18003_s7 + $0x5c8] sm:$0xff] }
 0x4d4   :  { %11097 = vmatpush1.bf16.msra.mxu1 %v16184_v37  ;;  %18260 = vst [vmem:[#allocation89_spill] sm:$0xff] %v16224_v9  ;;  %v16227_v30 = vpack.c.bf16 %v3199_v18, %v3193_v13  ;;  %v14202_v13 = vld [vmem:[#allocation2] sm:$0xff] }
 0x4d5   :  { %11099 = vmatprep.subr.bf16.mxu1 %v16187_v16  ;;  %v3198_v16 = vld [vmem:[%s18003_s7 + $0x5f0] sm:$0xff]  ;;  %v18264_v18 = vld [vmem:[#allocation43_spill] sm:$0xff] }
 0x4d6   :  { %11161 = vmatpush1.bf16.msra.mxu0 %v15817_v44  ;;  %18261 = vst [vmem:[#allocation90_spill] sm:$0xff] %v16227_v30  ;;  %v16238_v17 = vpack.c.bf16 %v3198_v16, %v3192_v25  ;;  %v18088_v16 = vlaneseq }
 0x4d7   :  { %11163 = vmatprep.subr.bf16.mxu0 %v15823_v50 }
 0x4d8   :  { %11101 = vmatpush1.bf16.msra.mxu1 %v16204_v1  ;;  %18262 = vst [vmem:[#allocation91_spill] sm:$0xff] %v16238_v17  ;;  %v16268_v25 = vshrl.u32 %v18088_v16, 7  ;;  %v18268_v16 = vld [vmem:[#allocation51_spill] sm:$0xff] }
 0x4d9   :  { %11103 = vmatprep.subr.bf16.mxu1 %v16207_v22 }
 0x4da   :  { %11165 = vmatpush1.bf16.msra.mxu0 %v15853_v58 }
 0x4db   :  { %11167 = vmatprep.subr.bf16.mxu0 %v15859_v11 }
 0x4dc   :  { %11105 = vmatpush1.bf16.msra.mxu1 %v16224_v9 }
 0x4dd   :  { %11107 = vmatprep.subr.bf16.mxu1 %v16227_v30 }
 0x4de   :  { %11169 = vmatpush1.bf16.msra.mxu0 %v15889_v23 }
 0x4df   :  { %11171 = vmatprep.subr.bf16.mxu0 %v15895_v48 }
 0x4e0   :  { %11109 = vmatpush1.bf16.msra.mxu1 %v16238_v17 }
 0x4e1   :  { %11175 = vmatprep.subr.bf16.mxu1 %v15359_v32 }
 0x4e2   :  { %11173 = vmatpush1.bf16.msra.mxu0 %v15919_v35 }
 0x4e3   :  { %3411 = vmatmul.mubr.f32.vlgmr.msra.gmra.mrb[14].mxu1 %v14202_v13  ;;  %11239 = vmatprep.subr.bf16.mxu0 %v15925_v4  ;;  %v18265_v13 = vld [vmem:[#allocation45_spill] sm:$0xff] }
 0x4e4   :  { %11177 = vmatpush1.bf16.msra.mxu1 %v15384_v41 }
 0x4e5   :  { %11179 = vmatprep.subr.bf16.mxu1 %v15398_v46 }
 0x4e8   :  { %11181 = vmatpush1.bf16.msra.mxu1 %v15421_v51 }
 0x4e9   :  { %11183 = vmatprep.subr.bf16.mxu1 %v15436_v54  ;;  %v18271_v54 = vld [vmem:[#allocation57_spill] sm:$0xff] }
 0x4ec   :  { %11185 = vmatpush1.bf16.msra.mxu1 %v15461_v6 }
 0x4ed   :  { %11187 = vmatprep.subr.bf16.mxu1 %v15475_v14 }
 0x4f0   :  { %11189 = vmatpush1.bf16.msra.mxu1 %v15497_v28 }
 0x4f1   :  { %11191 = vmatprep.subr.bf16.mxu1 %v15511_v34 }
 0x4f4   :  { %11193 = vmatpush1.bf16.msra.mxu1 %v15533_v7 }
 0x4f5   :  { %11195 = vmatprep.subr.bf16.mxu1 %v15547_v31 }
 0x4f8   :  { %11197 = vmatpush1.bf16.msra.mxu1 %v15569_v42 }
 0x4f9   :  { %11199 = vmatprep.subr.bf16.mxu1 %v15583_v49  ;;  %v18270_v49 = vld [vmem:[#allocation55_spill] sm:$0xff] }
 0x4fc   :  { %11201 = vmatpush1.bf16.msra.mxu1 %v15605_v57  ;;  %v18266_v57 = vld [vmem:[#allocation47_spill] sm:$0xff] }
 0x4fd   :  { %11203 = vmatprep.subr.bf16.mxu1 %v15619_v12  ;;  %v18269_v12 = vld [vmem:[#allocation53_spill] sm:$0xff] }
 0x500   :  { %11205 = vmatpush1.bf16.msra.mxu1 %v15641_v60  ;;  %v16273_v60 = vsub.s32 0, %v16268_v25 }
 0x501   :  { %11207 = vmatprep.subr.bf16.mxu1 %v15655_v21 }
 0x504   :  { %11209 = vmatpush1.bf16.msra.mxu1 %v15677_v36  ;;  %v2671_v36 = vld [vmem:[%s18002_s6] sm:$0x7] }
 0x505   :  { %11211 = vmatprep.subr.bf16.mxu1 %v15691_v47  ;;  %v16279_v47 = vsub.s32 1, %v16268_v25 }
 0x508   :  { %11213 = vmatpush1.bf16.msra.mxu1 %v18263_v63  ;;  %v2685_v63 = vsub.s32 2, %v16268_v25 }
 0x509   :  { %11215 = vmatprep.subr.bf16.mxu1 %v18264_v18  ;;  %v18267_v18 = vld [vmem:[#allocation49_spill] sm:$0xff] }
 0x50a   :  { %v2686_v21 = vrot.slane %v2671_v36, %v2685_v63 }
 0x50c   :  { %11217 = vmatpush1.bf16.msra.mxu1 %v18265_v13  ;;  %v2678_v13 = vrot.slane %v2671_v36, %v16273_v60 }
 0x50d   :  { %11219 = vmatprep.subr.bf16.mxu1 %v18266_v57  ;;  %v2682_v57 = vrot.slane %v2671_v36, %v16279_v47 }
 0x510   :  { %11221 = vmatpush1.bf16.msra.mxu1 %v18267_v18  ;;  %v18272_v18 = vld [vmem:[#allocation59_spill] sm:$0xff] }
 0x511   :  { %11223 = vmatprep.subr.bf16.mxu1 %v18268_v16 }
 0x514   :  { %11225 = vmatpush1.bf16.msra.mxu1 %v18269_v12 }
 0x515   :  { %11227 = vmatprep.subr.bf16.mxu1 %v18270_v49 }
 0x516   :  { %v2756_v42 = vpop.f32.mrb[4].mxu1 }
 0x517   :  { %v2757_v31 = vadd.f32 %v2756_v42, %v2678_v13  ;;  %v2758_v7 = vpop.f32.mrb[5].mxu1  ;;  %v9826_v34 = vpop.f32.mrb[8].mxu0  ;;  %v18273_v42 = vld [vmem:[#allocation63_spill] sm:$0xff] }
 0x518   :  { %v2759_v28 = vadd.f32 %v2758_v7, %v2682_v57  ;;  %v2839_v14 = vadd.f32 %v9826_v34, %v2686_v21  ;;  %v2833_v6 = vpop.f32.mrb[9].mxu0  ;;  %11229 = vmatpush1.bf16.msra.mxu1 %v18271_v54  ;;  %v18274_v34 = vld [vmem:[#allocation8_spill] sm:$0xff] }
 0x519   :  { %2842 = vst [vmem:[#allocation4] sm:$0xff] %v2757_v31  ;;  %v2834_v16 = vadd.f32 %v2833_v6, %v2686_v21  ;;  %11231 = vmatprep.subr.bf16.mxu1 %v18272_v18 }
 0x51a   :  { %2844 = vst [vmem:[#allocation4 + $0x10] sm:$0xff] %v2759_v28  ;;  %2847 = vst [vmem:[#allocation4 + $0x50] sm:$0xff] %v2839_v14  ;;  %v2762_v36 = vpop.f32.mrb[6].mxu1 }
 0x51b   :  { %2846 = vst [vmem:[#allocation4 + $0x20] sm:$0xff] %v2834_v16  ;;  %v2763_v63 = vadd.f32 %v2762_v36, %v2678_v13  ;;  %v2764_v12 = vpop.f32.mrb[7].mxu1 }
 0x51c   :  { %v2765_v49 = vadd.f32 %v2764_v12, %v2682_v57  ;;  %11233 = vmatpush1.bf16.msra.mxu1 %v15893_v24 }
 0x51d   :  { %2843 = vst [vmem:[#allocation4 + $0x30] sm:$0xff] %v2763_v63  ;;  %11235 = vmatprep.subr.bf16.mxu1 %v18273_v42 }
 0x51e   :  { %2845 = vst [vmem:[#allocation4 + $0x40] sm:$0xff] %v2765_v49 }
 0x520   :  { %11237 = vmatpush1.bf16.msra.mxu1 %v15923_v19 }
 0x521   :  { %11303 = vmatprep.subr.bf16.mxu1 %v18274_v34 }
 0x536   :  { %v2916_v6 = vpop.f32.mrb[8].mxu1 }
 0x537   :  { %v2917_v7 = vadd.f32 %v2916_v6, %v2678_v13  ;;  %v2918_v31 = vpop.f32.mrb[9].mxu1  ;;  %v9861_v28 = vpop.f32.mrb[10].mxu0 }
 0x538   :  { %v2919_v14 = vadd.f32 %v2918_v31, %v2682_v57  ;;  %v2999_v18 = vadd.f32 %v9861_v28, %v2686_v21  ;;  %v2993_v16 = vpop.f32.mrb[11].mxu0  ;;  %v14228_v31 = vmov 1966171168  }
 0x539   :  { %3002 = vst [vmem:[#allocation4 + $0x8] sm:$0xff] %v2917_v7  ;;  %v2994_v36 = vadd.f32 %v2993_v16, %v2686_v21  ;;  %v3421_v28 = vunpack.c.l.s4 %v14228_v31 }
 0x53a   :  { %3004 = vst [vmem:[#allocation4 + $0x18] sm:$0xff] %v2919_v14  ;;  %3007 = vst [vmem:[#allocation4 + $0x58] sm:$0xff] %v2999_v18  ;;  %v2922_v12 = vpop.f32.mrb[10].mxu1 }
 0x53b   :  { %3006 = vst [vmem:[#allocation4 + $0x28] sm:$0xff] %v2994_v36  ;;  %v2923_v63 = vadd.f32 %v2922_v12, %v2678_v13  ;;  %v2924_v42 = vpop.f32.mrb[11].mxu1  ;;  %v3422_v46 = vunpack.c.0.s8 %v3421_v28 }
 0x53c   :  { %v2925_v49 = vadd.f32 %v2924_v42, %v2682_v57 }
 0x53d   :  { %3003 = vst [vmem:[#allocation4 + $0x38] sm:$0xff] %v2923_v63  ;;  %v16295_v21 = vsub.s32 %v3422_v46, %v16268_v25  ;;  %v3200_v46 = vld [vmem:[%s18004_s8] sm:$0x3]  ;;  %s14229_s8 = smov [#allocation5]  }
 0x53e   :  { %3005 = vst [vmem:[#allocation4 + $0x48] sm:$0xff] %v2925_v49  ;;  %v16305_v63 = vrot.slane %v3200_v46, %v16273_v60  ;;  %v16308_v49 = vrot.slane %v3200_v46, %v16279_v47  ;;  %s8171_s3 = sshll.u32 %s14229_s8, 4  ;;  %s8172_s3 = int_to_ptr.vmem [resolvable:$true] %s8171_s3 }
 0x53f   :  { %s14203_s0 = scalar_lea.vmem %s8172_s3, 32  ;;  %p14208_p1 = scmp.lt.s32.totalorder %s8172_s3, %s8172_s3 }
 0x540   :  { %p14204_p0 = scmp.ne.s32.totalorder %s8172_s3, %s14203_s0  ;;  %p14209_p2 = scmp.lt.s32.totalorder %s14203_s0, %s14203_s0 }
 0x541   :  { %v3201_v7 = vld [vmem:[#allocation4] ss:$8 sm:$0xf] }
 0x542   :  { %v3202_v13 = vld [vmem:[#allocation4] ss:$8 sm:$0x30]  ;;  %p14210_p3 = por %p14209_p2, %p14208_p1 }
 0x543   :  { %v3203_v42 = vor.u32 %v3202_v13, %v3201_v7 }
 0x544   :  { %p14211_p4 = pnand %p14210_p3, %p14204_p0 }
 0x576   :  { %v3270_v19 = vpop.f32.mrb[12].mxu1 }
 0x577   :  { %v3272_v34 = vpop.f32.mrb[13].mxu1  ;;  %v3341_v24 = vpop.f32.mrb[12].mxu0 }
 0x578   :  { %v3419_v6 = vcombine.low %v3270_v19, %v3272_v34  ;;  %v3343_v54 = vpop.f32.mrb[13].mxu0 }
 0x579   :  { %v3447_v51 = vcombine.low %v3341_v24, %v3343_v54  ;;  %v3443_v54 = vrot.slane %v3203_v42, 2 }
 0x57a   :  { %v3426_v18 = vrot.slane %v3419_v6, %v16295_v21 }
 0x57b   :  { %v3454_v16 = vrot.slane %v3447_v51, %v16295_v21 }
 0x57c   :  { %v3433_v57 = vrot.slane %v3426_v18, %v16295_v21 }
 0x57d   :  { %v3461_v19 = vrot.slane %v3454_v16, %v16295_v21 }
 0x57e   :  { %v3435_v14 = vadd.f32 %v3433_v57, %v3203_v42 }
 0x57f   :  { %v3463_v24 = vadd.f32 %v3461_v19, %v3443_v54  ;;  %v3502_v19 = vrot.slane %v3203_v42, 4  ;;  %v18275_v42 = vld [vmem:[#allocation67_spill] sm:$0xff] }
 0x580   :  { %v8182_v36 = vmul.f32 -1.442695, %v3435_v14 }
 0x581   :  { %v8183_v34 = vmul.f32 -1.442695, %v3463_v24 }
 0x582   :  { %14041 = vpow2.f32 %v8182_v36 }
 0x583   :  { %14043 = vpow2.f32 %v8183_v34 }
 0x58c   :  { %v14042_v12 = vpop.eup %14041 }
 0x58d   :  { %v3439_v25 = vadd.f32 1.0, %v14042_v12  ;;  %v14044_v18 = vpop.eup %14043 }
 0x58e   :  { %v3467_v13 = vadd.f32 1.0, %v14044_v18  ;;  %v18277_v18 = vld [vmem:[#allocation68_spill] sm:$0xff] }
 0x58f   :  { %14045 = vrcp.f32 %v3439_v25 }
 0x590   :  { %14047 = vrcp.f32 %v3467_v13  ;;  %v18279_v13 = vld [vmem:[#allocation69_spill] sm:$0xff] }
 0x599   :  { %v14046_v16 = vpop.eup %14045 }
 0x59a   :  { %v14048_v24 = vpop.eup %14047 }
 0x59b   :  { %v3506_v34 = vsub.f32 1.0, %v14048_v24  ;;  %v3508_v25 = vmul.f32 0.0, %v14048_v24  ;;  %v18286_v24 = vld [vmem:[#allocation26_spill] sm:$0xff] }
 0x5b6   :  { %v3412_v51 = vpop.f32.mrb[14].mxu1 }
 0x5b7   :  { %v3481_v6 = vadd.f32 %v16305_v63, %v3412_v51  ;;  %v3414_v31 = vpop.f32.mrb[15].mxu1 }
 0x5b8   :  { %v3482_v28 = vadd.f32 %v16308_v49, %v3414_v31 }
 0x5ba   :  { %v3485_v7 = vcombine.low %v3481_v6, %v3482_v28  ;;  %v18276_v28 = vld [vmem:[#allocation11_spill] sm:$0xff] }
 0x5bc   :  { %v3492_v57 = vrot.slane %v3485_v7, %v16295_v21  ;;  %v18278_v7 = vld [vmem:[#allocation14_spill] sm:$0xff] }
 0x5be   :  { %v3499_v14 = vrot.slane %v3492_v57, %v16295_v21  ;;  %v18280_v57 = vld [vmem:[#allocation17_spill] sm:$0xff] }
 0x5c0   :  { %v3501_v36 = vmul.f32 %v14046_v16, %v3499_v14  ;;  %v18281_v14 = vld [vmem:[#allocation70_spill] sm:$0xff]  ;;  %v18282_v16 = vld [vmem:[#allocation20_spill] sm:$0xff] }
 0x5c2   :  { %v3504_v54 = vadd.f32 %v3502_v19, %v3501_v36  ;;  %v18283_v36 = vld [vmem:[#allocation71_spill] sm:$0xff] }
 0x5c3   :  { %v18284_v19 = vld [vmem:[#allocation23_spill] sm:$0xff] }
 0x5c4   :  { %14049 = vtanh.f32 %v3504_v54  ;;  %v18285_v54 = vld [vmem:[#allocation72_spill] sm:$0xff] }
 0x5ce   :  { %v14050_v12 = vpop.eup %14049 }
 0x5cf   :  { %v3507_v46 = vmul.f32 %v14050_v12, %v3506_v34  ;;  %v18287_v34 = vld [vmem:[#allocation74_spill] sm:$0xff] }
 0x5d0   :  { %v18288_v12 = vld [vmem:[#allocation30_spill] sm:$0xff] }
 0x5d1   :  { %v16314_v51 = vadd.f32 %v3508_v25, %v3507_v46  ;;  %v18289_v46 = vld [vmem:[#allocation76_spill] sm:$0xff]  ;;  %v18290_v25 = vld [vmem:[#allocation34_spill] sm:$0xff] }
 0x5d3   :  { %v3522_v6 = vrot.slane %v16314_v51, %v16279_v47  ;;  %v16320_v31 = vrot.slane %v16314_v51, %v16273_v60 }
 0x5d5   :  { %3589 = vmatprep.mubr.f32.mxu0 %v3522_v6  ;;  %3660 = vmatprep.mubr.f32.mxu1 %v3522_v6 }
 0x5d6   :  { %3590 = vmatmul.mubr.f32.vlgmr.msra.gmra.mrb[14].mxu0 %v16320_v31  ;;  %3661 = vmatmul.mubr.f32.vlgmr.msra.gmra.mrb[16].mxu1 %v16320_v31 }
 0x5d7   :  { %11241 = vmatpush1.bf16.msra.mxu0 %v18275_v42  ;;  %3731 = vmatprep.mubr.f32.mxu0 %v3522_v6  ;;  %v18291_v6 = vld [vmem:[#allocation78_spill] sm:$0xff] }
 0x5d8   :  { %11243 = vmatprep.subr.bf16.mxu0 %v15945_v15  ;;  %11305 = vmatpush1.bf16.msra.mxu1 %v15380_v40 }
 0x5d9   :  { %11307 = vmatprep.subr.bf16.mxu1 %v18276_v28 }
 0x5db   :  { %11245 = vmatpush1.bf16.msra.mxu0 %v15963_v2 }
 0x5dc   :  { %11247 = vmatprep.subr.bf16.mxu0 %v18277_v18  ;;  %11309 = vmatpush1.bf16.msra.mxu1 %v15417_v62 }
 0x5dd   :  { %11311 = vmatprep.subr.bf16.mxu1 %v18278_v7 }
 0x5df   :  { %11249 = vmatpush1.bf16.msra.mxu0 %v15984_v0 }
 0x5e0   :  { %11251 = vmatprep.subr.bf16.mxu0 %v18279_v13  ;;  %11313 = vmatpush1.bf16.msra.mxu1 %v15456_v5 }
 0x5e1   :  { %11315 = vmatprep.subr.bf16.mxu1 %v18280_v57 }
 0x5e3   :  { %11253 = vmatpush1.bf16.msra.mxu0 %v16004_v38 }
 0x5e4   :  { %11255 = vmatprep.subr.bf16.mxu0 %v18281_v14  ;;  %11317 = vmatpush1.bf16.msra.mxu1 %v15493_v27 }
 0x5e5   :  { %11319 = vmatprep.subr.bf16.mxu1 %v18282_v16 }
 0x5e7   :  { %11257 = vmatpush1.bf16.msra.mxu0 %v16024_v45 }
 0x5e8   :  { %11259 = vmatprep.subr.bf16.mxu0 %v18283_v36  ;;  %11321 = vmatpush1.bf16.msra.mxu1 %v15529_v39 }
 0x5e9   :  { %11323 = vmatprep.subr.bf16.mxu1 %v18284_v19 }
 0x5eb   :  { %11261 = vmatpush1.bf16.msra.mxu0 %v16044_v52 }
 0x5ec   :  { %11263 = vmatprep.subr.bf16.mxu0 %v18285_v54  ;;  %11325 = vmatpush1.bf16.msra.mxu1 %v15565_v3 }
 0x5ed   :  { %11327 = vmatprep.subr.bf16.mxu1 %v18286_v24 }
 0x5ef   :  { %11265 = vmatpush1.bf16.msra.mxu0 %v16064_v10  ;;  %v18292_v10 = vld [vmem:[#allocation38_spill] sm:$0xff] }
 0x5f0   :  { %11267 = vmatprep.subr.bf16.mxu0 %v18287_v34  ;;  %11329 = vmatpush1.bf16.msra.mxu1 %v15601_v56  ;;  %v18293_v56 = vld [vmem:[#allocation80_spill] sm:$0xff] }
 0x5f1   :  { %11331 = vmatprep.subr.bf16.mxu1 %v18288_v12 }
 0x5f3   :  { %11269 = vmatpush1.bf16.msra.mxu0 %v16084_v29  ;;  %v18294_v29 = vld [vmem:[#allocation42_spill] sm:$0xff] }
 0x5f4   :  { %11271 = vmatprep.subr.bf16.mxu0 %v18289_v46  ;;  %11333 = vmatpush1.bf16.msra.mxu1 %v15637_v26  ;;  %v18295_v26 = vld [vmem:[#allocation82_spill] sm:$0xff] }
 0x5f5   :  { %11335 = vmatprep.subr.bf16.mxu1 %v18290_v25 }
 0x5f7   :  { %11273 = vmatpush1.bf16.msra.mxu0 %v16104_v8  ;;  %v18296_v8 = vld [vmem:[#allocation46_spill] sm:$0xff] }
 0x5f8   :  { %11275 = vmatprep.subr.bf16.mxu0 %v18291_v6  ;;  %11337 = vmatpush1.bf16.msra.mxu1 %v15673_v33  ;;  %v18297_v33 = vld [vmem:[#allocation84_spill] sm:$0xff] }
 0x5f9   :  { %11339 = vmatprep.subr.bf16.mxu1 %v18292_v10 }
 0x5fb   :  { %11277 = vmatpush1.bf16.msra.mxu0 %v16124_v43  ;;  %v18298_v43 = vld [vmem:[#allocation50_spill] sm:$0xff] }
 0x5fc   :  { %11279 = vmatprep.subr.bf16.mxu0 %v18293_v56  ;;  %11341 = vmatpush1.bf16.msra.mxu1 %v15709_v53  ;;  %v18299_v53 = vld [vmem:[#allocation86_spill] sm:$0xff] }
 0x5fd   :  { %11343 = vmatprep.subr.bf16.mxu1 %v18294_v29 }
 0x5ff   :  { %11281 = vmatpush1.bf16.msra.mxu0 %v16144_v59 }
 0x600   :  { %11283 = vmatprep.subr.bf16.mxu0 %v18295_v26  ;;  %11345 = vmatpush1.bf16.msra.mxu1 %v15745_v61 }
 0x601   :  { %11347 = vmatprep.subr.bf16.mxu1 %v18296_v8 }
 0x603   :  { %11285 = vmatpush1.bf16.msra.mxu0 %v16164_v55 }
 0x604   :  { %11287 = vmatprep.subr.bf16.mxu0 %v18297_v33  ;;  %11349 = vmatpush1.bf16.msra.mxu1 %v15781_v20 }
 0x605   :  { %11351 = vmatprep.subr.bf16.mxu1 %v18298_v43 }
 0x607   :  { %11289 = vmatpush1.bf16.msra.mxu0 %v16184_v37 }
 0x608   :  { %11291 = vmatprep.subr.bf16.mxu0 %v18299_v53  ;;  %11353 = vmatpush1.bf16.msra.mxu1 %v15817_v44 }
 0x609   :  { %11355 = vmatprep.subr.bf16.mxu1 %v15823_v50 }
 0x60b   :  { %11293 = vmatpush1.bf16.msra.mxu0 %v16204_v1  ;;  %v3511_v1 = vld [vmem:[#allocation4 + $0x1] ss:$8 sm:$0xf] }
 0x60c   :  { %11295 = vmatprep.subr.bf16.mxu0 %v16207_v22  ;;  %11357 = vmatpush1.bf16.msra.mxu1 %v15853_v58 }
 0x60d   :  { %11359 = vmatprep.subr.bf16.mxu1 %v15859_v11  ;;  %v18300_v11 = vld [vmem:[#allocation12_spill] sm:$0xff] }
 0x60f   :  { %11297 = vmatpush1.bf16.msra.mxu0 %v16224_v9  ;;  %v18301_v9 = vld [vmem:[#allocation13_spill] sm:$0xff] }
 0x610   :  { %11299 = vmatprep.subr.bf16.mxu0 %v16227_v30  ;;  %11361 = vmatpush1.bf16.msra.mxu1 %v15889_v23  ;;  %v18302_v30 = vld [vmem:[#allocation15_spill] sm:$0xff]  ;;  %v18303_v23 = vld [vmem:[#allocation16_spill] sm:$0xff] }
 0x611   :  { %11363 = vmatprep.subr.bf16.mxu1 %v15895_v48  ;;  %v18304_v48 = vld [vmem:[#allocation18_spill] sm:$0xff] }
 0x613   :  { %11301 = vmatpush1.bf16.msra.mxu0 %v16238_v17  ;;  %v18305_v17 = vld [vmem:[#allocation19_spill] sm:$0xff] }
 0x614   :  { %11367 = vmatprep.subr.bf16.mxu0 %v15359_v32  ;;  %11365 = vmatpush1.bf16.msra.mxu1 %v15919_v35  ;;  %v18306_v32 = vld [vmem:[#allocation21_spill] sm:$0xff]  ;;  %v18307_v35 = vld [vmem:[#allocation22_spill] sm:$0xff] }
 0x615   :  { %11431 = vmatprep.subr.bf16.mxu1 %v15925_v4  ;;  %v18308_v4 = vld [vmem:[#allocation24_spill] sm:$0xff] }
 0x616   :  { %3732 = vmatmul.mubr.f32.vlgmr.msra.gmra.mrb[16].mxu0 %v16320_v31  ;;  %v18309_v31 = vld [vmem:[#allocation25_spill] sm:$0xff] }
 0x617   :  { %11369 = vmatpush1.bf16.msra.mxu0 %v15384_v41  ;;  %v18310_v41 = vld [vmem:[#allocation27_spill] sm:$0xff] }
 0x618   :  { %11371 = vmatprep.subr.bf16.mxu0 %v18300_v11  ;;  %v18311_v11 = vld [vmem:[#allocation29_spill] sm:$0xff] }
 0x61b   :  { %11373 = vmatpush1.bf16.msra.mxu0 %v18301_v9  ;;  %v18312_v9 = vld [vmem:[#allocation31_spill] sm:$0xff] }
 0x61c   :  { %11375 = vmatprep.subr.bf16.mxu0 %v18302_v30  ;;  %v18313_v30 = vld [vmem:[#allocation33_spill] sm:$0xff] }
 0x61f   :  { %11377 = vmatpush1.bf16.msra.mxu0 %v18303_v23  ;;  %v18314_v23 = vld [vmem:[#allocation35_spill] sm:$0xff] }
 0x620   :  { %11379 = vmatprep.subr.bf16.mxu0 %v18304_v48  ;;  %v18315_v48 = vld [vmem:[#allocation37_spill] sm:$0xff] }
 0x623   :  { %11381 = vmatpush1.bf16.msra.mxu0 %v18305_v17  ;;  %v18316_v17 = vld [vmem:[#allocation39_spill] sm:$0xff] }
 0x624   :  { %11383 = vmatprep.subr.bf16.mxu0 %v18306_v32  ;;  %v18317_v32 = vld [vmem:[#allocation41_spill] sm:$0xff] }
 0x627   :  { %11385 = vmatpush1.bf16.msra.mxu0 %v18307_v35  ;;  %v18318_v35 = vld [vmem:[#allocation43_spill] sm:$0xff] }
 0x628   :  { %11387 = vmatprep.subr.bf16.mxu0 %v18308_v4  ;;  %v18319_v4 = vld [vmem:[#allocation45_spill] sm:$0xff] }
 0x62b   :  { %11389 = vmatpush1.bf16.msra.mxu0 %v18309_v31  ;;  %v18320_v31 = vld [vmem:[#allocation47_spill] sm:$0xff] }
 0x62c   :  { %11391 = vmatprep.subr.bf16.mxu0 %v18310_v41  ;;  %v18321_v41 = vld [vmem:[#allocation49_spill] sm:$0xff] }
 0x62f   :  { %11393 = vmatpush1.bf16.msra.mxu0 %v18311_v11  ;;  %v18322_v11 = vld [vmem:[#allocation51_spill] sm:$0xff] }
 0x630   :  { %11395 = vmatprep.subr.bf16.mxu0 %v18312_v9  ;;  %v18323_v9 = vld [vmem:[#allocation53_spill] sm:$0xff] }
 0x633   :  { %11397 = vmatpush1.bf16.msra.mxu0 %v18313_v30  ;;  %v18324_v30 = vld [vmem:[#allocation55_spill] sm:$0xff] }
 0x634   :  { %11399 = vmatprep.subr.bf16.mxu0 %v18314_v23  ;;  %v18325_v23 = vld [vmem:[#allocation57_spill] sm:$0xff] }
 0x637   :  { %11401 = vmatpush1.bf16.msra.mxu0 %v18315_v48  ;;  %v18326_v48 = vld [vmem:[#allocation59_spill] sm:$0xff] }
 0x638   :  { %11403 = vmatprep.subr.bf16.mxu0 %v18316_v17  ;;  %v18327_v17 = vld [vmem:[#allocation61_spill] sm:$0xff] }
 0x63b   :  { %11405 = vmatpush1.bf16.msra.mxu0 %v18317_v32  ;;  %v18328_v32 = vld [vmem:[#allocation63_spill] sm:$0xff] }
 0x63c   :  { %11407 = vmatprep.subr.bf16.mxu0 %v18318_v35  ;;  %v18329_v35 = vld [vmem:[#allocation65_spill] sm:$0xff] }
 0x63f   :  { %11409 = vmatpush1.bf16.msra.mxu0 %v18319_v4  ;;  %v18330_v4 = vld [vmem:[#allocation8_spill] sm:$0xff] }
 0x640   :  { %11411 = vmatprep.subr.bf16.mxu0 %v18320_v31 }
 0x643   :  { %11413 = vmatpush1.bf16.msra.mxu0 %v18321_v41 }
 0x644   :  { %11415 = vmatprep.subr.bf16.mxu0 %v18322_v11 }
 0x647   :  { %11417 = vmatpush1.bf16.msra.mxu0 %v18323_v9 }
 0x648   :  { %11419 = vmatprep.subr.bf16.mxu0 %v18324_v30 }
 0x64b   :  { %11421 = vmatpush1.bf16.msra.mxu0 %v18325_v23  ;;  %v3512_v23 = vld [vmem:[#allocation4 + $0x1] ss:$8 sm:$0x30] }
 0x64c   :  { %11423 = vmatprep.subr.bf16.mxu0 %v18326_v48  ;;  %v3513_v50 = vor.u32 %v3512_v23, %v3511_v1 }
 0x64f   :  { %11425 = vmatpush1.bf16.msra.mxu0 %v18327_v17 }
 0x650   :  { %11427 = vmatprep.subr.bf16.mxu0 %v18328_v32 }
 0x653   :  { %11429 = vmatpush1.bf16.msra.mxu0 %v18329_v35 }
 0x654   :  { %11495 = vmatprep.subr.bf16.mxu0 %v18330_v4  ;;  %v3764_v4 = vrot.slane %v3513_v50, 2 }
 0x6a9   :  { %v3591_v31 = vpop.f32.mrb[14].mxu0  ;;  %v3662_v41 = vpop.f32.mrb[16].mxu1 }
 0x6aa   :  { %v3593_v58 = vpop.f32.mrb[15].mxu0  ;;  %v3664_v11 = vpop.f32.mrb[17].mxu1 }
 0x6ab   :  { %v3740_v22 = vcombine.low %v3591_v31, %v3593_v58  ;;  %v3768_v9 = vcombine.low %v3662_v41, %v3664_v11 }
 0x6ad   :  { %v3747_v30 = vrot.slane %v3740_v22, %v16295_v21  ;;  %v3775_v32 = vrot.slane %v3768_v9, %v16295_v21 }
 0x6af   :  { %v3754_v48 = vrot.slane %v3747_v30, %v16295_v21  ;;  %v3782_v35 = vrot.slane %v3775_v32, %v16295_v21 }
 0x6b1   :  { %v3756_v17 = vadd.f32 %v3754_v48, %v3513_v50  ;;  %v3784_v53 = vadd.f32 %v3782_v35, %v3764_v4  ;;  %v3812_v35 = vrot.slane %v3513_v50, 4  ;;  %v18331_v50 = vld [vmem:[#allocation73_spill] sm:$0xff] }
 0x6b3   :  { %v8184_v44 = vmul.f32 -1.442695, %v3756_v17  ;;  %v8185_v37 = vmul.f32 -1.442695, %v3784_v53 }
 0x6b5   :  { %14051 = vpow2.f32 %v8184_v44 }
 0x6b6   :  { %14053 = vpow2.f32 %v8185_v37 }
 0x6bf   :  { %v14052_v43 = vpop.eup %14051 }
 0x6c0   :  { %v3760_v41 = vadd.f32 1.0, %v14052_v43  ;;  %v14054_v48 = vpop.eup %14053 }
 0x6c1   :  { %v3788_v9 = vadd.f32 1.0, %v14054_v48  ;;  %v18334_v48 = vld [vmem:[#allocation32_spill] sm:$0xff] }
 0x6c2   :  { %14055 = vrcp.f32 %v3760_v41 }
 0x6c3   :  { %14057 = vrcp.f32 %v3788_v9  ;;  %v18336_v9 = vld [vmem:[#allocation36_spill] sm:$0xff] }
 0x6cc   :  { %v14056_v44 = vpop.eup %14055 }
 0x6cd   :  { %v14058_v43 = vpop.eup %14057 }
 0x6ce   :  { %v3816_v37 = vsub.f32 1.0, %v14058_v43  ;;  %v3818_v41 = vmul.f32 %v14058_v43, %v16314_v51  ;;  %v18332_v51 = vld [vmem:[#allocation28_spill] sm:$0xff]  ;;  %v18343_v43 = vld [vmem:[#allocation54_spill] sm:$0xff] }
 0x6e9   :  { %v3733_v11 = vpop.f32.mrb[16].mxu0 }
 0x6ea   :  { %v3791_v58 = vadd.f32 %v3733_v11, %v16305_v63  ;;  %v3735_v22 = vpop.f32.mrb[17].mxu0 }
 0x6eb   :  { %v3792_v23 = vadd.f32 %v3735_v22, %v16308_v49 }
 0x6ed   :  { %v3795_v1 = vcombine.low %v3791_v58, %v3792_v23  ;;  %v18333_v23 = vld [vmem:[#allocation75_spill] sm:$0xff] }
 0x6ef   :  { %v3802_v30 = vrot.slane %v3795_v1, %v16295_v21  ;;  %v18335_v1 = vld [vmem:[#allocation77_spill] sm:$0xff] }
 0x6f1   :  { %v3809_v32 = vrot.slane %v3802_v30, %v16295_v21  ;;  %v18337_v30 = vld [vmem:[#allocation79_spill] sm:$0xff] }
 0x6f3   :  { %v3811_v53 = vmul.f32 %v14056_v44, %v3809_v32  ;;  %v18338_v32 = vld [vmem:[#allocation40_spill] sm:$0xff]  ;;  %v18339_v44 = vld [vmem:[#allocation50_spill] sm:$0xff] }
 0x6f5   :  { %v3814_v4 = vadd.f32 %v3812_v35, %v3811_v53  ;;  %v18340_v53 = vld [vmem:[#allocation85_spill] sm:$0xff]  ;;  %v18341_v35 = vld [vmem:[#allocation86_spill] sm:$0xff] }
 0x6f7   :  { %14059 = vtanh.f32 %v3814_v4  ;;  %v18342_v4 = vld [vmem:[#allocation52_spill] sm:$0xff] }
 0x701   :  { %v14060_v17 = vpop.eup %14059 }
 0x702   :  { %v3817_v31 = vmul.f32 %v14060_v17, %v3816_v37  ;;  %v18344_v37 = vld [vmem:[#allocation87_spill] sm:$0xff]  ;;  %v18345_v17 = vld [vmem:[#allocation88_spill] sm:$0xff] }
 0x704   :  { %v16430_v11 = vadd.f32 %v3818_v41, %v3817_v31  ;;  %v18346_v31 = vld [vmem:[#allocation56_spill] sm:$0xff]  ;;  %v18347_v41 = vld [vmem:[#allocation58_spill] sm:$0xff] }
 0x706   :  { %v3832_v58 = vrot.slane %v16430_v11, %v16279_v47  ;;  %v16436_v22 = vrot.slane %v16430_v11, %v16273_v60 }
 0x708   :  { %3899 = vmatprep.mubr.f32.mxu1 %v3832_v58  ;;  %3970 = vmatprep.mubr.f32.mxu0 %v3832_v58 }
 0x709   :  { %3900 = vmatmul.mubr.f32.vlgmr.msra.gmra.mrb[18].mxu1 %v16436_v22  ;;  %3971 = vmatmul.mubr.f32.vlgmr.msra.gmra.mrb[18].mxu0 %v16436_v22 }
 0x70a   :  { %11433 = vmatpush1.bf16.msra.mxu1 %v18275_v42  ;;  %4041 = vmatprep.mubr.f32.mxu1 %v3832_v58  ;;  %v18348_v58 = vld [vmem:[#allocation89_spill] sm:$0xff] }
 0x70b   :  { %11435 = vmatprep.subr.bf16.mxu1 %v15945_v15  ;;  %11497 = vmatpush1.bf16.msra.mxu0 %v15380_v40 }
 0x70c   :  { %11499 = vmatprep.subr.bf16.mxu0 %v18276_v28 }
 0x70e   :  { %11437 = vmatpush1.bf16.msra.mxu1 %v15963_v2 }
 0x70f   :  { %11439 = vmatprep.subr.bf16.mxu1 %v18277_v18  ;;  %11501 = vmatpush1.bf16.msra.mxu0 %v15417_v62 }
 0x710   :  { %11503 = vmatprep.subr.bf16.mxu0 %v18278_v7 }
 0x712   :  { %11441 = vmatpush1.bf16.msra.mxu1 %v15984_v0 }
 0x713   :  { %11443 = vmatprep.subr.bf16.mxu1 %v18279_v13  ;;  %11505 = vmatpush1.bf16.msra.mxu0 %v15456_v5 }
 0x714   :  { %11507 = vmatprep.subr.bf16.mxu0 %v18280_v57 }
 0x716   :  { %11445 = vmatpush1.bf16.msra.mxu1 %v16004_v38 }
 0x717   :  { %11447 = vmatprep.subr.bf16.mxu1 %v18281_v14  ;;  %11509 = vmatpush1.bf16.msra.mxu0 %v15493_v27 }
 0x718   :  { %11511 = vmatprep.subr.bf16.mxu0 %v18282_v16 }
 0x71a   :  { %11449 = vmatpush1.bf16.msra.mxu1 %v16024_v45 }
 0x71b   :  { %11451 = vmatprep.subr.bf16.mxu1 %v18283_v36  ;;  %11513 = vmatpush1.bf16.msra.mxu0 %v15529_v39 }
 0x71c   :  { %11515 = vmatprep.subr.bf16.mxu0 %v18284_v19 }
 0x71e   :  { %11453 = vmatpush1.bf16.msra.mxu1 %v16044_v52 }
 0x71f   :  { %11455 = vmatprep.subr.bf16.mxu1 %v18285_v54  ;;  %11517 = vmatpush1.bf16.msra.mxu0 %v15565_v3 }
 0x720   :  { %11519 = vmatprep.subr.bf16.mxu0 %v18286_v24 }
 0x722   :  { %11457 = vmatpush1.bf16.msra.mxu1 %v18331_v50 }
 0x723   :  { %11459 = vmatprep.subr.bf16.mxu1 %v18287_v34  ;;  %11521 = vmatpush1.bf16.msra.mxu0 %v18332_v51 }
 0x724   :  { %11523 = vmatprep.subr.bf16.mxu0 %v18288_v12 }
 0x726   :  { %11461 = vmatpush1.bf16.msra.mxu1 %v18333_v23 }
 0x727   :  { %11463 = vmatprep.subr.bf16.mxu1 %v18289_v46  ;;  %11525 = vmatpush1.bf16.msra.mxu0 %v18334_v48 }
 0x728   :  { %11527 = vmatprep.subr.bf16.mxu0 %v18290_v25 }
 0x72a   :  { %11465 = vmatpush1.bf16.msra.mxu1 %v18335_v1 }
 0x72b   :  { %11467 = vmatprep.subr.bf16.mxu1 %v18291_v6  ;;  %11529 = vmatpush1.bf16.msra.mxu0 %v18336_v9 }
 0x72c   :  { %11531 = vmatprep.subr.bf16.mxu0 %v18292_v10 }
 0x72e   :  { %11469 = vmatpush1.bf16.msra.mxu1 %v18337_v30 }
 0x72f   :  { %11471 = vmatprep.subr.bf16.mxu1 %v18293_v56  ;;  %11533 = vmatpush1.bf16.msra.mxu0 %v18338_v32 }
 0x730   :  { %11535 = vmatprep.subr.bf16.mxu0 %v18294_v29 }
 0x732   :  { %11473 = vmatpush1.bf16.msra.mxu1 %v16144_v59 }
 0x733   :  { %11475 = vmatprep.subr.bf16.mxu1 %v18295_v26  ;;  %11537 = vmatpush1.bf16.msra.mxu0 %v15745_v61 }
 0x734   :  { %11539 = vmatprep.subr.bf16.mxu0 %v18296_v8 }
 0x736   :  { %11477 = vmatpush1.bf16.msra.mxu1 %v16164_v55  ;;  %v3821_v55 = vld [vmem:[#allocation4 + $0x2] ss:$8 sm:$0xf] }
 0x737   :  { %11479 = vmatprep.subr.bf16.mxu1 %v18297_v33  ;;  %11541 = vmatpush1.bf16.msra.mxu0 %v15781_v20  ;;  %v18349_v20 = vld [vmem:[#allocation90_spill] sm:$0xff] }
 0x738   :  { %11543 = vmatprep.subr.bf16.mxu0 %v18339_v44  ;;  %v18350_v44 = vld [vmem:[#allocation60_spill] sm:$0xff] }
 0x73a   :  { %11481 = vmatpush1.bf16.msra.mxu1 %v18340_v53  ;;  %v18351_v53 = vld [vmem:[#allocation62_spill] sm:$0xff] }
 0x73b   :  { %11483 = vmatprep.subr.bf16.mxu1 %v18341_v35  ;;  %11545 = vmatpush1.bf16.msra.mxu0 %v18342_v4  ;;  %v18352_v35 = vld [vmem:[#allocation91_spill] sm:$0xff]  ;;  %v18353_v4 = vld [vmem:[#allocation9_spill] sm:$0xff] }
 0x73c   :  { %11547 = vmatprep.subr.bf16.mxu0 %v18343_v43  ;;  %v18354_v43 = vld [vmem:[#allocation64_spill] sm:$0xff] }
 0x73e   :  { %11485 = vmatpush1.bf16.msra.mxu1 %v18344_v37  ;;  %v18355_v37 = vld [vmem:[#allocation66_spill] sm:$0xff] }
 0x73f   :  { %11487 = vmatprep.subr.bf16.mxu1 %v18345_v17  ;;  %11549 = vmatpush1.bf16.msra.mxu0 %v18346_v31  ;;  %v18356_v31 = vld [vmem:[#allocation10_spill] sm:$0xff] }
 0x740   :  { %11551 = vmatprep.subr.bf16.mxu0 %v18347_v41  ;;  %v18357_v41 = vld [vmem:[#allocation12_spill] sm:$0xff] }
 0x742   :  { %11489 = vmatpush1.bf16.msra.mxu1 %v18348_v58  ;;  %v18358_v58 = vld [vmem:[#allocation13_spill] sm:$0xff] }
 0x743   :  { %11491 = vmatprep.subr.bf16.mxu1 %v18349_v20  ;;  %11553 = vmatpush1.bf16.msra.mxu0 %v18350_v44  ;;  %v18359_v20 = vld [vmem:[#allocation15_spill] sm:$0xff]  ;;  %v18360_v44 = vld [vmem:[#allocation16_spill] sm:$0xff] }
 0x744   :  { %11555 = vmatprep.subr.bf16.mxu0 %v18351_v53  ;;  %v18361_v53 = vld [vmem:[#allocation18_spill] sm:$0xff] }
 0x746   :  { %11493 = vmatpush1.bf16.msra.mxu1 %v18352_v35  ;;  %v18362_v35 = vld [vmem:[#allocation19_spill] sm:$0xff] }
 0x747   :  { %11559 = vmatprep.subr.bf16.mxu1 %v18353_v4  ;;  %11557 = vmatpush1.bf16.msra.mxu0 %v18354_v43  ;;  %v18363_v4 = vld [vmem:[#allocation21_spill] sm:$0xff]  ;;  %v18364_v43 = vld [vmem:[#allocation22_spill] sm:$0xff] }
 0x748   :  { %11623 = vmatprep.subr.bf16.mxu0 %v18355_v37  ;;  %v18365_v37 = vld [vmem:[#allocation24_spill] sm:$0xff] }
 0x749   :  { %4042 = vmatmul.mubr.f32.vlgmr.msra.gmra.mrb[20].mxu1 %v16436_v22  ;;  %v18366_v22 = vld [vmem:[#allocation25_spill] sm:$0xff] }
 0x74a   :  { %11561 = vmatpush1.bf16.msra.mxu1 %v18356_v31  ;;  %v18367_v31 = vld [vmem:[#allocation27_spill] sm:$0xff] }
 0x74b   :  { %11563 = vmatprep.subr.bf16.mxu1 %v18357_v41  ;;  %v18368_v41 = vld [vmem:[#allocation29_spill] sm:$0xff] }
 0x74e   :  { %11565 = vmatpush1.bf16.msra.mxu1 %v18358_v58  ;;  %v18369_v58 = vld [vmem:[#allocation31_spill] sm:$0xff] }
 0x74f   :  { %11567 = vmatprep.subr.bf16.mxu1 %v18359_v20  ;;  %v18370_v20 = vld [vmem:[#allocation33_spill] sm:$0xff] }
 0x752   :  { %11569 = vmatpush1.bf16.msra.mxu1 %v18360_v44  ;;  %v18371_v44 = vld [vmem:[#allocation35_spill] sm:$0xff] }
 0x753   :  { %11571 = vmatprep.subr.bf16.mxu1 %v18361_v53  ;;  %v18372_v53 = vld [vmem:[#allocation37_spill] sm:$0xff] }
 0x756   :  { %11573 = vmatpush1.bf16.msra.mxu1 %v18362_v35  ;;  %v18373_v35 = vld [vmem:[#allocation39_spill] sm:$0xff] }
 0x757   :  { %11575 = vmatprep.subr.bf16.mxu1 %v18363_v4  ;;  %v18374_v4 = vld [vmem:[#allocation41_spill] sm:$0xff] }
 0x75a   :  { %11577 = vmatpush1.bf16.msra.mxu1 %v18364_v43  ;;  %v18375_v43 = vld [vmem:[#allocation43_spill] sm:$0xff] }
 0x75b   :  { %11579 = vmatprep.subr.bf16.mxu1 %v18365_v37  ;;  %v18376_v37 = vld [vmem:[#allocation45_spill] sm:$0xff] }
 0x75e   :  { %11581 = vmatpush1.bf16.msra.mxu1 %v18366_v22  ;;  %v18377_v22 = vld [vmem:[#allocation47_spill] sm:$0xff] }
 0x75f   :  { %11583 = vmatprep.subr.bf16.mxu1 %v18367_v31  ;;  %v18378_v31 = vld [vmem:[#allocation49_spill] sm:$0xff] }
 0x762   :  { %11585 = vmatpush1.bf16.msra.mxu1 %v18368_v41  ;;  %v18379_v41 = vld [vmem:[#allocation51_spill] sm:$0xff] }
 0x763   :  { %11587 = vmatprep.subr.bf16.mxu1 %v18369_v58  ;;  %v18380_v58 = vld [vmem:[#allocation53_spill] sm:$0xff] }
 0x766   :  { %11589 = vmatpush1.bf16.msra.mxu1 %v18370_v20  ;;  %v18381_v20 = vld [vmem:[#allocation55_spill] sm:$0xff] }
 0x767   :  { %11591 = vmatprep.subr.bf16.mxu1 %v18371_v44  ;;  %v18382_v44 = vld [vmem:[#allocation57_spill] sm:$0xff] }
 0x76a   :  { %11593 = vmatpush1.bf16.msra.mxu1 %v18372_v53  ;;  %v18383_v53 = vld [vmem:[#allocation59_spill] sm:$0xff] }
 0x76b   :  { %11595 = vmatprep.subr.bf16.mxu1 %v18373_v35  ;;  %v18384_v35 = vld [vmem:[#allocation61_spill] sm:$0xff] }
 0x76e   :  { %11597 = vmatpush1.bf16.msra.mxu1 %v18374_v4  ;;  %v18385_v4 = vld [vmem:[#allocation63_spill] sm:$0xff] }
 0x76f   :  { %11599 = vmatprep.subr.bf16.mxu1 %v18375_v43  ;;  %v18386_v43 = vld [vmem:[#allocation65_spill] sm:$0xff] }
 0x772   :  { %11601 = vmatpush1.bf16.msra.mxu1 %v18376_v37  ;;  %v18387_v37 = vld [vmem:[#allocation8_spill] sm:$0xff] }
 0x773   :  { %11603 = vmatprep.subr.bf16.mxu1 %v18377_v22 }
 0x776   :  { %11605 = vmatpush1.bf16.msra.mxu1 %v18378_v31 }
 0x777   :  { %11607 = vmatprep.subr.bf16.mxu1 %v18379_v41 }
 0x77a   :  { %11609 = vmatpush1.bf16.msra.mxu1 %v18380_v58 }
 0x77b   :  { %11611 = vmatprep.subr.bf16.mxu1 %v18381_v20 }
 0x77e   :  { %11613 = vmatpush1.bf16.msra.mxu1 %v18382_v44  ;;  %v3822_v44 = vld [vmem:[#allocation4 + $0x2] ss:$8 sm:$0x30] }
 0x77f   :  { %11615 = vmatprep.subr.bf16.mxu1 %v18383_v53  ;;  %v3823_v8 = vor.u32 %v3822_v44, %v3821_v55 }
 0x782   :  { %11617 = vmatpush1.bf16.msra.mxu1 %v18384_v35 }
 0x783   :  { %11619 = vmatprep.subr.bf16.mxu1 %v18385_v4 }
 0x786   :  { %11621 = vmatpush1.bf16.msra.mxu1 %v18386_v43 }
 0x787   :  { %11687 = vmatprep.subr.bf16.mxu1 %v18387_v37  ;;  %v4074_v37 = vrot.slane %v3823_v8, 2 }
 0x7dc   :  { %v3901_v22 = vpop.f32.mrb[18].mxu1  ;;  %v3972_v31 = vpop.f32.mrb[18].mxu0 }
 0x7dd   :  { %v3903_v17 = vpop.f32.mrb[19].mxu1  ;;  %v3974_v41 = vpop.f32.mrb[19].mxu0 }
 0x7de   :  { %v4050_v33 = vcombine.low %v3901_v22, %v3903_v17  ;;  %v4078_v58 = vcombine.low %v3972_v31, %v3974_v41 }
 0x7e0   :  { %v4057_v20 = vrot.slane %v4050_v33, %v16295_v21  ;;  %v4085_v4 = vrot.slane %v4078_v58, %v16295_v21 }
 0x7e2   :  { %v4064_v53 = vrot.slane %v4057_v20, %v16295_v21  ;;  %v4092_v43 = vrot.slane %v4085_v4, %v16295_v21 }
 0x7e4   :  { %v4066_v35 = vadd.f32 %v4064_v53, %v3823_v8  ;;  %v4094_v26 = vadd.f32 %v4092_v43, %v4074_v37  ;;  %v4122_v43 = vrot.slane %v3823_v8, 4  ;;  %v18388_v8 = vld [vmem:[#allocation42_spill] sm:$0xff] }
 0x7e6   :  { %v8186_v61 = vmul.f32 -1.442695, %v4066_v35  ;;  %v8187_v59 = vmul.f32 -1.442695, %v4094_v26 }
 0x7e8   :  { %14061 = vpow2.f32 %v8186_v61 }
 0x7e9   :  { %14063 = vpow2.f32 %v8187_v59 }
 0x7f2   :  { %v14062_v29 = vpop.eup %14061 }
 0x7f3   :  { %v4070_v17 = vadd.f32 1.0, %v14062_v29  ;;  %v14064_v55 = vpop.eup %14063 }
 0x7f4   :  { %v4098_v53 = vadd.f32 1.0, %v14064_v55  ;;  %v18391_v55 = vld [vmem:[#allocation44_spill] sm:$0xff] }
 0x7f5   :  { %14065 = vrcp.f32 %v4070_v17 }
 0x7f6   :  { %14067 = vrcp.f32 %v4098_v53  ;;  %v18393_v53 = vld [vmem:[#allocation83_spill] sm:$0xff] }
 0x7ff   :  { %v14066_v4 = vpop.eup %14065 }
 0x800   :  { %v14068_v29 = vpop.eup %14067 }
 0x801   :  { %v4126_v37 = vsub.f32 1.0, %v14068_v29  ;;  %v4128_v17 = vmul.f32 %v14068_v29, %v16430_v11  ;;  %v18389_v11 = vld [vmem:[#allocation81_spill] sm:$0xff]  ;;  %v18400_v29 = vld [vmem:[#allocation54_spill] sm:$0xff] }
 0x81c   :  { %v4043_v33 = vpop.f32.mrb[20].mxu1 }
 0x81d   :  { %v4101_v31 = vadd.f32 %v4043_v33, %v16305_v63  ;;  %v4045_v41 = vpop.f32.mrb[21].mxu1 }
 0x81e   :  { %v4102_v20 = vadd.f32 %v4045_v41, %v16308_v49 }
 0x820   :  { %v4105_v44 = vcombine.low %v4101_v31, %v4102_v20  ;;  %v18390_v20 = vld [vmem:[#allocation82_spill] sm:$0xff] }
 0x822   :  { %v4112_v35 = vrot.slane %v4105_v44, %v16295_v21  ;;  %v18392_v44 = vld [vmem:[#allocation46_spill] sm:$0xff] }
 0x824   :  { %v4119_v61 = vrot.slane %v4112_v35, %v16295_v21  ;;  %v18394_v35 = vld [vmem:[#allocation84_spill] sm:$0xff] }
 0x826   :  { %v4121_v26 = vmul.f32 %v14066_v4, %v4119_v61  ;;  %v18395_v61 = vld [vmem:[#allocation48_spill] sm:$0xff]  ;;  %v18396_v4 = vld [vmem:[#allocation50_spill] sm:$0xff] }
 0x828   :  { %v4124_v59 = vadd.f32 %v4122_v43, %v4121_v26  ;;  %v18397_v26 = vld [vmem:[#allocation85_spill] sm:$0xff]  ;;  %v18398_v43 = vld [vmem:[#allocation86_spill] sm:$0xff] }
 0x82a   :  { %14069 = vtanh.f32 %v4124_v59  ;;  %v18399_v59 = vld [vmem:[#allocation52_spill] sm:$0xff] }
 0x834   :  { %v14070_v58 = vpop.eup %14069 }
 0x835   :  { %v4127_v22 = vmul.f32 %v14070_v58, %v4126_v37  ;;  %v18401_v37 = vld [vmem:[#allocation87_spill] sm:$0xff]  ;;  %v18402_v58 = vld [vmem:[#allocation88_spill] sm:$0xff] }
 0x837   :  { %v16546_v33 = vadd.f32 %v4128_v17, %v4127_v22  ;;  %v18403_v22 = vld [vmem:[#allocation56_spill] sm:$0xff]  ;;  %v18404_v17 = vld [vmem:[#allocation58_spill] sm:$0xff] }
 0x839   :  { %v4142_v31 = vrot.slane %v16546_v33, %v16279_v47  ;;  %v16552_v41 = vrot.slane %v16546_v33, %v16273_v60 }
 0x83b   :  { %4209 = vmatprep.mubr.f32.mxu0 %v4142_v31  ;;  %4280 = vmatprep.mubr.f32.mxu1 %v4142_v31 }
 0x83c   :  { %4210 = vmatmul.mubr.f32.vlgmr.msra.gmra.mrb[20].mxu0 %v16552_v41  ;;  %4281 = vmatmul.mubr.f32.vlgmr.msra.gmra.mrb[22].mxu1 %v16552_v41 }
 0x83d   :  { %11625 = vmatpush1.bf16.msra.mxu0 %v18275_v42  ;;  %4351 = vmatprep.mubr.f32.mxu0 %v4142_v31  ;;  %v18405_v31 = vld [vmem:[#allocation89_spill] sm:$0xff] }
 0x83e   :  { %11627 = vmatprep.subr.bf16.mxu0 %v15945_v15  ;;  %11689 = vmatpush1.bf16.msra.mxu1 %v15380_v40 }
 0x83f   :  { %11691 = vmatprep.subr.bf16.mxu1 %v18276_v28 }
 0x841   :  { %11629 = vmatpush1.bf16.msra.mxu0 %v15963_v2 }
 0x842   :  { %11631 = vmatprep.subr.bf16.mxu0 %v18277_v18  ;;  %11693 = vmatpush1.bf16.msra.mxu1 %v15417_v62 }
 0x843   :  { %11695 = vmatprep.subr.bf16.mxu1 %v18278_v7 }
 0x845   :  { %11633 = vmatpush1.bf16.msra.mxu0 %v15984_v0 }
 0x846   :  { %11635 = vmatprep.subr.bf16.mxu0 %v18279_v13  ;;  %11697 = vmatpush1.bf16.msra.mxu1 %v15456_v5 }
 0x847   :  { %11699 = vmatprep.subr.bf16.mxu1 %v18280_v57 }
 0x849   :  { %11637 = vmatpush1.bf16.msra.mxu0 %v16004_v38 }
 0x84a   :  { %11639 = vmatprep.subr.bf16.mxu0 %v18281_v14  ;;  %11701 = vmatpush1.bf16.msra.mxu1 %v15493_v27 }
 0x84b   :  { %11703 = vmatprep.subr.bf16.mxu1 %v18282_v16 }
 0x84d   :  { %11641 = vmatpush1.bf16.msra.mxu0 %v16024_v45 }
 0x84e   :  { %11643 = vmatprep.subr.bf16.mxu0 %v18283_v36  ;;  %11705 = vmatpush1.bf16.msra.mxu1 %v15529_v39 }
 0x84f   :  { %11707 = vmatprep.subr.bf16.mxu1 %v18284_v19 }
 0x851   :  { %11645 = vmatpush1.bf16.msra.mxu0 %v16044_v52 }
 0x852   :  { %11647 = vmatprep.subr.bf16.mxu0 %v18285_v54  ;;  %11709 = vmatpush1.bf16.msra.mxu1 %v15565_v3 }
 0x853   :  { %11711 = vmatprep.subr.bf16.mxu1 %v18286_v24 }
 0x855   :  { %11649 = vmatpush1.bf16.msra.mxu0 %v18331_v50 }
 0x856   :  { %11651 = vmatprep.subr.bf16.mxu0 %v18287_v34  ;;  %11713 = vmatpush1.bf16.msra.mxu1 %v18332_v51 }
 0x857   :  { %11715 = vmatprep.subr.bf16.mxu1 %v18288_v12 }
 0x859   :  { %11653 = vmatpush1.bf16.msra.mxu0 %v18333_v23 }
 0x85a   :  { %11655 = vmatprep.subr.bf16.mxu0 %v18289_v46  ;;  %11717 = vmatpush1.bf16.msra.mxu1 %v18334_v48 }
 0x85b   :  { %11719 = vmatprep.subr.bf16.mxu1 %v18290_v25 }
 0x85d   :  { %11657 = vmatpush1.bf16.msra.mxu0 %v18335_v1 }
 0x85e   :  { %11659 = vmatprep.subr.bf16.mxu0 %v18291_v6  ;;  %11721 = vmatpush1.bf16.msra.mxu1 %v18336_v9 }
 0x85f   :  { %11723 = vmatprep.subr.bf16.mxu1 %v18292_v10 }
 0x861   :  { %11661 = vmatpush1.bf16.msra.mxu0 %v18337_v30 }
 0x862   :  { %11663 = vmatprep.subr.bf16.mxu0 %v18293_v56  ;;  %11725 = vmatpush1.bf16.msra.mxu1 %v18338_v32 }
 0x863   :  { %11727 = vmatprep.subr.bf16.mxu1 %v18388_v8 }
 0x865   :  { %11665 = vmatpush1.bf16.msra.mxu0 %v18389_v11 }
 0x866   :  { %11667 = vmatprep.subr.bf16.mxu0 %v18390_v20  ;;  %11729 = vmatpush1.bf16.msra.mxu1 %v18391_v55 }
 0x867   :  { %11731 = vmatprep.subr.bf16.mxu1 %v18392_v44 }
 0x869   :  { %11669 = vmatpush1.bf16.msra.mxu0 %v18393_v53  ;;  %v4131_v53 = vld [vmem:[#allocation4 + $0x3] ss:$8 sm:$0xf] }
 0x86a   :  { %11671 = vmatprep.subr.bf16.mxu0 %v18394_v35  ;;  %11733 = vmatpush1.bf16.msra.mxu1 %v18395_v61  ;;  %v18406_v61 = vld [vmem:[#allocation90_spill] sm:$0xff] }
 0x86b   :  { %11735 = vmatprep.subr.bf16.mxu1 %v18396_v4  ;;  %v18407_v4 = vld [vmem:[#allocation60_spill] sm:$0xff] }
 0x86d   :  { %11673 = vmatpush1.bf16.msra.mxu0 %v18397_v26  ;;  %v18408_v26 = vld [vmem:[#allocation62_spill] sm:$0xff] }
 0x86e   :  { %11675 = vmatprep.subr.bf16.mxu0 %v18398_v43  ;;  %11737 = vmatpush1.bf16.msra.mxu1 %v18399_v59  ;;  %v18409_v43 = vld [vmem:[#allocation91_spill] sm:$0xff]  ;;  %v18410_v59 = vld [vmem:[#allocation9_spill] sm:$0xff] }
 0x86f   :  { %11739 = vmatprep.subr.bf16.mxu1 %v18400_v29  ;;  %v18411_v29 = vld [vmem:[#allocation64_spill] sm:$0xff] }
 0x871   :  { %11677 = vmatpush1.bf16.msra.mxu0 %v18401_v37  ;;  %v18412_v37 = vld [vmem:[#allocation66_spill] sm:$0xff] }
 0x872   :  { %11679 = vmatprep.subr.bf16.mxu0 %v18402_v58  ;;  %11741 = vmatpush1.bf16.msra.mxu1 %v18403_v22  ;;  %v18413_v22 = vld [vmem:[#allocation10_spill] sm:$0xff] }
 0x873   :  { %11743 = vmatprep.subr.bf16.mxu1 %v18404_v17  ;;  %v18414_v17 = vld [vmem:[#allocation12_spill] sm:$0xff] }
 0x875   :  { %11681 = vmatpush1.bf16.msra.mxu0 %v18405_v31  ;;  %v18415_v31 = vld [vmem:[#allocation13_spill] sm:$0xff] }
 0x876   :  { %11683 = vmatprep.subr.bf16.mxu0 %v18406_v61  ;;  %11745 = vmatpush1.bf16.msra.mxu1 %v18407_v4  ;;  %v18416_v61 = vld [vmem:[#allocation15_spill] sm:$0xff]  ;;  %v18417_v4 = vld [vmem:[#allocation16_spill] sm:$0xff] }
 0x877   :  { %11747 = vmatprep.subr.bf16.mxu1 %v18408_v26  ;;  %v18418_v26 = vld [vmem:[#allocation18_spill] sm:$0xff] }
 0x879   :  { %11685 = vmatpush1.bf16.msra.mxu0 %v18409_v43  ;;  %v18419_v43 = vld [vmem:[#allocation19_spill] sm:$0xff] }
 0x87a   :  { %11751 = vmatprep.subr.bf16.mxu0 %v18410_v59  ;;  %11749 = vmatpush1.bf16.msra.mxu1 %v18411_v29  ;;  %v18420_v59 = vld [vmem:[#allocation21_spill] sm:$0xff]  ;;  %v18421_v29 = vld [vmem:[#allocation22_spill] sm:$0xff] }
 0x87b   :  { %11815 = vmatprep.subr.bf16.mxu1 %v18412_v37  ;;  %v18422_v37 = vld [vmem:[#allocation24_spill] sm:$0xff] }
 0x87c   :  { %4352 = vmatmul.mubr.f32.vlgmr.msra.gmra.mrb[22].mxu0 %v16552_v41  ;;  %v18423_v41 = vld [vmem:[#allocation25_spill] sm:$0xff] }
 0x87d   :  { %11753 = vmatpush1.bf16.msra.mxu0 %v18413_v22  ;;  %v18424_v22 = vld [vmem:[#allocation27_spill] sm:$0xff] }
 0x87e   :  { %11755 = vmatprep.subr.bf16.mxu0 %v18414_v17  ;;  %v18425_v17 = vld [vmem:[#allocation29_spill] sm:$0xff] }
 0x881   :  { %11757 = vmatpush1.bf16.msra.mxu0 %v18415_v31  ;;  %v18426_v31 = vld [vmem:[#allocation31_spill] sm:$0xff] }
 0x882   :  { %11759 = vmatprep.subr.bf16.mxu0 %v18416_v61  ;;  %v18427_v61 = vld [vmem:[#allocation33_spill] sm:$0xff] }
 0x885   :  { %11761 = vmatpush1.bf16.msra.mxu0 %v18417_v4  ;;  %v18428_v4 = vld [vmem:[#allocation35_spill] sm:$0xff] }
 0x886   :  { %11763 = vmatprep.subr.bf16.mxu0 %v18418_v26  ;;  %v18429_v26 = vld [vmem:[#allocation37_spill] sm:$0xff] }
 0x889   :  { %11765 = vmatpush1.bf16.msra.mxu0 %v18419_v43  ;;  %v18430_v43 = vld [vmem:[#allocation39_spill] sm:$0xff] }
 0x88a   :  { %11767 = vmatprep.subr.bf16.mxu0 %v18420_v59  ;;  %v18431_v59 = vld [vmem:[#allocation41_spill] sm:$0xff] }
 0x88d   :  { %11769 = vmatpush1.bf16.msra.mxu0 %v18421_v29  ;;  %v18432_v29 = vld [vmem:[#allocation43_spill] sm:$0xff] }
 0x88e   :  { %11771 = vmatprep.subr.bf16.mxu0 %v18422_v37  ;;  %v18433_v37 = vld [vmem:[#allocation45_spill] sm:$0xff] }
 0x891   :  { %11773 = vmatpush1.bf16.msra.mxu0 %v18423_v41  ;;  %v18434_v41 = vld [vmem:[#allocation47_spill] sm:$0xff] }
 0x892   :  { %11775 = vmatprep.subr.bf16.mxu0 %v18424_v22  ;;  %v18435_v22 = vld [vmem:[#allocation49_spill] sm:$0xff] }
 0x895   :  { %11777 = vmatpush1.bf16.msra.mxu0 %v18425_v17  ;;  %v18436_v17 = vld [vmem:[#allocation51_spill] sm:$0xff] }
 0x896   :  { %11779 = vmatprep.subr.bf16.mxu0 %v18426_v31  ;;  %v18437_v31 = vld [vmem:[#allocation53_spill] sm:$0xff] }
 0x899   :  { %11781 = vmatpush1.bf16.msra.mxu0 %v18427_v61  ;;  %v18438_v61 = vld [vmem:[#allocation55_spill] sm:$0xff] }
 0x89a   :  { %11783 = vmatprep.subr.bf16.mxu0 %v18428_v4  ;;  %v18439_v4 = vld [vmem:[#allocation57_spill] sm:$0xff] }
 0x89d   :  { %11785 = vmatpush1.bf16.msra.mxu0 %v18429_v26  ;;  %v18440_v26 = vld [vmem:[#allocation59_spill] sm:$0xff] }
 0x89e   :  { %11787 = vmatprep.subr.bf16.mxu0 %v18430_v43  ;;  %v18441_v43 = vld [vmem:[#allocation61_spill] sm:$0xff] }
 0x8a1   :  { %11789 = vmatpush1.bf16.msra.mxu0 %v18431_v59  ;;  %v18442_v59 = vld [vmem:[#allocation63_spill] sm:$0xff] }
 0x8a2   :  { %11791 = vmatprep.subr.bf16.mxu0 %v18432_v29  ;;  %v18443_v29 = vld [vmem:[#allocation65_spill] sm:$0xff] }
 0x8a5   :  { %11793 = vmatpush1.bf16.msra.mxu0 %v18433_v37  ;;  %v18444_v37 = vld [vmem:[#allocation8_spill] sm:$0xff] }
 0x8a6   :  { %11795 = vmatprep.subr.bf16.mxu0 %v18434_v41 }
 0x8a9   :  { %11797 = vmatpush1.bf16.msra.mxu0 %v18435_v22 }
 0x8aa   :  { %11799 = vmatprep.subr.bf16.mxu0 %v18436_v17 }
 0x8ad   :  { %11801 = vmatpush1.bf16.msra.mxu0 %v18437_v31 }
 0x8ae   :  { %11803 = vmatprep.subr.bf16.mxu0 %v18438_v61 }
 0x8b1   :  { %11805 = vmatpush1.bf16.msra.mxu0 %v18439_v4  ;;  %v4132_v4 = vld [vmem:[#allocation4 + $0x3] ss:$8 sm:$0x30] }
 0x8b2   :  { %11807 = vmatprep.subr.bf16.mxu0 %v18440_v26  ;;  %v4133_v44 = vor.u32 %v4132_v4, %v4131_v53 }
 0x8b5   :  { %11809 = vmatpush1.bf16.msra.mxu0 %v18441_v43 }
 0x8b6   :  { %11811 = vmatprep.subr.bf16.mxu0 %v18442_v59 }
 0x8b9   :  { %11813 = vmatpush1.bf16.msra.mxu0 %v18443_v29 }
 0x8ba   :  { %11879 = vmatprep.subr.bf16.mxu0 %v18444_v37  ;;  %v4384_v37 = vrot.slane %v4133_v44, 2 }
 0x90f   :  { %v4211_v41 = vpop.f32.mrb[20].mxu0  ;;  %v4282_v22 = vpop.f32.mrb[22].mxu1 }
 0x910   :  { %v4213_v58 = vpop.f32.mrb[21].mxu0  ;;  %v4284_v17 = vpop.f32.mrb[23].mxu1 }
 0x911   :  { %v4360_v35 = vcombine.low %v4211_v41, %v4213_v58  ;;  %v4388_v31 = vcombine.low %v4282_v22, %v4284_v17 }
 0x913   :  { %v4367_v61 = vrot.slane %v4360_v35, %v16295_v21  ;;  %v4395_v59 = vrot.slane %v4388_v31, %v16295_v21 }
 0x915   :  { %v4374_v26 = vrot.slane %v4367_v61, %v16295_v21  ;;  %v4402_v29 = vrot.slane %v4395_v59, %v16295_v21 }
 0x917   :  { %v4376_v43 = vadd.f32 %v4374_v26, %v4133_v44  ;;  %v4404_v20 = vadd.f32 %v4402_v29, %v4384_v37  ;;  %v4432_v29 = vrot.slane %v4133_v44, 4  ;;  %v18446_v44 = vld [vmem:[#allocation81_spill] sm:$0xff] }
 0x919   :  { %v8188_v55 = vmul.f32 -1.442695, %v4376_v43  ;;  %v8189_v11 = vmul.f32 -1.442695, %v4404_v20 }
 0x91b   :  { %14071 = vpow2.f32 %v8188_v55 }
 0x91c   :  { %14073 = vpow2.f32 %v8189_v11 }
 0x925   :  { %v14072_v8 = vpop.eup %14071 }
 0x926   :  { %v4380_v58 = vadd.f32 1.0, %v14072_v8  ;;  %v14074_v61 = vpop.eup %14073 }
 0x927   :  { %v4408_v26 = vadd.f32 1.0, %v14074_v61  ;;  %v18448_v61 = vld [vmem:[#allocation44_spill] sm:$0xff] }
 0x928   :  { %14075 = vrcp.f32 %v4380_v58 }
 0x929   :  { %14077 = vrcp.f32 %v4408_v26  ;;  %v18450_v26 = vld [vmem:[#allocation83_spill] sm:$0xff] }
 0x932   :  { %v14076_v59 = vpop.eup %14075 }
 0x933   :  { %v14078_v8 = vpop.eup %14077 }
 0x934   :  { %v4436_v37 = vsub.f32 1.0, %v14078_v8  ;;  %v4438_v58 = vmul.f32 %v14078_v8, %v16546_v33  ;;  %v18445_v33 = vld [vmem:[#allocation42_spill] sm:$0xff] }
 0x935   :  { %v18457_v8 = vld [vmem:[#allocation54_spill] sm:$0xff] }
 0x94f   :  { %v4353_v35 = vpop.f32.mrb[22].mxu0 }
 0x950   :  { %v4411_v22 = vadd.f32 %v4353_v35, %v16305_v63  ;;  %v4355_v17 = vpop.f32.mrb[23].mxu0 }
 0x951   :  { %v4412_v53 = vadd.f32 %v4355_v17, %v16308_v49 }
 0x953   :  { %v4415_v4 = vcombine.low %v4411_v22, %v4412_v53  ;;  %v18447_v53 = vld [vmem:[#allocation82_spill] sm:$0xff] }
 0x955   :  { %v4422_v43 = vrot.slane %v4415_v4, %v16295_v21  ;;  %v18449_v4 = vld [vmem:[#allocation46_spill] sm:$0xff] }
 0x957   :  { %v4429_v55 = vrot.slane %v4422_v43, %v16295_v21  ;;  %v18451_v43 = vld [vmem:[#allocation84_spill] sm:$0xff] }
 0x959   :  { %v4431_v20 = vmul.f32 %v14076_v59, %v4429_v55  ;;  %v18452_v55 = vld [vmem:[#allocation48_spill] sm:$0xff]  ;;  %v18453_v59 = vld [vmem:[#allocation50_spill] sm:$0xff] }
 0x95b   :  { %v4434_v11 = vadd.f32 %v4432_v29, %v4431_v20  ;;  %v18454_v20 = vld [vmem:[#allocation85_spill] sm:$0xff]  ;;  %v18455_v29 = vld [vmem:[#allocation86_spill] sm:$0xff] }
 0x95d   :  { %14079 = vtanh.f32 %v4434_v11  ;;  %v18456_v11 = vld [vmem:[#allocation52_spill] sm:$0xff] }
 0x967   :  { %v14080_v31 = vpop.eup %14079 }
 0x968   :  { %v4437_v41 = vmul.f32 %v14080_v31, %v4436_v37  ;;  %v18458_v37 = vld [vmem:[#allocation87_spill] sm:$0xff]  ;;  %v18459_v31 = vld [vmem:[#allocation88_spill] sm:$0xff] }
 0x96a   :  { %v16662_v35 = vadd.f32 %v4438_v58, %v4437_v41  ;;  %v18460_v41 = vld [vmem:[#allocation56_spill] sm:$0xff]  ;;  %v18461_v58 = vld [vmem:[#allocation58_spill] sm:$0xff] }
 0x96c   :  { %v4452_v22 = vrot.slane %v16662_v35, %v16279_v47  ;;  %v16668_v17 = vrot.slane %v16662_v35, %v16273_v60 }
 0x96e   :  { %4519 = vmatprep.mubr.f32.mxu1 %v4452_v22  ;;  %4590 = vmatprep.mubr.f32.mxu0 %v4452_v22 }
 0x96f   :  { %4520 = vmatmul.mubr.f32.vlgmr.msra.gmra.mrb[24].mxu1 %v16668_v17  ;;  %4591 = vmatmul.mubr.f32.vlgmr.msra.gmra.mrb[24].mxu0 %v16668_v17 }
 0x970   :  { %11817 = vmatpush1.bf16.msra.mxu1 %v18275_v42  ;;  %4661 = vmatprep.mubr.f32.mxu1 %v4452_v22  ;;  %v18462_v22 = vld [vmem:[#allocation89_spill] sm:$0xff] }
 0x971   :  { %11819 = vmatprep.subr.bf16.mxu1 %v15945_v15  ;;  %11881 = vmatpush1.bf16.msra.mxu0 %v15380_v40 }
 0x972   :  { %11883 = vmatprep.subr.bf16.mxu0 %v18276_v28 }
 0x974   :  { %11821 = vmatpush1.bf16.msra.mxu1 %v15963_v2 }
 0x975   :  { %11823 = vmatprep.subr.bf16.mxu1 %v18277_v18  ;;  %11885 = vmatpush1.bf16.msra.mxu0 %v15417_v62 }
 0x976   :  { %11887 = vmatprep.subr.bf16.mxu0 %v18278_v7 }
 0x978   :  { %11825 = vmatpush1.bf16.msra.mxu1 %v15984_v0 }
 0x979   :  { %11827 = vmatprep.subr.bf16.mxu1 %v18279_v13  ;;  %11889 = vmatpush1.bf16.msra.mxu0 %v15456_v5 }
 0x97a   :  { %11891 = vmatprep.subr.bf16.mxu0 %v18280_v57 }
 0x97c   :  { %11829 = vmatpush1.bf16.msra.mxu1 %v16004_v38 }
 0x97d   :  { %11831 = vmatprep.subr.bf16.mxu1 %v18281_v14  ;;  %11893 = vmatpush1.bf16.msra.mxu0 %v15493_v27 }
 0x97e   :  { %11895 = vmatprep.subr.bf16.mxu0 %v18282_v16 }
 0x980   :  { %11833 = vmatpush1.bf16.msra.mxu1 %v16024_v45 }
 0x981   :  { %11835 = vmatprep.subr.bf16.mxu1 %v18283_v36  ;;  %11897 = vmatpush1.bf16.msra.mxu0 %v15529_v39 }
 0x982   :  { %11899 = vmatprep.subr.bf16.mxu0 %v18284_v19 }
 0x984   :  { %11837 = vmatpush1.bf16.msra.mxu1 %v16044_v52 }
 0x985   :  { %11839 = vmatprep.subr.bf16.mxu1 %v18285_v54  ;;  %11901 = vmatpush1.bf16.msra.mxu0 %v15565_v3 }
 0x986   :  { %11903 = vmatprep.subr.bf16.mxu0 %v18286_v24 }
 0x988   :  { %11841 = vmatpush1.bf16.msra.mxu1 %v18331_v50 }
 0x989   :  { %11843 = vmatprep.subr.bf16.mxu1 %v18287_v34  ;;  %11905 = vmatpush1.bf16.msra.mxu0 %v18332_v51 }
 0x98a   :  { %11907 = vmatprep.subr.bf16.mxu0 %v18288_v12 }
 0x98c   :  { %11845 = vmatpush1.bf16.msra.mxu1 %v18333_v23 }
 0x98d   :  { %11847 = vmatprep.subr.bf16.mxu1 %v18289_v46  ;;  %11909 = vmatpush1.bf16.msra.mxu0 %v18334_v48 }
 0x98e   :  { %11911 = vmatprep.subr.bf16.mxu0 %v18290_v25 }
 0x990   :  { %11849 = vmatpush1.bf16.msra.mxu1 %v18335_v1 }
 0x991   :  { %11851 = vmatprep.subr.bf16.mxu1 %v18291_v6  ;;  %11913 = vmatpush1.bf16.msra.mxu0 %v18336_v9 }
 0x992   :  { %11915 = vmatprep.subr.bf16.mxu0 %v18292_v10 }
 0x994   :  { %11853 = vmatpush1.bf16.msra.mxu1 %v18337_v30 }
 0x995   :  { %11855 = vmatprep.subr.bf16.mxu1 %v18293_v56  ;;  %11917 = vmatpush1.bf16.msra.mxu0 %v18338_v32 }
 0x996   :  { %11919 = vmatprep.subr.bf16.mxu0 %v18445_v33 }
 0x998   :  { %11857 = vmatpush1.bf16.msra.mxu1 %v18446_v44 }
 0x999   :  { %11859 = vmatprep.subr.bf16.mxu1 %v18447_v53  ;;  %11921 = vmatpush1.bf16.msra.mxu0 %v18448_v61 }
 0x99a   :  { %11923 = vmatprep.subr.bf16.mxu0 %v18449_v4 }
 0x99c   :  { %11861 = vmatpush1.bf16.msra.mxu1 %v18450_v26  ;;  %v4441_v26 = vld [vmem:[#allocation4 + $0x4] ss:$8 sm:$0xf] }
 0x99d   :  { %11863 = vmatprep.subr.bf16.mxu1 %v18451_v43  ;;  %11925 = vmatpush1.bf16.msra.mxu0 %v18452_v55  ;;  %v18463_v55 = vld [vmem:[#allocation90_spill] sm:$0xff] }
 0x99e   :  { %11927 = vmatprep.subr.bf16.mxu0 %v18453_v59  ;;  %v18464_v59 = vld [vmem:[#allocation60_spill] sm:$0xff] }
 0x9a0   :  { %11865 = vmatpush1.bf16.msra.mxu1 %v18454_v20  ;;  %v18465_v20 = vld [vmem:[#allocation62_spill] sm:$0xff] }
 0x9a1   :  { %11867 = vmatprep.subr.bf16.mxu1 %v18455_v29  ;;  %11929 = vmatpush1.bf16.msra.mxu0 %v18456_v11  ;;  %v18466_v29 = vld [vmem:[#allocation91_spill] sm:$0xff]  ;;  %v18467_v11 = vld [vmem:[#allocation9_spill] sm:$0xff] }
 0x9a2   :  { %11931 = vmatprep.subr.bf16.mxu0 %v18457_v8  ;;  %v18468_v8 = vld [vmem:[#allocation64_spill] sm:$0xff] }
 0x9a4   :  { %11869 = vmatpush1.bf16.msra.mxu1 %v18458_v37  ;;  %v18469_v37 = vld [vmem:[#allocation66_spill] sm:$0xff] }
 0x9a5   :  { %11871 = vmatprep.subr.bf16.mxu1 %v18459_v31  ;;  %11933 = vmatpush1.bf16.msra.mxu0 %v18460_v41  ;;  %v18470_v41 = vld [vmem:[#allocation10_spill] sm:$0xff] }
 0x9a6   :  { %11935 = vmatprep.subr.bf16.mxu0 %v18461_v58  ;;  %v18471_v58 = vld [vmem:[#allocation12_spill] sm:$0xff] }
 0x9a8   :  { %11873 = vmatpush1.bf16.msra.mxu1 %v18462_v22  ;;  %v18472_v22 = vld [vmem:[#allocation13_spill] sm:$0xff] }
 0x9a9   :  { %11875 = vmatprep.subr.bf16.mxu1 %v18463_v55  ;;  %11937 = vmatpush1.bf16.msra.mxu0 %v18464_v59  ;;  %v18473_v55 = vld [vmem:[#allocation15_spill] sm:$0xff]  ;;  %v18474_v59 = vld [vmem:[#allocation16_spill] sm:$0xff] }
 0x9aa   :  { %11939 = vmatprep.subr.bf16.mxu0 %v18465_v20  ;;  %v18475_v20 = vld [vmem:[#allocation18_spill] sm:$0xff] }
 0x9ac   :  { %11877 = vmatpush1.bf16.msra.mxu1 %v18466_v29  ;;  %v18476_v29 = vld [vmem:[#allocation19_spill] sm:$0xff] }
 0x9ad   :  { %11943 = vmatprep.subr.bf16.mxu1 %v18467_v11  ;;  %11941 = vmatpush1.bf16.msra.mxu0 %v18468_v8  ;;  %v18477_v11 = vld [vmem:[#allocation21_spill] sm:$0xff]  ;;  %v18478_v8 = vld [vmem:[#allocation22_spill] sm:$0xff] }
 0x9ae   :  { %12007 = vmatprep.subr.bf16.mxu0 %v18469_v37  ;;  %v18479_v37 = vld [vmem:[#allocation24_spill] sm:$0xff] }
 0x9af   :  { %4662 = vmatmul.mubr.f32.vlgmr.msra.gmra.mrb[26].mxu1 %v16668_v17  ;;  %v18480_v17 = vld [vmem:[#allocation25_spill] sm:$0xff] }
 0x9b0   :  { %11945 = vmatpush1.bf16.msra.mxu1 %v18470_v41  ;;  %v18481_v41 = vld [vmem:[#allocation27_spill] sm:$0xff] }
 0x9b1   :  { %11947 = vmatprep.subr.bf16.mxu1 %v18471_v58  ;;  %v18482_v58 = vld [vmem:[#allocation29_spill] sm:$0xff] }
 0x9b4   :  { %11949 = vmatpush1.bf16.msra.mxu1 %v18472_v22  ;;  %v18483_v22 = vld [vmem:[#allocation31_spill] sm:$0xff] }
 0x9b5   :  { %11951 = vmatprep.subr.bf16.mxu1 %v18473_v55  ;;  %v18484_v55 = vld [vmem:[#allocation33_spill] sm:$0xff] }
 0x9b8   :  { %11953 = vmatpush1.bf16.msra.mxu1 %v18474_v59  ;;  %v18485_v59 = vld [vmem:[#allocation35_spill] sm:$0xff] }
 0x9b9   :  { %11955 = vmatprep.subr.bf16.mxu1 %v18475_v20  ;;  %v18486_v20 = vld [vmem:[#allocation37_spill] sm:$0xff] }
 0x9bc   :  { %11957 = vmatpush1.bf16.msra.mxu1 %v18476_v29  ;;  %v18487_v29 = vld [vmem:[#allocation39_spill] sm:$0xff] }
 0x9bd   :  { %11959 = vmatprep.subr.bf16.mxu1 %v18477_v11  ;;  %v18488_v11 = vld [vmem:[#allocation41_spill] sm:$0xff] }
 0x9c0   :  { %11961 = vmatpush1.bf16.msra.mxu1 %v18478_v8  ;;  %v18489_v8 = vld [vmem:[#allocation43_spill] sm:$0xff] }
 0x9c1   :  { %11963 = vmatprep.subr.bf16.mxu1 %v18479_v37  ;;  %v18490_v37 = vld [vmem:[#allocation45_spill] sm:$0xff] }
 0x9c4   :  { %11965 = vmatpush1.bf16.msra.mxu1 %v18480_v17  ;;  %v18491_v17 = vld [vmem:[#allocation47_spill] sm:$0xff] }
 0x9c5   :  { %11967 = vmatprep.subr.bf16.mxu1 %v18481_v41  ;;  %v18492_v41 = vld [vmem:[#allocation49_spill] sm:$0xff] }
 0x9c8   :  { %11969 = vmatpush1.bf16.msra.mxu1 %v18482_v58  ;;  %v18493_v58 = vld [vmem:[#allocation51_spill] sm:$0xff] }
 0x9c9   :  { %11971 = vmatprep.subr.bf16.mxu1 %v18483_v22  ;;  %v18494_v22 = vld [vmem:[#allocation53_spill] sm:$0xff] }
 0x9cc   :  { %11973 = vmatpush1.bf16.msra.mxu1 %v18484_v55  ;;  %v18495_v55 = vld [vmem:[#allocation55_spill] sm:$0xff] }
 0x9cd   :  { %11975 = vmatprep.subr.bf16.mxu1 %v18485_v59  ;;  %v18496_v59 = vld [vmem:[#allocation57_spill] sm:$0xff] }
 0x9d0   :  { %11977 = vmatpush1.bf16.msra.mxu1 %v18486_v20  ;;  %v18497_v20 = vld [vmem:[#allocation59_spill] sm:$0xff] }
 0x9d1   :  { %11979 = vmatprep.subr.bf16.mxu1 %v18487_v29  ;;  %v18498_v29 = vld [vmem:[#allocation61_spill] sm:$0xff] }
 0x9d4   :  { %11981 = vmatpush1.bf16.msra.mxu1 %v18488_v11  ;;  %v18499_v11 = vld [vmem:[#allocation63_spill] sm:$0xff] }
 0x9d5   :  { %11983 = vmatprep.subr.bf16.mxu1 %v18489_v8  ;;  %v18500_v8 = vld [vmem:[#allocation65_spill] sm:$0xff] }
 0x9d8   :  { %11985 = vmatpush1.bf16.msra.mxu1 %v18490_v37  ;;  %v18501_v37 = vld [vmem:[#allocation8_spill] sm:$0xff] }
 0x9d9   :  { %11987 = vmatprep.subr.bf16.mxu1 %v18491_v17 }
 0x9dc   :  { %11989 = vmatpush1.bf16.msra.mxu1 %v18492_v41 }
 0x9dd   :  { %11991 = vmatprep.subr.bf16.mxu1 %v18493_v58 }
 0x9e0   :  { %11993 = vmatpush1.bf16.msra.mxu1 %v18494_v22 }
 0x9e1   :  { %11995 = vmatprep.subr.bf16.mxu1 %v18495_v55 }
 0x9e4   :  { %11997 = vmatpush1.bf16.msra.mxu1 %v18496_v59  ;;  %v4442_v59 = vld [vmem:[#allocation4 + $0x4] ss:$8 sm:$0x30] }
 0x9e5   :  { %11999 = vmatprep.subr.bf16.mxu1 %v18497_v20  ;;  %v4443_v4 = vor.u32 %v4442_v59, %v4441_v26 }
 0x9e8   :  { %12001 = vmatpush1.bf16.msra.mxu1 %v18498_v29 }
 0x9e9   :  { %12003 = vmatprep.subr.bf16.mxu1 %v18499_v11 }
 0x9ec   :  { %12005 = vmatpush1.bf16.msra.mxu1 %v18500_v8 }
 0x9ed   :  { %12071 = vmatprep.subr.bf16.mxu1 %v18501_v37  ;;  %v4694_v37 = vrot.slane %v4443_v4, 2 }
 0xa42   :  { %v4521_v17 = vpop.f32.mrb[24].mxu1  ;;  %v4592_v41 = vpop.f32.mrb[24].mxu0 }
 0xa43   :  { %v4523_v31 = vpop.f32.mrb[25].mxu1  ;;  %v4594_v58 = vpop.f32.mrb[25].mxu0 }
 0xa44   :  { %v4670_v43 = vcombine.low %v4521_v17, %v4523_v31  ;;  %v4698_v22 = vcombine.low %v4592_v41, %v4594_v58 }
 0xa46   :  { %v4677_v55 = vrot.slane %v4670_v43, %v16295_v21  ;;  %v4705_v11 = vrot.slane %v4698_v22, %v16295_v21 }
 0xa48   :  { %v4684_v20 = vrot.slane %v4677_v55, %v16295_v21  ;;  %v4712_v8 = vrot.slane %v4705_v11, %v16295_v21 }
 0xa4a   :  { %v4686_v29 = vadd.f32 %v4684_v20, %v4443_v4  ;;  %v4714_v53 = vadd.f32 %v4712_v8, %v4694_v37  ;;  %v4742_v8 = vrot.slane %v4443_v4, 4  ;;  %v18503_v4 = vld [vmem:[#allocation81_spill] sm:$0xff] }
 0xa4c   :  { %v8190_v61 = vmul.f32 -1.442695, %v4686_v29  ;;  %v8191_v44 = vmul.f32 -1.442695, %v4714_v53 }
 0xa4e   :  { %14081 = vpow2.f32 %v8190_v61 }
 0xa4f   :  { %14083 = vpow2.f32 %v8191_v44 }
 0xa58   :  { %v14082_v33 = vpop.eup %14081 }
 0xa59   :  { %v4690_v31 = vadd.f32 1.0, %v14082_v33  ;;  %v14084_v55 = vpop.eup %14083 }
 0xa5a   :  { %v4718_v20 = vadd.f32 1.0, %v14084_v55  ;;  %v18505_v55 = vld [vmem:[#allocation44_spill] sm:$0xff] }
 0xa5b   :  { %14085 = vrcp.f32 %v4690_v31 }
 0xa5c   :  { %14087 = vrcp.f32 %v4718_v20  ;;  %v18507_v20 = vld [vmem:[#allocation83_spill] sm:$0xff] }
 0xa65   :  { %v14086_v11 = vpop.eup %14085 }
 0xa66   :  { %v14088_v33 = vpop.eup %14087 }
 0xa67   :  { %v4746_v37 = vsub.f32 1.0, %v14088_v33  ;;  %v4748_v31 = vmul.f32 %v14088_v33, %v16662_v35  ;;  %v18502_v35 = vld [vmem:[#allocation42_spill] sm:$0xff] }
 0xa68   :  { %v18514_v33 = vld [vmem:[#allocation54_spill] sm:$0xff] }
 0xa82   :  { %v4663_v43 = vpop.f32.mrb[26].mxu1 }
 0xa83   :  { %v4721_v41 = vadd.f32 %v4663_v43, %v16305_v63  ;;  %v4665_v58 = vpop.f32.mrb[27].mxu1 }
 0xa84   :  { %v4722_v26 = vadd.f32 %v4665_v58, %v16308_v49 }
 0xa86   :  { %v4725_v59 = vcombine.low %v4721_v41, %v4722_v26  ;;  %v18504_v26 = vld [vmem:[#allocation82_spill] sm:$0xff] }
 0xa88   :  { %v4732_v29 = vrot.slane %v4725_v59, %v16295_v21  ;;  %v18506_v59 = vld [vmem:[#allocation46_spill] sm:$0xff] }
 0xa8a   :  { %v4739_v61 = vrot.slane %v4732_v29, %v16295_v21  ;;  %v18508_v29 = vld [vmem:[#allocation84_spill] sm:$0xff] }
 0xa8c   :  { %v4741_v53 = vmul.f32 %v14086_v11, %v4739_v61  ;;  %v18509_v61 = vld [vmem:[#allocation48_spill] sm:$0xff]  ;;  %v18510_v11 = vld [vmem:[#allocation50_spill] sm:$0xff] }
 0xa8e   :  { %v4744_v44 = vadd.f32 %v4742_v8, %v4741_v53  ;;  %v18511_v53 = vld [vmem:[#allocation85_spill] sm:$0xff]  ;;  %v18512_v8 = vld [vmem:[#allocation86_spill] sm:$0xff] }
 0xa90   :  { %14089 = vtanh.f32 %v4744_v44  ;;  %v18513_v44 = vld [vmem:[#allocation52_spill] sm:$0xff] }
 0xa9a   :  { %v14090_v22 = vpop.eup %14089 }
 0xa9b   :  { %v4747_v17 = vmul.f32 %v14090_v22, %v4746_v37  ;;  %v18515_v37 = vld [vmem:[#allocation87_spill] sm:$0xff]  ;;  %v18516_v22 = vld [vmem:[#allocation88_spill] sm:$0xff] }
 0xa9d   :  { %v16778_v43 = vadd.f32 %v4748_v31, %v4747_v17  ;;  %v18517_v17 = vld [vmem:[#allocation56_spill] sm:$0xff]  ;;  %v18518_v31 = vld [vmem:[#allocation58_spill] sm:$0xff] }
 0xa9f   :  { %v4762_v41 = vrot.slane %v16778_v43, %v16279_v47  ;;  %v16784_v58 = vrot.slane %v16778_v43, %v16273_v60 }
 0xaa1   :  { %4829 = vmatprep.mubr.f32.mxu0 %v4762_v41  ;;  %4900 = vmatprep.mubr.f32.mxu1 %v4762_v41 }
 0xaa2   :  { %4830 = vmatmul.mubr.f32.vlgmr.msra.gmra.mrb[26].mxu0 %v16784_v58  ;;  %4901 = vmatmul.mubr.f32.vlgmr.msra.gmra.mrb[28].mxu1 %v16784_v58 }
 0xaa3   :  { %12009 = vmatpush1.bf16.msra.mxu0 %v18275_v42  ;;  %4971 = vmatprep.mubr.f32.mxu0 %v4762_v41  ;;  %v18519_v41 = vld [vmem:[#allocation89_spill] sm:$0xff] }
 0xaa4   :  { %12011 = vmatprep.subr.bf16.mxu0 %v15945_v15  ;;  %12073 = vmatpush1.bf16.msra.mxu1 %v15380_v40 }
 0xaa5   :  { %12075 = vmatprep.subr.bf16.mxu1 %v18276_v28 }
 0xaa7   :  { %12013 = vmatpush1.bf16.msra.mxu0 %v15963_v2 }
 0xaa8   :  { %12015 = vmatprep.subr.bf16.mxu0 %v18277_v18  ;;  %12077 = vmatpush1.bf16.msra.mxu1 %v15417_v62 }
 0xaa9   :  { %12079 = vmatprep.subr.bf16.mxu1 %v18278_v7 }
 0xaab   :  { %12017 = vmatpush1.bf16.msra.mxu0 %v15984_v0 }
 0xaac   :  { %12019 = vmatprep.subr.bf16.mxu0 %v18279_v13  ;;  %12081 = vmatpush1.bf16.msra.mxu1 %v15456_v5 }
 0xaad   :  { %12083 = vmatprep.subr.bf16.mxu1 %v18280_v57 }
 0xaaf   :  { %12021 = vmatpush1.bf16.msra.mxu0 %v16004_v38 }
 0xab0   :  { %12023 = vmatprep.subr.bf16.mxu0 %v18281_v14  ;;  %12085 = vmatpush1.bf16.msra.mxu1 %v15493_v27 }
 0xab1   :  { %12087 = vmatprep.subr.bf16.mxu1 %v18282_v16 }
 0xab3   :  { %12025 = vmatpush1.bf16.msra.mxu0 %v16024_v45 }
 0xab4   :  { %12027 = vmatprep.subr.bf16.mxu0 %v18283_v36  ;;  %12089 = vmatpush1.bf16.msra.mxu1 %v15529_v39 }
 0xab5   :  { %12091 = vmatprep.subr.bf16.mxu1 %v18284_v19 }
 0xab7   :  { %12029 = vmatpush1.bf16.msra.mxu0 %v16044_v52 }
 0xab8   :  { %12031 = vmatprep.subr.bf16.mxu0 %v18285_v54  ;;  %12093 = vmatpush1.bf16.msra.mxu1 %v15565_v3 }
 0xab9   :  { %12095 = vmatprep.subr.bf16.mxu1 %v18286_v24 }
 0xabb   :  { %12033 = vmatpush1.bf16.msra.mxu0 %v18331_v50 }
 0xabc   :  { %12035 = vmatprep.subr.bf16.mxu0 %v18287_v34  ;;  %12097 = vmatpush1.bf16.msra.mxu1 %v18332_v51 }
 0xabd   :  { %12099 = vmatprep.subr.bf16.mxu1 %v18288_v12 }
 0xabf   :  { %12037 = vmatpush1.bf16.msra.mxu0 %v18333_v23 }
 0xac0   :  { %12039 = vmatprep.subr.bf16.mxu0 %v18289_v46  ;;  %12101 = vmatpush1.bf16.msra.mxu1 %v18334_v48 }
 0xac1   :  { %12103 = vmatprep.subr.bf16.mxu1 %v18290_v25 }
 0xac3   :  { %12041 = vmatpush1.bf16.msra.mxu0 %v18335_v1 }
 0xac4   :  { %12043 = vmatprep.subr.bf16.mxu0 %v18291_v6  ;;  %12105 = vmatpush1.bf16.msra.mxu1 %v18336_v9 }
 0xac5   :  { %12107 = vmatprep.subr.bf16.mxu1 %v18292_v10 }
 0xac7   :  { %12045 = vmatpush1.bf16.msra.mxu0 %v18337_v30 }
 0xac8   :  { %12047 = vmatprep.subr.bf16.mxu0 %v18293_v56  ;;  %12109 = vmatpush1.bf16.msra.mxu1 %v18338_v32 }
 0xac9   :  { %12111 = vmatprep.subr.bf16.mxu1 %v18502_v35 }
 0xacb   :  { %12049 = vmatpush1.bf16.msra.mxu0 %v18503_v4 }
 0xacc   :  { %12051 = vmatprep.subr.bf16.mxu0 %v18504_v26  ;;  %12113 = vmatpush1.bf16.msra.mxu1 %v18505_v55 }
 0xacd   :  { %12115 = vmatprep.subr.bf16.mxu1 %v18506_v59 }
 0xacf   :  { %12053 = vmatpush1.bf16.msra.mxu0 %v18507_v20  ;;  %v4751_v20 = vld [vmem:[#allocation4 + $0x5] ss:$8 sm:$0xf] }
 0xad0   :  { %12055 = vmatprep.subr.bf16.mxu0 %v18508_v29  ;;  %12117 = vmatpush1.bf16.msra.mxu1 %v18509_v61  ;;  %v18520_v61 = vld [vmem:[#allocation90_spill] sm:$0xff] }
 0xad1   :  { %12119 = vmatprep.subr.bf16.mxu1 %v18510_v11  ;;  %v18521_v11 = vld [vmem:[#allocation60_spill] sm:$0xff] }
 0xad3   :  { %12057 = vmatpush1.bf16.msra.mxu0 %v18511_v53  ;;  %v18522_v53 = vld [vmem:[#allocation62_spill] sm:$0xff] }
 0xad4   :  { %12059 = vmatprep.subr.bf16.mxu0 %v18512_v8  ;;  %12121 = vmatpush1.bf16.msra.mxu1 %v18513_v44  ;;  %v18523_v8 = vld [vmem:[#allocation91_spill] sm:$0xff]  ;;  %v18524_v44 = vld [vmem:[#allocation9_spill] sm:$0xff] }
 0xad5   :  { %12123 = vmatprep.subr.bf16.mxu1 %v18514_v33  ;;  %v18525_v33 = vld [vmem:[#allocation64_spill] sm:$0xff] }
 0xad7   :  { %12061 = vmatpush1.bf16.msra.mxu0 %v18515_v37  ;;  %v18526_v37 = vld [vmem:[#allocation66_spill] sm:$0xff] }
 0xad8   :  { %12063 = vmatprep.subr.bf16.mxu0 %v18516_v22  ;;  %12125 = vmatpush1.bf16.msra.mxu1 %v18517_v17  ;;  %v18527_v17 = vld [vmem:[#allocation10_spill] sm:$0xff] }
 0xad9   :  { %12127 = vmatprep.subr.bf16.mxu1 %v18518_v31  ;;  %v18528_v31 = vld [vmem:[#allocation12_spill] sm:$0xff] }
 0xadb   :  { %12065 = vmatpush1.bf16.msra.mxu0 %v18519_v41  ;;  %v18529_v41 = vld [vmem:[#allocation13_spill] sm:$0xff] }
 0xadc   :  { %12067 = vmatprep.subr.bf16.mxu0 %v18520_v61  ;;  %12129 = vmatpush1.bf16.msra.mxu1 %v18521_v11  ;;  %v18530_v61 = vld [vmem:[#allocation15_spill] sm:$0xff]  ;;  %v18531_v11 = vld [vmem:[#allocation16_spill] sm:$0xff] }
 0xadd   :  { %12131 = vmatprep.subr.bf16.mxu1 %v18522_v53  ;;  %v18532_v53 = vld [vmem:[#allocation18_spill] sm:$0xff] }
 0xadf   :  { %12069 = vmatpush1.bf16.msra.mxu0 %v18523_v8  ;;  %v18533_v8 = vld [vmem:[#allocation19_spill] sm:$0xff] }
 0xae0   :  { %12135 = vmatprep.subr.bf16.mxu0 %v18524_v44  ;;  %12133 = vmatpush1.bf16.msra.mxu1 %v18525_v33  ;;  %v18534_v44 = vld [vmem:[#allocation21_spill] sm:$0xff]  ;;  %v18535_v33 = vld [vmem:[#allocation22_spill] sm:$0xff] }
 0xae1   :  { %12199 = vmatprep.subr.bf16.mxu1 %v18526_v37  ;;  %v18536_v37 = vld [vmem:[#allocation24_spill] sm:$0xff] }
 0xae2   :  { %4972 = vmatmul.mubr.f32.vlgmr.msra.gmra.mrb[28].mxu0 %v16784_v58  ;;  %v18537_v58 = vld [vmem:[#allocation25_spill] sm:$0xff] }
 0xae3   :  { %12137 = vmatpush1.bf16.msra.mxu0 %v18527_v17  ;;  %v18538_v17 = vld [vmem:[#allocation27_spill] sm:$0xff] }
 0xae4   :  { %12139 = vmatprep.subr.bf16.mxu0 %v18528_v31  ;;  %v18539_v31 = vld [vmem:[#allocation29_spill] sm:$0xff] }
 0xae7   :  { %12141 = vmatpush1.bf16.msra.mxu0 %v18529_v41  ;;  %v18540_v41 = vld [vmem:[#allocation31_spill] sm:$0xff] }
 0xae8   :  { %12143 = vmatprep.subr.bf16.mxu0 %v18530_v61  ;;  %v18541_v61 = vld [vmem:[#allocation33_spill] sm:$0xff] }
 0xaeb   :  { %12145 = vmatpush1.bf16.msra.mxu0 %v18531_v11  ;;  %v18542_v11 = vld [vmem:[#allocation35_spill] sm:$0xff] }
 0xaec   :  { %12147 = vmatprep.subr.bf16.mxu0 %v18532_v53  ;;  %v18543_v53 = vld [vmem:[#allocation37_spill] sm:$0xff] }
 0xaef   :  { %12149 = vmatpush1.bf16.msra.mxu0 %v18533_v8  ;;  %v18544_v8 = vld [vmem:[#allocation39_spill] sm:$0xff] }
 0xaf0   :  { %12151 = vmatprep.subr.bf16.mxu0 %v18534_v44  ;;  %v18545_v44 = vld [vmem:[#allocation41_spill] sm:$0xff] }
 0xaf3   :  { %12153 = vmatpush1.bf16.msra.mxu0 %v18535_v33  ;;  %v18546_v33 = vld [vmem:[#allocation43_spill] sm:$0xff] }
 0xaf4   :  { %12155 = vmatprep.subr.bf16.mxu0 %v18536_v37  ;;  %v18547_v37 = vld [vmem:[#allocation45_spill] sm:$0xff] }
 0xaf7   :  { %12157 = vmatpush1.bf16.msra.mxu0 %v18537_v58  ;;  %v18548_v58 = vld [vmem:[#allocation47_spill] sm:$0xff] }
 0xaf8   :  { %12159 = vmatprep.subr.bf16.mxu0 %v18538_v17  ;;  %v18549_v17 = vld [vmem:[#allocation49_spill] sm:$0xff] }
 0xafb   :  { %12161 = vmatpush1.bf16.msra.mxu0 %v18539_v31  ;;  %v18550_v31 = vld [vmem:[#allocation51_spill] sm:$0xff] }
 0xafc   :  { %12163 = vmatprep.subr.bf16.mxu0 %v18540_v41  ;;  %v18551_v41 = vld [vmem:[#allocation53_spill] sm:$0xff] }
 0xaff   :  { %12165 = vmatpush1.bf16.msra.mxu0 %v18541_v61  ;;  %v18552_v61 = vld [vmem:[#allocation55_spill] sm:$0xff] }
 0xb00   :  { %12167 = vmatprep.subr.bf16.mxu0 %v18542_v11  ;;  %v18553_v11 = vld [vmem:[#allocation57_spill] sm:$0xff] }
 0xb03   :  { %12169 = vmatpush1.bf16.msra.mxu0 %v18543_v53  ;;  %v18554_v53 = vld [vmem:[#allocation59_spill] sm:$0xff] }
 0xb04   :  { %12171 = vmatprep.subr.bf16.mxu0 %v18544_v8  ;;  %v18555_v8 = vld [vmem:[#allocation61_spill] sm:$0xff] }
 0xb07   :  { %12173 = vmatpush1.bf16.msra.mxu0 %v18545_v44  ;;  %v18556_v44 = vld [vmem:[#allocation63_spill] sm:$0xff] }
 0xb08   :  { %12175 = vmatprep.subr.bf16.mxu0 %v18546_v33  ;;  %v18557_v33 = vld [vmem:[#allocation65_spill] sm:$0xff] }
 0xb0b   :  { %12177 = vmatpush1.bf16.msra.mxu0 %v18547_v37  ;;  %v18558_v37 = vld [vmem:[#allocation8_spill] sm:$0xff] }
 0xb0c   :  { %12179 = vmatprep.subr.bf16.mxu0 %v18548_v58 }
 0xb0f   :  { %12181 = vmatpush1.bf16.msra.mxu0 %v18549_v17 }
 0xb10   :  { %12183 = vmatprep.subr.bf16.mxu0 %v18550_v31 }
 0xb13   :  { %12185 = vmatpush1.bf16.msra.mxu0 %v18551_v41 }
 0xb14   :  { %12187 = vmatprep.subr.bf16.mxu0 %v18552_v61 }
 0xb17   :  { %12189 = vmatpush1.bf16.msra.mxu0 %v18553_v11  ;;  %v4752_v11 = vld [vmem:[#allocation4 + $0x5] ss:$8 sm:$0x30] }
 0xb18   :  { %12191 = vmatprep.subr.bf16.mxu0 %v18554_v53  ;;  %v4753_v59 = vor.u32 %v4752_v11, %v4751_v20 }
 0xb1b   :  { %12193 = vmatpush1.bf16.msra.mxu0 %v18555_v8 }
 0xb1c   :  { %12195 = vmatprep.subr.bf16.mxu0 %v18556_v44 }
 0xb1f   :  { %12197 = vmatpush1.bf16.msra.mxu0 %v18557_v33 }
 0xb20   :  { %12263 = vmatprep.subr.bf16.mxu0 %v18558_v37  ;;  %v5004_v37 = vrot.slane %v4753_v59, 2 }
 0xb75   :  { %v4831_v58 = vpop.f32.mrb[26].mxu0  ;;  %v4902_v17 = vpop.f32.mrb[28].mxu1 }
 0xb76   :  { %v4833_v22 = vpop.f32.mrb[27].mxu0  ;;  %v4904_v31 = vpop.f32.mrb[29].mxu1 }
 0xb77   :  { %v4980_v29 = vcombine.low %v4831_v58, %v4833_v22  ;;  %v5008_v41 = vcombine.low %v4902_v17, %v4904_v31 }
 0xb79   :  { %v4987_v61 = vrot.slane %v4980_v29, %v16295_v21  ;;  %v5015_v44 = vrot.slane %v5008_v41, %v16295_v21 }
 0xb7b   :  { %v4994_v53 = vrot.slane %v4987_v61, %v16295_v21  ;;  %v5022_v33 = vrot.slane %v5015_v44, %v16295_v21 }
 0xb7d   :  { %v4996_v8 = vadd.f32 %v4994_v53, %v4753_v59  ;;  %v5024_v26 = vadd.f32 %v5022_v33, %v5004_v37  ;;  %v5052_v33 = vrot.slane %v4753_v59, 4  ;;  %v18560_v59 = vld [vmem:[#allocation81_spill] sm:$0xff] }
 0xb7f   :  { %v8192_v55 = vmul.f32 -1.442695, %v4996_v8  ;;  %v8193_v4 = vmul.f32 -1.442695, %v5024_v26 }
 0xb81   :  { %14091 = vpow2.f32 %v8192_v55 }
 0xb82   :  { %14093 = vpow2.f32 %v8193_v4 }
 0xb8b   :  { %v14092_v35 = vpop.eup %14091 }
 0xb8c   :  { %v5000_v22 = vadd.f32 1.0, %v14092_v35  ;;  %v14094_v61 = vpop.eup %14093 }
 0xb8d   :  { %v5028_v53 = vadd.f32 1.0, %v14094_v61  ;;  %v18562_v61 = vld [vmem:[#allocation44_spill] sm:$0xff] }
 0xb8e   :  { %14095 = vrcp.f32 %v5000_v22 }
 0xb8f   :  { %14097 = vrcp.f32 %v5028_v53  ;;  %v18564_v53 = vld [vmem:[#allocation83_spill] sm:$0xff] }
 0xb98   :  { %v14096_v44 = vpop.eup %14095 }
 0xb99   :  { %v14098_v35 = vpop.eup %14097 }
 0xb9a   :  { %v5056_v37 = vsub.f32 1.0, %v14098_v35  ;;  %v5058_v22 = vmul.f32 %v14098_v35, %v16778_v43  ;;  %v18559_v43 = vld [vmem:[#allocation42_spill] sm:$0xff] }
 0xb9b   :  { %v18571_v35 = vld [vmem:[#allocation54_spill] sm:$0xff] }
 0xbb5   :  { %v4973_v29 = vpop.f32.mrb[28].mxu0 }
 0xbb6   :  { %v5031_v17 = vadd.f32 %v4973_v29, %v16305_v63  ;;  %v4975_v31 = vpop.f32.mrb[29].mxu0 }
 0xbb7   :  { %v5032_v20 = vadd.f32 %v4975_v31, %v16308_v49 }
 0xbb9   :  { %v5035_v11 = vcombine.low %v5031_v17, %v5032_v20  ;;  %v18561_v20 = vld [vmem:[#allocation82_spill] sm:$0xff] }
 0xbbb   :  { %v5042_v8 = vrot.slane %v5035_v11, %v16295_v21  ;;  %v18563_v11 = vld [vmem:[#allocation46_spill] sm:$0xff] }
 0xbbd   :  { %v5049_v55 = vrot.slane %v5042_v8, %v16295_v21  ;;  %v18565_v8 = vld [vmem:[#allocation84_spill] sm:$0xff] }
 0xbbf   :  { %v5051_v26 = vmul.f32 %v14096_v44, %v5049_v55  ;;  %v18566_v55 = vld [vmem:[#allocation48_spill] sm:$0xff]  ;;  %v18567_v44 = vld [vmem:[#allocation50_spill] sm:$0xff] }
 0xbc1   :  { %v5054_v4 = vadd.f32 %v5052_v33, %v5051_v26  ;;  %v18568_v26 = vld [vmem:[#allocation85_spill] sm:$0xff]  ;;  %v18569_v33 = vld [vmem:[#allocation86_spill] sm:$0xff] }
 0xbc3   :  { %14099 = vtanh.f32 %v5054_v4  ;;  %v18570_v4 = vld [vmem:[#allocation52_spill] sm:$0xff] }
 0xbcd   :  { %v14100_v41 = vpop.eup %14099 }
 0xbce   :  { %v5057_v58 = vmul.f32 %v14100_v41, %v5056_v37  ;;  %v18572_v37 = vld [vmem:[#allocation87_spill] sm:$0xff]  ;;  %v18573_v41 = vld [vmem:[#allocation88_spill] sm:$0xff] }
 0xbd0   :  { %v16894_v29 = vadd.f32 %v5058_v22, %v5057_v58  ;;  %v18574_v58 = vld [vmem:[#allocation56_spill] sm:$0xff]  ;;  %v18575_v22 = vld [vmem:[#allocation58_spill] sm:$0xff] }
 0xbd2   :  { %v5072_v17 = vrot.slane %v16894_v29, %v16279_v47  ;;  %v16900_v31 = vrot.slane %v16894_v29, %v16273_v60 }
 0xbd4   :  { %5139 = vmatprep.mubr.f32.mxu1 %v5072_v17  ;;  %5210 = vmatprep.mubr.f32.mxu0 %v5072_v17 }
 0xbd5   :  { %5140 = vmatmul.mubr.f32.vlgmr.msra.gmra.mrb[30].mxu1 %v16900_v31  ;;  %5211 = vmatmul.mubr.f32.vlgmr.msra.gmra.mrb[30].mxu0 %v16900_v31 }
 0xbd6   :  { %12201 = vmatpush1.bf16.msra.mxu1 %v18275_v42  ;;  %5281 = vmatprep.mubr.f32.mxu1 %v5072_v17  ;;  %v18576_v17 = vld [vmem:[#allocation89_spill] sm:$0xff] }
 0xbd7   :  { %12203 = vmatprep.subr.bf16.mxu1 %v15945_v15  ;;  %12265 = vmatpush1.bf16.msra.mxu0 %v15380_v40 }
 0xbd8   :  { %12267 = vmatprep.subr.bf16.mxu0 %v18276_v28 }
 0xbda   :  { %12205 = vmatpush1.bf16.msra.mxu1 %v15963_v2 }
 0xbdb   :  { %12207 = vmatprep.subr.bf16.mxu1 %v18277_v18  ;;  %12269 = vmatpush1.bf16.msra.mxu0 %v15417_v62 }
 0xbdc   :  { %12271 = vmatprep.subr.bf16.mxu0 %v18278_v7 }
 0xbde   :  { %12209 = vmatpush1.bf16.msra.mxu1 %v15984_v0 }
 0xbdf   :  { %12211 = vmatprep.subr.bf16.mxu1 %v18279_v13  ;;  %12273 = vmatpush1.bf16.msra.mxu0 %v15456_v5 }
 0xbe0   :  { %12275 = vmatprep.subr.bf16.mxu0 %v18280_v57 }
 0xbe2   :  { %12213 = vmatpush1.bf16.msra.mxu1 %v16004_v38 }
 0xbe3   :  { %12215 = vmatprep.subr.bf16.mxu1 %v18281_v14  ;;  %12277 = vmatpush1.bf16.msra.mxu0 %v15493_v27 }
 0xbe4   :  { %12279 = vmatprep.subr.bf16.mxu0 %v18282_v16 }
 0xbe6   :  { %12217 = vmatpush1.bf16.msra.mxu1 %v16024_v45 }
 0xbe7   :  { %12219 = vmatprep.subr.bf16.mxu1 %v18283_v36  ;;  %12281 = vmatpush1.bf16.msra.mxu0 %v15529_v39 }
 0xbe8   :  { %12283 = vmatprep.subr.bf16.mxu0 %v18284_v19 }
 0xbea   :  { %12221 = vmatpush1.bf16.msra.mxu1 %v16044_v52 }
 0xbeb   :  { %12223 = vmatprep.subr.bf16.mxu1 %v18285_v54  ;;  %12285 = vmatpush1.bf16.msra.mxu0 %v15565_v3 }
 0xbec   :  { %12287 = vmatprep.subr.bf16.mxu0 %v18286_v24 }
 0xbee   :  { %12225 = vmatpush1.bf16.msra.mxu1 %v18331_v50 }
 0xbef   :  { %12227 = vmatprep.subr.bf16.mxu1 %v18287_v34  ;;  %12289 = vmatpush1.bf16.msra.mxu0 %v18332_v51 }
 0xbf0   :  { %12291 = vmatprep.subr.bf16.mxu0 %v18288_v12 }
 0xbf2   :  { %12229 = vmatpush1.bf16.msra.mxu1 %v18333_v23 }
 0xbf3   :  { %12231 = vmatprep.subr.bf16.mxu1 %v18289_v46  ;;  %12293 = vmatpush1.bf16.msra.mxu0 %v18334_v48 }
 0xbf4   :  { %12295 = vmatprep.subr.bf16.mxu0 %v18290_v25 }
 0xbf6   :  { %12233 = vmatpush1.bf16.msra.mxu1 %v18335_v1 }
 0xbf7   :  { %12235 = vmatprep.subr.bf16.mxu1 %v18291_v6  ;;  %12297 = vmatpush1.bf16.msra.mxu0 %v18336_v9 }
 0xbf8   :  { %12299 = vmatprep.subr.bf16.mxu0 %v18292_v10 }
 0xbfa   :  { %12237 = vmatpush1.bf16.msra.mxu1 %v18337_v30 }
 0xbfb   :  { %12239 = vmatprep.subr.bf16.mxu1 %v18293_v56  ;;  %12301 = vmatpush1.bf16.msra.mxu0 %v18338_v32 }
 0xbfc   :  { %12303 = vmatprep.subr.bf16.mxu0 %v18559_v43 }
 0xbfe   :  { %12241 = vmatpush1.bf16.msra.mxu1 %v18560_v59 }
 0xbff   :  { %12243 = vmatprep.subr.bf16.mxu1 %v18561_v20  ;;  %12305 = vmatpush1.bf16.msra.mxu0 %v18562_v61 }
 0xc00   :  { %12307 = vmatprep.subr.bf16.mxu0 %v18563_v11 }
 0xc02   :  { %12245 = vmatpush1.bf16.msra.mxu1 %v18564_v53  ;;  %v5061_v53 = vld [vmem:[#allocation4 + $0x6] ss:$8 sm:$0xf] }
 0xc03   :  { %12247 = vmatprep.subr.bf16.mxu1 %v18565_v8  ;;  %12309 = vmatpush1.bf16.msra.mxu0 %v18566_v55  ;;  %v18577_v55 = vld [vmem:[#allocation90_spill] sm:$0xff] }
 0xc04   :  { %12311 = vmatprep.subr.bf16.mxu0 %v18567_v44  ;;  %v18578_v44 = vld [vmem:[#allocation60_spill] sm:$0xff] }
 0xc06   :  { %12249 = vmatpush1.bf16.msra.mxu1 %v18568_v26  ;;  %v18579_v26 = vld [vmem:[#allocation62_spill] sm:$0xff] }
 0xc07   :  { %12251 = vmatprep.subr.bf16.mxu1 %v18569_v33  ;;  %12313 = vmatpush1.bf16.msra.mxu0 %v18570_v4  ;;  %v18580_v33 = vld [vmem:[#allocation91_spill] sm:$0xff]  ;;  %v18581_v4 = vld [vmem:[#allocation9_spill] sm:$0xff] }
 0xc08   :  { %12315 = vmatprep.subr.bf16.mxu0 %v18571_v35  ;;  %v18582_v35 = vld [vmem:[#allocation64_spill] sm:$0xff] }
 0xc0a   :  { %12253 = vmatpush1.bf16.msra.mxu1 %v18572_v37  ;;  %v18583_v37 = vld [vmem:[#allocation66_spill] sm:$0xff] }
 0xc0b   :  { %12255 = vmatprep.subr.bf16.mxu1 %v18573_v41  ;;  %12317 = vmatpush1.bf16.msra.mxu0 %v18574_v58  ;;  %v18584_v58 = vld [vmem:[#allocation10_spill] sm:$0xff] }
 0xc0c   :  { %12319 = vmatprep.subr.bf16.mxu0 %v18575_v22  ;;  %v18585_v22 = vld [vmem:[#allocation12_spill] sm:$0xff] }
 0xc0e   :  { %12257 = vmatpush1.bf16.msra.mxu1 %v18576_v17  ;;  %v18586_v17 = vld [vmem:[#allocation13_spill] sm:$0xff] }
 0xc0f   :  { %12259 = vmatprep.subr.bf16.mxu1 %v18577_v55  ;;  %12321 = vmatpush1.bf16.msra.mxu0 %v18578_v44  ;;  %v18587_v55 = vld [vmem:[#allocation15_spill] sm:$0xff]  ;;  %v18588_v44 = vld [vmem:[#allocation16_spill] sm:$0xff] }
 0xc10   :  { %12323 = vmatprep.subr.bf16.mxu0 %v18579_v26  ;;  %v18589_v26 = vld [vmem:[#allocation18_spill] sm:$0xff] }
 0xc12   :  { %12261 = vmatpush1.bf16.msra.mxu1 %v18580_v33  ;;  %v18590_v33 = vld [vmem:[#allocation19_spill] sm:$0xff] }
 0xc13   :  { %12327 = vmatprep.subr.bf16.mxu1 %v18581_v4  ;;  %12325 = vmatpush1.bf16.msra.mxu0 %v18582_v35  ;;  %v18591_v4 = vld [vmem:[#allocation21_spill] sm:$0xff]  ;;  %v18592_v35 = vld [vmem:[#allocation22_spill] sm:$0xff] }
 0xc14   :  { %12391 = vmatprep.subr.bf16.mxu0 %v18583_v37  ;;  %v18593_v37 = vld [vmem:[#allocation24_spill] sm:$0xff] }
 0xc15   :  { %5282 = vmatmul.mubr.f32.vlgmr.msra.gmra.mrb[32].mxu1 %v16900_v31  ;;  %v18594_v31 = vld [vmem:[#allocation25_spill] sm:$0xff] }
 0xc16   :  { %12329 = vmatpush1.bf16.msra.mxu1 %v18584_v58  ;;  %v18595_v58 = vld [vmem:[#allocation27_spill] sm:$0xff] }
 0xc17   :  { %12331 = vmatprep.subr.bf16.mxu1 %v18585_v22  ;;  %v18596_v22 = vld [vmem:[#allocation29_spill] sm:$0xff] }
 0xc1a   :  { %12333 = vmatpush1.bf16.msra.mxu1 %v18586_v17  ;;  %v18597_v17 = vld [vmem:[#allocation31_spill] sm:$0xff] }
 0xc1b   :  { %12335 = vmatprep.subr.bf16.mxu1 %v18587_v55  ;;  %v18598_v55 = vld [vmem:[#allocation33_spill] sm:$0xff] }
 0xc1e   :  { %12337 = vmatpush1.bf16.msra.mxu1 %v18588_v44  ;;  %v18599_v44 = vld [vmem:[#allocation35_spill] sm:$0xff] }
 0xc1f   :  { %12339 = vmatprep.subr.bf16.mxu1 %v18589_v26  ;;  %v18600_v26 = vld [vmem:[#allocation37_spill] sm:$0xff] }
 0xc22   :  { %12341 = vmatpush1.bf16.msra.mxu1 %v18590_v33  ;;  %v18601_v33 = vld [vmem:[#allocation39_spill] sm:$0xff] }
 0xc23   :  { %12343 = vmatprep.subr.bf16.mxu1 %v18591_v4  ;;  %v18602_v4 = vld [vmem:[#allocation41_spill] sm:$0xff] }
 0xc26   :  { %12345 = vmatpush1.bf16.msra.mxu1 %v18592_v35  ;;  %v18603_v35 = vld [vmem:[#allocation43_spill] sm:$0xff] }
 0xc27   :  { %12347 = vmatprep.subr.bf16.mxu1 %v18593_v37  ;;  %v18604_v37 = vld [vmem:[#allocation45_spill] sm:$0xff] }
 0xc2a   :  { %12349 = vmatpush1.bf16.msra.mxu1 %v18594_v31  ;;  %v18605_v31 = vld [vmem:[#allocation47_spill] sm:$0xff] }
 0xc2b   :  { %12351 = vmatprep.subr.bf16.mxu1 %v18595_v58  ;;  %v18606_v58 = vld [vmem:[#allocation49_spill] sm:$0xff] }
 0xc2e   :  { %12353 = vmatpush1.bf16.msra.mxu1 %v18596_v22  ;;  %v18607_v22 = vld [vmem:[#allocation51_spill] sm:$0xff] }
 0xc2f   :  { %12355 = vmatprep.subr.bf16.mxu1 %v18597_v17  ;;  %v18608_v17 = vld [vmem:[#allocation53_spill] sm:$0xff] }
 0xc32   :  { %12357 = vmatpush1.bf16.msra.mxu1 %v18598_v55  ;;  %v18609_v55 = vld [vmem:[#allocation55_spill] sm:$0xff] }
 0xc33   :  { %12359 = vmatprep.subr.bf16.mxu1 %v18599_v44  ;;  %v18610_v44 = vld [vmem:[#allocation57_spill] sm:$0xff] }
 0xc36   :  { %12361 = vmatpush1.bf16.msra.mxu1 %v18600_v26  ;;  %v18611_v26 = vld [vmem:[#allocation59_spill] sm:$0xff] }
 0xc37   :  { %12363 = vmatprep.subr.bf16.mxu1 %v18601_v33  ;;  %v18612_v33 = vld [vmem:[#allocation61_spill] sm:$0xff] }
 0xc3a   :  { %12365 = vmatpush1.bf16.msra.mxu1 %v18602_v4  ;;  %v18613_v4 = vld [vmem:[#allocation63_spill] sm:$0xff] }
 0xc3b   :  { %12367 = vmatprep.subr.bf16.mxu1 %v18603_v35  ;;  %v18614_v35 = vld [vmem:[#allocation65_spill] sm:$0xff] }
 0xc3e   :  { %12369 = vmatpush1.bf16.msra.mxu1 %v18604_v37  ;;  %v18615_v37 = vld [vmem:[#allocation8_spill] sm:$0xff] }
 0xc3f   :  { %12371 = vmatprep.subr.bf16.mxu1 %v18605_v31 }
 0xc42   :  { %12373 = vmatpush1.bf16.msra.mxu1 %v18606_v58 }
 0xc43   :  { %12375 = vmatprep.subr.bf16.mxu1 %v18607_v22 }
 0xc46   :  { %12377 = vmatpush1.bf16.msra.mxu1 %v18608_v17 }
 0xc47   :  { %12379 = vmatprep.subr.bf16.mxu1 %v18609_v55 }
 0xc4a   :  { %12381 = vmatpush1.bf16.msra.mxu1 %v18610_v44  ;;  %v5062_v44 = vld [vmem:[#allocation4 + $0x6] ss:$8 sm:$0x30] }
 0xc4b   :  { %12383 = vmatprep.subr.bf16.mxu1 %v18611_v26  ;;  %v5063_v11 = vor.u32 %v5062_v44, %v5061_v53 }
 0xc4e   :  { %12385 = vmatpush1.bf16.msra.mxu1 %v18612_v33 }
 0xc4f   :  { %12387 = vmatprep.subr.bf16.mxu1 %v18613_v4 }
 0xc52   :  { %12389 = vmatpush1.bf16.msra.mxu1 %v18614_v35 }
 0xc53   :  { %12455 = vmatprep.subr.bf16.mxu1 %v18615_v37  ;;  %v5314_v37 = vrot.slane %v5063_v11, 2 }
 0xca8   :  { %v5141_v31 = vpop.f32.mrb[30].mxu1  ;;  %v5212_v58 = vpop.f32.mrb[30].mxu0 }
 0xca9   :  { %v5143_v41 = vpop.f32.mrb[31].mxu1  ;;  %v5214_v22 = vpop.f32.mrb[31].mxu0 }
 0xcaa   :  { %v5290_v8 = vcombine.low %v5141_v31, %v5143_v41  ;;  %v5318_v17 = vcombine.low %v5212_v58, %v5214_v22 }
 0xcac   :  { %v5297_v55 = vrot.slane %v5290_v8, %v16295_v21  ;;  %v5325_v4 = vrot.slane %v5318_v17, %v16295_v21 }
 0xcae   :  { %v5304_v26 = vrot.slane %v5297_v55, %v16295_v21  ;;  %v5332_v35 = vrot.slane %v5325_v4, %v16295_v21 }
 0xcb0   :  { %v5306_v33 = vadd.f32 %v5304_v26, %v5063_v11  ;;  %v5334_v20 = vadd.f32 %v5332_v35, %v5314_v37  ;;  %v5362_v35 = vrot.slane %v5063_v11, 4  ;;  %v18617_v11 = vld [vmem:[#allocation81_spill] sm:$0xff] }
 0xcb2   :  { %v8194_v61 = vmul.f32 -1.442695, %v5306_v33  ;;  %v8195_v59 = vmul.f32 -1.442695, %v5334_v20 }
 0xcb4   :  { %14101 = vpow2.f32 %v8194_v61 }
 0xcb5   :  { %14103 = vpow2.f32 %v8195_v59 }
 0xcbe   :  { %v14102_v43 = vpop.eup %14101 }
 0xcbf   :  { %v5310_v41 = vadd.f32 1.0, %v14102_v43  ;;  %v14104_v55 = vpop.eup %14103 }
 0xcc0   :  { %v5338_v26 = vadd.f32 1.0, %v14104_v55  ;;  %v18619_v55 = vld [vmem:[#allocation44_spill] sm:$0xff] }
 0xcc1   :  { %14105 = vrcp.f32 %v5310_v41 }
 0xcc2   :  { %14107 = vrcp.f32 %v5338_v26  ;;  %v18621_v26 = vld [vmem:[#allocation83_spill] sm:$0xff] }
 0xccb   :  { %v14106_v4 = vpop.eup %14105 }
 0xccc   :  { %v14108_v43 = vpop.eup %14107 }
 0xccd   :  { %v5366_v37 = vsub.f32 1.0, %v14108_v43  ;;  %v5368_v41 = vmul.f32 %v14108_v43, %v16894_v29  ;;  %v18616_v29 = vld [vmem:[#allocation42_spill] sm:$0xff] }
 0xcce   :  { %v18628_v43 = vld [vmem:[#allocation54_spill] sm:$0xff] }
 0xce8   :  { %v5283_v8 = vpop.f32.mrb[32].mxu1 }
 0xce9   :  { %v5341_v58 = vadd.f32 %v5283_v8, %v16305_v63  ;;  %v5285_v22 = vpop.f32.mrb[33].mxu1 }
 0xcea   :  { %v5342_v53 = vadd.f32 %v5285_v22, %v16308_v49 }
 0xcec   :  { %v5345_v44 = vcombine.low %v5341_v58, %v5342_v53  ;;  %v18618_v53 = vld [vmem:[#allocation82_spill] sm:$0xff] }
 0xcee   :  { %v5352_v33 = vrot.slane %v5345_v44, %v16295_v21  ;;  %v18620_v44 = vld [vmem:[#allocation46_spill] sm:$0xff] }
 0xcf0   :  { %v5359_v61 = vrot.slane %v5352_v33, %v16295_v21  ;;  %v18622_v33 = vld [vmem:[#allocation84_spill] sm:$0xff] }
 0xcf2   :  { %v5361_v20 = vmul.f32 %v14106_v4, %v5359_v61  ;;  %v18623_v61 = vld [vmem:[#allocation48_spill] sm:$0xff]  ;;  %v18624_v4 = vld [vmem:[#allocation50_spill] sm:$0xff] }
 0xcf4   :  { %v5364_v59 = vadd.f32 %v5362_v35, %v5361_v20  ;;  %v18625_v20 = vld [vmem:[#allocation85_spill] sm:$0xff]  ;;  %v18626_v35 = vld [vmem:[#allocation86_spill] sm:$0xff] }
 0xcf6   :  { %14109 = vtanh.f32 %v5364_v59  ;;  %v18627_v59 = vld [vmem:[#allocation52_spill] sm:$0xff] }
 0xd00   :  { %v14110_v17 = vpop.eup %14109 }
 0xd01   :  { %v5367_v31 = vmul.f32 %v14110_v17, %v5366_v37  ;;  %v18629_v37 = vld [vmem:[#allocation87_spill] sm:$0xff]  ;;  %v18630_v17 = vld [vmem:[#allocation88_spill] sm:$0xff] }
 0xd03   :  { %v17010_v8 = vadd.f32 %v5368_v41, %v5367_v31  ;;  %v18631_v31 = vld [vmem:[#allocation56_spill] sm:$0xff]  ;;  %v18632_v41 = vld [vmem:[#allocation58_spill] sm:$0xff] }
 0xd05   :  { %v5382_v58 = vrot.slane %v17010_v8, %v16279_v47  ;;  %v17016_v22 = vrot.slane %v17010_v8, %v16273_v60 }
 0xd07   :  { %5449 = vmatprep.mubr.f32.mxu0 %v5382_v58  ;;  %5520 = vmatprep.mubr.f32.mxu1 %v5382_v58 }
 0xd08   :  { %5450 = vmatmul.mubr.f32.vlgmr.msra.gmra.mrb[32].mxu0 %v17016_v22  ;;  %5521 = vmatmul.mubr.f32.vlgmr.msra.gmra.mrb[34].mxu1 %v17016_v22 }
 0xd09   :  { %12393 = vmatpush1.bf16.msra.mxu0 %v18275_v42  ;;  %5591 = vmatprep.mubr.f32.mxu0 %v5382_v58  ;;  %v18633_v58 = vld [vmem:[#allocation89_spill] sm:$0xff] }
 0xd0a   :  { %12395 = vmatprep.subr.bf16.mxu0 %v15945_v15  ;;  %12457 = vmatpush1.bf16.msra.mxu1 %v15380_v40 }
 0xd0b   :  { %12459 = vmatprep.subr.bf16.mxu1 %v18276_v28 }
 0xd0d   :  { %12397 = vmatpush1.bf16.msra.mxu0 %v15963_v2 }
 0xd0e   :  { %12399 = vmatprep.subr.bf16.mxu0 %v18277_v18  ;;  %12461 = vmatpush1.bf16.msra.mxu1 %v15417_v62 }
 0xd0f   :  { %12463 = vmatprep.subr.bf16.mxu1 %v18278_v7 }
 0xd11   :  { %12401 = vmatpush1.bf16.msra.mxu0 %v15984_v0 }
 0xd12   :  { %12403 = vmatprep.subr.bf16.mxu0 %v18279_v13  ;;  %12465 = vmatpush1.bf16.msra.mxu1 %v15456_v5 }
 0xd13   :  { %12467 = vmatprep.subr.bf16.mxu1 %v18280_v57 }
 0xd15   :  { %12405 = vmatpush1.bf16.msra.mxu0 %v16004_v38 }
 0xd16   :  { %12407 = vmatprep.subr.bf16.mxu0 %v18281_v14  ;;  %12469 = vmatpush1.bf16.msra.mxu1 %v15493_v27 }
 0xd17   :  { %12471 = vmatprep.subr.bf16.mxu1 %v18282_v16 }
 0xd19   :  { %12409 = vmatpush1.bf16.msra.mxu0 %v16024_v45 }
 0xd1a   :  { %12411 = vmatprep.subr.bf16.mxu0 %v18283_v36  ;;  %12473 = vmatpush1.bf16.msra.mxu1 %v15529_v39 }
 0xd1b   :  { %12475 = vmatprep.subr.bf16.mxu1 %v18284_v19 }
 0xd1d   :  { %12413 = vmatpush1.bf16.msra.mxu0 %v16044_v52 }
 0xd1e   :  { %12415 = vmatprep.subr.bf16.mxu0 %v18285_v54  ;;  %12477 = vmatpush1.bf16.msra.mxu1 %v15565_v3 }
 0xd1f   :  { %12479 = vmatprep.subr.bf16.mxu1 %v18286_v24 }
 0xd21   :  { %12417 = vmatpush1.bf16.msra.mxu0 %v18331_v50 }
 0xd22   :  { %12419 = vmatprep.subr.bf16.mxu0 %v18287_v34  ;;  %12481 = vmatpush1.bf16.msra.mxu1 %v18332_v51 }
 0xd23   :  { %12483 = vmatprep.subr.bf16.mxu1 %v18288_v12 }
 0xd25   :  { %12421 = vmatpush1.bf16.msra.mxu0 %v18333_v23 }
 0xd26   :  { %12423 = vmatprep.subr.bf16.mxu0 %v18289_v46  ;;  %12485 = vmatpush1.bf16.msra.mxu1 %v18334_v48 }
 0xd27   :  { %12487 = vmatprep.subr.bf16.mxu1 %v18290_v25 }
 0xd29   :  { %12425 = vmatpush1.bf16.msra.mxu0 %v18335_v1 }
 0xd2a   :  { %12427 = vmatprep.subr.bf16.mxu0 %v18291_v6  ;;  %12489 = vmatpush1.bf16.msra.mxu1 %v18336_v9 }
 0xd2b   :  { %12491 = vmatprep.subr.bf16.mxu1 %v18292_v10 }
 0xd2d   :  { %12429 = vmatpush1.bf16.msra.mxu0 %v18337_v30 }
 0xd2e   :  { %12431 = vmatprep.subr.bf16.mxu0 %v18293_v56  ;;  %12493 = vmatpush1.bf16.msra.mxu1 %v18338_v32 }
 0xd2f   :  { %12495 = vmatprep.subr.bf16.mxu1 %v18616_v29 }
 0xd31   :  { %12433 = vmatpush1.bf16.msra.mxu0 %v18617_v11 }
 0xd32   :  { %12435 = vmatprep.subr.bf16.mxu0 %v18618_v53  ;;  %12497 = vmatpush1.bf16.msra.mxu1 %v18619_v55 }
 0xd33   :  { %12499 = vmatprep.subr.bf16.mxu1 %v18620_v44 }
 0xd35   :  { %12437 = vmatpush1.bf16.msra.mxu0 %v18621_v26  ;;  %v5371_v26 = vld [vmem:[#allocation4 + $0x7] ss:$8 sm:$0xf] }
 0xd36   :  { %12439 = vmatprep.subr.bf16.mxu0 %v18622_v33  ;;  %12501 = vmatpush1.bf16.msra.mxu1 %v18623_v61  ;;  %v18634_v61 = vld [vmem:[#allocation90_spill] sm:$0xff] }
 0xd37   :  { %12503 = vmatprep.subr.bf16.mxu1 %v18624_v4  ;;  %v18635_v4 = vld [vmem:[#allocation60_spill] sm:$0xff] }
 0xd39   :  { %12441 = vmatpush1.bf16.msra.mxu0 %v18625_v20  ;;  %v18636_v20 = vld [vmem:[#allocation62_spill] sm:$0xff] }
 0xd3a   :  { %12443 = vmatprep.subr.bf16.mxu0 %v18626_v35  ;;  %12505 = vmatpush1.bf16.msra.mxu1 %v18627_v59  ;;  %v18637_v35 = vld [vmem:[#allocation91_spill] sm:$0xff]  ;;  %v18638_v59 = vld [vmem:[#allocation9_spill] sm:$0xff] }
 0xd3b   :  { %12507 = vmatprep.subr.bf16.mxu1 %v18628_v43  ;;  %v18639_v43 = vld [vmem:[#allocation64_spill] sm:$0xff] }
 0xd3d   :  { %12445 = vmatpush1.bf16.msra.mxu0 %v18629_v37  ;;  %v18640_v37 = vld [vmem:[#allocation66_spill] sm:$0xff] }
 0xd3e   :  { %12447 = vmatprep.subr.bf16.mxu0 %v18630_v17  ;;  %12509 = vmatpush1.bf16.msra.mxu1 %v18631_v31  ;;  %v18641_v31 = vld [vmem:[#allocation10_spill] sm:$0xff] }
 0xd3f   :  { %12511 = vmatprep.subr.bf16.mxu1 %v18632_v41  ;;  %v18642_v41 = vld [vmem:[#allocation12_spill] sm:$0xff] }
 0xd41   :  { %12449 = vmatpush1.bf16.msra.mxu0 %v18633_v58  ;;  %v18643_v58 = vld [vmem:[#allocation13_spill] sm:$0xff] }
 0xd42   :  { %12451 = vmatprep.subr.bf16.mxu0 %v18634_v61  ;;  %12513 = vmatpush1.bf16.msra.mxu1 %v18635_v4  ;;  %v18644_v61 = vld [vmem:[#allocation15_spill] sm:$0xff]  ;;  %v18645_v4 = vld [vmem:[#allocation16_spill] sm:$0xff] }
 0xd43   :  { %12515 = vmatprep.subr.bf16.mxu1 %v18636_v20  ;;  %v18646_v20 = vld [vmem:[#allocation18_spill] sm:$0xff] }
 0xd45   :  { %12453 = vmatpush1.bf16.msra.mxu0 %v18637_v35  ;;  %v18647_v35 = vld [vmem:[#allocation19_spill] sm:$0xff] }
 0xd46   :  { %12519 = vmatprep.subr.bf16.mxu0 %v18638_v59  ;;  %12517 = vmatpush1.bf16.msra.mxu1 %v18639_v43  ;;  %v18648_v59 = vld [vmem:[#allocation21_spill] sm:$0xff]  ;;  %v18649_v43 = vld [vmem:[#allocation22_spill] sm:$0xff] }
 0xd47   :  { %12583 = vmatprep.subr.bf16.mxu1 %v18640_v37  ;;  %v18650_v37 = vld [vmem:[#allocation24_spill] sm:$0xff] }
 0xd48   :  { %5592 = vmatmul.mubr.f32.vlgmr.msra.gmra.mrb[34].mxu0 %v17016_v22  ;;  %v18651_v22 = vld [vmem:[#allocation25_spill] sm:$0xff] }
 0xd49   :  { %12521 = vmatpush1.bf16.msra.mxu0 %v18641_v31  ;;  %v18652_v31 = vld [vmem:[#allocation27_spill] sm:$0xff] }
 0xd4a   :  { %12523 = vmatprep.subr.bf16.mxu0 %v18642_v41  ;;  %v18653_v41 = vld [vmem:[#allocation29_spill] sm:$0xff] }
 0xd4d   :  { %12525 = vmatpush1.bf16.msra.mxu0 %v18643_v58  ;;  %v18654_v58 = vld [vmem:[#allocation31_spill] sm:$0xff] }
 0xd4e   :  { %12527 = vmatprep.subr.bf16.mxu0 %v18644_v61  ;;  %v18655_v61 = vld [vmem:[#allocation33_spill] sm:$0xff] }
 0xd51   :  { %12529 = vmatpush1.bf16.msra.mxu0 %v18645_v4  ;;  %v18656_v4 = vld [vmem:[#allocation35_spill] sm:$0xff] }
 0xd52   :  { %12531 = vmatprep.subr.bf16.mxu0 %v18646_v20  ;;  %v18657_v20 = vld [vmem:[#allocation37_spill] sm:$0xff] }
 0xd55   :  { %12533 = vmatpush1.bf16.msra.mxu0 %v18647_v35  ;;  %v18658_v35 = vld [vmem:[#allocation39_spill] sm:$0xff] }
 0xd56   :  { %12535 = vmatprep.subr.bf16.mxu0 %v18648_v59  ;;  %v18659_v59 = vld [vmem:[#allocation41_spill] sm:$0xff] }
 0xd59   :  { %12537 = vmatpush1.bf16.msra.mxu0 %v18649_v43  ;;  %v18660_v43 = vld [vmem:[#allocation43_spill] sm:$0xff] }
 0xd5a   :  { %12539 = vmatprep.subr.bf16.mxu0 %v18650_v37  ;;  %v18661_v37 = vld [vmem:[#allocation45_spill] sm:$0xff] }
 0xd5d   :  { %12541 = vmatpush1.bf16.msra.mxu0 %v18651_v22  ;;  %v18662_v22 = vld [vmem:[#allocation47_spill] sm:$0xff] }
 0xd5e   :  { %12543 = vmatprep.subr.bf16.mxu0 %v18652_v31  ;;  %v18663_v31 = vld [vmem:[#allocation49_spill] sm:$0xff] }
 0xd61   :  { %12545 = vmatpush1.bf16.msra.mxu0 %v18653_v41  ;;  %v18664_v41 = vld [vmem:[#allocation51_spill] sm:$0xff] }
 0xd62   :  { %12547 = vmatprep.subr.bf16.mxu0 %v18654_v58  ;;  %v18665_v58 = vld [vmem:[#allocation53_spill] sm:$0xff] }
 0xd65   :  { %12549 = vmatpush1.bf16.msra.mxu0 %v18655_v61  ;;  %v18666_v61 = vld [vmem:[#allocation55_spill] sm:$0xff] }
 0xd66   :  { %12551 = vmatprep.subr.bf16.mxu0 %v18656_v4  ;;  %v18667_v4 = vld [vmem:[#allocation57_spill] sm:$0xff] }
 0xd69   :  { %12553 = vmatpush1.bf16.msra.mxu0 %v18657_v20  ;;  %v18668_v20 = vld [vmem:[#allocation59_spill] sm:$0xff] }
 0xd6a   :  { %12555 = vmatprep.subr.bf16.mxu0 %v18658_v35  ;;  %v18669_v35 = vld [vmem:[#allocation61_spill] sm:$0xff] }
 0xd6d   :  { %12557 = vmatpush1.bf16.msra.mxu0 %v18659_v59  ;;  %v18670_v59 = vld [vmem:[#allocation63_spill] sm:$0xff] }
 0xd6e   :  { %12559 = vmatprep.subr.bf16.mxu0 %v18660_v43  ;;  %v18671_v43 = vld [vmem:[#allocation65_spill] sm:$0xff] }
 0xd71   :  { %12561 = vmatpush1.bf16.msra.mxu0 %v18661_v37  ;;  %v18672_v37 = vld [vmem:[#allocation8_spill] sm:$0xff] }
 0xd72   :  { %12563 = vmatprep.subr.bf16.mxu0 %v18662_v22 }
 0xd75   :  { %12565 = vmatpush1.bf16.msra.mxu0 %v18663_v31 }
 0xd76   :  { %12567 = vmatprep.subr.bf16.mxu0 %v18664_v41 }
 0xd79   :  { %12569 = vmatpush1.bf16.msra.mxu0 %v18665_v58 }
 0xd7a   :  { %12571 = vmatprep.subr.bf16.mxu0 %v18666_v61 }
 0xd7d   :  { %12573 = vmatpush1.bf16.msra.mxu0 %v18667_v4  ;;  %v5372_v4 = vld [vmem:[#allocation4 + $0x7] ss:$8 sm:$0x30] }
 0xd7e   :  { %12575 = vmatprep.subr.bf16.mxu0 %v18668_v20  ;;  %v5373_v44 = vor.u32 %v5372_v4, %v5371_v26 }
 0xd81   :  { %12577 = vmatpush1.bf16.msra.mxu0 %v18669_v35 }
 0xd82   :  { %12579 = vmatprep.subr.bf16.mxu0 %v18670_v59 }
 0xd85   :  { %12581 = vmatpush1.bf16.msra.mxu0 %v18671_v43 }
 0xd86   :  { %12647 = vmatprep.subr.bf16.mxu0 %v18672_v37  ;;  %v5624_v37 = vrot.slane %v5373_v44, 2 }
 0xddb   :  { %v5451_v22 = vpop.f32.mrb[32].mxu0  ;;  %v5522_v31 = vpop.f32.mrb[34].mxu1 }
 0xddc   :  { %v5453_v17 = vpop.f32.mrb[33].mxu0  ;;  %v5524_v41 = vpop.f32.mrb[35].mxu1 }
 0xddd   :  { %v5600_v33 = vcombine.low %v5451_v22, %v5453_v17  ;;  %v5628_v58 = vcombine.low %v5522_v31, %v5524_v41 }
 0xddf   :  { %v5607_v61 = vrot.slane %v5600_v33, %v16295_v21  ;;  %v5635_v59 = vrot.slane %v5628_v58, %v16295_v21 }
 0xde1   :  { %v5614_v20 = vrot.slane %v5607_v61, %v16295_v21  ;;  %v5642_v43 = vrot.slane %v5635_v59, %v16295_v21 }
 0xde3   :  { %v5616_v35 = vadd.f32 %v5614_v20, %v5373_v44  ;;  %v5644_v53 = vadd.f32 %v5642_v43, %v5624_v37  ;;  %v5672_v43 = vrot.slane %v5373_v44, 4  ;;  %v18674_v44 = vld [vmem:[#allocation81_spill] sm:$0xff] }
 0xde5   :  { %v8196_v55 = vmul.f32 -1.442695, %v5616_v35  ;;  %v8197_v11 = vmul.f32 -1.442695, %v5644_v53 }
 0xde7   :  { %14111 = vpow2.f32 %v8196_v55 }
 0xde8   :  { %14113 = vpow2.f32 %v8197_v11 }
 0xdf1   :  { %v14112_v29 = vpop.eup %14111 }
 0xdf2   :  { %v5620_v17 = vadd.f32 1.0, %v14112_v29  ;;  %v14114_v61 = vpop.eup %14113 }
 0xdf3   :  { %v5648_v20 = vadd.f32 1.0, %v14114_v61  ;;  %v18676_v61 = vld [vmem:[#allocation44_spill] sm:$0xff] }
 0xdf4   :  { %14115 = vrcp.f32 %v5620_v17 }
 0xdf5   :  { %14117 = vrcp.f32 %v5648_v20  ;;  %v18678_v20 = vld [vmem:[#allocation83_spill] sm:$0xff] }
 0xdfe   :  { %v14116_v59 = vpop.eup %14115 }
 0xdff   :  { %v14118_v29 = vpop.eup %14117 }
 0xe00   :  { %v5676_v37 = vsub.f32 1.0, %v14118_v29  ;;  %v5678_v17 = vmul.f32 %v14118_v29, %v17010_v8  ;;  %v18673_v8 = vld [vmem:[#allocation42_spill] sm:$0xff] }
 0xe01   :  { %v18685_v29 = vld [vmem:[#allocation54_spill] sm:$0xff] }
 0xe1b   :  { %v5593_v33 = vpop.f32.mrb[34].mxu0 }
 0xe1c   :  { %v5651_v31 = vadd.f32 %v5593_v33, %v16305_v63  ;;  %v5595_v41 = vpop.f32.mrb[35].mxu0 }
 0xe1d   :  { %v5652_v26 = vadd.f32 %v5595_v41, %v16308_v49 }
 0xe1f   :  { %v5655_v4 = vcombine.low %v5651_v31, %v5652_v26  ;;  %v18675_v26 = vld [vmem:[#allocation82_spill] sm:$0xff] }
 0xe21   :  { %v5662_v35 = vrot.slane %v5655_v4, %v16295_v21  ;;  %v18677_v4 = vld [vmem:[#allocation46_spill] sm:$0xff] }
 0xe23   :  { %v5669_v55 = vrot.slane %v5662_v35, %v16295_v21  ;;  %v18679_v35 = vld [vmem:[#allocation84_spill] sm:$0xff] }
 0xe25   :  { %v5671_v53 = vmul.f32 %v14116_v59, %v5669_v55  ;;  %v18680_v55 = vld [vmem:[#allocation48_spill] sm:$0xff]  ;;  %v18681_v59 = vld [vmem:[#allocation50_spill] sm:$0xff] }
 0xe27   :  { %v5674_v11 = vadd.f32 %v5672_v43, %v5671_v53  ;;  %v18682_v53 = vld [vmem:[#allocation85_spill] sm:$0xff]  ;;  %v18683_v43 = vld [vmem:[#allocation86_spill] sm:$0xff] }
 0xe29   :  { %14119 = vtanh.f32 %v5674_v11  ;;  %v18684_v11 = vld [vmem:[#allocation52_spill] sm:$0xff] }
 0xe33   :  { %v14120_v58 = vpop.eup %14119 }
 0xe34   :  { %v5677_v22 = vmul.f32 %v14120_v58, %v5676_v37  ;;  %v18686_v37 = vld [vmem:[#allocation87_spill] sm:$0xff]  ;;  %v18687_v58 = vld [vmem:[#allocation88_spill] sm:$0xff] }
 0xe36   :  { %v17126_v33 = vadd.f32 %v5678_v17, %v5677_v22  ;;  %v18688_v22 = vld [vmem:[#allocation56_spill] sm:$0xff]  ;;  %v18689_v17 = vld [vmem:[#allocation58_spill] sm:$0xff] }
 0xe38   :  { %v5692_v31 = vrot.slane %v17126_v33, %v16279_v47  ;;  %v17132_v41 = vrot.slane %v17126_v33, %v16273_v60 }
 0xe3a   :  { %5759 = vmatprep.mubr.f32.mxu1 %v5692_v31  ;;  %5830 = vmatprep.mubr.f32.mxu0 %v5692_v31 }
 0xe3b   :  { %5760 = vmatmul.mubr.f32.vlgmr.msra.gmra.mrb[36].mxu1 %v17132_v41  ;;  %5831 = vmatmul.mubr.f32.vlgmr.msra.gmra.mrb[36].mxu0 %v17132_v41 }
 0xe3c   :  { %12585 = vmatpush1.bf16.msra.mxu1 %v18275_v42  ;;  %5901 = vmatprep.mubr.f32.mxu1 %v5692_v31  ;;  %v18690_v31 = vld [vmem:[#allocation89_spill] sm:$0xff] }
 0xe3d   :  { %12587 = vmatprep.subr.bf16.mxu1 %v15945_v15  ;;  %12649 = vmatpush1.bf16.msra.mxu0 %v15380_v40 }
 0xe3e   :  { %12651 = vmatprep.subr.bf16.mxu0 %v18276_v28 }
 0xe40   :  { %12589 = vmatpush1.bf16.msra.mxu1 %v15963_v2 }
 0xe41   :  { %12591 = vmatprep.subr.bf16.mxu1 %v18277_v18  ;;  %12653 = vmatpush1.bf16.msra.mxu0 %v15417_v62 }
 0xe42   :  { %12655 = vmatprep.subr.bf16.mxu0 %v18278_v7 }
 0xe44   :  { %12593 = vmatpush1.bf16.msra.mxu1 %v15984_v0 }
 0xe45   :  { %12595 = vmatprep.subr.bf16.mxu1 %v18279_v13  ;;  %12657 = vmatpush1.bf16.msra.mxu0 %v15456_v5 }
 0xe46   :  { %12659 = vmatprep.subr.bf16.mxu0 %v18280_v57 }
 0xe48   :  { %12597 = vmatpush1.bf16.msra.mxu1 %v16004_v38 }
 0xe49   :  { %12599 = vmatprep.subr.bf16.mxu1 %v18281_v14  ;;  %12661 = vmatpush1.bf16.msra.mxu0 %v15493_v27 }
 0xe4a   :  { %12663 = vmatprep.subr.bf16.mxu0 %v18282_v16 }
 0xe4c   :  { %12601 = vmatpush1.bf16.msra.mxu1 %v16024_v45 }
 0xe4d   :  { %12603 = vmatprep.subr.bf16.mxu1 %v18283_v36  ;;  %12665 = vmatpush1.bf16.msra.mxu0 %v15529_v39 }
 0xe4e   :  { %12667 = vmatprep.subr.bf16.mxu0 %v18284_v19 }
 0xe50   :  { %12605 = vmatpush1.bf16.msra.mxu1 %v16044_v52 }
 0xe51   :  { %12607 = vmatprep.subr.bf16.mxu1 %v18285_v54  ;;  %12669 = vmatpush1.bf16.msra.mxu0 %v15565_v3 }
 0xe52   :  { %12671 = vmatprep.subr.bf16.mxu0 %v18286_v24 }
 0xe54   :  { %12609 = vmatpush1.bf16.msra.mxu1 %v18331_v50 }
 0xe55   :  { %12611 = vmatprep.subr.bf16.mxu1 %v18287_v34  ;;  %12673 = vmatpush1.bf16.msra.mxu0 %v18332_v51 }
 0xe56   :  { %12675 = vmatprep.subr.bf16.mxu0 %v18288_v12 }
 0xe58   :  { %12613 = vmatpush1.bf16.msra.mxu1 %v18333_v23 }
 0xe59   :  { %12615 = vmatprep.subr.bf16.mxu1 %v18289_v46  ;;  %12677 = vmatpush1.bf16.msra.mxu0 %v18334_v48 }
 0xe5a   :  { %12679 = vmatprep.subr.bf16.mxu0 %v18290_v25 }
 0xe5c   :  { %12617 = vmatpush1.bf16.msra.mxu1 %v18335_v1 }
 0xe5d   :  { %12619 = vmatprep.subr.bf16.mxu1 %v18291_v6  ;;  %12681 = vmatpush1.bf16.msra.mxu0 %v18336_v9 }
 0xe5e   :  { %12683 = vmatprep.subr.bf16.mxu0 %v18292_v10 }
 0xe60   :  { %12621 = vmatpush1.bf16.msra.mxu1 %v18337_v30 }
 0xe61   :  { %12623 = vmatprep.subr.bf16.mxu1 %v18293_v56  ;;  %12685 = vmatpush1.bf16.msra.mxu0 %v18338_v32 }
 0xe62   :  { %12687 = vmatprep.subr.bf16.mxu0 %v18673_v8 }
 0xe64   :  { %12625 = vmatpush1.bf16.msra.mxu1 %v18674_v44 }
 0xe65   :  { %12627 = vmatprep.subr.bf16.mxu1 %v18675_v26  ;;  %12689 = vmatpush1.bf16.msra.mxu0 %v18676_v61 }
 0xe66   :  { %12691 = vmatprep.subr.bf16.mxu0 %v18677_v4 }
 0xe68   :  { %12629 = vmatpush1.bf16.msra.mxu1 %v18678_v20  ;;  %v5681_v20 = vld [vmem:[#allocation4 + $0x30] ss:$8 sm:$0xf] }
 0xe69   :  { %12631 = vmatprep.subr.bf16.mxu1 %v18679_v35  ;;  %12693 = vmatpush1.bf16.msra.mxu0 %v18680_v55  ;;  %v18691_v55 = vld [vmem:[#allocation90_spill] sm:$0xff] }
 0xe6a   :  { %12695 = vmatprep.subr.bf16.mxu0 %v18681_v59  ;;  %v18692_v59 = vld [vmem:[#allocation60_spill] sm:$0xff] }
 0xe6c   :  { %12633 = vmatpush1.bf16.msra.mxu1 %v18682_v53  ;;  %v18693_v53 = vld [vmem:[#allocation62_spill] sm:$0xff] }
 0xe6d   :  { %12635 = vmatprep.subr.bf16.mxu1 %v18683_v43  ;;  %12697 = vmatpush1.bf16.msra.mxu0 %v18684_v11  ;;  %v18694_v43 = vld [vmem:[#allocation91_spill] sm:$0xff]  ;;  %v18695_v11 = vld [vmem:[#allocation9_spill] sm:$0xff] }
 0xe6e   :  { %12699 = vmatprep.subr.bf16.mxu0 %v18685_v29  ;;  %v18696_v29 = vld [vmem:[#allocation64_spill] sm:$0xff] }
 0xe70   :  { %12637 = vmatpush1.bf16.msra.mxu1 %v18686_v37  ;;  %v18697_v37 = vld [vmem:[#allocation66_spill] sm:$0xff] }
 0xe71   :  { %12639 = vmatprep.subr.bf16.mxu1 %v18687_v58  ;;  %12701 = vmatpush1.bf16.msra.mxu0 %v18688_v22  ;;  %v18698_v22 = vld [vmem:[#allocation10_spill] sm:$0xff] }
 0xe72   :  { %12703 = vmatprep.subr.bf16.mxu0 %v18689_v17  ;;  %v18699_v17 = vld [vmem:[#allocation12_spill] sm:$0xff] }
 0xe74   :  { %12641 = vmatpush1.bf16.msra.mxu1 %v18690_v31  ;;  %v18700_v31 = vld [vmem:[#allocation13_spill] sm:$0xff] }
 0xe75   :  { %12643 = vmatprep.subr.bf16.mxu1 %v18691_v55  ;;  %12705 = vmatpush1.bf16.msra.mxu0 %v18692_v59  ;;  %v18701_v55 = vld [vmem:[#allocation15_spill] sm:$0xff]  ;;  %v18702_v59 = vld [vmem:[#allocation16_spill] sm:$0xff] }
 0xe76   :  { %12707 = vmatprep.subr.bf16.mxu0 %v18693_v53  ;;  %v18703_v53 = vld [vmem:[#allocation18_spill] sm:$0xff] }
 0xe78   :  { %12645 = vmatpush1.bf16.msra.mxu1 %v18694_v43  ;;  %v18704_v43 = vld [vmem:[#allocation19_spill] sm:$0xff] }
 0xe79   :  { %12711 = vmatprep.subr.bf16.mxu1 %v18695_v11  ;;  %12709 = vmatpush1.bf16.msra.mxu0 %v18696_v29  ;;  %v18705_v11 = vld [vmem:[#allocation21_spill] sm:$0xff]  ;;  %v18706_v29 = vld [vmem:[#allocation22_spill] sm:$0xff] }
 0xe7a   :  { %12775 = vmatprep.subr.bf16.mxu0 %v18697_v37  ;;  %v18707_v37 = vld [vmem:[#allocation24_spill] sm:$0xff] }
 0xe7b   :  { %5902 = vmatmul.mubr.f32.vlgmr.msra.gmra.mrb[38].mxu1 %v17132_v41  ;;  %v18708_v41 = vld [vmem:[#allocation25_spill] sm:$0xff] }
 0xe7c   :  { %12713 = vmatpush1.bf16.msra.mxu1 %v18698_v22  ;;  %v18709_v22 = vld [vmem:[#allocation27_spill] sm:$0xff] }
 0xe7d   :  { %12715 = vmatprep.subr.bf16.mxu1 %v18699_v17  ;;  %v18710_v17 = vld [vmem:[#allocation29_spill] sm:$0xff] }
 0xe80   :  { %12717 = vmatpush1.bf16.msra.mxu1 %v18700_v31  ;;  %v18711_v31 = vld [vmem:[#allocation31_spill] sm:$0xff] }
 0xe81   :  { %12719 = vmatprep.subr.bf16.mxu1 %v18701_v55  ;;  %v18712_v55 = vld [vmem:[#allocation33_spill] sm:$0xff] }
 0xe84   :  { %12721 = vmatpush1.bf16.msra.mxu1 %v18702_v59  ;;  %v18713_v59 = vld [vmem:[#allocation35_spill] sm:$0xff] }
 0xe85   :  { %12723 = vmatprep.subr.bf16.mxu1 %v18703_v53  ;;  %v18714_v53 = vld [vmem:[#allocation37_spill] sm:$0xff] }
 0xe88   :  { %12725 = vmatpush1.bf16.msra.mxu1 %v18704_v43  ;;  %v18715_v43 = vld [vmem:[#allocation39_spill] sm:$0xff] }
 0xe89   :  { %12727 = vmatprep.subr.bf16.mxu1 %v18705_v11  ;;  %v18716_v11 = vld [vmem:[#allocation41_spill] sm:$0xff] }
 0xe8c   :  { %12729 = vmatpush1.bf16.msra.mxu1 %v18706_v29  ;;  %v18717_v29 = vld [vmem:[#allocation43_spill] sm:$0xff] }
 0xe8d   :  { %12731 = vmatprep.subr.bf16.mxu1 %v18707_v37  ;;  %v18718_v37 = vld [vmem:[#allocation45_spill] sm:$0xff] }
 0xe90   :  { %12733 = vmatpush1.bf16.msra.mxu1 %v18708_v41  ;;  %v18719_v41 = vld [vmem:[#allocation47_spill] sm:$0xff] }
 0xe91   :  { %12735 = vmatprep.subr.bf16.mxu1 %v18709_v22  ;;  %v18720_v22 = vld [vmem:[#allocation49_spill] sm:$0xff] }
 0xe94   :  { %12737 = vmatpush1.bf16.msra.mxu1 %v18710_v17  ;;  %v18721_v17 = vld [vmem:[#allocation51_spill] sm:$0xff] }
 0xe95   :  { %12739 = vmatprep.subr.bf16.mxu1 %v18711_v31  ;;  %v18722_v31 = vld [vmem:[#allocation53_spill] sm:$0xff] }
 0xe98   :  { %12741 = vmatpush1.bf16.msra.mxu1 %v18712_v55  ;;  %v18723_v55 = vld [vmem:[#allocation55_spill] sm:$0xff] }
 0xe99   :  { %12743 = vmatprep.subr.bf16.mxu1 %v18713_v59  ;;  %v18724_v59 = vld [vmem:[#allocation57_spill] sm:$0xff] }
 0xe9c   :  { %12745 = vmatpush1.bf16.msra.mxu1 %v18714_v53  ;;  %v18725_v53 = vld [vmem:[#allocation59_spill] sm:$0xff] }
 0xe9d   :  { %12747 = vmatprep.subr.bf16.mxu1 %v18715_v43  ;;  %v18726_v43 = vld [vmem:[#allocation61_spill] sm:$0xff] }
 0xea0   :  { %12749 = vmatpush1.bf16.msra.mxu1 %v18716_v11  ;;  %v18727_v11 = vld [vmem:[#allocation63_spill] sm:$0xff] }
 0xea1   :  { %12751 = vmatprep.subr.bf16.mxu1 %v18717_v29  ;;  %v18728_v29 = vld [vmem:[#allocation65_spill] sm:$0xff] }
 0xea4   :  { %12753 = vmatpush1.bf16.msra.mxu1 %v18718_v37  ;;  %v18729_v37 = vld [vmem:[#allocation8_spill] sm:$0xff] }
 0xea5   :  { %12755 = vmatprep.subr.bf16.mxu1 %v18719_v41 }
 0xea8   :  { %12757 = vmatpush1.bf16.msra.mxu1 %v18720_v22 }
 0xea9   :  { %12759 = vmatprep.subr.bf16.mxu1 %v18721_v17 }
 0xeac   :  { %12761 = vmatpush1.bf16.msra.mxu1 %v18722_v31 }
 0xead   :  { %12763 = vmatprep.subr.bf16.mxu1 %v18723_v55 }
 0xeb0   :  { %12765 = vmatpush1.bf16.msra.mxu1 %v18724_v59 }
 0xeb1   :  { %12767 = vmatprep.subr.bf16.mxu1 %v18725_v53  ;;  %v5682_v53 = vld [vmem:[#allocation4 + $0x30] ss:$8 sm:$0x30] }
 0xeb2   :  { %v5683_v4 = vor.u32 %v5682_v53, %v5681_v20 }
 0xeb4   :  { %12769 = vmatpush1.bf16.msra.mxu1 %v18726_v43 }
 0xeb5   :  { %12771 = vmatprep.subr.bf16.mxu1 %v18727_v11 }
 0xeb8   :  { %12773 = vmatpush1.bf16.msra.mxu1 %v18728_v29 }
 0xeb9   :  { %12839 = vmatprep.subr.bf16.mxu1 %v18729_v37  ;;  %v5934_v37 = vrot.slane %v5683_v4, 2 }
 0xf0e   :  { %v5761_v41 = vpop.f32.mrb[36].mxu1  ;;  %v5832_v22 = vpop.f32.mrb[36].mxu0 }
 0xf0f   :  { %v5763_v58 = vpop.f32.mrb[37].mxu1  ;;  %v5834_v17 = vpop.f32.mrb[37].mxu0 }
 0xf10   :  { %v5910_v35 = vcombine.low %v5761_v41, %v5763_v58  ;;  %v5938_v31 = vcombine.low %v5832_v22, %v5834_v17 }
 0xf12   :  { %v5917_v55 = vrot.slane %v5910_v35, %v16295_v21  ;;  %v5945_v11 = vrot.slane %v5938_v31, %v16295_v21 }
 0xf14   :  { %v5924_v59 = vrot.slane %v5917_v55, %v16295_v21  ;;  %v5952_v29 = vrot.slane %v5945_v11, %v16295_v21 }
 0xf16   :  { %v5926_v43 = vadd.f32 %v5924_v59, %v5683_v4  ;;  %v5954_v26 = vadd.f32 %v5952_v29, %v5934_v37  ;;  %v5982_v29 = vrot.slane %v5683_v4, 4  ;;  %v18731_v4 = vld [vmem:[#allocation81_spill] sm:$0xff] }
 0xf18   :  { %v8198_v61 = vmul.f32 -1.442695, %v5926_v43  ;;  %v8199_v44 = vmul.f32 -1.442695, %v5954_v26 }
 0xf1a   :  { %14121 = vpow2.f32 %v8198_v61 }
 0xf1b   :  { %14123 = vpow2.f32 %v8199_v44 }
 0xf24   :  { %v14122_v8 = vpop.eup %14121 }
 0xf25   :  { %v5930_v58 = vadd.f32 1.0, %v14122_v8  ;;  %v14124_v59 = vpop.eup %14123 }
 0xf26   :  { %v5958_v17 = vadd.f32 1.0, %v14124_v59  ;;  %v18733_v59 = vld [vmem:[#allocation44_spill] sm:$0xff] }
 0xf27   :  { %14125 = vrcp.f32 %v5930_v58 }
 0xf28   :  { %14127 = vrcp.f32 %v5958_v17  ;;  %v18735_v17 = vld [vmem:[#allocation83_spill] sm:$0xff] }
 0xf31   :  { %v14126_v11 = vpop.eup %14125 }
 0xf32   :  { %v14128_v8 = vpop.eup %14127 }
 0xf33   :  { %v5986_v37 = vsub.f32 1.0, %v14128_v8  ;;  %v5988_v58 = vmul.f32 %v14128_v8, %v17126_v33  ;;  %v18730_v33 = vld [vmem:[#allocation42_spill] sm:$0xff] }
 0xf34   :  { %v18742_v8 = vld [vmem:[#allocation54_spill] sm:$0xff] }
 0xf4e   :  { %v5903_v35 = vpop.f32.mrb[38].mxu1 }
 0xf4f   :  { %v5961_v22 = vadd.f32 %v5903_v35, %v16305_v63  ;;  %v5905_v55 = vpop.f32.mrb[39].mxu1 }
 0xf50   :  { %v5962_v20 = vadd.f32 %v5905_v55, %v16308_v49 }
 0xf52   :  { %v5965_v53 = vcombine.low %v5961_v22, %v5962_v20  ;;  %v18732_v20 = vld [vmem:[#allocation82_spill] sm:$0xff] }
 0xf54   :  { %v5972_v43 = vrot.slane %v5965_v53, %v16295_v21  ;;  %v18734_v53 = vld [vmem:[#allocation46_spill] sm:$0xff] }
 0xf56   :  { %v5979_v61 = vrot.slane %v5972_v43, %v16295_v21  ;;  %v18736_v43 = vld [vmem:[#allocation84_spill] sm:$0xff] }
 0xf58   :  { %v5981_v26 = vmul.f32 %v14126_v11, %v5979_v61  ;;  %v18737_v61 = vld [vmem:[#allocation48_spill] sm:$0xff]  ;;  %v18738_v11 = vld [vmem:[#allocation50_spill] sm:$0xff] }
 0xf5a   :  { %v5984_v44 = vadd.f32 %v5982_v29, %v5981_v26  ;;  %v18739_v26 = vld [vmem:[#allocation85_spill] sm:$0xff]  ;;  %v18740_v29 = vld [vmem:[#allocation86_spill] sm:$0xff] }
 0xf5c   :  { %14129 = vtanh.f32 %v5984_v44  ;;  %v18741_v44 = vld [vmem:[#allocation52_spill] sm:$0xff] }
 0xf66   :  { %v14130_v31 = vpop.eup %14129 }
 0xf67   :  { %v5987_v41 = vmul.f32 %v14130_v31, %v5986_v37  ;;  %v18743_v37 = vld [vmem:[#allocation87_spill] sm:$0xff]  ;;  %v18744_v31 = vld [vmem:[#allocation88_spill] sm:$0xff] }
 0xf69   :  { %v17242_v35 = vadd.f32 %v5988_v58, %v5987_v41  ;;  %v18745_v41 = vld [vmem:[#allocation56_spill] sm:$0xff]  ;;  %v18746_v58 = vld [vmem:[#allocation58_spill] sm:$0xff] }
 0xf6b   :  { %v6002_v22 = vrot.slane %v17242_v35, %v16279_v47  ;;  %v17248_v55 = vrot.slane %v17242_v35, %v16273_v60 }
 0xf6d   :  { %6069 = vmatprep.mubr.f32.mxu0 %v6002_v22  ;;  %6140 = vmatprep.mubr.f32.mxu1 %v6002_v22 }
 0xf6e   :  { %6070 = vmatmul.mubr.f32.vlgmr.msra.gmra.mrb[38].mxu0 %v17248_v55  ;;  %6141 = vmatmul.mubr.f32.vlgmr.msra.gmra.mrb[40].mxu1 %v17248_v55 }
 0xf6f   :  { %12777 = vmatpush1.bf16.msra.mxu0 %v18275_v42  ;;  %6211 = vmatprep.mubr.f32.mxu0 %v6002_v22  ;;  %v18747_v22 = vld [vmem:[#allocation89_spill] sm:$0xff] }
 0xf70   :  { %12779 = vmatprep.subr.bf16.mxu0 %v15945_v15  ;;  %12841 = vmatpush1.bf16.msra.mxu1 %v15380_v40 }
 0xf71   :  { %12843 = vmatprep.subr.bf16.mxu1 %v18276_v28 }
 0xf73   :  { %12781 = vmatpush1.bf16.msra.mxu0 %v15963_v2 }
 0xf74   :  { %12783 = vmatprep.subr.bf16.mxu0 %v18277_v18  ;;  %12845 = vmatpush1.bf16.msra.mxu1 %v15417_v62 }
 0xf75   :  { %12847 = vmatprep.subr.bf16.mxu1 %v18278_v7 }
 0xf77   :  { %12785 = vmatpush1.bf16.msra.mxu0 %v15984_v0 }
 0xf78   :  { %12787 = vmatprep.subr.bf16.mxu0 %v18279_v13  ;;  %12849 = vmatpush1.bf16.msra.mxu1 %v15456_v5 }
 0xf79   :  { %12851 = vmatprep.subr.bf16.mxu1 %v18280_v57 }
 0xf7b   :  { %12789 = vmatpush1.bf16.msra.mxu0 %v16004_v38 }
 0xf7c   :  { %12791 = vmatprep.subr.bf16.mxu0 %v18281_v14  ;;  %12853 = vmatpush1.bf16.msra.mxu1 %v15493_v27 }
 0xf7d   :  { %12855 = vmatprep.subr.bf16.mxu1 %v18282_v16 }
 0xf7f   :  { %12793 = vmatpush1.bf16.msra.mxu0 %v16024_v45 }
 0xf80   :  { %12795 = vmatprep.subr.bf16.mxu0 %v18283_v36  ;;  %12857 = vmatpush1.bf16.msra.mxu1 %v15529_v39 }
 0xf81   :  { %12859 = vmatprep.subr.bf16.mxu1 %v18284_v19 }
 0xf83   :  { %12797 = vmatpush1.bf16.msra.mxu0 %v16044_v52 }
 0xf84   :  { %12799 = vmatprep.subr.bf16.mxu0 %v18285_v54  ;;  %12861 = vmatpush1.bf16.msra.mxu1 %v15565_v3 }
 0xf85   :  { %12863 = vmatprep.subr.bf16.mxu1 %v18286_v24 }
 0xf87   :  { %12801 = vmatpush1.bf16.msra.mxu0 %v18331_v50 }
 0xf88   :  { %12803 = vmatprep.subr.bf16.mxu0 %v18287_v34  ;;  %12865 = vmatpush1.bf16.msra.mxu1 %v18332_v51 }
 0xf89   :  { %12867 = vmatprep.subr.bf16.mxu1 %v18288_v12 }
 0xf8b   :  { %12805 = vmatpush1.bf16.msra.mxu0 %v18333_v23 }
 0xf8c   :  { %12807 = vmatprep.subr.bf16.mxu0 %v18289_v46  ;;  %12869 = vmatpush1.bf16.msra.mxu1 %v18334_v48 }
 0xf8d   :  { %12871 = vmatprep.subr.bf16.mxu1 %v18290_v25 }
 0xf8f   :  { %12809 = vmatpush1.bf16.msra.mxu0 %v18335_v1 }
 0xf90   :  { %12811 = vmatprep.subr.bf16.mxu0 %v18291_v6  ;;  %12873 = vmatpush1.bf16.msra.mxu1 %v18336_v9 }
 0xf91   :  { %12875 = vmatprep.subr.bf16.mxu1 %v18292_v10 }
 0xf93   :  { %12813 = vmatpush1.bf16.msra.mxu0 %v18337_v30 }
 0xf94   :  { %12815 = vmatprep.subr.bf16.mxu0 %v18293_v56  ;;  %12877 = vmatpush1.bf16.msra.mxu1 %v18338_v32 }
 0xf95   :  { %12879 = vmatprep.subr.bf16.mxu1 %v18730_v33 }
 0xf97   :  { %12817 = vmatpush1.bf16.msra.mxu0 %v18731_v4 }
 0xf98   :  { %12819 = vmatprep.subr.bf16.mxu0 %v18732_v20  ;;  %12881 = vmatpush1.bf16.msra.mxu1 %v18733_v59 }
 0xf99   :  { %12883 = vmatprep.subr.bf16.mxu1 %v18734_v53 }
 0xf9b   :  { %12821 = vmatpush1.bf16.msra.mxu0 %v18735_v17  ;;  %v5991_v17 = vld [vmem:[#allocation4 + $0x31] ss:$8 sm:$0xf] }
 0xf9c   :  { %12823 = vmatprep.subr.bf16.mxu0 %v18736_v43  ;;  %12885 = vmatpush1.bf16.msra.mxu1 %v18737_v61  ;;  %v18748_v61 = vld [vmem:[#allocation90_spill] sm:$0xff] }
 0xf9d   :  { %12887 = vmatprep.subr.bf16.mxu1 %v18738_v11  ;;  %v18749_v11 = vld [vmem:[#allocation60_spill] sm:$0xff] }
 0xf9f   :  { %12825 = vmatpush1.bf16.msra.mxu0 %v18739_v26  ;;  %v18750_v26 = vld [vmem:[#allocation62_spill] sm:$0xff] }
 0xfa0   :  { %12827 = vmatprep.subr.bf16.mxu0 %v18740_v29  ;;  %12889 = vmatpush1.bf16.msra.mxu1 %v18741_v44  ;;  %v18751_v29 = vld [vmem:[#allocation91_spill] sm:$0xff]  ;;  %v18752_v44 = vld [vmem:[#allocation9_spill] sm:$0xff] }
 0xfa1   :  { %12891 = vmatprep.subr.bf16.mxu1 %v18742_v8  ;;  %v18753_v8 = vld [vmem:[#allocation64_spill] sm:$0xff] }
 0xfa3   :  { %12829 = vmatpush1.bf16.msra.mxu0 %v18743_v37  ;;  %v18754_v37 = vld [vmem:[#allocation66_spill] sm:$0xff] }
 0xfa4   :  { %12831 = vmatprep.subr.bf16.mxu0 %v18744_v31  ;;  %12893 = vmatpush1.bf16.msra.mxu1 %v18745_v41  ;;  %v18755_v41 = vld [vmem:[#allocation10_spill] sm:$0xff] }
 0xfa5   :  { %12895 = vmatprep.subr.bf16.mxu1 %v18746_v58  ;;  %v18756_v58 = vld [vmem:[#allocation12_spill] sm:$0xff] }
 0xfa7   :  { %12833 = vmatpush1.bf16.msra.mxu0 %v18747_v22  ;;  %v18757_v22 = vld [vmem:[#allocation13_spill] sm:$0xff] }
 0xfa8   :  { %12835 = vmatprep.subr.bf16.mxu0 %v18748_v61  ;;  %12897 = vmatpush1.bf16.msra.mxu1 %v18749_v11  ;;  %v18758_v61 = vld [vmem:[#allocation15_spill] sm:$0xff]  ;;  %v18759_v11 = vld [vmem:[#allocation16_spill] sm:$0xff] }
 0xfa9   :  { %12899 = vmatprep.subr.bf16.mxu1 %v18750_v26  ;;  %v18760_v26 = vld [vmem:[#allocation18_spill] sm:$0xff] }
 0xfab   :  { %12837 = vmatpush1.bf16.msra.mxu0 %v18751_v29  ;;  %v18761_v29 = vld [vmem:[#allocation19_spill] sm:$0xff] }
 0xfac   :  { %12903 = vmatprep.subr.bf16.mxu0 %v18752_v44  ;;  %12901 = vmatpush1.bf16.msra.mxu1 %v18753_v8  ;;  %v18762_v44 = vld [vmem:[#allocation21_spill] sm:$0xff]  ;;  %v18763_v8 = vld [vmem:[#allocation22_spill] sm:$0xff] }
 0xfad   :  { %12967 = vmatprep.subr.bf16.mxu1 %v18754_v37  ;;  %v18764_v37 = vld [vmem:[#allocation24_spill] sm:$0xff] }
 0xfae   :  { %6212 = vmatmul.mubr.f32.vlgmr.msra.gmra.mrb[40].mxu0 %v17248_v55  ;;  %v18765_v55 = vld [vmem:[#allocation25_spill] sm:$0xff] }
 0xfaf   :  { %12905 = vmatpush1.bf16.msra.mxu0 %v18755_v41  ;;  %v18766_v41 = vld [vmem:[#allocation27_spill] sm:$0xff] }
 0xfb0   :  { %12907 = vmatprep.subr.bf16.mxu0 %v18756_v58  ;;  %v18767_v58 = vld [vmem:[#allocation29_spill] sm:$0xff] }
 0xfb3   :  { %12909 = vmatpush1.bf16.msra.mxu0 %v18757_v22  ;;  %v18768_v22 = vld [vmem:[#allocation31_spill] sm:$0xff] }
 0xfb4   :  { %12911 = vmatprep.subr.bf16.mxu0 %v18758_v61  ;;  %v18769_v61 = vld [vmem:[#allocation33_spill] sm:$0xff] }
 0xfb7   :  { %12913 = vmatpush1.bf16.msra.mxu0 %v18759_v11  ;;  %v18770_v11 = vld [vmem:[#allocation35_spill] sm:$0xff] }
 0xfb8   :  { %12915 = vmatprep.subr.bf16.mxu0 %v18760_v26  ;;  %v18771_v26 = vld [vmem:[#allocation37_spill] sm:$0xff] }
 0xfbb   :  { %12917 = vmatpush1.bf16.msra.mxu0 %v18761_v29  ;;  %v18772_v29 = vld [vmem:[#allocation39_spill] sm:$0xff] }
 0xfbc   :  { %12919 = vmatprep.subr.bf16.mxu0 %v18762_v44  ;;  %v18773_v44 = vld [vmem:[#allocation41_spill] sm:$0xff] }
 0xfbf   :  { %12921 = vmatpush1.bf16.msra.mxu0 %v18763_v8  ;;  %v18774_v8 = vld [vmem:[#allocation43_spill] sm:$0xff] }
 0xfc0   :  { %12923 = vmatprep.subr.bf16.mxu0 %v18764_v37  ;;  %v18775_v37 = vld [vmem:[#allocation45_spill] sm:$0xff] }
 0xfc3   :  { %12925 = vmatpush1.bf16.msra.mxu0 %v18765_v55  ;;  %v18776_v55 = vld [vmem:[#allocation47_spill] sm:$0xff] }
 0xfc4   :  { %12927 = vmatprep.subr.bf16.mxu0 %v18766_v41  ;;  %v18777_v41 = vld [vmem:[#allocation49_spill] sm:$0xff] }
 0xfc7   :  { %12929 = vmatpush1.bf16.msra.mxu0 %v18767_v58  ;;  %v18778_v58 = vld [vmem:[#allocation51_spill] sm:$0xff] }
 0xfc8   :  { %12931 = vmatprep.subr.bf16.mxu0 %v18768_v22  ;;  %v18779_v22 = vld [vmem:[#allocation53_spill] sm:$0xff] }
 0xfcb   :  { %12933 = vmatpush1.bf16.msra.mxu0 %v18769_v61  ;;  %v18780_v61 = vld [vmem:[#allocation55_spill] sm:$0xff] }
 0xfcc   :  { %12935 = vmatprep.subr.bf16.mxu0 %v18770_v11  ;;  %v18781_v11 = vld [vmem:[#allocation57_spill] sm:$0xff] }
 0xfcf   :  { %12937 = vmatpush1.bf16.msra.mxu0 %v18771_v26  ;;  %v18782_v26 = vld [vmem:[#allocation59_spill] sm:$0xff] }
 0xfd0   :  { %12939 = vmatprep.subr.bf16.mxu0 %v18772_v29  ;;  %v18783_v29 = vld [vmem:[#allocation61_spill] sm:$0xff] }
 0xfd3   :  { %12941 = vmatpush1.bf16.msra.mxu0 %v18773_v44  ;;  %v18784_v44 = vld [vmem:[#allocation63_spill] sm:$0xff] }
 0xfd4   :  { %12943 = vmatprep.subr.bf16.mxu0 %v18774_v8  ;;  %v18785_v8 = vld [vmem:[#allocation65_spill] sm:$0xff] }
 0xfd7   :  { %12945 = vmatpush1.bf16.msra.mxu0 %v18775_v37  ;;  %v18786_v37 = vld [vmem:[#allocation8_spill] sm:$0xff] }
 0xfd8   :  { %12947 = vmatprep.subr.bf16.mxu0 %v18776_v55 }
 0xfdb   :  { %12949 = vmatpush1.bf16.msra.mxu0 %v18777_v41 }
 0xfdc   :  { %12951 = vmatprep.subr.bf16.mxu0 %v18778_v58 }
 0xfdf   :  { %12953 = vmatpush1.bf16.msra.mxu0 %v18779_v22 }
 0xfe0   :  { %12955 = vmatprep.subr.bf16.mxu0 %v18780_v61 }
 0xfe3   :  { %12957 = vmatpush1.bf16.msra.mxu0 %v18781_v11 }
 0xfe4   :  { %12959 = vmatprep.subr.bf16.mxu0 %v18782_v26  ;;  %v5992_v26 = vld [vmem:[#allocation4 + $0x31] ss:$8 sm:$0x30] }
 0xfe5   :  { %v5993_v53 = vor.u32 %v5992_v26, %v5991_v17 }
 0xfe7   :  { %12961 = vmatpush1.bf16.msra.mxu0 %v18783_v29 }
 0xfe8   :  { %12963 = vmatprep.subr.bf16.mxu0 %v18784_v44 }
 0xfeb   :  { %12965 = vmatpush1.bf16.msra.mxu0 %v18785_v8 }
 0xfec   :  { %13031 = vmatprep.subr.bf16.mxu0 %v18786_v37  ;;  %v6244_v37 = vrot.slane %v5993_v53, 2 }
0x1041   :  { %v6071_v55 = vpop.f32.mrb[38].mxu0  ;;  %v6142_v41 = vpop.f32.mrb[40].mxu1 }
0x1042   :  { %v6073_v31 = vpop.f32.mrb[39].mxu0  ;;  %v6144_v58 = vpop.f32.mrb[41].mxu1 }
0x1043   :  { %v6220_v43 = vcombine.low %v6071_v55, %v6073_v31  ;;  %v6248_v22 = vcombine.low %v6142_v41, %v6144_v58 }
0x1045   :  { %v6227_v61 = vrot.slane %v6220_v43, %v16295_v21  ;;  %v6255_v44 = vrot.slane %v6248_v22, %v16295_v21 }
0x1047   :  { %v6234_v11 = vrot.slane %v6227_v61, %v16295_v21  ;;  %v6262_v8 = vrot.slane %v6255_v44, %v16295_v21 }
0x1049   :  { %v6236_v29 = vadd.f32 %v6234_v11, %v5993_v53  ;;  %v6264_v20 = vadd.f32 %v6262_v8, %v6244_v37  ;;  %v6292_v8 = vrot.slane %v5993_v53, 4  ;;  %v18788_v53 = vld [vmem:[#allocation81_spill] sm:$0xff] }
0x104b   :  { %v8200_v59 = vmul.f32 -1.442695, %v6236_v29  ;;  %v8201_v4 = vmul.f32 -1.442695, %v6264_v20 }
0x104d   :  { %14131 = vpow2.f32 %v8200_v59 }
0x104e   :  { %14133 = vpow2.f32 %v8201_v4 }
0x1057   :  { %v14132_v33 = vpop.eup %14131 }
0x1058   :  { %v6240_v31 = vadd.f32 1.0, %v14132_v33  ;;  %v14134_v11 = vpop.eup %14133 }
0x1059   :  { %v6268_v58 = vadd.f32 1.0, %v14134_v11  ;;  %v18790_v11 = vld [vmem:[#allocation44_spill] sm:$0xff] }
0x105a   :  { %14135 = vrcp.f32 %v6240_v31 }
0x105b   :  { %14137 = vrcp.f32 %v6268_v58  ;;  %v18792_v58 = vld [vmem:[#allocation83_spill] sm:$0xff] }
0x1064   :  { %v14136_v44 = vpop.eup %14135 }
0x1065   :  { %v14138_v33 = vpop.eup %14137 }
0x1066   :  { %v6296_v37 = vsub.f32 1.0, %v14138_v33  ;;  %v6298_v31 = vmul.f32 %v14138_v33, %v17242_v35  ;;  %v18787_v35 = vld [vmem:[#allocation42_spill] sm:$0xff] }
0x1067   :  { %v18799_v33 = vld [vmem:[#allocation54_spill] sm:$0xff] }
0x1081   :  { %v6213_v43 = vpop.f32.mrb[40].mxu0 }
0x1082   :  { %v6271_v41 = vadd.f32 %v6213_v43, %v16305_v63  ;;  %v6215_v61 = vpop.f32.mrb[41].mxu0 }
0x1083   :  { %v6272_v17 = vadd.f32 %v6215_v61, %v16308_v49 }
0x1085   :  { %v6275_v26 = vcombine.low %v6271_v41, %v6272_v17  ;;  %v18789_v17 = vld [vmem:[#allocation82_spill] sm:$0xff] }
0x1087   :  { %v6282_v29 = vrot.slane %v6275_v26, %v16295_v21  ;;  %v18791_v26 = vld [vmem:[#allocation46_spill] sm:$0xff] }
0x1089   :  { %v6289_v59 = vrot.slane %v6282_v29, %v16295_v21  ;;  %v18793_v29 = vld [vmem:[#allocation84_spill] sm:$0xff] }
0x108b   :  { %v6291_v20 = vmul.f32 %v14136_v44, %v6289_v59  ;;  %v18794_v59 = vld [vmem:[#allocation48_spill] sm:$0xff]  ;;  %v18795_v44 = vld [vmem:[#allocation50_spill] sm:$0xff] }
0x108d   :  { %v6294_v4 = vadd.f32 %v6292_v8, %v6291_v20  ;;  %v18796_v20 = vld [vmem:[#allocation85_spill] sm:$0xff]  ;;  %v18797_v8 = vld [vmem:[#allocation86_spill] sm:$0xff] }
0x108f   :  { %14139 = vtanh.f32 %v6294_v4  ;;  %v18798_v4 = vld [vmem:[#allocation52_spill] sm:$0xff] }
0x1099   :  { %v14140_v22 = vpop.eup %14139 }
0x109a   :  { %v6297_v55 = vmul.f32 %v14140_v22, %v6296_v37  ;;  %v18800_v37 = vld [vmem:[#allocation87_spill] sm:$0xff]  ;;  %v18801_v22 = vld [vmem:[#allocation88_spill] sm:$0xff] }
0x109c   :  { %v17358_v43 = vadd.f32 %v6298_v31, %v6297_v55  ;;  %v18802_v55 = vld [vmem:[#allocation56_spill] sm:$0xff]  ;;  %v18803_v31 = vld [vmem:[#allocation58_spill] sm:$0xff] }
0x109e   :  { %v6312_v41 = vrot.slane %v17358_v43, %v16279_v47  ;;  %v17364_v61 = vrot.slane %v17358_v43, %v16273_v60 }
0x10a0   :  { %6379 = vmatprep.mubr.f32.mxu1 %v6312_v41  ;;  %6450 = vmatprep.mubr.f32.mxu0 %v6312_v41 }
0x10a1   :  { %6380 = vmatmul.mubr.f32.vlgmr.msra.gmra.mrb[42].mxu1 %v17364_v61  ;;  %6451 = vmatmul.mubr.f32.vlgmr.msra.gmra.mrb[42].mxu0 %v17364_v61 }
0x10a2   :  { %12969 = vmatpush1.bf16.msra.mxu1 %v18275_v42  ;;  %6521 = vmatprep.mubr.f32.mxu1 %v6312_v41  ;;  %v18804_v41 = vld [vmem:[#allocation89_spill] sm:$0xff] }
0x10a3   :  { %12971 = vmatprep.subr.bf16.mxu1 %v15945_v15  ;;  %13033 = vmatpush1.bf16.msra.mxu0 %v15380_v40 }
0x10a4   :  { %13035 = vmatprep.subr.bf16.mxu0 %v18276_v28 }
0x10a6   :  { %12973 = vmatpush1.bf16.msra.mxu1 %v15963_v2 }
0x10a7   :  { %12975 = vmatprep.subr.bf16.mxu1 %v18277_v18  ;;  %13037 = vmatpush1.bf16.msra.mxu0 %v15417_v62 }
0x10a8   :  { %13039 = vmatprep.subr.bf16.mxu0 %v18278_v7 }
0x10aa   :  { %12977 = vmatpush1.bf16.msra.mxu1 %v15984_v0 }
0x10ab   :  { %12979 = vmatprep.subr.bf16.mxu1 %v18279_v13  ;;  %13041 = vmatpush1.bf16.msra.mxu0 %v15456_v5 }
0x10ac   :  { %13043 = vmatprep.subr.bf16.mxu0 %v18280_v57 }
0x10ae   :  { %12981 = vmatpush1.bf16.msra.mxu1 %v16004_v38 }
0x10af   :  { %12983 = vmatprep.subr.bf16.mxu1 %v18281_v14  ;;  %13045 = vmatpush1.bf16.msra.mxu0 %v15493_v27 }
0x10b0   :  { %13047 = vmatprep.subr.bf16.mxu0 %v18282_v16 }
0x10b2   :  { %12985 = vmatpush1.bf16.msra.mxu1 %v16024_v45 }
0x10b3   :  { %12987 = vmatprep.subr.bf16.mxu1 %v18283_v36  ;;  %13049 = vmatpush1.bf16.msra.mxu0 %v15529_v39 }
0x10b4   :  { %13051 = vmatprep.subr.bf16.mxu0 %v18284_v19 }
0x10b6   :  { %12989 = vmatpush1.bf16.msra.mxu1 %v16044_v52 }
0x10b7   :  { %12991 = vmatprep.subr.bf16.mxu1 %v18285_v54  ;;  %13053 = vmatpush1.bf16.msra.mxu0 %v15565_v3 }
0x10b8   :  { %13055 = vmatprep.subr.bf16.mxu0 %v18286_v24 }
0x10ba   :  { %12993 = vmatpush1.bf16.msra.mxu1 %v18331_v50 }
0x10bb   :  { %12995 = vmatprep.subr.bf16.mxu1 %v18287_v34  ;;  %13057 = vmatpush1.bf16.msra.mxu0 %v18332_v51 }
0x10bc   :  { %13059 = vmatprep.subr.bf16.mxu0 %v18288_v12 }
0x10be   :  { %12997 = vmatpush1.bf16.msra.mxu1 %v18333_v23 }
0x10bf   :  { %12999 = vmatprep.subr.bf16.mxu1 %v18289_v46  ;;  %13061 = vmatpush1.bf16.msra.mxu0 %v18334_v48 }
0x10c0   :  { %13063 = vmatprep.subr.bf16.mxu0 %v18290_v25 }
0x10c2   :  { %13001 = vmatpush1.bf16.msra.mxu1 %v18335_v1 }
0x10c3   :  { %13003 = vmatprep.subr.bf16.mxu1 %v18291_v6  ;;  %13065 = vmatpush1.bf16.msra.mxu0 %v18336_v9 }
0x10c4   :  { %13067 = vmatprep.subr.bf16.mxu0 %v18292_v10 }
0x10c6   :  { %13005 = vmatpush1.bf16.msra.mxu1 %v18337_v30 }
0x10c7   :  { %13007 = vmatprep.subr.bf16.mxu1 %v18293_v56  ;;  %13069 = vmatpush1.bf16.msra.mxu0 %v18338_v32 }
0x10c8   :  { %13071 = vmatprep.subr.bf16.mxu0 %v18787_v35 }
0x10ca   :  { %13009 = vmatpush1.bf16.msra.mxu1 %v18788_v53 }
0x10cb   :  { %13011 = vmatprep.subr.bf16.mxu1 %v18789_v17  ;;  %13073 = vmatpush1.bf16.msra.mxu0 %v18790_v11 }
0x10cc   :  { %13075 = vmatprep.subr.bf16.mxu0 %v18791_v26 }
0x10ce   :  { %13013 = vmatpush1.bf16.msra.mxu1 %v18792_v58  ;;  %v6301_v58 = vld [vmem:[#allocation4 + $0x32] ss:$8 sm:$0xf] }
0x10cf   :  { %13015 = vmatprep.subr.bf16.mxu1 %v18793_v29  ;;  %13077 = vmatpush1.bf16.msra.mxu0 %v18794_v59  ;;  %v18805_v59 = vld [vmem:[#allocation90_spill] sm:$0xff] }
0x10d0   :  { %13079 = vmatprep.subr.bf16.mxu0 %v18795_v44  ;;  %v18806_v44 = vld [vmem:[#allocation60_spill] sm:$0xff] }
0x10d2   :  { %13017 = vmatpush1.bf16.msra.mxu1 %v18796_v20  ;;  %v18807_v20 = vld [vmem:[#allocation62_spill] sm:$0xff] }
0x10d3   :  { %13019 = vmatprep.subr.bf16.mxu1 %v18797_v8  ;;  %13081 = vmatpush1.bf16.msra.mxu0 %v18798_v4  ;;  %v18808_v8 = vld [vmem:[#allocation91_spill] sm:$0xff]  ;;  %v18809_v4 = vld [vmem:[#allocation9_spill] sm:$0xff] }
0x10d4   :  { %13083 = vmatprep.subr.bf16.mxu0 %v18799_v33  ;;  %v18810_v33 = vld [vmem:[#allocation64_spill] sm:$0xff] }
0x10d6   :  { %13021 = vmatpush1.bf16.msra.mxu1 %v18800_v37  ;;  %v18811_v37 = vld [vmem:[#allocation66_spill] sm:$0xff] }
0x10d7   :  { %13023 = vmatprep.subr.bf16.mxu1 %v18801_v22  ;;  %13085 = vmatpush1.bf16.msra.mxu0 %v18802_v55  ;;  %v18812_v55 = vld [vmem:[#allocation10_spill] sm:$0xff] }
0x10d8   :  { %13087 = vmatprep.subr.bf16.mxu0 %v18803_v31  ;;  %v18813_v31 = vld [vmem:[#allocation12_spill] sm:$0xff] }
0x10da   :  { %13025 = vmatpush1.bf16.msra.mxu1 %v18804_v41  ;;  %v18814_v41 = vld [vmem:[#allocation13_spill] sm:$0xff] }
0x10db   :  { %13027 = vmatprep.subr.bf16.mxu1 %v18805_v59  ;;  %13089 = vmatpush1.bf16.msra.mxu0 %v18806_v44  ;;  %v18815_v59 = vld [vmem:[#allocation15_spill] sm:$0xff]  ;;  %v18816_v44 = vld [vmem:[#allocation16_spill] sm:$0xff] }
0x10dc   :  { %13091 = vmatprep.subr.bf16.mxu0 %v18807_v20  ;;  %v18817_v20 = vld [vmem:[#allocation18_spill] sm:$0xff] }
0x10de   :  { %13029 = vmatpush1.bf16.msra.mxu1 %v18808_v8  ;;  %v18818_v8 = vld [vmem:[#allocation19_spill] sm:$0xff] }
0x10df   :  { %13095 = vmatprep.subr.bf16.mxu1 %v18809_v4  ;;  %13093 = vmatpush1.bf16.msra.mxu0 %v18810_v33  ;;  %v18819_v4 = vld [vmem:[#allocation21_spill] sm:$0xff]  ;;  %v18820_v33 = vld [vmem:[#allocation22_spill] sm:$0xff] }
0x10e0   :  { %13159 = vmatprep.subr.bf16.mxu0 %v18811_v37  ;;  %v18821_v37 = vld [vmem:[#allocation24_spill] sm:$0xff] }
0x10e1   :  { %6522 = vmatmul.mubr.f32.vlgmr.msra.gmra.mrb[44].mxu1 %v17364_v61  ;;  %v18822_v61 = vld [vmem:[#allocation25_spill] sm:$0xff] }
0x10e2   :  { %13097 = vmatpush1.bf16.msra.mxu1 %v18812_v55  ;;  %v18823_v55 = vld [vmem:[#allocation27_spill] sm:$0xff] }
0x10e3   :  { %13099 = vmatprep.subr.bf16.mxu1 %v18813_v31  ;;  %v18824_v31 = vld [vmem:[#allocation29_spill] sm:$0xff] }
0x10e6   :  { %13101 = vmatpush1.bf16.msra.mxu1 %v18814_v41  ;;  %v18825_v41 = vld [vmem:[#allocation31_spill] sm:$0xff] }
0x10e7   :  { %13103 = vmatprep.subr.bf16.mxu1 %v18815_v59  ;;  %v18826_v59 = vld [vmem:[#allocation33_spill] sm:$0xff] }
0x10ea   :  { %13105 = vmatpush1.bf16.msra.mxu1 %v18816_v44  ;;  %v18827_v44 = vld [vmem:[#allocation35_spill] sm:$0xff] }
0x10eb   :  { %13107 = vmatprep.subr.bf16.mxu1 %v18817_v20  ;;  %v18828_v20 = vld [vmem:[#allocation37_spill] sm:$0xff] }
0x10ee   :  { %13109 = vmatpush1.bf16.msra.mxu1 %v18818_v8  ;;  %v18829_v8 = vld [vmem:[#allocation39_spill] sm:$0xff] }
0x10ef   :  { %13111 = vmatprep.subr.bf16.mxu1 %v18819_v4  ;;  %v18830_v4 = vld [vmem:[#allocation41_spill] sm:$0xff] }
0x10f2   :  { %13113 = vmatpush1.bf16.msra.mxu1 %v18820_v33  ;;  %v18831_v33 = vld [vmem:[#allocation43_spill] sm:$0xff] }
0x10f3   :  { %13115 = vmatprep.subr.bf16.mxu1 %v18821_v37  ;;  %v18832_v37 = vld [vmem:[#allocation45_spill] sm:$0xff] }
0x10f6   :  { %13117 = vmatpush1.bf16.msra.mxu1 %v18822_v61  ;;  %v18833_v61 = vld [vmem:[#allocation47_spill] sm:$0xff] }
0x10f7   :  { %13119 = vmatprep.subr.bf16.mxu1 %v18823_v55  ;;  %v18834_v55 = vld [vmem:[#allocation49_spill] sm:$0xff] }
0x10fa   :  { %13121 = vmatpush1.bf16.msra.mxu1 %v18824_v31  ;;  %v18835_v31 = vld [vmem:[#allocation51_spill] sm:$0xff] }
0x10fb   :  { %13123 = vmatprep.subr.bf16.mxu1 %v18825_v41  ;;  %v18836_v41 = vld [vmem:[#allocation53_spill] sm:$0xff] }
0x10fe   :  { %13125 = vmatpush1.bf16.msra.mxu1 %v18826_v59  ;;  %v18837_v59 = vld [vmem:[#allocation55_spill] sm:$0xff] }
0x10ff   :  { %13127 = vmatprep.subr.bf16.mxu1 %v18827_v44  ;;  %v18838_v44 = vld [vmem:[#allocation57_spill] sm:$0xff] }
0x1102   :  { %13129 = vmatpush1.bf16.msra.mxu1 %v18828_v20  ;;  %v18839_v20 = vld [vmem:[#allocation59_spill] sm:$0xff] }
0x1103   :  { %13131 = vmatprep.subr.bf16.mxu1 %v18829_v8  ;;  %v18840_v8 = vld [vmem:[#allocation61_spill] sm:$0xff] }
0x1106   :  { %13133 = vmatpush1.bf16.msra.mxu1 %v18830_v4  ;;  %v18841_v4 = vld [vmem:[#allocation63_spill] sm:$0xff] }
0x1107   :  { %13135 = vmatprep.subr.bf16.mxu1 %v18831_v33  ;;  %v18842_v33 = vld [vmem:[#allocation65_spill] sm:$0xff] }
0x110a   :  { %13137 = vmatpush1.bf16.msra.mxu1 %v18832_v37  ;;  %v18843_v37 = vld [vmem:[#allocation8_spill] sm:$0xff] }
0x110b   :  { %13139 = vmatprep.subr.bf16.mxu1 %v18833_v61 }
0x110e   :  { %13141 = vmatpush1.bf16.msra.mxu1 %v18834_v55 }
0x110f   :  { %13143 = vmatprep.subr.bf16.mxu1 %v18835_v31 }
0x1112   :  { %13145 = vmatpush1.bf16.msra.mxu1 %v18836_v41 }
0x1113   :  { %13147 = vmatprep.subr.bf16.mxu1 %v18837_v59 }
0x1116   :  { %13149 = vmatpush1.bf16.msra.mxu1 %v18838_v44 }
0x1117   :  { %13151 = vmatprep.subr.bf16.mxu1 %v18839_v20  ;;  %v6302_v20 = vld [vmem:[#allocation4 + $0x32] ss:$8 sm:$0x30] }
0x1118   :  { %v6303_v26 = vor.u32 %v6302_v20, %v6301_v58 }
0x111a   :  { %13153 = vmatpush1.bf16.msra.mxu1 %v18840_v8 }
0x111b   :  { %13155 = vmatprep.subr.bf16.mxu1 %v18841_v4 }
0x111e   :  { %13157 = vmatpush1.bf16.msra.mxu1 %v18842_v33 }
0x111f   :  { %13223 = vmatprep.subr.bf16.mxu1 %v18843_v37  ;;  %v6554_v37 = vrot.slane %v6303_v26, 2 }
0x1174   :  { %v6381_v61 = vpop.f32.mrb[42].mxu1  ;;  %v6452_v55 = vpop.f32.mrb[42].mxu0 }
0x1175   :  { %v6383_v22 = vpop.f32.mrb[43].mxu1  ;;  %v6454_v31 = vpop.f32.mrb[43].mxu0 }
0x1176   :  { %v6530_v29 = vcombine.low %v6381_v61, %v6383_v22  ;;  %v6558_v41 = vcombine.low %v6452_v55, %v6454_v31 }
0x1178   :  { %v6537_v59 = vrot.slane %v6530_v29, %v16295_v21  ;;  %v6565_v4 = vrot.slane %v6558_v41, %v16295_v21 }
0x117a   :  { %v6544_v44 = vrot.slane %v6537_v59, %v16295_v21  ;;  %v6572_v33 = vrot.slane %v6565_v4, %v16295_v21 }
0x117c   :  { %v6546_v8 = vadd.f32 %v6544_v44, %v6303_v26  ;;  %v6574_v17 = vadd.f32 %v6572_v33, %v6554_v37  ;;  %v6602_v33 = vrot.slane %v6303_v26, 4  ;;  %v18845_v26 = vld [vmem:[#allocation81_spill] sm:$0xff] }
0x117e   :  { %v8202_v11 = vmul.f32 -1.442695, %v6546_v8  ;;  %v8203_v53 = vmul.f32 -1.442695, %v6574_v17 }
0x1180   :  { %14141 = vpow2.f32 %v8202_v11 }
0x1181   :  { %14143 = vpow2.f32 %v8203_v53 }
0x118a   :  { %v14142_v35 = vpop.eup %14141 }
0x118b   :  { %v6550_v22 = vadd.f32 1.0, %v14142_v35  ;;  %v14144_v44 = vpop.eup %14143 }
0x118c   :  { %v6578_v31 = vadd.f32 1.0, %v14144_v44  ;;  %v18847_v44 = vld [vmem:[#allocation44_spill] sm:$0xff] }
0x118d   :  { %14145 = vrcp.f32 %v6550_v22 }
0x118e   :  { %14147 = vrcp.f32 %v6578_v31  ;;  %v18849_v31 = vld [vmem:[#allocation83_spill] sm:$0xff] }
0x1197   :  { %v14146_v4 = vpop.eup %14145 }
0x1198   :  { %v14148_v35 = vpop.eup %14147 }
0x1199   :  { %v6606_v37 = vsub.f32 1.0, %v14148_v35  ;;  %v6608_v22 = vmul.f32 %v14148_v35, %v17358_v43  ;;  %v18844_v43 = vld [vmem:[#allocation42_spill] sm:$0xff] }
0x119a   :  { %v18856_v35 = vld [vmem:[#allocation54_spill] sm:$0xff] }
0x11b4   :  { %v6523_v29 = vpop.f32.mrb[44].mxu1 }
0x11b5   :  { %v6581_v55 = vadd.f32 %v6523_v29, %v16305_v63  ;;  %v6525_v59 = vpop.f32.mrb[45].mxu1 }
0x11b6   :  { %v6582_v58 = vadd.f32 %v6525_v59, %v16308_v49 }
0x11b8   :  { %v6585_v20 = vcombine.low %v6581_v55, %v6582_v58  ;;  %v18846_v58 = vld [vmem:[#allocation82_spill] sm:$0xff] }
0x11ba   :  { %v6592_v8 = vrot.slane %v6585_v20, %v16295_v21  ;;  %v18848_v20 = vld [vmem:[#allocation46_spill] sm:$0xff] }
0x11bc   :  { %v6599_v11 = vrot.slane %v6592_v8, %v16295_v21  ;;  %v18850_v8 = vld [vmem:[#allocation84_spill] sm:$0xff] }
0x11be   :  { %v6601_v17 = vmul.f32 %v14146_v4, %v6599_v11  ;;  %v18851_v11 = vld [vmem:[#allocation48_spill] sm:$0xff]  ;;  %v18852_v4 = vld [vmem:[#allocation50_spill] sm:$0xff] }
0x11c0   :  { %v6604_v53 = vadd.f32 %v6602_v33, %v6601_v17  ;;  %v18853_v17 = vld [vmem:[#allocation85_spill] sm:$0xff]  ;;  %v18854_v33 = vld [vmem:[#allocation86_spill] sm:$0xff] }
0x11c2   :  { %14149 = vtanh.f32 %v6604_v53  ;;  %v18855_v53 = vld [vmem:[#allocation52_spill] sm:$0xff] }
0x11cc   :  { %v14150_v41 = vpop.eup %14149 }
0x11cd   :  { %v6607_v61 = vmul.f32 %v14150_v41, %v6606_v37  ;;  %v18857_v37 = vld [vmem:[#allocation87_spill] sm:$0xff]  ;;  %v18858_v41 = vld [vmem:[#allocation88_spill] sm:$0xff] }
0x11cf   :  { %v17474_v29 = vadd.f32 %v6608_v22, %v6607_v61  ;;  %v18859_v61 = vld [vmem:[#allocation56_spill] sm:$0xff]  ;;  %v18860_v22 = vld [vmem:[#allocation58_spill] sm:$0xff] }
0x11d1   :  { %v6622_v55 = vrot.slane %v17474_v29, %v16279_v47  ;;  %v17480_v59 = vrot.slane %v17474_v29, %v16273_v60 }
0x11d3   :  { %6689 = vmatprep.mubr.f32.mxu0 %v6622_v55  ;;  %6760 = vmatprep.mubr.f32.mxu1 %v6622_v55 }
0x11d4   :  { %6690 = vmatmul.mubr.f32.vlgmr.msra.gmra.mrb[44].mxu0 %v17480_v59  ;;  %6761 = vmatmul.mubr.f32.vlgmr.msra.gmra.mrb[46].mxu1 %v17480_v59 }
0x11d5   :  { %13161 = vmatpush1.bf16.msra.mxu0 %v18275_v42  ;;  %6831 = vmatprep.mubr.f32.mxu0 %v6622_v55  ;;  %v18861_v55 = vld [vmem:[#allocation89_spill] sm:$0xff] }
0x11d6   :  { %13163 = vmatprep.subr.bf16.mxu0 %v15945_v15  ;;  %13225 = vmatpush1.bf16.msra.mxu1 %v15380_v40 }
0x11d7   :  { %13227 = vmatprep.subr.bf16.mxu1 %v18276_v28 }
0x11d9   :  { %13165 = vmatpush1.bf16.msra.mxu0 %v15963_v2 }
0x11da   :  { %13167 = vmatprep.subr.bf16.mxu0 %v18277_v18  ;;  %13229 = vmatpush1.bf16.msra.mxu1 %v15417_v62 }
0x11db   :  { %13231 = vmatprep.subr.bf16.mxu1 %v18278_v7 }
0x11dd   :  { %13169 = vmatpush1.bf16.msra.mxu0 %v15984_v0 }
0x11de   :  { %13171 = vmatprep.subr.bf16.mxu0 %v18279_v13  ;;  %13233 = vmatpush1.bf16.msra.mxu1 %v15456_v5 }
0x11df   :  { %13235 = vmatprep.subr.bf16.mxu1 %v18280_v57 }
0x11e1   :  { %13173 = vmatpush1.bf16.msra.mxu0 %v16004_v38 }
0x11e2   :  { %13175 = vmatprep.subr.bf16.mxu0 %v18281_v14  ;;  %13237 = vmatpush1.bf16.msra.mxu1 %v15493_v27 }
0x11e3   :  { %13239 = vmatprep.subr.bf16.mxu1 %v18282_v16 }
0x11e5   :  { %13177 = vmatpush1.bf16.msra.mxu0 %v16024_v45 }
0x11e6   :  { %13179 = vmatprep.subr.bf16.mxu0 %v18283_v36  ;;  %13241 = vmatpush1.bf16.msra.mxu1 %v15529_v39 }
0x11e7   :  { %13243 = vmatprep.subr.bf16.mxu1 %v18284_v19 }
0x11e9   :  { %13181 = vmatpush1.bf16.msra.mxu0 %v16044_v52 }
0x11ea   :  { %13183 = vmatprep.subr.bf16.mxu0 %v18285_v54  ;;  %13245 = vmatpush1.bf16.msra.mxu1 %v15565_v3 }
0x11eb   :  { %13247 = vmatprep.subr.bf16.mxu1 %v18286_v24 }
0x11ed   :  { %13185 = vmatpush1.bf16.msra.mxu0 %v18331_v50 }
0x11ee   :  { %13187 = vmatprep.subr.bf16.mxu0 %v18287_v34  ;;  %13249 = vmatpush1.bf16.msra.mxu1 %v18332_v51 }
0x11ef   :  { %13251 = vmatprep.subr.bf16.mxu1 %v18288_v12 }
0x11f1   :  { %13189 = vmatpush1.bf16.msra.mxu0 %v18333_v23 }
0x11f2   :  { %13191 = vmatprep.subr.bf16.mxu0 %v18289_v46  ;;  %13253 = vmatpush1.bf16.msra.mxu1 %v18334_v48 }
0x11f3   :  { %13255 = vmatprep.subr.bf16.mxu1 %v18290_v25 }
0x11f5   :  { %13193 = vmatpush1.bf16.msra.mxu0 %v18335_v1 }
0x11f6   :  { %13195 = vmatprep.subr.bf16.mxu0 %v18291_v6  ;;  %13257 = vmatpush1.bf16.msra.mxu1 %v18336_v9 }
0x11f7   :  { %13259 = vmatprep.subr.bf16.mxu1 %v18292_v10 }
0x11f9   :  { %13197 = vmatpush1.bf16.msra.mxu0 %v18337_v30 }
0x11fa   :  { %13199 = vmatprep.subr.bf16.mxu0 %v18293_v56  ;;  %13261 = vmatpush1.bf16.msra.mxu1 %v18338_v32 }
0x11fb   :  { %13263 = vmatprep.subr.bf16.mxu1 %v18844_v43 }
0x11fd   :  { %13201 = vmatpush1.bf16.msra.mxu0 %v18845_v26 }
0x11fe   :  { %13203 = vmatprep.subr.bf16.mxu0 %v18846_v58  ;;  %13265 = vmatpush1.bf16.msra.mxu1 %v18847_v44 }
0x11ff   :  { %13267 = vmatprep.subr.bf16.mxu1 %v18848_v20 }
0x1201   :  { %13205 = vmatpush1.bf16.msra.mxu0 %v18849_v31  ;;  %v6611_v31 = vld [vmem:[#allocation4 + $0x33] ss:$8 sm:$0xf] }
0x1202   :  { %13207 = vmatprep.subr.bf16.mxu0 %v18850_v8  ;;  %13269 = vmatpush1.bf16.msra.mxu1 %v18851_v11  ;;  %v18862_v11 = vld [vmem:[#allocation90_spill] sm:$0xff] }
0x1203   :  { %13271 = vmatprep.subr.bf16.mxu1 %v18852_v4  ;;  %v18863_v4 = vld [vmem:[#allocation60_spill] sm:$0xff] }
0x1205   :  { %13209 = vmatpush1.bf16.msra.mxu0 %v18853_v17  ;;  %v18864_v17 = vld [vmem:[#allocation62_spill] sm:$0xff] }
0x1206   :  { %13211 = vmatprep.subr.bf16.mxu0 %v18854_v33  ;;  %13273 = vmatpush1.bf16.msra.mxu1 %v18855_v53  ;;  %v18865_v33 = vld [vmem:[#allocation91_spill] sm:$0xff]  ;;  %v18866_v53 = vld [vmem:[#allocation9_spill] sm:$0xff] }
0x1207   :  { %13275 = vmatprep.subr.bf16.mxu1 %v18856_v35  ;;  %v18867_v35 = vld [vmem:[#allocation64_spill] sm:$0xff] }
0x1209   :  { %13213 = vmatpush1.bf16.msra.mxu0 %v18857_v37  ;;  %v18868_v37 = vld [vmem:[#allocation66_spill] sm:$0xff] }
0x120a   :  { %13215 = vmatprep.subr.bf16.mxu0 %v18858_v41  ;;  %13277 = vmatpush1.bf16.msra.mxu1 %v18859_v61  ;;  %v18869_v61 = vld [vmem:[#allocation10_spill] sm:$0xff] }
0x120b   :  { %13279 = vmatprep.subr.bf16.mxu1 %v18860_v22  ;;  %v18870_v22 = vld [vmem:[#allocation12_spill] sm:$0xff] }
0x120d   :  { %13217 = vmatpush1.bf16.msra.mxu0 %v18861_v55  ;;  %v18871_v55 = vld [vmem:[#allocation13_spill] sm:$0xff] }
0x120e   :  { %13219 = vmatprep.subr.bf16.mxu0 %v18862_v11  ;;  %13281 = vmatpush1.bf16.msra.mxu1 %v18863_v4  ;;  %v18872_v11 = vld [vmem:[#allocation15_spill] sm:$0xff]  ;;  %v18873_v4 = vld [vmem:[#allocation16_spill] sm:$0xff] }
0x120f   :  { %13283 = vmatprep.subr.bf16.mxu1 %v18864_v17  ;;  %v18874_v17 = vld [vmem:[#allocation18_spill] sm:$0xff] }
0x1211   :  { %13221 = vmatpush1.bf16.msra.mxu0 %v18865_v33  ;;  %v18875_v33 = vld [vmem:[#allocation19_spill] sm:$0xff] }
0x1212   :  { %13287 = vmatprep.subr.bf16.mxu0 %v18866_v53  ;;  %13285 = vmatpush1.bf16.msra.mxu1 %v18867_v35  ;;  %v18876_v53 = vld [vmem:[#allocation21_spill] sm:$0xff]  ;;  %v18877_v35 = vld [vmem:[#allocation22_spill] sm:$0xff] }
0x1213   :  { %13351 = vmatprep.subr.bf16.mxu1 %v18868_v37  ;;  %v18878_v37 = vld [vmem:[#allocation24_spill] sm:$0xff] }
0x1214   :  { %6832 = vmatmul.mubr.f32.vlgmr.msra.gmra.mrb[46].mxu0 %v17480_v59  ;;  %v18879_v59 = vld [vmem:[#allocation25_spill] sm:$0xff] }
0x1215   :  { %13289 = vmatpush1.bf16.msra.mxu0 %v18869_v61  ;;  %v18880_v61 = vld [vmem:[#allocation27_spill] sm:$0xff] }
0x1216   :  { %13291 = vmatprep.subr.bf16.mxu0 %v18870_v22  ;;  %v18881_v22 = vld [vmem:[#allocation29_spill] sm:$0xff] }
0x1219   :  { %13293 = vmatpush1.bf16.msra.mxu0 %v18871_v55  ;;  %v18882_v55 = vld [vmem:[#allocation31_spill] sm:$0xff] }
0x121a   :  { %13295 = vmatprep.subr.bf16.mxu0 %v18872_v11  ;;  %v18883_v11 = vld [vmem:[#allocation33_spill] sm:$0xff] }
0x121d   :  { %13297 = vmatpush1.bf16.msra.mxu0 %v18873_v4  ;;  %v18884_v4 = vld [vmem:[#allocation35_spill] sm:$0xff] }
0x121e   :  { %13299 = vmatprep.subr.bf16.mxu0 %v18874_v17  ;;  %v18885_v17 = vld [vmem:[#allocation37_spill] sm:$0xff] }
0x1221   :  { %13301 = vmatpush1.bf16.msra.mxu0 %v18875_v33  ;;  %v18886_v33 = vld [vmem:[#allocation39_spill] sm:$0xff] }
0x1222   :  { %13303 = vmatprep.subr.bf16.mxu0 %v18876_v53  ;;  %v18887_v53 = vld [vmem:[#allocation41_spill] sm:$0xff] }
0x1225   :  { %13305 = vmatpush1.bf16.msra.mxu0 %v18877_v35  ;;  %v18888_v35 = vld [vmem:[#allocation43_spill] sm:$0xff] }
0x1226   :  { %13307 = vmatprep.subr.bf16.mxu0 %v18878_v37  ;;  %v18889_v37 = vld [vmem:[#allocation45_spill] sm:$0xff] }
0x1229   :  { %13309 = vmatpush1.bf16.msra.mxu0 %v18879_v59  ;;  %v18890_v59 = vld [vmem:[#allocation47_spill] sm:$0xff] }
0x122a   :  { %13311 = vmatprep.subr.bf16.mxu0 %v18880_v61  ;;  %v18891_v61 = vld [vmem:[#allocation49_spill] sm:$0xff] }
0x122d   :  { %13313 = vmatpush1.bf16.msra.mxu0 %v18881_v22  ;;  %v18892_v22 = vld [vmem:[#allocation51_spill] sm:$0xff] }
0x122e   :  { %13315 = vmatprep.subr.bf16.mxu0 %v18882_v55  ;;  %v18893_v55 = vld [vmem:[#allocation53_spill] sm:$0xff] }
0x1231   :  { %13317 = vmatpush1.bf16.msra.mxu0 %v18883_v11  ;;  %v18894_v11 = vld [vmem:[#allocation55_spill] sm:$0xff] }
0x1232   :  { %13319 = vmatprep.subr.bf16.mxu0 %v18884_v4  ;;  %v18895_v4 = vld [vmem:[#allocation57_spill] sm:$0xff] }
0x1235   :  { %13321 = vmatpush1.bf16.msra.mxu0 %v18885_v17  ;;  %v18896_v17 = vld [vmem:[#allocation59_spill] sm:$0xff] }
0x1236   :  { %13323 = vmatprep.subr.bf16.mxu0 %v18886_v33  ;;  %v18897_v33 = vld [vmem:[#allocation61_spill] sm:$0xff] }
0x1239   :  { %13325 = vmatpush1.bf16.msra.mxu0 %v18887_v53  ;;  %v18898_v53 = vld [vmem:[#allocation63_spill] sm:$0xff] }
0x123a   :  { %13327 = vmatprep.subr.bf16.mxu0 %v18888_v35  ;;  %v18899_v35 = vld [vmem:[#allocation65_spill] sm:$0xff] }
0x123d   :  { %13329 = vmatpush1.bf16.msra.mxu0 %v18889_v37  ;;  %v18900_v37 = vld [vmem:[#allocation8_spill] sm:$0xff] }
0x123e   :  { %13331 = vmatprep.subr.bf16.mxu0 %v18890_v59 }
0x1241   :  { %13333 = vmatpush1.bf16.msra.mxu0 %v18891_v61 }
0x1242   :  { %13335 = vmatprep.subr.bf16.mxu0 %v18892_v22 }
0x1245   :  { %13337 = vmatpush1.bf16.msra.mxu0 %v18893_v55 }
0x1246   :  { %13339 = vmatprep.subr.bf16.mxu0 %v18894_v11 }
0x1249   :  { %13341 = vmatpush1.bf16.msra.mxu0 %v18895_v4 }
0x124a   :  { %13343 = vmatprep.subr.bf16.mxu0 %v18896_v17  ;;  %v6612_v17 = vld [vmem:[#allocation4 + $0x33] ss:$8 sm:$0x30] }
0x124b   :  { %v6613_v20 = vor.u32 %v6612_v17, %v6611_v31 }
0x124d   :  { %13345 = vmatpush1.bf16.msra.mxu0 %v18897_v33 }
0x124e   :  { %13347 = vmatprep.subr.bf16.mxu0 %v18898_v53 }
0x1251   :  { %13349 = vmatpush1.bf16.msra.mxu0 %v18899_v35 }
0x1252   :  { %13415 = vmatprep.subr.bf16.mxu0 %v18900_v37  ;;  %v6864_v37 = vrot.slane %v6613_v20, 2 }
0x12a7   :  { %v6691_v59 = vpop.f32.mrb[44].mxu0  ;;  %v6762_v61 = vpop.f32.mrb[46].mxu1 }
0x12a8   :  { %v6693_v41 = vpop.f32.mrb[45].mxu0  ;;  %v6764_v22 = vpop.f32.mrb[47].mxu1 }
0x12a9   :  { %v6840_v8 = vcombine.low %v6691_v59, %v6693_v41  ;;  %v6868_v55 = vcombine.low %v6762_v61, %v6764_v22 }
0x12ab   :  { %v6847_v11 = vrot.slane %v6840_v8, %v16295_v21  ;;  %v6875_v53 = vrot.slane %v6868_v55, %v16295_v21 }
0x12ad   :  { %v6854_v4 = vrot.slane %v6847_v11, %v16295_v21  ;;  %v6882_v35 = vrot.slane %v6875_v53, %v16295_v21 }
0x12af   :  { %v6856_v33 = vadd.f32 %v6854_v4, %v6613_v20  ;;  %v6884_v58 = vadd.f32 %v6882_v35, %v6864_v37  ;;  %v6912_v35 = vrot.slane %v6613_v20, 4  ;;  %v18902_v20 = vld [vmem:[#allocation81_spill] sm:$0xff] }
0x12b1   :  { %v8204_v44 = vmul.f32 -1.442695, %v6856_v33  ;;  %v8205_v26 = vmul.f32 -1.442695, %v6884_v58 }
0x12b3   :  { %14151 = vpow2.f32 %v8204_v44 }
0x12b4   :  { %14153 = vpow2.f32 %v8205_v26 }
0x12bd   :  { %v14152_v43 = vpop.eup %14151 }
0x12be   :  { %v6860_v41 = vadd.f32 1.0, %v14152_v43  ;;  %v14154_v4 = vpop.eup %14153 }
0x12bf   :  { %v6888_v22 = vadd.f32 1.0, %v14154_v4  ;;  %v18904_v4 = vld [vmem:[#allocation44_spill] sm:$0xff] }
0x12c0   :  { %14155 = vrcp.f32 %v6860_v41 }
0x12c1   :  { %14157 = vrcp.f32 %v6888_v22  ;;  %v18906_v22 = vld [vmem:[#allocation83_spill] sm:$0xff] }
0x12ca   :  { %v14156_v53 = vpop.eup %14155 }
0x12cb   :  { %v14158_v43 = vpop.eup %14157 }
0x12cc   :  { %v6916_v37 = vsub.f32 1.0, %v14158_v43  ;;  %v6918_v41 = vmul.f32 %v14158_v43, %v17474_v29  ;;  %v18901_v29 = vld [vmem:[#allocation42_spill] sm:$0xff] }
0x12cd   :  { %v18913_v43 = vld [vmem:[#allocation54_spill] sm:$0xff] }
0x12e7   :  { %v6833_v8 = vpop.f32.mrb[46].mxu0 }
0x12e8   :  { %v6891_v61 = vadd.f32 %v6833_v8, %v16305_v63  ;;  %v6835_v11 = vpop.f32.mrb[47].mxu0 }
0x12e9   :  { %v6892_v31 = vadd.f32 %v6835_v11, %v16308_v49 }
0x12eb   :  { %v6895_v17 = vcombine.low %v6891_v61, %v6892_v31  ;;  %v18903_v31 = vld [vmem:[#allocation82_spill] sm:$0xff] }
0x12ed   :  { %v6902_v33 = vrot.slane %v6895_v17, %v16295_v21  ;;  %v18905_v17 = vld [vmem:[#allocation46_spill] sm:$0xff] }
0x12ef   :  { %v6909_v44 = vrot.slane %v6902_v33, %v16295_v21  ;;  %v18907_v33 = vld [vmem:[#allocation84_spill] sm:$0xff] }
0x12f1   :  { %v6911_v58 = vmul.f32 %v14156_v53, %v6909_v44  ;;  %v18908_v44 = vld [vmem:[#allocation48_spill] sm:$0xff]  ;;  %v18909_v53 = vld [vmem:[#allocation50_spill] sm:$0xff] }
0x12f3   :  { %v6914_v26 = vadd.f32 %v6912_v35, %v6911_v58  ;;  %v18910_v58 = vld [vmem:[#allocation85_spill] sm:$0xff]  ;;  %v18911_v35 = vld [vmem:[#allocation86_spill] sm:$0xff] }
0x12f5   :  { %14159 = vtanh.f32 %v6914_v26  ;;  %v18912_v26 = vld [vmem:[#allocation52_spill] sm:$0xff] }
0x12ff   :  { %v14160_v55 = vpop.eup %14159 }
0x1300   :  { %v6917_v59 = vmul.f32 %v14160_v55, %v6916_v37  ;;  %v18914_v37 = vld [vmem:[#allocation87_spill] sm:$0xff]  ;;  %v18915_v55 = vld [vmem:[#allocation88_spill] sm:$0xff] }
0x1302   :  { %v17590_v8 = vadd.f32 %v6918_v41, %v6917_v59  ;;  %v18916_v59 = vld [vmem:[#allocation56_spill] sm:$0xff]  ;;  %v18917_v41 = vld [vmem:[#allocation58_spill] sm:$0xff] }
0x1304   :  { %v6932_v61 = vrot.slane %v17590_v8, %v16279_v47  ;;  %v17596_v11 = vrot.slane %v17590_v8, %v16273_v60 }
0x1306   :  { %6999 = vmatprep.mubr.f32.mxu1 %v6932_v61  ;;  %7070 = vmatprep.mubr.f32.mxu0 %v6932_v61 }
0x1307   :  { %7000 = vmatmul.mubr.f32.vlgmr.msra.gmra.mrb[48].mxu1 %v17596_v11  ;;  %7071 = vmatmul.mubr.f32.vlgmr.msra.gmra.mrb[48].mxu0 %v17596_v11 }
0x1308   :  { %13353 = vmatpush1.bf16.msra.mxu1 %v18275_v42  ;;  %7141 = vmatprep.mubr.f32.mxu1 %v6932_v61  ;;  %v18918_v61 = vld [vmem:[#allocation89_spill] sm:$0xff] }
0x1309   :  { %13355 = vmatprep.subr.bf16.mxu1 %v15945_v15  ;;  %13417 = vmatpush1.bf16.msra.mxu0 %v15380_v40 }
0x130a   :  { %13419 = vmatprep.subr.bf16.mxu0 %v18276_v28 }
0x130c   :  { %13357 = vmatpush1.bf16.msra.mxu1 %v15963_v2 }
0x130d   :  { %13359 = vmatprep.subr.bf16.mxu1 %v18277_v18  ;;  %13421 = vmatpush1.bf16.msra.mxu0 %v15417_v62 }
0x130e   :  { %13423 = vmatprep.subr.bf16.mxu0 %v18278_v7 }
0x1310   :  { %13361 = vmatpush1.bf16.msra.mxu1 %v15984_v0 }
0x1311   :  { %13363 = vmatprep.subr.bf16.mxu1 %v18279_v13  ;;  %13425 = vmatpush1.bf16.msra.mxu0 %v15456_v5 }
0x1312   :  { %13427 = vmatprep.subr.bf16.mxu0 %v18280_v57 }
0x1314   :  { %13365 = vmatpush1.bf16.msra.mxu1 %v16004_v38 }
0x1315   :  { %13367 = vmatprep.subr.bf16.mxu1 %v18281_v14  ;;  %13429 = vmatpush1.bf16.msra.mxu0 %v15493_v27 }
0x1316   :  { %13431 = vmatprep.subr.bf16.mxu0 %v18282_v16 }
0x1318   :  { %13369 = vmatpush1.bf16.msra.mxu1 %v16024_v45 }
0x1319   :  { %13371 = vmatprep.subr.bf16.mxu1 %v18283_v36  ;;  %13433 = vmatpush1.bf16.msra.mxu0 %v15529_v39 }
0x131a   :  { %13435 = vmatprep.subr.bf16.mxu0 %v18284_v19 }
0x131c   :  { %13373 = vmatpush1.bf16.msra.mxu1 %v16044_v52 }
0x131d   :  { %13375 = vmatprep.subr.bf16.mxu1 %v18285_v54  ;;  %13437 = vmatpush1.bf16.msra.mxu0 %v15565_v3 }
0x131e   :  { %13439 = vmatprep.subr.bf16.mxu0 %v18286_v24 }
0x1320   :  { %13377 = vmatpush1.bf16.msra.mxu1 %v18331_v50 }
0x1321   :  { %13379 = vmatprep.subr.bf16.mxu1 %v18287_v34  ;;  %13441 = vmatpush1.bf16.msra.mxu0 %v18332_v51 }
0x1322   :  { %13443 = vmatprep.subr.bf16.mxu0 %v18288_v12 }
0x1324   :  { %13381 = vmatpush1.bf16.msra.mxu1 %v18333_v23 }
0x1325   :  { %13383 = vmatprep.subr.bf16.mxu1 %v18289_v46  ;;  %13445 = vmatpush1.bf16.msra.mxu0 %v18334_v48 }
0x1326   :  { %13447 = vmatprep.subr.bf16.mxu0 %v18290_v25 }
0x1328   :  { %13385 = vmatpush1.bf16.msra.mxu1 %v18335_v1 }
0x1329   :  { %13387 = vmatprep.subr.bf16.mxu1 %v18291_v6  ;;  %13449 = vmatpush1.bf16.msra.mxu0 %v18336_v9 }
0x132a   :  { %13451 = vmatprep.subr.bf16.mxu0 %v18292_v10 }
0x132c   :  { %13389 = vmatpush1.bf16.msra.mxu1 %v18337_v30 }
0x132d   :  { %13391 = vmatprep.subr.bf16.mxu1 %v18293_v56  ;;  %13453 = vmatpush1.bf16.msra.mxu0 %v18338_v32 }
0x132e   :  { %13455 = vmatprep.subr.bf16.mxu0 %v18901_v29 }
0x1330   :  { %13393 = vmatpush1.bf16.msra.mxu1 %v18902_v20 }
0x1331   :  { %13395 = vmatprep.subr.bf16.mxu1 %v18903_v31  ;;  %13457 = vmatpush1.bf16.msra.mxu0 %v18904_v4 }
0x1332   :  { %13459 = vmatprep.subr.bf16.mxu0 %v18905_v17 }
0x1334   :  { %13397 = vmatpush1.bf16.msra.mxu1 %v18906_v22  ;;  %v6921_v22 = vld [vmem:[#allocation4 + $0x34] ss:$8 sm:$0xf] }
0x1335   :  { %13399 = vmatprep.subr.bf16.mxu1 %v18907_v33  ;;  %13461 = vmatpush1.bf16.msra.mxu0 %v18908_v44  ;;  %v18919_v44 = vld [vmem:[#allocation90_spill] sm:$0xff] }
0x1336   :  { %13463 = vmatprep.subr.bf16.mxu0 %v18909_v53  ;;  %v18920_v53 = vld [vmem:[#allocation60_spill] sm:$0xff] }
0x1338   :  { %13401 = vmatpush1.bf16.msra.mxu1 %v18910_v58  ;;  %v18921_v58 = vld [vmem:[#allocation62_spill] sm:$0xff] }
0x1339   :  { %13403 = vmatprep.subr.bf16.mxu1 %v18911_v35  ;;  %13465 = vmatpush1.bf16.msra.mxu0 %v18912_v26  ;;  %v18922_v35 = vld [vmem:[#allocation91_spill] sm:$0xff]  ;;  %v18923_v26 = vld [vmem:[#allocation9_spill] sm:$0xff] }
0x133a   :  { %13467 = vmatprep.subr.bf16.mxu0 %v18913_v43  ;;  %v18924_v43 = vld [vmem:[#allocation64_spill] sm:$0xff] }
0x133c   :  { %13405 = vmatpush1.bf16.msra.mxu1 %v18914_v37  ;;  %v18925_v37 = vld [vmem:[#allocation66_spill] sm:$0xff] }
0x133d   :  { %13407 = vmatprep.subr.bf16.mxu1 %v18915_v55  ;;  %13469 = vmatpush1.bf16.msra.mxu0 %v18916_v59  ;;  %v18926_v59 = vld [vmem:[#allocation10_spill] sm:$0xff] }
0x133e   :  { %13471 = vmatprep.subr.bf16.mxu0 %v18917_v41  ;;  %v18927_v41 = vld [vmem:[#allocation12_spill] sm:$0xff] }
0x1340   :  { %13409 = vmatpush1.bf16.msra.mxu1 %v18918_v61  ;;  %v18928_v61 = vld [vmem:[#allocation13_spill] sm:$0xff] }
0x1341   :  { %13411 = vmatprep.subr.bf16.mxu1 %v18919_v44  ;;  %13473 = vmatpush1.bf16.msra.mxu0 %v18920_v53  ;;  %v18929_v44 = vld [vmem:[#allocation15_spill] sm:$0xff]  ;;  %v18930_v53 = vld [vmem:[#allocation16_spill] sm:$0xff] }
0x1342   :  { %13475 = vmatprep.subr.bf16.mxu0 %v18921_v58  ;;  %v18931_v58 = vld [vmem:[#allocation18_spill] sm:$0xff] }
0x1344   :  { %13413 = vmatpush1.bf16.msra.mxu1 %v18922_v35  ;;  %v18932_v35 = vld [vmem:[#allocation19_spill] sm:$0xff] }
0x1345   :  { %13479 = vmatprep.subr.bf16.mxu1 %v18923_v26  ;;  %13477 = vmatpush1.bf16.msra.mxu0 %v18924_v43  ;;  %v18933_v26 = vld [vmem:[#allocation21_spill] sm:$0xff]  ;;  %v18934_v43 = vld [vmem:[#allocation22_spill] sm:$0xff] }
0x1346   :  { %13543 = vmatprep.subr.bf16.mxu0 %v18925_v37  ;;  %v18935_v37 = vld [vmem:[#allocation24_spill] sm:$0xff] }
0x1347   :  { %7142 = vmatmul.mubr.f32.vlgmr.msra.gmra.mrb[50].mxu1 %v17596_v11  ;;  %v18936_v11 = vld [vmem:[#allocation25_spill] sm:$0xff] }
0x1348   :  { %13481 = vmatpush1.bf16.msra.mxu1 %v18926_v59  ;;  %v18937_v59 = vld [vmem:[#allocation27_spill] sm:$0xff] }
0x1349   :  { %13483 = vmatprep.subr.bf16.mxu1 %v18927_v41  ;;  %v18938_v41 = vld [vmem:[#allocation29_spill] sm:$0xff] }
0x134c   :  { %13485 = vmatpush1.bf16.msra.mxu1 %v18928_v61  ;;  %v18939_v61 = vld [vmem:[#allocation31_spill] sm:$0xff] }
0x134d   :  { %13487 = vmatprep.subr.bf16.mxu1 %v18929_v44  ;;  %v18940_v44 = vld [vmem:[#allocation33_spill] sm:$0xff] }
0x1350   :  { %13489 = vmatpush1.bf16.msra.mxu1 %v18930_v53  ;;  %v18941_v53 = vld [vmem:[#allocation35_spill] sm:$0xff] }
0x1351   :  { %13491 = vmatprep.subr.bf16.mxu1 %v18931_v58  ;;  %v18942_v58 = vld [vmem:[#allocation37_spill] sm:$0xff] }
0x1354   :  { %13493 = vmatpush1.bf16.msra.mxu1 %v18932_v35  ;;  %v18943_v35 = vld [vmem:[#allocation39_spill] sm:$0xff] }
0x1355   :  { %13495 = vmatprep.subr.bf16.mxu1 %v18933_v26  ;;  %v18944_v26 = vld [vmem:[#allocation41_spill] sm:$0xff] }
0x1358   :  { %13497 = vmatpush1.bf16.msra.mxu1 %v18934_v43  ;;  %v18945_v43 = vld [vmem:[#allocation43_spill] sm:$0xff] }
0x1359   :  { %13499 = vmatprep.subr.bf16.mxu1 %v18935_v37  ;;  %v18946_v37 = vld [vmem:[#allocation45_spill] sm:$0xff] }
0x135c   :  { %13501 = vmatpush1.bf16.msra.mxu1 %v18936_v11  ;;  %v18947_v11 = vld [vmem:[#allocation47_spill] sm:$0xff] }
0x135d   :  { %13503 = vmatprep.subr.bf16.mxu1 %v18937_v59  ;;  %v18948_v59 = vld [vmem:[#allocation49_spill] sm:$0xff] }
0x1360   :  { %13505 = vmatpush1.bf16.msra.mxu1 %v18938_v41  ;;  %v18949_v41 = vld [vmem:[#allocation51_spill] sm:$0xff] }
0x1361   :  { %13507 = vmatprep.subr.bf16.mxu1 %v18939_v61  ;;  %v18950_v61 = vld [vmem:[#allocation53_spill] sm:$0xff] }
0x1364   :  { %13509 = vmatpush1.bf16.msra.mxu1 %v18940_v44  ;;  %v18951_v44 = vld [vmem:[#allocation55_spill] sm:$0xff] }
0x1365   :  { %13511 = vmatprep.subr.bf16.mxu1 %v18941_v53  ;;  %v18952_v53 = vld [vmem:[#allocation57_spill] sm:$0xff] }
0x1368   :  { %13513 = vmatpush1.bf16.msra.mxu1 %v18942_v58  ;;  %v18953_v58 = vld [vmem:[#allocation59_spill] sm:$0xff] }
0x1369   :  { %13515 = vmatprep.subr.bf16.mxu1 %v18943_v35  ;;  %v18954_v35 = vld [vmem:[#allocation61_spill] sm:$0xff] }
0x136c   :  { %13517 = vmatpush1.bf16.msra.mxu1 %v18944_v26  ;;  %v18955_v26 = vld [vmem:[#allocation63_spill] sm:$0xff] }
0x136d   :  { %13519 = vmatprep.subr.bf16.mxu1 %v18945_v43  ;;  %v18956_v43 = vld [vmem:[#allocation65_spill] sm:$0xff] }
0x1370   :  { %13521 = vmatpush1.bf16.msra.mxu1 %v18946_v37  ;;  %v18957_v37 = vld [vmem:[#allocation8_spill] sm:$0xff] }
0x1371   :  { %13523 = vmatprep.subr.bf16.mxu1 %v18947_v11 }
0x1374   :  { %13525 = vmatpush1.bf16.msra.mxu1 %v18948_v59 }
0x1375   :  { %13527 = vmatprep.subr.bf16.mxu1 %v18949_v41 }
0x1378   :  { %13529 = vmatpush1.bf16.msra.mxu1 %v18950_v61 }
0x1379   :  { %13531 = vmatprep.subr.bf16.mxu1 %v18951_v44 }
0x137c   :  { %13533 = vmatpush1.bf16.msra.mxu1 %v18952_v53 }
0x137d   :  { %13535 = vmatprep.subr.bf16.mxu1 %v18953_v58  ;;  %v6922_v58 = vld [vmem:[#allocation4 + $0x34] ss:$8 sm:$0x30] }
0x137e   :  { %v6923_v17 = vor.u32 %v6922_v58, %v6921_v22 }
0x1380   :  { %13537 = vmatpush1.bf16.msra.mxu1 %v18954_v35 }
0x1381   :  { %13539 = vmatprep.subr.bf16.mxu1 %v18955_v26 }
0x1384   :  { %13541 = vmatpush1.bf16.msra.mxu1 %v18956_v43 }
0x1385   :  { %13607 = vmatprep.subr.bf16.mxu1 %v18957_v37  ;;  %v7174_v37 = vrot.slane %v6923_v17, 2 }
0x13da   :  { %v7001_v11 = vpop.f32.mrb[48].mxu1  ;;  %v7072_v59 = vpop.f32.mrb[48].mxu0 }
0x13db   :  { %v7003_v55 = vpop.f32.mrb[49].mxu1  ;;  %v7074_v41 = vpop.f32.mrb[49].mxu0 }
0x13dc   :  { %v7150_v33 = vcombine.low %v7001_v11, %v7003_v55  ;;  %v7178_v61 = vcombine.low %v7072_v59, %v7074_v41 }
0x13de   :  { %v7157_v44 = vrot.slane %v7150_v33, %v16295_v21  ;;  %v7185_v26 = vrot.slane %v7178_v61, %v16295_v21 }
0x13e0   :  { %v7164_v53 = vrot.slane %v7157_v44, %v16295_v21  ;;  %v7192_v43 = vrot.slane %v7185_v26, %v16295_v21 }
0x13e2   :  { %v7166_v35 = vadd.f32 %v7164_v53, %v6923_v17  ;;  %v7194_v31 = vadd.f32 %v7192_v43, %v7174_v37  ;;  %v7222_v43 = vrot.slane %v6923_v17, 4  ;;  %v18959_v17 = vld [vmem:[#allocation81_spill] sm:$0xff] }
0x13e4   :  { %v8206_v4 = vmul.f32 -1.442695, %v7166_v35  ;;  %v8207_v20 = vmul.f32 -1.442695, %v7194_v31 }
0x13e6   :  { %14161 = vpow2.f32 %v8206_v4 }
0x13e7   :  { %14163 = vpow2.f32 %v8207_v20 }
0x13f0   :  { %v14162_v29 = vpop.eup %14161 }
0x13f1   :  { %v7170_v55 = vadd.f32 1.0, %v14162_v29  ;;  %v14164_v53 = vpop.eup %14163 }
0x13f2   :  { %v7198_v41 = vadd.f32 1.0, %v14164_v53  ;;  %v18961_v53 = vld [vmem:[#allocation44_spill] sm:$0xff] }
0x13f3   :  { %14165 = vrcp.f32 %v7170_v55 }
0x13f4   :  { %14167 = vrcp.f32 %v7198_v41  ;;  %v18963_v41 = vld [vmem:[#allocation83_spill] sm:$0xff] }
0x13fd   :  { %v14166_v26 = vpop.eup %14165 }
0x13fe   :  { %v14168_v29 = vpop.eup %14167 }
0x13ff   :  { %v7226_v37 = vsub.f32 1.0, %v14168_v29  ;;  %v7228_v55 = vmul.f32 %v14168_v29, %v17590_v8  ;;  %v18958_v8 = vld [vmem:[#allocation42_spill] sm:$0xff] }
0x1400   :  { %v18970_v29 = vld [vmem:[#allocation54_spill] sm:$0xff] }
0x141a   :  { %v7143_v33 = vpop.f32.mrb[50].mxu1 }
0x141b   :  { %v7201_v59 = vadd.f32 %v7143_v33, %v16305_v63  ;;  %v7145_v44 = vpop.f32.mrb[51].mxu1 }
0x141c   :  { %v7202_v22 = vadd.f32 %v7145_v44, %v16308_v49 }
0x141e   :  { %v7205_v58 = vcombine.low %v7201_v59, %v7202_v22  ;;  %v18960_v22 = vld [vmem:[#allocation82_spill] sm:$0xff] }
0x1420   :  { %v7212_v35 = vrot.slane %v7205_v58, %v16295_v21  ;;  %v18962_v58 = vld [vmem:[#allocation46_spill] sm:$0xff] }
0x1422   :  { %v7219_v4 = vrot.slane %v7212_v35, %v16295_v21  ;;  %v18964_v35 = vld [vmem:[#allocation84_spill] sm:$0xff] }
0x1424   :  { %v7221_v31 = vmul.f32 %v14166_v26, %v7219_v4  ;;  %v18965_v4 = vld [vmem:[#allocation48_spill] sm:$0xff]  ;;  %v18966_v26 = vld [vmem:[#allocation50_spill] sm:$0xff] }
0x1426   :  { %v7224_v20 = vadd.f32 %v7222_v43, %v7221_v31  ;;  %v18967_v31 = vld [vmem:[#allocation85_spill] sm:$0xff]  ;;  %v18968_v43 = vld [vmem:[#allocation86_spill] sm:$0xff] }
0x1428   :  { %14169 = vtanh.f32 %v7224_v20  ;;  %v18969_v20 = vld [vmem:[#allocation52_spill] sm:$0xff] }
0x1432   :  { %v14170_v61 = vpop.eup %14169 }
0x1433   :  { %v7227_v11 = vmul.f32 %v14170_v61, %v7226_v37  ;;  %v18971_v37 = vld [vmem:[#allocation87_spill] sm:$0xff]  ;;  %v18972_v61 = vld [vmem:[#allocation88_spill] sm:$0xff] }
0x1435   :  { %v17706_v33 = vadd.f32 %v7228_v55, %v7227_v11  ;;  %v18973_v11 = vld [vmem:[#allocation56_spill] sm:$0xff]  ;;  %v18974_v55 = vld [vmem:[#allocation58_spill] sm:$0xff] }
0x1437   :  { %v7242_v59 = vrot.slane %v17706_v33, %v16279_v47  ;;  %v17712_v44 = vrot.slane %v17706_v33, %v16273_v60 }
0x1439   :  { %7309 = vmatprep.mubr.f32.mxu0 %v7242_v59  ;;  %7380 = vmatprep.mubr.f32.mxu1 %v7242_v59 }
0x143a   :  { %7310 = vmatmul.mubr.f32.vlgmr.msra.gmra.mrb[50].mxu0 %v17712_v44  ;;  %7381 = vmatmul.mubr.f32.vlgmr.msra.gmra.mrb[52].mxu1 %v17712_v44 }
0x143b   :  { %13545 = vmatpush1.bf16.msra.mxu0 %v18275_v42  ;;  %7451 = vmatprep.mubr.f32.mxu0 %v7242_v59  ;;  %v18975_v59 = vld [vmem:[#allocation89_spill] sm:$0xff] }
0x143c   :  { %13547 = vmatprep.subr.bf16.mxu0 %v15945_v15  ;;  %13609 = vmatpush1.bf16.msra.mxu1 %v15380_v40 }
0x143d   :  { %13611 = vmatprep.subr.bf16.mxu1 %v18276_v28 }
0x143f   :  { %13549 = vmatpush1.bf16.msra.mxu0 %v15963_v2 }
0x1440   :  { %13551 = vmatprep.subr.bf16.mxu0 %v18277_v18  ;;  %13613 = vmatpush1.bf16.msra.mxu1 %v15417_v62 }
0x1441   :  { %13615 = vmatprep.subr.bf16.mxu1 %v18278_v7 }
0x1443   :  { %13553 = vmatpush1.bf16.msra.mxu0 %v15984_v0 }
0x1444   :  { %13555 = vmatprep.subr.bf16.mxu0 %v18279_v13  ;;  %13617 = vmatpush1.bf16.msra.mxu1 %v15456_v5 }
0x1445   :  { %13619 = vmatprep.subr.bf16.mxu1 %v18280_v57 }
0x1447   :  { %13557 = vmatpush1.bf16.msra.mxu0 %v16004_v38 }
0x1448   :  { %13559 = vmatprep.subr.bf16.mxu0 %v18281_v14  ;;  %13621 = vmatpush1.bf16.msra.mxu1 %v15493_v27 }
0x1449   :  { %13623 = vmatprep.subr.bf16.mxu1 %v18282_v16 }
0x144b   :  { %13561 = vmatpush1.bf16.msra.mxu0 %v16024_v45 }
0x144c   :  { %13563 = vmatprep.subr.bf16.mxu0 %v18283_v36  ;;  %13625 = vmatpush1.bf16.msra.mxu1 %v15529_v39 }
0x144d   :  { %13627 = vmatprep.subr.bf16.mxu1 %v18284_v19 }
0x144f   :  { %13565 = vmatpush1.bf16.msra.mxu0 %v16044_v52 }
0x1450   :  { %13567 = vmatprep.subr.bf16.mxu0 %v18285_v54  ;;  %13629 = vmatpush1.bf16.msra.mxu1 %v15565_v3 }
0x1451   :  { %13631 = vmatprep.subr.bf16.mxu1 %v18286_v24 }
0x1453   :  { %13569 = vmatpush1.bf16.msra.mxu0 %v18331_v50 }
0x1454   :  { %13571 = vmatprep.subr.bf16.mxu0 %v18287_v34  ;;  %13633 = vmatpush1.bf16.msra.mxu1 %v18332_v51 }
0x1455   :  { %13635 = vmatprep.subr.bf16.mxu1 %v18288_v12 }
0x1457   :  { %13573 = vmatpush1.bf16.msra.mxu0 %v18333_v23 }
0x1458   :  { %13575 = vmatprep.subr.bf16.mxu0 %v18289_v46  ;;  %13637 = vmatpush1.bf16.msra.mxu1 %v18334_v48 }
0x1459   :  { %13639 = vmatprep.subr.bf16.mxu1 %v18290_v25 }
0x145b   :  { %13577 = vmatpush1.bf16.msra.mxu0 %v18335_v1 }
0x145c   :  { %13579 = vmatprep.subr.bf16.mxu0 %v18291_v6  ;;  %13641 = vmatpush1.bf16.msra.mxu1 %v18336_v9 }
0x145d   :  { %13643 = vmatprep.subr.bf16.mxu1 %v18292_v10 }
0x145f   :  { %13581 = vmatpush1.bf16.msra.mxu0 %v18337_v30 }
0x1460   :  { %13583 = vmatprep.subr.bf16.mxu0 %v18293_v56  ;;  %13645 = vmatpush1.bf16.msra.mxu1 %v18338_v32 }
0x1461   :  { %13647 = vmatprep.subr.bf16.mxu1 %v18958_v8 }
0x1463   :  { %13585 = vmatpush1.bf16.msra.mxu0 %v18959_v17 }
0x1464   :  { %13587 = vmatprep.subr.bf16.mxu0 %v18960_v22  ;;  %13649 = vmatpush1.bf16.msra.mxu1 %v18961_v53 }
0x1465   :  { %13651 = vmatprep.subr.bf16.mxu1 %v18962_v58 }
0x1467   :  { %13589 = vmatpush1.bf16.msra.mxu0 %v18963_v41  ;;  %v7231_v41 = vld [vmem:[#allocation4 + $0x35] ss:$8 sm:$0xf] }
0x1468   :  { %13591 = vmatprep.subr.bf16.mxu0 %v18964_v35  ;;  %13653 = vmatpush1.bf16.msra.mxu1 %v18965_v4  ;;  %v18976_v4 = vld [vmem:[#allocation90_spill] sm:$0xff] }
0x1469   :  { %13655 = vmatprep.subr.bf16.mxu1 %v18966_v26  ;;  %v18977_v26 = vld [vmem:[#allocation60_spill] sm:$0xff] }
0x146b   :  { %13593 = vmatpush1.bf16.msra.mxu0 %v18967_v31  ;;  %v18978_v31 = vld [vmem:[#allocation62_spill] sm:$0xff] }
0x146c   :  { %13595 = vmatprep.subr.bf16.mxu0 %v18968_v43  ;;  %13657 = vmatpush1.bf16.msra.mxu1 %v18969_v20  ;;  %v18979_v43 = vld [vmem:[#allocation91_spill] sm:$0xff]  ;;  %v18980_v20 = vld [vmem:[#allocation9_spill] sm:$0xff] }
0x146d   :  { %13659 = vmatprep.subr.bf16.mxu1 %v18970_v29  ;;  %v18981_v29 = vld [vmem:[#allocation64_spill] sm:$0xff] }
0x146f   :  { %13597 = vmatpush1.bf16.msra.mxu0 %v18971_v37  ;;  %v18982_v37 = vld [vmem:[#allocation66_spill] sm:$0xff] }
0x1470   :  { %13599 = vmatprep.subr.bf16.mxu0 %v18972_v61  ;;  %13661 = vmatpush1.bf16.msra.mxu1 %v18973_v11  ;;  %v18983_v11 = vld [vmem:[#allocation10_spill] sm:$0xff] }
0x1471   :  { %13663 = vmatprep.subr.bf16.mxu1 %v18974_v55  ;;  %v18984_v55 = vld [vmem:[#allocation12_spill] sm:$0xff] }
0x1473   :  { %13601 = vmatpush1.bf16.msra.mxu0 %v18975_v59  ;;  %v18985_v59 = vld [vmem:[#allocation13_spill] sm:$0xff] }
0x1474   :  { %13603 = vmatprep.subr.bf16.mxu0 %v18976_v4  ;;  %13665 = vmatpush1.bf16.msra.mxu1 %v18977_v26  ;;  %v18986_v4 = vld [vmem:[#allocation15_spill] sm:$0xff]  ;;  %v18987_v26 = vld [vmem:[#allocation16_spill] sm:$0xff] }
0x1475   :  { %13667 = vmatprep.subr.bf16.mxu1 %v18978_v31  ;;  %v18988_v31 = vld [vmem:[#allocation18_spill] sm:$0xff] }
0x1477   :  { %13605 = vmatpush1.bf16.msra.mxu0 %v18979_v43  ;;  %v18989_v43 = vld [vmem:[#allocation19_spill] sm:$0xff] }
0x1478   :  { %13671 = vmatprep.subr.bf16.mxu0 %v18980_v20  ;;  %13669 = vmatpush1.bf16.msra.mxu1 %v18981_v29  ;;  %v18990_v20 = vld [vmem:[#allocation21_spill] sm:$0xff]  ;;  %v18991_v29 = vld [vmem:[#allocation22_spill] sm:$0xff] }
0x1479   :  { %13735 = vmatprep.subr.bf16.mxu1 %v18982_v37  ;;  %v18992_v37 = vld [vmem:[#allocation24_spill] sm:$0xff] }
0x147a   :  { %7452 = vmatmul.mubr.f32.vlgmr.msra.gmra.mrb[52].mxu0 %v17712_v44  ;;  %v18993_v44 = vld [vmem:[#allocation25_spill] sm:$0xff] }
0x147b   :  { %13673 = vmatpush1.bf16.msra.mxu0 %v18983_v11  ;;  %v18994_v11 = vld [vmem:[#allocation27_spill] sm:$0xff] }
0x147c   :  { %13675 = vmatprep.subr.bf16.mxu0 %v18984_v55  ;;  %v18995_v55 = vld [vmem:[#allocation29_spill] sm:$0xff] }
0x147f   :  { %13677 = vmatpush1.bf16.msra.mxu0 %v18985_v59  ;;  %v18996_v59 = vld [vmem:[#allocation31_spill] sm:$0xff] }
0x1480   :  { %13679 = vmatprep.subr.bf16.mxu0 %v18986_v4  ;;  %v18997_v4 = vld [vmem:[#allocation33_spill] sm:$0xff] }
0x1483   :  { %13681 = vmatpush1.bf16.msra.mxu0 %v18987_v26  ;;  %v18998_v26 = vld [vmem:[#allocation35_spill] sm:$0xff] }
0x1484   :  { %13683 = vmatprep.subr.bf16.mxu0 %v18988_v31  ;;  %v18999_v31 = vld [vmem:[#allocation37_spill] sm:$0xff] }
0x1487   :  { %13685 = vmatpush1.bf16.msra.mxu0 %v18989_v43  ;;  %v19000_v43 = vld [vmem:[#allocation39_spill] sm:$0xff] }
0x1488   :  { %13687 = vmatprep.subr.bf16.mxu0 %v18990_v20  ;;  %v19001_v20 = vld [vmem:[#allocation41_spill] sm:$0xff] }
0x148b   :  { %13689 = vmatpush1.bf16.msra.mxu0 %v18991_v29  ;;  %v19002_v29 = vld [vmem:[#allocation43_spill] sm:$0xff] }
0x148c   :  { %13691 = vmatprep.subr.bf16.mxu0 %v18992_v37  ;;  %v19003_v37 = vld [vmem:[#allocation45_spill] sm:$0xff] }
0x148f   :  { %13693 = vmatpush1.bf16.msra.mxu0 %v18993_v44  ;;  %v19004_v44 = vld [vmem:[#allocation47_spill] sm:$0xff] }
0x1490   :  { %13695 = vmatprep.subr.bf16.mxu0 %v18994_v11  ;;  %v19005_v11 = vld [vmem:[#allocation49_spill] sm:$0xff] }
0x1493   :  { %13697 = vmatpush1.bf16.msra.mxu0 %v18995_v55  ;;  %v19006_v55 = vld [vmem:[#allocation51_spill] sm:$0xff] }
0x1494   :  { %13699 = vmatprep.subr.bf16.mxu0 %v18996_v59  ;;  %v19007_v59 = vld [vmem:[#allocation53_spill] sm:$0xff] }
0x1497   :  { %13701 = vmatpush1.bf16.msra.mxu0 %v18997_v4  ;;  %v19008_v4 = vld [vmem:[#allocation55_spill] sm:$0xff] }
0x1498   :  { %13703 = vmatprep.subr.bf16.mxu0 %v18998_v26  ;;  %v19009_v26 = vld [vmem:[#allocation57_spill] sm:$0xff] }
0x149b   :  { %13705 = vmatpush1.bf16.msra.mxu0 %v18999_v31  ;;  %v19010_v31 = vld [vmem:[#allocation59_spill] sm:$0xff] }
0x149c   :  { %13707 = vmatprep.subr.bf16.mxu0 %v19000_v43  ;;  %v19011_v43 = vld [vmem:[#allocation61_spill] sm:$0xff] }
0x149f   :  { %13709 = vmatpush1.bf16.msra.mxu0 %v19001_v20  ;;  %v19012_v20 = vld [vmem:[#allocation63_spill] sm:$0xff] }
0x14a0   :  { %13711 = vmatprep.subr.bf16.mxu0 %v19002_v29  ;;  %v19013_v29 = vld [vmem:[#allocation65_spill] sm:$0xff] }
0x14a3   :  { %13713 = vmatpush1.bf16.msra.mxu0 %v19003_v37  ;;  %v19014_v37 = vld [vmem:[#allocation8_spill] sm:$0xff] }
0x14a4   :  { %13715 = vmatprep.subr.bf16.mxu0 %v19004_v44 }
0x14a7   :  { %13717 = vmatpush1.bf16.msra.mxu0 %v19005_v11 }
0x14a8   :  { %13719 = vmatprep.subr.bf16.mxu0 %v19006_v55 }
0x14ab   :  { %13721 = vmatpush1.bf16.msra.mxu0 %v19007_v59 }
0x14ac   :  { %13723 = vmatprep.subr.bf16.mxu0 %v19008_v4 }
0x14af   :  { %13725 = vmatpush1.bf16.msra.mxu0 %v19009_v26 }
0x14b0   :  { %13727 = vmatprep.subr.bf16.mxu0 %v19010_v31  ;;  %v7232_v31 = vld [vmem:[#allocation4 + $0x35] ss:$8 sm:$0x30] }
0x14b1   :  { %v7233_v58 = vor.u32 %v7232_v31, %v7231_v41 }
0x14b3   :  { %13729 = vmatpush1.bf16.msra.mxu0 %v19011_v43 }
0x14b4   :  { %13731 = vmatprep.subr.bf16.mxu0 %v19012_v20 }
0x14b7   :  { %13733 = vmatpush1.bf16.msra.mxu0 %v19013_v29 }
0x14b8   :  { %13799 = vmatprep.subr.bf16.mxu0 %v19014_v37  ;;  %v7484_v37 = vrot.slane %v7233_v58, 2 }
0x150d   :  { %v7311_v44 = vpop.f32.mrb[50].mxu0  ;;  %v7382_v11 = vpop.f32.mrb[52].mxu1 }
0x150e   :  { %v7313_v61 = vpop.f32.mrb[51].mxu0  ;;  %v7384_v55 = vpop.f32.mrb[53].mxu1 }
0x150f   :  { %v7460_v35 = vcombine.low %v7311_v44, %v7313_v61  ;;  %v7488_v59 = vcombine.low %v7382_v11, %v7384_v55 }
0x1511   :  { %v7467_v4 = vrot.slane %v7460_v35, %v16295_v21  ;;  %v7495_v20 = vrot.slane %v7488_v59, %v16295_v21 }
0x1513   :  { %v7474_v26 = vrot.slane %v7467_v4, %v16295_v21  ;;  %v7502_v29 = vrot.slane %v7495_v20, %v16295_v21 }
0x1515   :  { %v7476_v43 = vadd.f32 %v7474_v26, %v7233_v58  ;;  %v7504_v22 = vadd.f32 %v7502_v29, %v7484_v37  ;;  %v7532_v29 = vrot.slane %v7233_v58, 4  ;;  %v19035_v58 = vld [vmem:[#allocation62_spill] sm:$0xff] }
0x1517   :  { %v8208_v53 = vmul.f32 -1.442695, %v7476_v43  ;;  %v8209_v17 = vmul.f32 -1.442695, %v7504_v22 }
0x1519   :  { %14171 = vpow2.f32 %v8208_v53 }
0x151a   :  { %14173 = vpow2.f32 %v8209_v17 }
0x1523   :  { %v14172_v8 = vpop.eup %14171 }
0x1524   :  { %v7480_v61 = vadd.f32 1.0, %v14172_v8  ;;  %v14174_v26 = vpop.eup %14173 }
0x1525   :  { %v7508_v55 = vadd.f32 1.0, %v14174_v26  ;;  %v19037_v26 = vld [vmem:[#allocation9_spill] sm:$0xff] }
0x1526   :  { %14175 = vrcp.f32 %v7480_v61 }
0x1527   :  { %14177 = vrcp.f32 %v7508_v55  ;;  %v19039_v55 = vld [vmem:[#allocation66_spill] sm:$0xff] }
0x1530   :  { %v14176_v20 = vpop.eup %14175 }
0x1531   :  { %v14178_v8 = vpop.eup %14177 }
0x1532   :  { %v7536_v59 = vsub.f32 1.0, %v14178_v8  ;;  %v7538_v61 = vmul.f32 %v14178_v8, %v17706_v33  ;;  %v19034_v33 = vld [vmem:[#allocation60_spill] sm:$0xff]  ;;  %v19046_v8 = vld [vmem:[#allocation19_spill] sm:$0xff] }
0x154d   :  { %v7453_v35 = vpop.f32.mrb[52].mxu0 }
0x154e   :  { %v7511_v11 = vadd.f32 %v7453_v35, %v16305_v63  ;;  %v7455_v4 = vpop.f32.mrb[53].mxu0 }
0x154f   :  { %v7512_v41 = vadd.f32 %v7455_v4, %v16308_v49 }
0x1551   :  { %v7515_v31 = vcombine.low %v7511_v11, %v7512_v41  ;;  %v19036_v41 = vld [vmem:[#allocation91_spill] sm:$0xff] }
0x1553   :  { %v7522_v43 = vrot.slane %v7515_v31, %v16295_v21  ;;  %v19038_v31 = vld [vmem:[#allocation64_spill] sm:$0xff] }
0x1555   :  { %v7529_v53 = vrot.slane %v7522_v43, %v16295_v21  ;;  %v19040_v43 = vld [vmem:[#allocation10_spill] sm:$0xff] }
0x1557   :  { %v7531_v22 = vmul.f32 %v14176_v20, %v7529_v53  ;;  %v19041_v53 = vld [vmem:[#allocation12_spill] sm:$0xff]  ;;  %v19042_v20 = vld [vmem:[#allocation13_spill] sm:$0xff] }
0x1559   :  { %v7534_v17 = vadd.f32 %v7532_v29, %v7531_v22  ;;  %v19043_v22 = vld [vmem:[#allocation15_spill] sm:$0xff]  ;;  %v19044_v29 = vld [vmem:[#allocation16_spill] sm:$0xff] }
0x155b   :  { %14179 = vtanh.f32 %v7534_v17  ;;  %v19045_v17 = vld [vmem:[#allocation18_spill] sm:$0xff] }
0x1565   :  { %v14180_v44 = vpop.eup %14179 }
0x1566   :  { %v7537_v37 = vmul.f32 %v14180_v44, %v7536_v59  ;;  %v19047_v59 = vld [vmem:[#allocation21_spill] sm:$0xff]  ;;  %v19048_v44 = vld [vmem:[#allocation22_spill] sm:$0xff] }
0x1568   :  { %v17822_v35 = vadd.f32 %v7538_v61, %v7537_v37  ;;  %v19049_v37 = vld [vmem:[#allocation24_spill] sm:$0xff]  ;;  %v19050_v61 = vld [vmem:[#allocation25_spill] sm:$0xff] }
0x156a   :  { %v7552_v11 = vrot.slane %v17822_v35, %v16279_v47  ;;  %v17828_v4 = vrot.slane %v17822_v35, %v16273_v60 }
0x156c   :  { %7619 = vmatprep.mubr.f32.mxu1 %v7552_v11  ;;  %7690 = vmatprep.mubr.f32.mxu0 %v7552_v11 }
0x156d   :  { %7620 = vmatmul.mubr.f32.vlgmr.msra.gmra.mrb[54].mxu1 %v17828_v4  ;;  %7691 = vmatmul.mubr.f32.vlgmr.msra.gmra.mrb[54].mxu0 %v17828_v4 }
0x156e   :  { %13737 = vmatpush1.bf16.msra.mxu1 %v18275_v42  ;;  %7761 = vmatprep.mubr.f32.mxu1 %v7552_v11  ;;  %v19051_v11 = vld [vmem:[#allocation27_spill] sm:$0xff] }
0x156f   :  { %13739 = vmatprep.subr.bf16.mxu1 %v15945_v15  ;;  %13801 = vmatpush1.bf16.msra.mxu0 %v15380_v40  ;;  %v19015_v40 = vld [vmem:[#allocation42_spill] sm:$0xff] }
0x1570   :  { %13803 = vmatprep.subr.bf16.mxu0 %v18276_v28  ;;  %v19021_v28 = vld [vmem:[#allocation84_spill] sm:$0xff] }
0x1572   :  { %13741 = vmatpush1.bf16.msra.mxu1 %v15963_v2 }
0x1573   :  { %13743 = vmatprep.subr.bf16.mxu1 %v18277_v18  ;;  %13805 = vmatpush1.bf16.msra.mxu0 %v15417_v62  ;;  %v19016_v62 = vld [vmem:[#allocation81_spill] sm:$0xff] }
0x1574   :  { %13807 = vmatprep.subr.bf16.mxu0 %v18278_v7  ;;  %v19023_v7 = vld [vmem:[#allocation50_spill] sm:$0xff] }
0x1576   :  { %13745 = vmatpush1.bf16.msra.mxu1 %v15984_v0 }
0x1577   :  { %13747 = vmatprep.subr.bf16.mxu1 %v18279_v13  ;;  %13809 = vmatpush1.bf16.msra.mxu0 %v15456_v5  ;;  %v19017_v5 = vld [vmem:[#allocation82_spill] sm:$0xff] }
0x1578   :  { %13811 = vmatprep.subr.bf16.mxu0 %v18280_v57  ;;  %v19024_v57 = vld [vmem:[#allocation85_spill] sm:$0xff] }
0x157a   :  { %13749 = vmatpush1.bf16.msra.mxu1 %v16004_v38 }
0x157b   :  { %13751 = vmatprep.subr.bf16.mxu1 %v18281_v14  ;;  %13813 = vmatpush1.bf16.msra.mxu0 %v15493_v27  ;;  %v19018_v27 = vld [vmem:[#allocation44_spill] sm:$0xff] }
0x157c   :  { %13815 = vmatprep.subr.bf16.mxu0 %v18282_v16  ;;  %v19025_v16 = vld [vmem:[#allocation86_spill] sm:$0xff] }
0x157e   :  { %13753 = vmatpush1.bf16.msra.mxu1 %v16024_v45 }
0x157f   :  { %13755 = vmatprep.subr.bf16.mxu1 %v18283_v36  ;;  %13817 = vmatpush1.bf16.msra.mxu0 %v15529_v39  ;;  %v19019_v39 = vld [vmem:[#allocation46_spill] sm:$0xff] }
0x1580   :  { %13819 = vmatprep.subr.bf16.mxu0 %v18284_v19  ;;  %v19026_v19 = vld [vmem:[#allocation52_spill] sm:$0xff] }
0x1582   :  { %13757 = vmatpush1.bf16.msra.mxu1 %v16044_v52 }
0x1583   :  { %13759 = vmatprep.subr.bf16.mxu1 %v18285_v54  ;;  %13821 = vmatpush1.bf16.msra.mxu0 %v15565_v3  ;;  %v19020_v3 = vld [vmem:[#allocation83_spill] sm:$0xff] }
0x1584   :  { %13823 = vmatprep.subr.bf16.mxu0 %v18286_v24  ;;  %v19027_v24 = vld [vmem:[#allocation54_spill] sm:$0xff] }
0x1586   :  { %13761 = vmatpush1.bf16.msra.mxu1 %v18331_v50 }
0x1587   :  { %13763 = vmatprep.subr.bf16.mxu1 %v18287_v34  ;;  %13825 = vmatpush1.bf16.msra.mxu0 %v18332_v51  ;;  %v19030_v51 = vld [vmem:[#allocation56_spill] sm:$0xff] }
0x1588   :  { %13827 = vmatprep.subr.bf16.mxu0 %v18288_v12  ;;  %v19028_v12 = vld [vmem:[#allocation87_spill] sm:$0xff] }
0x158a   :  { %13765 = vmatpush1.bf16.msra.mxu1 %v18333_v23 }
0x158b   :  { %13767 = vmatprep.subr.bf16.mxu1 %v18289_v46  ;;  %13829 = vmatpush1.bf16.msra.mxu0 %v18334_v48  ;;  %v19031_v48 = vld [vmem:[#allocation58_spill] sm:$0xff] }
0x158c   :  { %13831 = vmatprep.subr.bf16.mxu0 %v18290_v25  ;;  %v19029_v25 = vld [vmem:[#allocation88_spill] sm:$0xff] }
0x158e   :  { %13769 = vmatpush1.bf16.msra.mxu1 %v18335_v1 }
0x158f   :  { %13771 = vmatprep.subr.bf16.mxu1 %v18291_v6  ;;  %13833 = vmatpush1.bf16.msra.mxu0 %v18336_v9  ;;  %v19032_v9 = vld [vmem:[#allocation89_spill] sm:$0xff] }
0x1590   :  { %13835 = vmatprep.subr.bf16.mxu0 %v18292_v10  ;;  %v19022_v10 = vld [vmem:[#allocation48_spill] sm:$0xff] }
0x1592   :  { %13773 = vmatpush1.bf16.msra.mxu1 %v18337_v30 }
0x1593   :  { %13775 = vmatprep.subr.bf16.mxu1 %v18293_v56  ;;  %13837 = vmatpush1.bf16.msra.mxu0 %v18338_v32  ;;  %v19033_v32 = vld [vmem:[#allocation90_spill] sm:$0xff] }
0x1594   :  { %13839 = vmatprep.subr.bf16.mxu0 %v19015_v40  ;;  %v19053_v40 = vld [vmem:[#allocation31_spill] sm:$0xff] }
0x1596   :  { %13777 = vmatpush1.bf16.msra.mxu1 %v19016_v62 }
0x1597   :  { %13779 = vmatprep.subr.bf16.mxu1 %v19017_v5  ;;  %13841 = vmatpush1.bf16.msra.mxu0 %v19018_v27  ;;  %v19054_v27 = vld [vmem:[#allocation33_spill] sm:$0xff] }
0x1598   :  { %13843 = vmatprep.subr.bf16.mxu0 %v19019_v39  ;;  %v19055_v39 = vld [vmem:[#allocation35_spill] sm:$0xff] }
0x159a   :  { %13781 = vmatpush1.bf16.msra.mxu1 %v19020_v3 }
0x159b   :  { %13783 = vmatprep.subr.bf16.mxu1 %v19021_v28  ;;  %13845 = vmatpush1.bf16.msra.mxu0 %v19022_v10  ;;  %v19056_v10 = vld [vmem:[#allocation37_spill] sm:$0xff] }
0x159c   :  { %13847 = vmatprep.subr.bf16.mxu0 %v19023_v7  ;;  %v19057_v7 = vld [vmem:[#allocation39_spill] sm:$0xff] }
0x159e   :  { %13785 = vmatpush1.bf16.msra.mxu1 %v19024_v57 }
0x159f   :  { %13787 = vmatprep.subr.bf16.mxu1 %v19025_v16  ;;  %13849 = vmatpush1.bf16.msra.mxu0 %v19026_v19  ;;  %v19058_v19 = vld [vmem:[#allocation41_spill] sm:$0xff] }
0x15a0   :  { %13851 = vmatprep.subr.bf16.mxu0 %v19027_v24  ;;  %v19059_v24 = vld [vmem:[#allocation43_spill] sm:$0xff] }
0x15a2   :  { %13789 = vmatpush1.bf16.msra.mxu1 %v19028_v12 }
0x15a3   :  { %13791 = vmatprep.subr.bf16.mxu1 %v19029_v25  ;;  %13853 = vmatpush1.bf16.msra.mxu0 %v19030_v51  ;;  %v19060_v51 = vld [vmem:[#allocation45_spill] sm:$0xff] }
0x15a4   :  { %13855 = vmatprep.subr.bf16.mxu0 %v19031_v48  ;;  %v19061_v48 = vld [vmem:[#allocation47_spill] sm:$0xff] }
0x15a6   :  { %13793 = vmatpush1.bf16.msra.mxu1 %v19032_v9 }
0x15a7   :  { %13795 = vmatprep.subr.bf16.mxu1 %v19033_v32  ;;  %13857 = vmatpush1.bf16.msra.mxu0 %v19034_v33  ;;  %v19062_v33 = vld [vmem:[#allocation49_spill] sm:$0xff] }
0x15a8   :  { %13859 = vmatprep.subr.bf16.mxu0 %v19035_v58  ;;  %v19063_v58 = vld [vmem:[#allocation51_spill] sm:$0xff] }
0x15aa   :  { %13797 = vmatpush1.bf16.msra.mxu1 %v19036_v41 }
0x15ab   :  { %13863 = vmatprep.subr.bf16.mxu1 %v19037_v26  ;;  %13861 = vmatpush1.bf16.msra.mxu0 %v19038_v31  ;;  %v19064_v26 = vld [vmem:[#allocation53_spill] sm:$0xff]  ;;  %v19065_v31 = vld [vmem:[#allocation55_spill] sm:$0xff] }
0x15ac   :  { %13927 = vmatprep.subr.bf16.mxu0 %v19039_v55  ;;  %v19066_v55 = vld [vmem:[#allocation57_spill] sm:$0xff] }
0x15ad   :  { %7762 = vmatmul.mubr.f32.vlgmr.msra.gmra.mrb[56].mxu1 %v17828_v4  ;;  %v19052_v4 = vld [vmem:[#allocation29_spill] sm:$0xff] }
0x15ae   :  { %13865 = vmatpush1.bf16.msra.mxu1 %v19040_v43  ;;  %v19067_v43 = vld [vmem:[#allocation59_spill] sm:$0xff] }
0x15af   :  { %13867 = vmatprep.subr.bf16.mxu1 %v19041_v53  ;;  %v19068_v53 = vld [vmem:[#allocation61_spill] sm:$0xff] }
0x15b2   :  { %13869 = vmatpush1.bf16.msra.mxu1 %v19042_v20  ;;  %v19069_v20 = vld [vmem:[#allocation63_spill] sm:$0xff] }
0x15b3   :  { %13871 = vmatprep.subr.bf16.mxu1 %v19043_v22  ;;  %v19070_v22 = vld [vmem:[#allocation65_spill] sm:$0xff] }
0x15b6   :  { %13873 = vmatpush1.bf16.msra.mxu1 %v19044_v29 }
0x15b7   :  { %13875 = vmatprep.subr.bf16.mxu1 %v19045_v17 }
0x15ba   :  { %13877 = vmatpush1.bf16.msra.mxu1 %v19046_v8 }
0x15bb   :  { %13879 = vmatprep.subr.bf16.mxu1 %v19047_v59 }
0x15be   :  { %13881 = vmatpush1.bf16.msra.mxu1 %v19048_v44 }
0x15bf   :  { %13883 = vmatprep.subr.bf16.mxu1 %v19049_v37 }
0x15c2   :  { %13885 = vmatpush1.bf16.msra.mxu1 %v19050_v61 }
0x15c3   :  { %13887 = vmatprep.subr.bf16.mxu1 %v19051_v11  ;;  %v7541_v11 = vld [vmem:[#allocation4 + $0x36] ss:$8 sm:$0xf] }
0x15c6   :  { %13889 = vmatpush1.bf16.msra.mxu1 %v19052_v4 }
0x15c7   :  { %13891 = vmatprep.subr.bf16.mxu1 %v19053_v40  ;;  %v7542_v40 = vld [vmem:[#allocation4 + $0x36] ss:$8 sm:$0x30] }
0x15ca   :  { %13893 = vmatpush1.bf16.msra.mxu1 %v19054_v27  ;;  %v7543_v27 = vor.u32 %v7542_v40, %v7541_v11 }
0x15cb   :  { %13895 = vmatprep.subr.bf16.mxu1 %v19055_v39 }
0x15ce   :  { %13897 = vmatpush1.bf16.msra.mxu1 %v19056_v10 }
0x15cf   :  { %13899 = vmatprep.subr.bf16.mxu1 %v19057_v7 }
0x15d2   :  { %13901 = vmatpush1.bf16.msra.mxu1 %v19058_v19 }
0x15d3   :  { %13903 = vmatprep.subr.bf16.mxu1 %v19059_v24  ;;  %v7794_v24 = vrot.slane %v7543_v27, 2 }
0x15d6   :  { %13905 = vmatpush1.bf16.msra.mxu1 %v19060_v51 }
0x15d7   :  { %13907 = vmatprep.subr.bf16.mxu1 %v19061_v48 }
0x15da   :  { %13909 = vmatpush1.bf16.msra.mxu1 %v19062_v33 }
0x15db   :  { %13911 = vmatprep.subr.bf16.mxu1 %v19063_v58 }
0x15de   :  { %13913 = vmatpush1.bf16.msra.mxu1 %v19064_v26 }
0x15df   :  { %13915 = vmatprep.subr.bf16.mxu1 %v19065_v31 }
0x15e2   :  { %13917 = vmatpush1.bf16.msra.mxu1 %v19066_v55 }
0x15e3   :  { %13919 = vmatprep.subr.bf16.mxu1 %v19067_v43 }
0x15e6   :  { %13921 = vmatpush1.bf16.msra.mxu1 %v19068_v53 }
0x15e7   :  { %13923 = vmatprep.subr.bf16.mxu1 %v19069_v20 }
0x15ea   :  { %13925 = vmatpush1.bf16.msra.mxu1 %v19070_v22 }
0x1640   :  { %v7621_v29 = vpop.f32.mrb[54].mxu1  ;;  %v7692_v17 = vpop.f32.mrb[54].mxu0 }
0x1641   :  { %v7623_v8 = vpop.f32.mrb[55].mxu1  ;;  %v7694_v59 = vpop.f32.mrb[55].mxu0 }
0x1642   :  { %v7770_v44 = vcombine.low %v7621_v29, %v7623_v8  ;;  %v7798_v37 = vcombine.low %v7692_v17, %v7694_v59 }
0x1644   :  { %v7777_v61 = vrot.slane %v7770_v44, %v16295_v21  ;;  %v7805_v10 = vrot.slane %v7798_v37, %v16295_v21  ;;  %v7842_v44 = vrot.slane %v7543_v27, 4 }
0x1646   :  { %v7784_v4 = vrot.slane %v7777_v61, %v16295_v21  ;;  %v7812_v19 = vrot.slane %v7805_v10, %v16295_v21 }
0x1648   :  { %v7786_v39 = vadd.f32 %v7784_v4, %v7543_v27  ;;  %v7814_v51 = vadd.f32 %v7812_v19, %v7794_v24 }
0x164a   :  { %v8210_v7 = vmul.f32 -1.442695, %v7786_v39  ;;  %v8211_v48 = vmul.f32 -1.442695, %v7814_v51  ;;  %v19071_v51 = vlaneseq }
0x164c   :  { %14181 = vpow2.f32 %v8210_v7  ;;  %vm8162_vm0 = vcmp.lt.s32.totalorder %v19071_v51, 256 }
0x164d   :  { %14183 = vpow2.f32 %v8211_v48 }
0x1656   :  { %v14182_v33 = vpop.eup %14181 }
0x1657   :  { %v7790_v58 = vadd.f32 1.0, %v14182_v33  ;;  %v14184_v53 = vpop.eup %14183 }
0x1658   :  { %v7818_v22 = vadd.f32 1.0, %v14184_v53 }
0x1659   :  { %14185 = vrcp.f32 %v7790_v58 }
0x165a   :  { %14187 = vrcp.f32 %v7818_v22 }
0x1663   :  { %v14186_v8 = vpop.eup %14185 }
0x1664   :  { %v14188_v61 = vpop.eup %14187 }
0x1665   :  { %v7846_v11 = vsub.f32 1.0, %v14188_v61  ;;  %v7848_v39 = vmul.f32 %v14188_v61, %v17822_v35 }
0x1680   :  { %v7763_v26 = vpop.f32.mrb[56].mxu1 }
0x1681   :  { %v7821_v31 = vadd.f32 %v7763_v26, %v16305_v63  ;;  %v7765_v55 = vpop.f32.mrb[57].mxu1 }
0x1682   :  { %v7822_v43 = vadd.f32 %v7765_v55, %v16308_v49 }
0x1684   :  { %v7825_v20 = vcombine.low %v7821_v31, %v7822_v43 }
0x1686   :  { %v7832_v29 = vrot.slane %v7825_v20, %v16295_v21 }
0x1688   :  { %v7839_v17 = vrot.slane %v7832_v29, %v16295_v21 }
0x168a   :  { %v7841_v59 = vmul.f32 %v14186_v8, %v7839_v17 }
0x168c   :  { %v7844_v37 = vadd.f32 %v7842_v44, %v7841_v59 }
0x168e   :  { %14189 = vtanh.f32 %v7844_v37 }
0x1698   :  { %v14190_v4 = vpop.eup %14189 }
0x1699   :  { %v7847_v40 = vmul.f32 %v14190_v4, %v7846_v11 }
0x169b   :  { %v17937_v10 = vadd.f32 %v7848_v39, %v7847_v40 }
0x169d   :  { %v7862_v7 = vrot.slane %v17937_v10, %v16279_v47  ;;  %v7858_v19 = vrot.slane %v17937_v10, %v16273_v60 }
0x169f   :  { %7929 = vmatprep.mubr.f32.mxu0 %v7862_v7  ;;  %8000 = vmatprep.mubr.f32.mxu1 %v7862_v7 }
0x16a0   :  { %7930 = vmatmul.mubr.f32.vlgmr.msra.gmra.mrb[56].mxu0 %v7858_v19  ;;  %8001 = vmatmul.mubr.f32.vlgmr.msra.gmra.mrb[58].mxu1 %v7858_v19 }
0x16a1   :  { %13929 = vmatpush1.bf16.msra.mxu0 %v18275_v42  ;;  %8071 = vmatprep.mubr.f32.mxu0 %v7862_v7  ;;  %v7852_v42 = vld [vmem:[#allocation4 + $0x37] ss:$8 sm:$0x30] }
0x16a2   :  { %13931 = vmatprep.subr.bf16.mxu0 %v15945_v15 }
0x16a5   :  { %13933 = vmatpush1.bf16.msra.mxu0 %v15963_v2 }
0x16a6   :  { %13935 = vmatprep.subr.bf16.mxu0 %v18277_v18 }
0x16a9   :  { %13937 = vmatpush1.bf16.msra.mxu0 %v15984_v0 }
0x16aa   :  { %13939 = vmatprep.subr.bf16.mxu0 %v18279_v13 }
0x16ad   :  { %13941 = vmatpush1.bf16.msra.mxu0 %v16004_v38 }
0x16ae   :  { %13943 = vmatprep.subr.bf16.mxu0 %v18281_v14 }
0x16b1   :  { %13945 = vmatpush1.bf16.msra.mxu0 %v16024_v45  ;;  %v7851_v45 = vld [vmem:[#allocation4 + $0x37] ss:$8 sm:$0xf] }
0x16b2   :  { %13947 = vmatprep.subr.bf16.mxu0 %v18283_v36  ;;  %v7853_v18 = vor.u32 %v7852_v42, %v7851_v45 }
0x16b5   :  { %13949 = vmatpush1.bf16.msra.mxu0 %v16044_v52 }
0x16b6   :  { %13951 = vmatprep.subr.bf16.mxu0 %v18285_v54 }
0x16b9   :  { %13953 = vmatpush1.bf16.msra.mxu0 %v18331_v50 }
0x16ba   :  { %13955 = vmatprep.subr.bf16.mxu0 %v18287_v34  ;;  %v8104_v34 = vrot.slane %v7853_v18, 2 }
0x16bd   :  { %13957 = vmatpush1.bf16.msra.mxu0 %v18333_v23 }
0x16be   :  { %13959 = vmatprep.subr.bf16.mxu0 %v18289_v46 }
0x16c1   :  { %13961 = vmatpush1.bf16.msra.mxu0 %v18335_v1 }
0x16c2   :  { %13963 = vmatprep.subr.bf16.mxu0 %v18291_v6 }
0x16c5   :  { %13965 = vmatpush1.bf16.msra.mxu0 %v18337_v30 }
0x16c6   :  { %13967 = vmatprep.subr.bf16.mxu0 %v18293_v56 }
0x16c9   :  { %13969 = vmatpush1.bf16.msra.mxu0 %v19016_v62 }
0x16ca   :  { %13971 = vmatprep.subr.bf16.mxu0 %v19017_v5 }
0x16cd   :  { %13973 = vmatpush1.bf16.msra.mxu0 %v19020_v3 }
0x16ce   :  { %13975 = vmatprep.subr.bf16.mxu0 %v19021_v28 }
0x16d1   :  { %13977 = vmatpush1.bf16.msra.mxu0 %v19024_v57 }
0x16d2   :  { %13979 = vmatprep.subr.bf16.mxu0 %v19025_v16 }
0x16d5   :  { %13981 = vmatpush1.bf16.msra.mxu0 %v19028_v12 }
0x16d6   :  { %13983 = vmatprep.subr.bf16.mxu0 %v19029_v25 }
0x16d9   :  { %13985 = vmatpush1.bf16.msra.mxu0 %v19032_v9  ;;  %v8152_v9 = vrot.slane %v7853_v18, 4 }
0x16da   :  { %13987 = vmatprep.subr.bf16.mxu0 %v19033_v32 }
0x16dd   :  { %13989 = vmatpush1.bf16.msra.mxu0 %v19036_v41 }
0x16e0   :  { %8072 = vmatmul.mubr.f32.vlgmr.msra.gmra.mrb[58].mxu0 %v7858_v19 }
0x1773   :  { %v7931_v56 = vpop.f32.mrb[56].mxu0  ;;  %v8002_v60 = vpop.f32.mrb[58].mxu1 }
0x1774   :  { %v7933_v47 = vpop.f32.mrb[57].mxu0  ;;  %v8004_v15 = vpop.f32.mrb[59].mxu1 }
0x1775   :  { %v8080_v2 = vcombine.low %v7931_v56, %v7933_v47  ;;  %v8108_v0 = vcombine.low %v8002_v60, %v8004_v15 }
0x1777   :  { %v8087_v38 = vrot.slane %v8080_v2, %v16295_v21  ;;  %v8115_v14 = vrot.slane %v8108_v0, %v16295_v21 }
0x1779   :  { %v8094_v52 = vrot.slane %v8087_v38, %v16295_v21  ;;  %v8122_v54 = vrot.slane %v8115_v14, %v16295_v21 }
0x177b   :  { %v8096_v13 = vadd.f32 %v8094_v52, %v7853_v18  ;;  %v8124_v46 = vadd.f32 %v8122_v54, %v8104_v34 }
0x177d   :  { %v8212_v36 = vmul.f32 -1.442695, %v8096_v13  ;;  %v8213_v6 = vmul.f32 -1.442695, %v8124_v46 }
0x177f   :  { %14191 = vpow2.f32 %v8212_v36 }
0x1780   :  { %14193 = vpow2.f32 %v8213_v6 }
0x1789   :  { %v14192_v50 = vpop.eup %14191 }
0x178a   :  { %v8100_v23 = vadd.f32 1.0, %v14192_v50  ;;  %v14194_v5 = vpop.eup %14193 }
0x178b   :  { %v8128_v28 = vadd.f32 1.0, %v14194_v5 }
0x178c   :  { %14195 = vrcp.f32 %v8100_v23 }
0x178d   :  { %14197 = vrcp.f32 %v8128_v28 }
0x1796   :  { %v14196_v12 = vpop.eup %14195 }
0x1797   :  { %v14198_v41 = vpop.eup %14197 }
0x1798   :  { %v8156_v27 = vsub.f32 1.0, %v14198_v41 }
0x17b3   :  { %v8073_v1 = vpop.f32.mrb[58].mxu0 }
0x17b4   :  { %v8131_v30 = vadd.f32 %v8073_v1, %v16305_v63  ;;  %v8075_v35 = vpop.f32.mrb[59].mxu0 }
0x17b5   :  { %v8132_v62 = vadd.f32 %v8075_v35, %v16308_v49  ;;  %v8158_v49 = vmul.f32 %v14198_v41, %v17937_v10 }
0x17b7   :  { %v8135_v3 = vcombine.low %v8131_v30, %v8132_v62 }
0x17b9   :  { %v8142_v57 = vrot.slane %v8135_v3, %v16295_v21 }
0x17bb   :  { %v8149_v16 = vrot.slane %v8142_v57, %v16295_v21 }
0x17bd   :  { %v8151_v25 = vmul.f32 %v14196_v12, %v8149_v16 }
0x17bf   :  { %v8154_v32 = vadd.f32 %v8152_v9, %v8151_v25 }
0x17c1   :  { %14199 = vtanh.f32 %v8154_v32 }
0x17cb   :  { %v14200_v24 = vpop.eup %14199 }
0x17cc   :  { %v8157_v63 = vmul.f32 %v14200_v24, %v8156_v27 }
0x17ce   :  { %v8159_v48 = vadd.f32 %v8158_v49, %v8157_v63 }
0x17d0   :  { %8164 = vst.msk [vmem:[#allocation5] sm:$0x3] %vm8162_vm0, %v8159_v48 }
0x17d1   :  { %14214 = shalt.err (!%p14211_p4)
}
0x17d2   :  { %s14215_s11 = scalar_lea.hbm %s18005_s9, 32 }
0x17d3   :  { %p14216_p5 = scmp.ne.s32.totalorder %s18005_s9, %s14215_s11  ;;  %p14219_p6 = scmp.lt.u32.totalorder %s14215_s11, %s18005_s9 }
0x17d5   :  { %p14221_p7 = pnand %p14219_p6, %p14216_p5 }
0x17d7   :  { %14224 = shalt.err (!%p14221_p7)
}
0x17d8   :  { %8174 = dma.vmem_to_hbm [thread:$0]  %s8172_s3, 32, %s18005_s9, [#allocation6]  }
0x17d9   :  { %14225 = dma.done.wait [#allocation6], 32  }
0x17da   :  { %14226 = vsyncadd [#allocation6], 4294967264 }
0x17db   :  { %8178 = vsyncpa [#allocation6], 1 }

</bundles_post_ra>
